<compile_context>
chip_gen: v6e
topology: v6e:2x2x1
jax: 0.10.0
libtpu: 0.0.40
codegen_flags: <defaults>
</compile_context>

<pallas_src>
import functools

import jax
import jax.numpy as jnp
from jax import lax
from jax.experimental import pallas as pl
from jax.experimental.pallas import tpu as pltpu


def _round_up(x, m):
    return ((x + m - 1) // m) * m


def _apply_act(y, act):
    if act == "leaky_relu":
        return jnp.where(y >= 0.0, y, 0.2 * y)
    if act == "sigmoid":
        e = jnp.exp(-jnp.abs(y))  # numerically stable sigmoid
        return jnp.where(y >= 0.0, 1.0 / (1.0 + e), e / (1.0 + e))
    return y


# ----------------------------------------------------------------------------
# Pallas kernels
# ----------------------------------------------------------------------------
def _matmul_act_kernel(w_ref, col_ref, b_ref, o_ref, *, act):
    """O = W @ col + b on a lane-dense (Cout, TM) tile, fused activation."""
    y = jnp.dot(w_ref[...], col_ref[...], preferred_element_type=jnp.float32)
    y = y + b_ref[...]
    o_ref[...] = _apply_act(y, act).astype(o_ref.dtype)


def matmul_act(w, col, b, act="none", tile_m=512):
    """w: (Cout, K), col: (K, M), b: (Cout, 1) -> (Cout, M) float32."""
    Cout, K = w.shape
    K2, M = col.shape
    assert K == K2
    TM = min(tile_m, _round_up(M, 128))
    M_pad = _round_up(M, TM)
    if M_pad != M:
        col = jnp.pad(col, ((0, 0), (0, M_pad - M)))
    out = pl.pallas_call(
        functools.partial(_matmul_act_kernel, act=act),
        out_shape=jax.ShapeDtypeStruct((Cout, M_pad), jnp.float32),
        grid=(M_pad // TM,),
        in_specs=[
            pl.BlockSpec((Cout, K), lambda i: (0, 0)),
            pl.BlockSpec((K, TM), lambda i: (0, i)),
            pl.BlockSpec((Cout, 1), lambda i: (0, 0)),
        ],
        out_specs=pl.BlockSpec((Cout, TM), lambda i: (0, i)),
        compiler_params=pltpu.CompilerParams(
            dimension_semantics=("parallel",)),
    )(w.astype(jnp.bfloat16), col.astype(jnp.bfloat16), b.astype(jnp.float32))
    return out[:, :M] if M_pad != M else out


def _phase_matmul_kernel(w_ref, col_ref, b_ref, g_ref, bt_ref, o_ref, *,
                         fuse_bn, act):
    """Per phase: O[p] = W[p] @ col[p] + b; epilogue = fused BN+ReLU or act.

    BatchNorm (training mode, biased variance) is computed per output channel
    over (phase, M) in one pass (sum + sum of squares) while the whole result
    is still resident in VMEM."""
    nph = w_ref.shape[0]
    b = b_ref[...]
    ys = []
    for ph in range(nph):
        y = jnp.dot(w_ref[ph], col_ref[ph], preferred_element_type=jnp.float32)
        ys.append(y + b)
    if fuse_bn:
        m_total = float(nph * ys[0].shape[1])
        s1 = sum([jnp.sum(y, axis=1, keepdims=True) for y in ys])
        s2 = sum([jnp.sum(y * y, axis=1, keepdims=True) for y in ys])
        mean = s1 * (1.0 / m_total)
        var = jnp.maximum(s2 * (1.0 / m_total) - mean * mean, 0.0)
        scale = g_ref[...] * lax.rsqrt(var + 1e-5)
        shift = bt_ref[...] - mean * scale
        for ph in range(nph):
            o_ref[ph] = jnp.maximum(ys[ph] * scale + shift, 0.0).astype(o_ref.dtype)
    else:
        for ph in range(nph):
            o_ref[ph] = _apply_act(ys[ph], act).astype(o_ref.dtype)


def phase_matmul(w_ph, col_ph, b, gamma=None, beta=None, act="none"):
    """w_ph: (P, Cout, K), col_ph: (P, K, M) -> (P, Cout, M) float32."""
    P, Cout, K = w_ph.shape
    P2, K2, M = col_ph.shape
    assert P == P2 and K == K2
    fuse_bn = gamma is not None
    if gamma is None:
        gamma = jnp.ones((Cout,), jnp.float32)
        beta = jnp.zeros((Cout,), jnp.float32)
    # TODO(synk): for large batch sizes this single-block kernel should tile M
    #             (fused BN stats would then need a cross-tile reduction pass).
    return pl.pallas_call(
        functools.partial(_phase_matmul_kernel, fuse_bn=fuse_bn, act=act),
        out_shape=jax.ShapeDtypeStruct((P, Cout, M), jnp.float32),
        grid=(1,),
        in_specs=[
            pl.BlockSpec((P, Cout, K), lambda i: (0, 0, 0)),
            pl.BlockSpec((P, K, M), lambda i: (0, 0, 0)),
            pl.BlockSpec((Cout, 1), lambda i: (0, 0)),
            pl.BlockSpec((Cout, 1), lambda i: (0, 0)),
            pl.BlockSpec((Cout, 1), lambda i: (0, 0)),
        ],
        out_specs=pl.BlockSpec((P, Cout, M), lambda i: (0, 0, 0)),
    )(w_ph.astype(jnp.bfloat16), col_ph.astype(jnp.bfloat16),
      b.reshape(Cout, 1).astype(jnp.float32),
      gamma.reshape(Cout, 1).astype(jnp.float32),
      beta.reshape(Cout, 1).astype(jnp.float32))


# ----------------------------------------------------------------------------
# JAX glue (channel-major layouts, im2col, phase decomposition)
# ----------------------------------------------------------------------------
def _im2col_cm(x, kh, kw, stride, pad):
    """x: (C, N, H, W) -> col (C*kh*kw, N*OH*OW) (lane-dense last axis)."""
    C, N, H, W = x.shape
    xp = jnp.pad(x, ((0, 0), (0, 0), (pad, pad), (pad, pad)))
    OH = (H + 2 * pad - kh) // stride + 1
    OW = (W + 2 * pad - kw) // stride + 1
    taps = []
    for i in range(kh):
        for j in range(kw):
            taps.append(xp[:, :, i:i + stride * OH:stride, j:j + stride * OW:stride])
    col = jnp.stack(taps, axis=1).reshape(C * kh * kw, N * OH * OW)
    return col, OH, OW


def conv2d_cm(x, w, b, stride, pad, act="none"):
    """x: (Cin, N, H, W), w: (Cout, Cin, KH, KW), b: (Cout,) -> (Cout, N, OH, OW)."""
    Cout, Cin, KH, KW = w.shape
    _, N, _, _ = x.shape
    col, OH, OW = _im2col_cm(x, KH, KW, stride, pad)
    y = matmul_act(w.reshape(Cout, Cin * KH * KW), col, b.reshape(Cout, 1), act=act)
    return y.reshape(Cout, N, OH, OW)


# Kernel-tap index per (phase, offset) for ConvTranspose2d(k=4, stride=2, pad=1):
# output (2t+p, 2s+q) = sum over 2x2 taps of the padded input with these w taps.
_KIDX = ([3, 1], [2, 0])


def _convt_phase_cols(x):
    """x: (Cin, N, H, W) -> (4, Cin*4, N*H*W); no zero-upsampled columns."""
    C, N, H, W = x.shape
    xp = jnp.pad(x, ((0, 0), (0, 0), (1, 1), (1, 1)))
    cols = []
    for p in range(2):
        for q in range(2):
            taps = []
            for a in range(2):
                for c in range(2):
                    taps.append(xp[:, :, p + a:p + a + H, q + c:q + c + W])
            cols.append(jnp.stack(taps, axis=1).reshape(C * 4, N * H * W))
    return jnp.stack(cols, axis=0)


def _convt_phase_weights(w):
    """w: (Cin, Cout, 4, 4) -> (4, Cout, Cin*4) matching _convt_phase_cols."""
    Cin, Cout = w.shape[0], w.shape[1]
    w_ph = []
    for p in range(2):
        for q in range(2):
            taps = []
            for a in range(2):
                for c in range(2):
                    taps.append(w[:, :, _KIDX[p][a], _KIDX[q][c]])   # (Cin, Cout)
            sub = jnp.stack(taps, axis=-1)                           # (Cin, Cout, 4)
            w_ph.append(sub.transpose(1, 0, 2).reshape(Cout, Cin * 4))
    return jnp.stack(w_ph, axis=0)


def conv_transpose2d_s2(x, w, b, gamma=None, beta=None, act="none"):
    """ConvTranspose2d(k=4, stride=2, pad=1) on channel-major x via sub-pixel
    phase decomposition; optional fused BatchNorm+ReLU or activation."""
    Cin, N, H, W = x.shape
    Cout = w.shape[1]
    col_ph = _convt_phase_cols(x)                    # (4, Cin*4, N*H*W)
    w_ph = _convt_phase_weights(w)                   # (4, Cout, Cin*4)
    y = phase_matmul(w_ph, col_ph, b, gamma, beta, act=act)  # (4, Cout, N*H*W)
    y = y.reshape(2, 2, Cout, N, H, W).transpose(2, 3, 4, 0, 5, 1)
    return y.reshape(Cout, N, 2 * H, 2 * W)


def gen_first_layer(z_cm, w, b, gamma, beta):
    """ConvTranspose2d(100->Cout, k=4, s=1, p=0) on a 1x1 input + BN + ReLU.
    Output pixel (ky,kx) is just W[:, :, ky, kx]^T @ z -> 16 batched matmuls
    sharing z (no padding / im2col), BN fused over (pixel, batch)."""
    Cin, N = z_cm.shape
    Cout, KH, KW = w.shape[1], w.shape[2], w.shape[3]
    w_ph = w.transpose(2, 3, 1, 0).reshape(KH * KW, Cout, Cin)   # (16, Cout, Cin)
    col_ph = jnp.broadcast_to(z_cm[None], (KH * KW, Cin, N))      # (16, Cin, N)
    y = phase_matmul(w_ph, col_ph, b, gamma, beta)                # (16, Cout, N)
    return y.reshape(KH, KW, Cout, N).transpose(2, 3, 0, 1)       # (Cout, N, 4, 4)


# ----------------------------------------------------------------------------
# Model: parameters + forwards
# ----------------------------------------------------------------------------
def init_params(key):
    ks = jax.random.split(key, 8)

    def nrm(k, shape):
        return (0.02 * jax.random.normal(k, shape)).astype(jnp.float32)

    p = {}
    # Discriminator: Conv2d weights are (Cout, Cin, 4, 4)
    p["d_w1"], p["d_b1"] = nrm(ks[0], (8, 3, 4, 4)),   jnp.zeros((8,), jnp.float32)
    p["d_w2"], p["d_b2"] = nrm(ks[1], (16, 8, 4, 4)),  jnp.zeros((16,), jnp.float32)
    p["d_w3"], p["d_b3"] = nrm(ks[2], (32, 16, 4, 4)), jnp.zeros((32,), jnp.float32)
    p["d_w4"], p["d_b4"] = nrm(ks[3], (1, 32, 4, 4)),  jnp.zeros((1,), jnp.float32)
    # Generator: ConvTranspose2d weights are (Cin, Cout, 4, 4)
    p["g_w1"], p["g_b1"] = nrm(ks[4], (100, 64, 4, 4)), jnp.zeros((64,), jnp.float32)
    p["g_w2"], p["g_b2"] = nrm(ks[5], (64, 32, 4, 4)),  jnp.zeros((32,), jnp.float32)
    p["g_w3"], p["g_b3"] = nrm(ks[6], (32, 16, 4, 4)),  jnp.zeros((16,), jnp.float32)
    p["g_w4"], p["g_b4"] = nrm(ks[7], (16, 3, 4, 4)),   jnp.zeros((3,), jnp.float32)
    # BatchNorm2d affine params (default init: gamma=1, beta=0)
    for name, c in (("bn1", 64), ("bn2", 32), ("bn3", 16)):
        p[f"{name}_g"] = jnp.ones((c,), jnp.float32)
        p[f"{name}_b"] = jnp.zeros((c,), jnp.float32)
    return p


@jax.jit
def discriminator_forward(p, x_nchw):
    x = jnp.transpose(x_nchw, (1, 0, 2, 3))                           # (C, N, H, W)
    h = conv2d_cm(x, p["d_w1"], p["d_b1"], 2, 1, act="leaky_relu")    # (8, N, 16, 16)
    h = conv2d_cm(h, p["d_w2"], p["d_b2"], 2, 1, act="leaky_relu")    # (16, N, 8, 8)
    h = conv2d_cm(h, p["d_w3"], p["d_b3"], 2, 1, act="leaky_relu")    # (32, N, 4, 4)
    h = conv2d_cm(h, p["d_w4"], p["d_b4"], 1, 0, act="none")          # (1, N, 1, 1)
    return jnp.transpose(h, (1, 0, 2, 3))                             # NCHW


@jax.jit
def generator_forward(p, z_nchw):
    N = z_nchw.shape[0]
    z = z_nchw.reshape(N, -1).T                                       # (100, N)
    h = gen_first_layer(z, p["g_w1"], p["g_b1"], p["bn1_g"], p["bn1_b"])        # (64,N,4,4)
    h = conv_transpose2d_s2(h, p["g_w2"], p["g_b2"], p["bn2_g"], p["bn2_b"])    # (32,N,8,8)
    h = conv_transpose2d_s2(h, p["g_w3"], p["g_b3"], p["bn3_g"], p["bn3_b"])    # (16,N,16,16)
    h = conv_transpose2d_s2(h, p["g_w4"], p["g_b4"], act="sigmoid")             # (3,N,32,32)
    return jnp.transpose(h, (1, 0, 2, 3))                             # NCHW


def gan_arch_forward(p, inp):
    # TODO(synk): GANArch.forward in the reference module is literally `pass`
    #             (returns None); Generator/Discriminator above hold all compute.
    return None


# ----------------------------------------------------------------------------
# Pure-JAX float32 reference (for a loose cross-check only)
# ----------------------------------------------------------------------------
def _ref_conv2d(x, w, b, stride, pad):
    y = lax.conv_general_dilated(
        x, w, window_strides=(stride, stride), padding=[(pad, pad)] * 2,
        dimension_numbers=("NCHW", "OIHW", "NCHW"))
    return y + b.reshape(1, -1, 1, 1)


def _ref_conv_transpose2d(x, w, b, stride, pad):
    k = w.shape[2]
    w_flip = jnp.flip(w, (2, 3)).transpose(1, 0, 2, 3)
    y = lax.conv_general_dilated(
        x, w_flip, window_strides=(1, 1), padding=[(k - 1 - pad, k - 1 - pad)] * 2,
        lhs_dilation=(stride, stride), dimension_numbers=("NCHW", "OIHW", "NCHW"))
    return y + b.reshape(1, -1, 1, 1)


def _ref_bn_relu(x, g, bch):
    mean = x.mean(axis=(0, 2, 3), keepdims=True)
    var = ((x - mean) ** 2).mean(axis=(0, 2, 3), keepdims=True)
    y = (x - mean) * lax.rsqrt(var + 1e-5) * g.reshape(1, -1, 1, 1) + bch.reshape(1, -1, 1, 1)
    return jnp.maximum(y, 0.0)


def _ref_discriminator(p, x):
    h = x
    for wk, bk in (("d_w1", "d_b1"), ("d_w2", "d_b2"), ("d_w3", "d_b3")):
        h = _ref_conv2d(h, p[wk], p[bk], 2, 1)
        h = jnp.where(h >= 0, h, 0.2 * h)
    return _ref_conv2d(h, p["d_w4"], p["d_b4"], 1, 0)


def _ref_generator(p, z):
    h = _ref_conv_transpose2d(z, p["g_w1"], p["g_b1"], 1, 0)
    h = _ref_bn_relu(h, p["bn1_g"], p["bn1_b"])
    h = _ref_conv_transpose2d(h, p["g_w2"], p["g_b2"], 2, 1)
    h = _ref_bn_relu(h, p["bn2_g"], p["bn2_b"])
    h = _ref_conv_transpose2d(h, p["g_w3"], p["g_b3"], 2, 1)
    h = _ref_bn_relu(h, p["bn3_g"], p["bn3_b"])
    h = _ref_conv_transpose2d(h, p["g_w4"], p["g_b4"], 2, 1)
    return jax.nn.sigmoid(h)


# ----------------------------------------------------------------------------
if __name__ == "__main__":
    key = jax.random.PRNGKey(0)
    k_p, k_z, k_x = jax.random.split(key, 3)
    params = init_params(k_p)

    z = jax.random.normal(k_z, (2, 100, 1, 1), dtype=jnp.float32)
    real_img = jax.random.normal(k_x, (2, 3, 32, 32), dtype=jnp.float32)

    fake_img = generator_forward(params, z)
    d_real = discriminator_forward(params, real_img)
    d_fake = discriminator_forward(params, fake_img)
    none_out = gan_arch_forward(params, z)

    jax.block_until_ready((fake_img, d_real, d_fake))

    assert fake_img.shape == (2, 3, 32, 32)
    assert d_real.shape == (2, 1, 1, 1) and d_fake.shape == (2, 1, 1, 1)
    assert bool(jnp.all(jnp.isfinite(fake_img)))
    assert bool(jnp.all((fake_img >= 0.0) & (fake_img <= 1.0)))  # sigmoid range
    assert none_out is None

    # Loose cross-check vs. a pure-JAX f32 reference (Pallas path uses bf16 MXU
    # operands with f32 accumulation, so tolerances are deliberately wide).
    ref_fake = _ref_generator(params, z)
    ref_d = _ref_discriminator(params, real_img)
    gen_err = float(jnp.max(jnp.abs(fake_img - ref_fake)))
    dis_err = float(jnp.max(jnp.abs(d_real - ref_d)))
    dis_tol = 1e-3 + 0.1 * float(jnp.max(jnp.abs(ref_d)))
    assert gen_err < 5e-2, f"generator mismatch: {gen_err}"
    assert dis_err < dis_tol, f"discriminator mismatch: {dis_err} vs {dis_tol}"

    print("KERNEL_OK")
</pallas_src>

<mosaic_0001>
module attributes {stable_mosaic.version = 11 : i64} {
  func.func @_phase_matmul_kernel(%arg0: i32, %arg1: memref<16x64x100xbf16, #tpu.memory_space<vmem>>, %arg2: memref<16x100x2xbf16, #tpu.memory_space<vmem>>, %arg3: memref<64x1xf32, #tpu.memory_space<vmem>>, %arg4: memref<64x1xf32, #tpu.memory_space<vmem>>, %arg5: memref<64x1xf32, #tpu.memory_space<vmem>>, %arg6: memref<16x64x2xf32, #tpu.memory_space<vmem>>) attributes {dimension_semantics = [#tpu.dimension_semantics<arbitrary>], iteration_bounds = array<i64: 1>, scalar_prefetch = 0 : i64, scratch_operands = 0 : i64, tpu.core_type = #tpu.core_type<tc>, window_params = [{pipeline_mode = #tpu.pipeline_mode<synchronous>, transform_indices = @transform_0, window_bounds = array<i64: 16, 64, 100>}, {pipeline_mode = #tpu.pipeline_mode<synchronous>, transform_indices = @transform_1, window_bounds = array<i64: 16, 100, 2>}, {pipeline_mode = #tpu.pipeline_mode<synchronous>, transform_indices = @transform_2, window_bounds = array<i64: 64, 1>}, {pipeline_mode = #tpu.pipeline_mode<synchronous>, transform_indices = @transform_3, window_bounds = array<i64: 64, 1>}, {pipeline_mode = #tpu.pipeline_mode<synchronous>, transform_indices = @transform_4, window_bounds = array<i64: 64, 1>}, {pipeline_mode = #tpu.pipeline_mode<synchronous>, transform_indices = @transform_5, window_bounds = array<i64: 16, 64, 2>}]} {
    %c0 = arith.constant 0 : index
    %c0_0 = arith.constant 0 : index
    %0 = vector.load %arg3[%c0, %c0_0] : memref<64x1xf32, #tpu.memory_space<vmem>>, vector<64x1xf32>
    %c0_1 = arith.constant 0 : index
    %c0_2 = arith.constant 0 : index
    %c0_3 = arith.constant 0 : index
    %1 = vector.load %arg1[%c0_1, %c0_2, %c0_3] : memref<16x64x100xbf16, #tpu.memory_space<vmem>>, vector<1x64x100xbf16>
    %2 = vector.shape_cast %1 : vector<1x64x100xbf16> to vector<64x100xbf16>
    %c0_4 = arith.constant 0 : index
    %c0_5 = arith.constant 0 : index
    %c0_6 = arith.constant 0 : index
    %3 = vector.load %arg2[%c0_4, %c0_5, %c0_6] : memref<16x100x2xbf16, #tpu.memory_space<vmem>>, vector<1x100x2xbf16>
    %4 = vector.shape_cast %3 : vector<1x100x2xbf16> to vector<100x2xbf16>
    %cst = arith.constant dense<0.000000e+00> : vector<64x2xf32>
    %5 = tpu.matmul %2, %4, %cst {dimension_numbers = #tpu.dot_dimension_numbers<[1], [0], [0], [1], [0, 0, 1, 1], [], []>} : vector<64x100xbf16>, vector<100x2xbf16>, vector<64x2xf32> -> vector<64x2xf32>
    %6 = vector.broadcast %0 : vector<64x1xf32> to vector<64x2xf32>
    %7 = arith.addf %5, %6 : vector<64x2xf32>
    %c1 = arith.constant 1 : index
    %c0_7 = arith.constant 0 : index
    %c0_8 = arith.constant 0 : index
    %8 = vector.load %arg1[%c1, %c0_7, %c0_8] : memref<16x64x100xbf16, #tpu.memory_space<vmem>>, vector<1x64x100xbf16>
    %9 = vector.shape_cast %8 : vector<1x64x100xbf16> to vector<64x100xbf16>
    %c1_9 = arith.constant 1 : index
    %c0_10 = arith.constant 0 : index
    %c0_11 = arith.constant 0 : index
    %10 = vector.load %arg2[%c1_9, %c0_10, %c0_11] : memref<16x100x2xbf16, #tpu.memory_space<vmem>>, vector<1x100x2xbf16>
    %11 = vector.shape_cast %10 : vector<1x100x2xbf16> to vector<100x2xbf16>
    %cst_12 = arith.constant dense<0.000000e+00> : vector<64x2xf32>
    %12 = tpu.matmul %9, %11, %cst_12 {dimension_numbers = #tpu.dot_dimension_numbers<[1], [0], [0], [1], [0, 0, 1, 1], [], []>} : vector<64x100xbf16>, vector<100x2xbf16>, vector<64x2xf32> -> vector<64x2xf32>
    %13 = vector.broadcast %0 : vector<64x1xf32> to vector<64x2xf32>
    %14 = arith.addf %12, %13 : vector<64x2xf32>
    %c2 = arith.constant 2 : index
    %c0_13 = arith.constant 0 : index
    %c0_14 = arith.constant 0 : index
    %15 = vector.load %arg1[%c2, %c0_13, %c0_14] : memref<16x64x100xbf16, #tpu.memory_space<vmem>>, vector<1x64x100xbf16>
    %16 = vector.shape_cast %15 : vector<1x64x100xbf16> to vector<64x100xbf16>
    %c2_15 = arith.constant 2 : index
    %c0_16 = arith.constant 0 : index
    %c0_17 = arith.constant 0 : index
    %17 = vector.load %arg2[%c2_15, %c0_16, %c0_17] : memref<16x100x2xbf16, #tpu.memory_space<vmem>>, vector<1x100x2xbf16>
    %18 = vector.shape_cast %17 : vector<1x100x2xbf16> to vector<100x2xbf16>
    %cst_18 = arith.constant dense<0.000000e+00> : vector<64x2xf32>
    %19 = tpu.matmul %16, %18, %cst_18 {dimension_numbers = #tpu.dot_dimension_numbers<[1], [0], [0], [1], [0, 0, 1, 1], [], []>} : vector<64x100xbf16>, vector<100x2xbf16>, vector<64x2xf32> -> vector<64x2xf32>
    %20 = vector.broadcast %0 : vector<64x1xf32> to vector<64x2xf32>
    %21 = arith.addf %19, %20 : vector<64x2xf32>
    %c3 = arith.constant 3 : index
    %c0_19 = arith.constant 0 : index
    %c0_20 = arith.constant 0 : index
    %22 = vector.load %arg1[%c3, %c0_19, %c0_20] : memref<16x64x100xbf16, #tpu.memory_space<vmem>>, vector<1x64x100xbf16>
    %23 = vector.shape_cast %22 : vector<1x64x100xbf16> to vector<64x100xbf16>
    %c3_21 = arith.constant 3 : index
    %c0_22 = arith.constant 0 : index
    %c0_23 = arith.constant 0 : index
    %24 = vector.load %arg2[%c3_21, %c0_22, %c0_23] : memref<16x100x2xbf16, #tpu.memory_space<vmem>>, vector<1x100x2xbf16>
    %25 = vector.shape_cast %24 : vector<1x100x2xbf16> to vector<100x2xbf16>
    %cst_24 = arith.constant dense<0.000000e+00> : vector<64x2xf32>
    %26 = tpu.matmul %23, %25, %cst_24 {dimension_numbers = #tpu.dot_dimension_numbers<[1], [0], [0], [1], [0, 0, 1, 1], [], []>} : vector<64x100xbf16>, vector<100x2xbf16>, vector<64x2xf32> -> vector<64x2xf32>
    %27 = vector.broadcast %0 : vector<64x1xf32> to vector<64x2xf32>
    %28 = arith.addf %26, %27 : vector<64x2xf32>
    %c4 = arith.constant 4 : index
    %c0_25 = arith.constant 0 : index
    %c0_26 = arith.constant 0 : index
    %29 = vector.load %arg1[%c4, %c0_25, %c0_26] : memref<16x64x100xbf16, #tpu.memory_space<vmem>>, vector<1x64x100xbf16>
    %30 = vector.shape_cast %29 : vector<1x64x100xbf16> to vector<64x100xbf16>
    %c4_27 = arith.constant 4 : index
    %c0_28 = arith.constant 0 : index
    %c0_29 = arith.constant 0 : index
    %31 = vector.load %arg2[%c4_27, %c0_28, %c0_29] : memref<16x100x2xbf16, #tpu.memory_space<vmem>>, vector<1x100x2xbf16>
    %32 = vector.shape_cast %31 : vector<1x100x2xbf16> to vector<100x2xbf16>
    %cst_30 = arith.constant dense<0.000000e+00> : vector<64x2xf32>
    %33 = tpu.matmul %30, %32, %cst_30 {dimension_numbers = #tpu.dot_dimension_numbers<[1], [0], [0], [1], [0, 0, 1, 1], [], []>} : vector<64x100xbf16>, vector<100x2xbf16>, vector<64x2xf32> -> vector<64x2xf32>
    %34 = vector.broadcast %0 : vector<64x1xf32> to vector<64x2xf32>
    %35 = arith.addf %33, %34 : vector<64x2xf32>
    %c5 = arith.constant 5 : index
    %c0_31 = arith.constant 0 : index
    %c0_32 = arith.constant 0 : index
    %36 = vector.load %arg1[%c5, %c0_31, %c0_32] : memref<16x64x100xbf16, #tpu.memory_space<vmem>>, vector<1x64x100xbf16>
    %37 = vector.shape_cast %36 : vector<1x64x100xbf16> to vector<64x100xbf16>
    %c5_33 = arith.constant 5 : index
    %c0_34 = arith.constant 0 : index
    %c0_35 = arith.constant 0 : index
    %38 = vector.load %arg2[%c5_33, %c0_34, %c0_35] : memref<16x100x2xbf16, #tpu.memory_space<vmem>>, vector<1x100x2xbf16>
    %39 = vector.shape_cast %38 : vector<1x100x2xbf16> to vector<100x2xbf16>
    %cst_36 = arith.constant dense<0.000000e+00> : vector<64x2xf32>
    %40 = tpu.matmul %37, %39, %cst_36 {dimension_numbers = #tpu.dot_dimension_numbers<[1], [0], [0], [1], [0, 0, 1, 1], [], []>} : vector<64x100xbf16>, vector<100x2xbf16>, vector<64x2xf32> -> vector<64x2xf32>
    %41 = vector.broadcast %0 : vector<64x1xf32> to vector<64x2xf32>
    %42 = arith.addf %40, %41 : vector<64x2xf32>
    %c6 = arith.constant 6 : index
    %c0_37 = arith.constant 0 : index
    %c0_38 = arith.constant 0 : index
    %43 = vector.load %arg1[%c6, %c0_37, %c0_38] : memref<16x64x100xbf16, #tpu.memory_space<vmem>>, vector<1x64x100xbf16>
    %44 = vector.shape_cast %43 : vector<1x64x100xbf16> to vector<64x100xbf16>
    %c6_39 = arith.constant 6 : index
    %c0_40 = arith.constant 0 : index
    %c0_41 = arith.constant 0 : index
    %45 = vector.load %arg2[%c6_39, %c0_40, %c0_41] : memref<16x100x2xbf16, #tpu.memory_space<vmem>>, vector<1x100x2xbf16>
    %46 = vector.shape_cast %45 : vector<1x100x2xbf16> to vector<100x2xbf16>
    %cst_42 = arith.constant dense<0.000000e+00> : vector<64x2xf32>
    %47 = tpu.matmul %44, %46, %cst_42 {dimension_numbers = #tpu.dot_dimension_numbers<[1], [0], [0], [1], [0, 0, 1, 1], [], []>} : vector<64x100xbf16>, vector<100x2xbf16>, vector<64x2xf32> -> vector<64x2xf32>
    %48 = vector.broadcast %0 : vector<64x1xf32> to vector<64x2xf32>
    %49 = arith.addf %47, %48 : vector<64x2xf32>
    %c7 = arith.constant 7 : index
    %c0_43 = arith.constant 0 : index
    %c0_44 = arith.constant 0 : index
    %50 = vector.load %arg1[%c7, %c0_43, %c0_44] : memref<16x64x100xbf16, #tpu.memory_space<vmem>>, vector<1x64x100xbf16>
    %51 = vector.shape_cast %50 : vector<1x64x100xbf16> to vector<64x100xbf16>
    %c7_45 = arith.constant 7 : index
    %c0_46 = arith.constant 0 : index
    %c0_47 = arith.constant 0 : index
    %52 = vector.load %arg2[%c7_45, %c0_46, %c0_47] : memref<16x100x2xbf16, #tpu.memory_space<vmem>>, vector<1x100x2xbf16>
    %53 = vector.shape_cast %52 : vector<1x100x2xbf16> to vector<100x2xbf16>
    %cst_48 = arith.constant dense<0.000000e+00> : vector<64x2xf32>
    %54 = tpu.matmul %51, %53, %cst_48 {dimension_numbers = #tpu.dot_dimension_numbers<[1], [0], [0], [1], [0, 0, 1, 1], [], []>} : vector<64x100xbf16>, vector<100x2xbf16>, vector<64x2xf32> -> vector<64x2xf32>
    %55 = vector.broadcast %0 : vector<64x1xf32> to vector<64x2xf32>
    %56 = arith.addf %54, %55 : vector<64x2xf32>
    %c8 = arith.constant 8 : index
    %c0_49 = arith.constant 0 : index
    %c0_50 = arith.constant 0 : index
    %57 = vector.load %arg1[%c8, %c0_49, %c0_50] : memref<16x64x100xbf16, #tpu.memory_space<vmem>>, vector<1x64x100xbf16>
    %58 = vector.shape_cast %57 : vector<1x64x100xbf16> to vector<64x100xbf16>
    %c8_51 = arith.constant 8 : index
    %c0_52 = arith.constant 0 : index
    %c0_53 = arith.constant 0 : index
    %59 = vector.load %arg2[%c8_51, %c0_52, %c0_53] : memref<16x100x2xbf16, #tpu.memory_space<vmem>>, vector<1x100x2xbf16>
    %60 = vector.shape_cast %59 : vector<1x100x2xbf16> to vector<100x2xbf16>
    %cst_54 = arith.constant dense<0.000000e+00> : vector<64x2xf32>
    %61 = tpu.matmul %58, %60, %cst_54 {dimension_numbers = #tpu.dot_dimension_numbers<[1], [0], [0], [1], [0, 0, 1, 1], [], []>} : vector<64x100xbf16>, vector<100x2xbf16>, vector<64x2xf32> -> vector<64x2xf32>
    %62 = vector.broadcast %0 : vector<64x1xf32> to vector<64x2xf32>
    %63 = arith.addf %61, %62 : vector<64x2xf32>
    %c9 = arith.constant 9 : index
    %c0_55 = arith.constant 0 : index
    %c0_56 = arith.constant 0 : index
    %64 = vector.load %arg1[%c9, %c0_55, %c0_56] : memref<16x64x100xbf16, #tpu.memory_space<vmem>>, vector<1x64x100xbf16>
    %65 = vector.shape_cast %64 : vector<1x64x100xbf16> to vector<64x100xbf16>
    %c9_57 = arith.constant 9 : index
    %c0_58 = arith.constant 0 : index
    %c0_59 = arith.constant 0 : index
    %66 = vector.load %arg2[%c9_57, %c0_58, %c0_59] : memref<16x100x2xbf16, #tpu.memory_space<vmem>>, vector<1x100x2xbf16>
    %67 = vector.shape_cast %66 : vector<1x100x2xbf16> to vector<100x2xbf16>
    %cst_60 = arith.constant dense<0.000000e+00> : vector<64x2xf32>
    %68 = tpu.matmul %65, %67, %cst_60 {dimension_numbers = #tpu.dot_dimension_numbers<[1], [0], [0], [1], [0, 0, 1, 1], [], []>} : vector<64x100xbf16>, vector<100x2xbf16>, vector<64x2xf32> -> vector<64x2xf32>
    %69 = vector.broadcast %0 : vector<64x1xf32> to vector<64x2xf32>
    %70 = arith.addf %68, %69 : vector<64x2xf32>
    %c10 = arith.constant 10 : index
    %c0_61 = arith.constant 0 : index
    %c0_62 = arith.constant 0 : index
    %71 = vector.load %arg1[%c10, %c0_61, %c0_62] : memref<16x64x100xbf16, #tpu.memory_space<vmem>>, vector<1x64x100xbf16>
    %72 = vector.shape_cast %71 : vector<1x64x100xbf16> to vector<64x100xbf16>
    %c10_63 = arith.constant 10 : index
    %c0_64 = arith.constant 0 : index
    %c0_65 = arith.constant 0 : index
    %73 = vector.load %arg2[%c10_63, %c0_64, %c0_65] : memref<16x100x2xbf16, #tpu.memory_space<vmem>>, vector<1x100x2xbf16>
    %74 = vector.shape_cast %73 : vector<1x100x2xbf16> to vector<100x2xbf16>
    %cst_66 = arith.constant dense<0.000000e+00> : vector<64x2xf32>
    %75 = tpu.matmul %72, %74, %cst_66 {dimension_numbers = #tpu.dot_dimension_numbers<[1], [0], [0], [1], [0, 0, 1, 1], [], []>} : vector<64x100xbf16>, vector<100x2xbf16>, vector<64x2xf32> -> vector<64x2xf32>
    %76 = vector.broadcast %0 : vector<64x1xf32> to vector<64x2xf32>
    %77 = arith.addf %75, %76 : vector<64x2xf32>
    %c11 = arith.constant 11 : index
    %c0_67 = arith.constant 0 : index
    %c0_68 = arith.constant 0 : index
    %78 = vector.load %arg1[%c11, %c0_67, %c0_68] : memref<16x64x100xbf16, #tpu.memory_space<vmem>>, vector<1x64x100xbf16>
    %79 = vector.shape_cast %78 : vector<1x64x100xbf16> to vector<64x100xbf16>
    %c11_69 = arith.constant 11 : index
    %c0_70 = arith.constant 0 : index
    %c0_71 = arith.constant 0 : index
    %80 = vector.load %arg2[%c11_69, %c0_70, %c0_71] : memref<16x100x2xbf16, #tpu.memory_space<vmem>>, vector<1x100x2xbf16>
    %81 = vector.shape_cast %80 : vector<1x100x2xbf16> to vector<100x2xbf16>
    %cst_72 = arith.constant dense<0.000000e+00> : vector<64x2xf32>
    %82 = tpu.matmul %79, %81, %cst_72 {dimension_numbers = #tpu.dot_dimension_numbers<[1], [0], [0], [1], [0, 0, 1, 1], [], []>} : vector<64x100xbf16>, vector<100x2xbf16>, vector<64x2xf32> -> vector<64x2xf32>
    %83 = vector.broadcast %0 : vector<64x1xf32> to vector<64x2xf32>
    %84 = arith.addf %82, %83 : vector<64x2xf32>
    %c12 = arith.constant 12 : index
    %c0_73 = arith.constant 0 : index
    %c0_74 = arith.constant 0 : index
    %85 = vector.load %arg1[%c12, %c0_73, %c0_74] : memref<16x64x100xbf16, #tpu.memory_space<vmem>>, vector<1x64x100xbf16>
    %86 = vector.shape_cast %85 : vector<1x64x100xbf16> to vector<64x100xbf16>
    %c12_75 = arith.constant 12 : index
    %c0_76 = arith.constant 0 : index
    %c0_77 = arith.constant 0 : index
    %87 = vector.load %arg2[%c12_75, %c0_76, %c0_77] : memref<16x100x2xbf16, #tpu.memory_space<vmem>>, vector<1x100x2xbf16>
    %88 = vector.shape_cast %87 : vector<1x100x2xbf16> to vector<100x2xbf16>
    %cst_78 = arith.constant dense<0.000000e+00> : vector<64x2xf32>
    %89 = tpu.matmul %86, %88, %cst_78 {dimension_numbers = #tpu.dot_dimension_numbers<[1], [0], [0], [1], [0, 0, 1, 1], [], []>} : vector<64x100xbf16>, vector<100x2xbf16>, vector<64x2xf32> -> vector<64x2xf32>
    %90 = vector.broadcast %0 : vector<64x1xf32> to vector<64x2xf32>
    %91 = arith.addf %89, %90 : vector<64x2xf32>
    %c13 = arith.constant 13 : index
    %c0_79 = arith.constant 0 : index
    %c0_80 = arith.constant 0 : index
    %92 = vector.load %arg1[%c13, %c0_79, %c0_80] : memref<16x64x100xbf16, #tpu.memory_space<vmem>>, vector<1x64x100xbf16>
    %93 = vector.shape_cast %92 : vector<1x64x100xbf16> to vector<64x100xbf16>
    %c13_81 = arith.constant 13 : index
    %c0_82 = arith.constant 0 : index
    %c0_83 = arith.constant 0 : index
    %94 = vector.load %arg2[%c13_81, %c0_82, %c0_83] : memref<16x100x2xbf16, #tpu.memory_space<vmem>>, vector<1x100x2xbf16>
    %95 = vector.shape_cast %94 : vector<1x100x2xbf16> to vector<100x2xbf16>
    %cst_84 = arith.constant dense<0.000000e+00> : vector<64x2xf32>
    %96 = tpu.matmul %93, %95, %cst_84 {dimension_numbers = #tpu.dot_dimension_numbers<[1], [0], [0], [1], [0, 0, 1, 1], [], []>} : vector<64x100xbf16>, vector<100x2xbf16>, vector<64x2xf32> -> vector<64x2xf32>
    %97 = vector.broadcast %0 : vector<64x1xf32> to vector<64x2xf32>
    %98 = arith.addf %96, %97 : vector<64x2xf32>
    %c14 = arith.constant 14 : index
    %c0_85 = arith.constant 0 : index
    %c0_86 = arith.constant 0 : index
    %99 = vector.load %arg1[%c14, %c0_85, %c0_86] : memref<16x64x100xbf16, #tpu.memory_space<vmem>>, vector<1x64x100xbf16>
    %100 = vector.shape_cast %99 : vector<1x64x100xbf16> to vector<64x100xbf16>
    %c14_87 = arith.constant 14 : index
    %c0_88 = arith.constant 0 : index
    %c0_89 = arith.constant 0 : index
    %101 = vector.load %arg2[%c14_87, %c0_88, %c0_89] : memref<16x100x2xbf16, #tpu.memory_space<vmem>>, vector<1x100x2xbf16>
    %102 = vector.shape_cast %101 : vector<1x100x2xbf16> to vector<100x2xbf16>
    %cst_90 = arith.constant dense<0.000000e+00> : vector<64x2xf32>
    %103 = tpu.matmul %100, %102, %cst_90 {dimension_numbers = #tpu.dot_dimension_numbers<[1], [0], [0], [1], [0, 0, 1, 1], [], []>} : vector<64x100xbf16>, vector<100x2xbf16>, vector<64x2xf32> -> vector<64x2xf32>
    %104 = vector.broadcast %0 : vector<64x1xf32> to vector<64x2xf32>
    %105 = arith.addf %103, %104 : vector<64x2xf32>
    %c15 = arith.constant 15 : index
    %c0_91 = arith.constant 0 : index
    %c0_92 = arith.constant 0 : index
    %106 = vector.load %arg1[%c15, %c0_91, %c0_92] : memref<16x64x100xbf16, #tpu.memory_space<vmem>>, vector<1x64x100xbf16>
    %107 = vector.shape_cast %106 : vector<1x64x100xbf16> to vector<64x100xbf16>
    %c15_93 = arith.constant 15 : index
    %c0_94 = arith.constant 0 : index
    %c0_95 = arith.constant 0 : index
    %108 = vector.load %arg2[%c15_93, %c0_94, %c0_95] : memref<16x100x2xbf16, #tpu.memory_space<vmem>>, vector<1x100x2xbf16>
    %109 = vector.shape_cast %108 : vector<1x100x2xbf16> to vector<100x2xbf16>
    %cst_96 = arith.constant dense<0.000000e+00> : vector<64x2xf32>
    %110 = tpu.matmul %107, %109, %cst_96 {dimension_numbers = #tpu.dot_dimension_numbers<[1], [0], [0], [1], [0, 0, 1, 1], [], []>} : vector<64x100xbf16>, vector<100x2xbf16>, vector<64x2xf32> -> vector<64x2xf32>
    %111 = vector.broadcast %0 : vector<64x1xf32> to vector<64x2xf32>
    %112 = arith.addf %110, %111 : vector<64x2xf32>
    %cst_97 = arith.constant dense<0.000000e+00> : vector<64xf32>
    %113 = vector.multi_reduction <add>, %7, %cst_97 [1] : vector<64x2xf32> to vector<64xf32>
    %114 = vector.shape_cast %113 : vector<64xf32> to vector<64x1xf32>
    %cst_98 = arith.constant dense<0.000000e+00> : vector<64xf32>
    %115 = vector.multi_reduction <add>, %14, %cst_98 [1] : vector<64x2xf32> to vector<64xf32>
    %116 = vector.shape_cast %115 : vector<64xf32> to vector<64x1xf32>
    %cst_99 = arith.constant dense<0.000000e+00> : vector<64xf32>
    %117 = vector.multi_reduction <add>, %21, %cst_99 [1] : vector<64x2xf32> to vector<64xf32>
    %118 = vector.shape_cast %117 : vector<64xf32> to vector<64x1xf32>
    %cst_100 = arith.constant dense<0.000000e+00> : vector<64xf32>
    %119 = vector.multi_reduction <add>, %28, %cst_100 [1] : vector<64x2xf32> to vector<64xf32>
    %120 = vector.shape_cast %119 : vector<64xf32> to vector<64x1xf32>
    %cst_101 = arith.constant dense<0.000000e+00> : vector<64xf32>
    %121 = vector.multi_reduction <add>, %35, %cst_101 [1] : vector<64x2xf32> to vector<64xf32>
    %122 = vector.shape_cast %121 : vector<64xf32> to vector<64x1xf32>
    %cst_102 = arith.constant dense<0.000000e+00> : vector<64xf32>
    %123 = vector.multi_reduction <add>, %42, %cst_102 [1] : vector<64x2xf32> to vector<64xf32>
    %124 = vector.shape_cast %123 : vector<64xf32> to vector<64x1xf32>
    %cst_103 = arith.constant dense<0.000000e+00> : vector<64xf32>
    %125 = vector.multi_reduction <add>, %49, %cst_103 [1] : vector<64x2xf32> to vector<64xf32>
    %126 = vector.shape_cast %125 : vector<64xf32> to vector<64x1xf32>
    %cst_104 = arith.constant dense<0.000000e+00> : vector<64xf32>
    %127 = vector.multi_reduction <add>, %56, %cst_104 [1] : vector<64x2xf32> to vector<64xf32>
    %128 = vector.shape_cast %127 : vector<64xf32> to vector<64x1xf32>
    %cst_105 = arith.constant dense<0.000000e+00> : vector<64xf32>
    %129 = vector.multi_reduction <add>, %63, %cst_105 [1] : vector<64x2xf32> to vector<64xf32>
    %130 = vector.shape_cast %129 : vector<64xf32> to vector<64x1xf32>
    %cst_106 = arith.constant dense<0.000000e+00> : vector<64xf32>
    %131 = vector.multi_reduction <add>, %70, %cst_106 [1] : vector<64x2xf32> to vector<64xf32>
    %132 = vector.shape_cast %131 : vector<64xf32> to vector<64x1xf32>
    %cst_107 = arith.constant dense<0.000000e+00> : vector<64xf32>
    %133 = vector.multi_reduction <add>, %77, %cst_107 [1] : vector<64x2xf32> to vector<64xf32>
    %134 = vector.shape_cast %133 : vector<64xf32> to vector<64x1xf32>
    %cst_108 = arith.constant dense<0.000000e+00> : vector<64xf32>
    %135 = vector.multi_reduction <add>, %84, %cst_108 [1] : vector<64x2xf32> to vector<64xf32>
    %136 = vector.shape_cast %135 : vector<64xf32> to vector<64x1xf32>
    %cst_109 = arith.constant dense<0.000000e+00> : vector<64xf32>
    %137 = vector.multi_reduction <add>, %91, %cst_109 [1] : vector<64x2xf32> to vector<64xf32>
    %138 = vector.shape_cast %137 : vector<64xf32> to vector<64x1xf32>
    %cst_110 = arith.constant dense<0.000000e+00> : vector<64xf32>
    %139 = vector.multi_reduction <add>, %98, %cst_110 [1] : vector<64x2xf32> to vector<64xf32>
    %140 = vector.shape_cast %139 : vector<64xf32> to vector<64x1xf32>
    %cst_111 = arith.constant dense<0.000000e+00> : vector<64xf32>
    %141 = vector.multi_reduction <add>, %105, %cst_111 [1] : vector<64x2xf32> to vector<64xf32>
    %142 = vector.shape_cast %141 : vector<64xf32> to vector<64x1xf32>
    %cst_112 = arith.constant dense<0.000000e+00> : vector<64xf32>
    %143 = vector.multi_reduction <add>, %112, %cst_112 [1] : vector<64x2xf32> to vector<64xf32>
    %144 = vector.shape_cast %143 : vector<64xf32> to vector<64x1xf32>
    %cst_113 = arith.constant 0.000000e+00 : f32
    %145 = vector.broadcast %cst_113 : f32 to vector<64x1xf32>
    %146 = arith.addf %145, %114 : vector<64x1xf32>
    %147 = arith.addf %146, %116 : vector<64x1xf32>
    %148 = arith.addf %147, %118 : vector<64x1xf32>
    %149 = arith.addf %148, %120 : vector<64x1xf32>
    %150 = arith.addf %149, %122 : vector<64x1xf32>
    %151 = arith.addf %150, %124 : vector<64x1xf32>
    %152 = arith.addf %151, %126 : vector<64x1xf32>
    %153 = arith.addf %152, %128 : vector<64x1xf32>
    %154 = arith.addf %153, %130 : vector<64x1xf32>
    %155 = arith.addf %154, %132 : vector<64x1xf32>
    %156 = arith.addf %155, %134 : vector<64x1xf32>
    %157 = arith.addf %156, %136 : vector<64x1xf32>
    %158 = arith.addf %157, %138 : vector<64x1xf32>
    %159 = arith.addf %158, %140 : vector<64x1xf32>
    %160 = arith.addf %159, %142 : vector<64x1xf32>
    %161 = arith.addf %160, %144 : vector<64x1xf32>
    %162 = arith.mulf %7, %7 : vector<64x2xf32>
    %cst_114 = arith.constant dense<0.000000e+00> : vector<64xf32>
    %163 = vector.multi_reduction <add>, %162, %cst_114 [1] : vector<64x2xf32> to vector<64xf32>
    %164 = vector.shape_cast %163 : vector<64xf32> to vector<64x1xf32>
    %165 = arith.mulf %14, %14 : vector<64x2xf32>
    %cst_115 = arith.constant dense<0.000000e+00> : vector<64xf32>
    %166 = vector.multi_reduction <add>, %165, %cst_115 [1] : vector<64x2xf32> to vector<64xf32>
    %167 = vector.shape_cast %166 : vector<64xf32> to vector<64x1xf32>
    %168 = arith.mulf %21, %21 : vector<64x2xf32>
    %cst_116 = arith.constant dense<0.000000e+00> : vector<64xf32>
    %169 = vector.multi_reduction <add>, %168, %cst_116 [1] : vector<64x2xf32> to vector<64xf32>
    %170 = vector.shape_cast %169 : vector<64xf32> to vector<64x1xf32>
    %171 = arith.mulf %28, %28 : vector<64x2xf32>
    %cst_117 = arith.constant dense<0.000000e+00> : vector<64xf32>
    %172 = vector.multi_reduction <add>, %171, %cst_117 [1] : vector<64x2xf32> to vector<64xf32>
    %173 = vector.shape_cast %172 : vector<64xf32> to vector<64x1xf32>
    %174 = arith.mulf %35, %35 : vector<64x2xf32>
    %cst_118 = arith.constant dense<0.000000e+00> : vector<64xf32>
    %175 = vector.multi_reduction <add>, %174, %cst_118 [1] : vector<64x2xf32> to vector<64xf32>
    %176 = vector.shape_cast %175 : vector<64xf32> to vector<64x1xf32>
    %177 = arith.mulf %42, %42 : vector<64x2xf32>
    %cst_119 = arith.constant dense<0.000000e+00> : vector<64xf32>
    %178 = vector.multi_reduction <add>, %177, %cst_119 [1] : vector<64x2xf32> to vector<64xf32>
    %179 = vector.shape_cast %178 : vector<64xf32> to vector<64x1xf32>
    %180 = arith.mulf %49, %49 : vector<64x2xf32>
    %cst_120 = arith.constant dense<0.000000e+00> : vector<64xf32>
    %181 = vector.multi_reduction <add>, %180, %cst_120 [1] : vector<64x2xf32> to vector<64xf32>
    %182 = vector.shape_cast %181 : vector<64xf32> to vector<64x1xf32>
    %183 = arith.mulf %56, %56 : vector<64x2xf32>
    %cst_121 = arith.constant dense<0.000000e+00> : vector<64xf32>
    %184 = vector.multi_reduction <add>, %183, %cst_121 [1] : vector<64x2xf32> to vector<64xf32>
    %185 = vector.shape_cast %184 : vector<64xf32> to vector<64x1xf32>
    %186 = arith.mulf %63, %63 : vector<64x2xf32>
    %cst_122 = arith.constant dense<0.000000e+00> : vector<64xf32>
    %187 = vector.multi_reduction <add>, %186, %cst_122 [1] : vector<64x2xf32> to vector<64xf32>
    %188 = vector.shape_cast %187 : vector<64xf32> to vector<64x1xf32>
    %189 = arith.mulf %70, %70 : vector<64x2xf32>
    %cst_123 = arith.constant dense<0.000000e+00> : vector<64xf32>
    %190 = vector.multi_reduction <add>, %189, %cst_123 [1] : vector<64x2xf32> to vector<64xf32>
    %191 = vector.shape_cast %190 : vector<64xf32> to vector<64x1xf32>
    %192 = arith.mulf %77, %77 : vector<64x2xf32>
    %cst_124 = arith.constant dense<0.000000e+00> : vector<64xf32>
    %193 = vector.multi_reduction <add>, %192, %cst_124 [1] : vector<64x2xf32> to vector<64xf32>
    %194 = vector.shape_cast %193 : vector<64xf32> to vector<64x1xf32>
    %195 = arith.mulf %84, %84 : vector<64x2xf32>
    %cst_125 = arith.constant dense<0.000000e+00> : vector<64xf32>
    %196 = vector.multi_reduction <add>, %195, %cst_125 [1] : vector<64x2xf32> to vector<64xf32>
    %197 = vector.shape_cast %196 : vector<64xf32> to vector<64x1xf32>
    %198 = arith.mulf %91, %91 : vector<64x2xf32>
    %cst_126 = arith.constant dense<0.000000e+00> : vector<64xf32>
    %199 = vector.multi_reduction <add>, %198, %cst_126 [1] : vector<64x2xf32> to vector<64xf32>
    %200 = vector.shape_cast %199 : vector<64xf32> to vector<64x1xf32>
    %201 = arith.mulf %98, %98 : vector<64x2xf32>
    %cst_127 = arith.constant dense<0.000000e+00> : vector<64xf32>
    %202 = vector.multi_reduction <add>, %201, %cst_127 [1] : vector<64x2xf32> to vector<64xf32>
    %203 = vector.shape_cast %202 : vector<64xf32> to vector<64x1xf32>
    %204 = arith.mulf %105, %105 : vector<64x2xf32>
    %cst_128 = arith.constant dense<0.000000e+00> : vector<64xf32>
    %205 = vector.multi_reduction <add>, %204, %cst_128 [1] : vector<64x2xf32> to vector<64xf32>
    %206 = vector.shape_cast %205 : vector<64xf32> to vector<64x1xf32>
    %207 = arith.mulf %112, %112 : vector<64x2xf32>
    %cst_129 = arith.constant dense<0.000000e+00> : vector<64xf32>
    %208 = vector.multi_reduction <add>, %207, %cst_129 [1] : vector<64x2xf32> to vector<64xf32>
    %209 = vector.shape_cast %208 : vector<64xf32> to vector<64x1xf32>
    %cst_130 = arith.constant 0.000000e+00 : f32
    %210 = vector.broadcast %cst_130 : f32 to vector<64x1xf32>
    %211 = arith.addf %210, %164 : vector<64x1xf32>
    %212 = arith.addf %211, %167 : vector<64x1xf32>
    %213 = arith.addf %212, %170 : vector<64x1xf32>
    %214 = arith.addf %213, %173 : vector<64x1xf32>
    %215 = arith.addf %214, %176 : vector<64x1xf32>
    %216 = arith.addf %215, %179 : vector<64x1xf32>
    %217 = arith.addf %216, %182 : vector<64x1xf32>
    %218 = arith.addf %217, %185 : vector<64x1xf32>
    %219 = arith.addf %218, %188 : vector<64x1xf32>
    %220 = arith.addf %219, %191 : vector<64x1xf32>
    %221 = arith.addf %220, %194 : vector<64x1xf32>
    %222 = arith.addf %221, %197 : vector<64x1xf32>
    %223 = arith.addf %222, %200 : vector<64x1xf32>
    %224 = arith.addf %223, %203 : vector<64x1xf32>
    %225 = arith.addf %224, %206 : vector<64x1xf32>
    %226 = arith.addf %225, %209 : vector<64x1xf32>
    %cst_131 = arith.constant 3.125000e-02 : f32
    %227 = vector.broadcast %cst_131 : f32 to vector<64x1xf32>
    %228 = arith.mulf %161, %227 : vector<64x1xf32>
    %cst_132 = arith.constant 3.125000e-02 : f32
    %229 = vector.broadcast %cst_132 : f32 to vector<64x1xf32>
    %230 = arith.mulf %226, %229 : vector<64x1xf32>
    %231 = arith.mulf %228, %228 : vector<64x1xf32>
    %232 = arith.subf %230, %231 : vector<64x1xf32>
    %cst_133 = arith.constant 0.000000e+00 : f32
    %233 = vector.broadcast %cst_133 : f32 to vector<64x1xf32>
    %234 = arith.maximumf %232, %233 : vector<64x1xf32>
    %c0_134 = arith.constant 0 : index
    %c0_135 = arith.constant 0 : index
    %235 = vector.load %arg4[%c0_134, %c0_135] : memref<64x1xf32, #tpu.memory_space<vmem>>, vector<64x1xf32>
    %cst_136 = arith.constant 9.99999974E-6 : f32
    %236 = vector.broadcast %cst_136 : f32 to vector<64x1xf32>
    %237 = arith.addf %234, %236 : vector<64x1xf32>
    %238 = math.rsqrt %237 : vector<64x1xf32>
    %239 = arith.mulf %235, %238 : vector<64x1xf32>
    %c0_137 = arith.constant 0 : index
    %c0_138 = arith.constant 0 : index
    %240 = vector.load %arg5[%c0_137, %c0_138] : memref<64x1xf32, #tpu.memory_space<vmem>>, vector<64x1xf32>
    %241 = arith.mulf %228, %239 : vector<64x1xf32>
    %242 = arith.subf %240, %241 : vector<64x1xf32>
    %243 = vector.broadcast %239 : vector<64x1xf32> to vector<64x2xf32>
    %244 = arith.mulf %7, %243 : vector<64x2xf32>
    %245 = vector.broadcast %242 : vector<64x1xf32> to vector<64x2xf32>
    %246 = arith.addf %244, %245 : vector<64x2xf32>
    %cst_139 = arith.constant 0.000000e+00 : f32
    %247 = vector.broadcast %cst_139 : f32 to vector<64x2xf32>
    %248 = arith.maximumf %246, %247 : vector<64x2xf32>
    %c0_140 = arith.constant 0 : index
    %c0_141 = arith.constant 0 : index
    %c0_142 = arith.constant 0 : index
    %249 = vector.load %arg6[%c0_140, %c0_141, %c0_142] : memref<16x64x2xf32, #tpu.memory_space<vmem>>, vector<1x64x2xf32>
    %250 = vector.shape_cast %249 : vector<1x64x2xf32> to vector<64x2xf32>
    %251 = vector.shape_cast %248 : vector<64x2xf32> to vector<1x64x2xf32>
    tpu.vector_store %arg6[%c0_140, %c0_141, %c0_142], %251 {strides = array<i32>} : memref<16x64x2xf32, #tpu.memory_space<vmem>>, vector<1x64x2xf32>,
    %252 = vector.broadcast %239 : vector<64x1xf32> to vector<64x2xf32>
    %253 = arith.mulf %14, %252 : vector<64x2xf32>
    %254 = vector.broadcast %242 : vector<64x1xf32> to vector<64x2xf32>
    %255 = arith.addf %253, %254 : vector<64x2xf32>
    %cst_143 = arith.constant 0.000000e+00 : f32
    %256 = vector.broadcast %cst_143 : f32 to vector<64x2xf32>
    %257 = arith.maximumf %255, %256 : vector<64x2xf32>
    %c1_144 = arith.constant 1 : index
    %c0_145 = arith.constant 0 : index
    %c0_146 = arith.constant 0 : index
    %258 = vector.load %arg6[%c1_144, %c0_145, %c0_146] : memref<16x64x2xf32, #tpu.memory_space<vmem>>, vector<1x64x2xf32>
    %259 = vector.shape_cast %258 : vector<1x64x2xf32> to vector<64x2xf32>
    %260 = vector.shape_cast %257 : vector<64x2xf32> to vector<1x64x2xf32>
    tpu.vector_store %arg6[%c1_144, %c0_145, %c0_146], %260 {strides = array<i32>} : memref<16x64x2xf32, #tpu.memory_space<vmem>>, vector<1x64x2xf32>,
    %261 = vector.broadcast %239 : vector<64x1xf32> to vector<64x2xf32>
    %262 = arith.mulf %21, %261 : vector<64x2xf32>
    %263 = vector.broadcast %242 : vector<64x1xf32> to vector<64x2xf32>
    %264 = arith.addf %262, %263 : vector<64x2xf32>
    %cst_147 = arith.constant 0.000000e+00 : f32
    %265 = vector.broadcast %cst_147 : f32 to vector<64x2xf32>
    %266 = arith.maximumf %264, %265 : vector<64x2xf32>
    %c2_148 = arith.constant 2 : index
    %c0_149 = arith.constant 0 : index
    %c0_150 = arith.constant 0 : index
    %267 = vector.load %arg6[%c2_148, %c0_149, %c0_150] : memref<16x64x2xf32, #tpu.memory_space<vmem>>, vector<1x64x2xf32>
    %268 = vector.shape_cast %267 : vector<1x64x2xf32> to vector<64x2xf32>
    %269 = vector.shape_cast %266 : vector<64x2xf32> to vector<1x64x2xf32>
    tpu.vector_store %arg6[%c2_148, %c0_149, %c0_150], %269 {strides = array<i32>} : memref<16x64x2xf32, #tpu.memory_space<vmem>>, vector<1x64x2xf32>,
    %270 = vector.broadcast %239 : vector<64x1xf32> to vector<64x2xf32>
    %271 = arith.mulf %28, %270 : vector<64x2xf32>
    %272 = vector.broadcast %242 : vector<64x1xf32> to vector<64x2xf32>
    %273 = arith.addf %271, %272 : vector<64x2xf32>
    %cst_151 = arith.constant 0.000000e+00 : f32
    %274 = vector.broadcast %cst_151 : f32 to vector<64x2xf32>
    %275 = arith.maximumf %273, %274 : vector<64x2xf32>
    %c3_152 = arith.constant 3 : index
    %c0_153 = arith.constant 0 : index
    %c0_154 = arith.constant 0 : index
    %276 = vector.load %arg6[%c3_152, %c0_153, %c0_154] : memref<16x64x2xf32, #tpu.memory_space<vmem>>, vector<1x64x2xf32>
    %277 = vector.shape_cast %276 : vector<1x64x2xf32> to vector<64x2xf32>
    %278 = vector.shape_cast %275 : vector<64x2xf32> to vector<1x64x2xf32>
    tpu.vector_store %arg6[%c3_152, %c0_153, %c0_154], %278 {strides = array<i32>} : memref<16x64x2xf32, #tpu.memory_space<vmem>>, vector<1x64x2xf32>,
    %279 = vector.broadcast %239 : vector<64x1xf32> to vector<64x2xf32>
    %280 = arith.mulf %35, %279 : vector<64x2xf32>
    %281 = vector.broadcast %242 : vector<64x1xf32> to vector<64x2xf32>
    %282 = arith.addf %280, %281 : vector<64x2xf32>
    %cst_155 = arith.constant 0.000000e+00 : f32
    %283 = vector.broadcast %cst_155 : f32 to vector<64x2xf32>
    %284 = arith.maximumf %282, %283 : vector<64x2xf32>
    %c4_156 = arith.constant 4 : index
    %c0_157 = arith.constant 0 : index
    %c0_158 = arith.constant 0 : index
    %285 = vector.load %arg6[%c4_156, %c0_157, %c0_158] : memref<16x64x2xf32, #tpu.memory_space<vmem>>, vector<1x64x2xf32>
    %286 = vector.shape_cast %285 : vector<1x64x2xf32> to vector<64x2xf32>
    %287 = vector.shape_cast %284 : vector<64x2xf32> to vector<1x64x2xf32>
    tpu.vector_store %arg6[%c4_156, %c0_157, %c0_158], %287 {strides = array<i32>} : memref<16x64x2xf32, #tpu.memory_space<vmem>>, vector<1x64x2xf32>,
    %288 = vector.broadcast %239 : vector<64x1xf32> to vector<64x2xf32>
    %289 = arith.mulf %42, %288 : vector<64x2xf32>
    %290 = vector.broadcast %242 : vector<64x1xf32> to vector<64x2xf32>
    %291 = arith.addf %289, %290 : vector<64x2xf32>
    %cst_159 = arith.constant 0.000000e+00 : f32
    %292 = vector.broadcast %cst_159 : f32 to vector<64x2xf32>
    %293 = arith.maximumf %291, %292 : vector<64x2xf32>
    %c5_160 = arith.constant 5 : index
    %c0_161 = arith.constant 0 : index
    %c0_162 = arith.constant 0 : index
    %294 = vector.load %arg6[%c5_160, %c0_161, %c0_162] : memref<16x64x2xf32, #tpu.memory_space<vmem>>, vector<1x64x2xf32>
    %295 = vector.shape_cast %294 : vector<1x64x2xf32> to vector<64x2xf32>
    %296 = vector.shape_cast %293 : vector<64x2xf32> to vector<1x64x2xf32>
    tpu.vector_store %arg6[%c5_160, %c0_161, %c0_162], %296 {strides = array<i32>} : memref<16x64x2xf32, #tpu.memory_space<vmem>>, vector<1x64x2xf32>,
    %297 = vector.broadcast %239 : vector<64x1xf32> to vector<64x2xf32>
    %298 = arith.mulf %49, %297 : vector<64x2xf32>
    %299 = vector.broadcast %242 : vector<64x1xf32> to vector<64x2xf32>
    %300 = arith.addf %298, %299 : vector<64x2xf32>
    %cst_163 = arith.constant 0.000000e+00 : f32
    %301 = vector.broadcast %cst_163 : f32 to vector<64x2xf32>
    %302 = arith.maximumf %300, %301 : vector<64x2xf32>
    %c6_164 = arith.constant 6 : index
    %c0_165 = arith.constant 0 : index
    %c0_166 = arith.constant 0 : index
    %303 = vector.load %arg6[%c6_164, %c0_165, %c0_166] : memref<16x64x2xf32, #tpu.memory_space<vmem>>, vector<1x64x2xf32>
    %304 = vector.shape_cast %303 : vector<1x64x2xf32> to vector<64x2xf32>
    %305 = vector.shape_cast %302 : vector<64x2xf32> to vector<1x64x2xf32>
    tpu.vector_store %arg6[%c6_164, %c0_165, %c0_166], %305 {strides = array<i32>} : memref<16x64x2xf32, #tpu.memory_space<vmem>>, vector<1x64x2xf32>,
    %306 = vector.broadcast %239 : vector<64x1xf32> to vector<64x2xf32>
    %307 = arith.mulf %56, %306 : vector<64x2xf32>
    %308 = vector.broadcast %242 : vector<64x1xf32> to vector<64x2xf32>
    %309 = arith.addf %307, %308 : vector<64x2xf32>
    %cst_167 = arith.constant 0.000000e+00 : f32
    %310 = vector.broadcast %cst_167 : f32 to vector<64x2xf32>
    %311 = arith.maximumf %309, %310 : vector<64x2xf32>
    %c7_168 = arith.constant 7 : index
    %c0_169 = arith.constant 0 : index
    %c0_170 = arith.constant 0 : index
    %312 = vector.load %arg6[%c7_168, %c0_169, %c0_170] : memref<16x64x2xf32, #tpu.memory_space<vmem>>, vector<1x64x2xf32>
    %313 = vector.shape_cast %312 : vector<1x64x2xf32> to vector<64x2xf32>
    %314 = vector.shape_cast %311 : vector<64x2xf32> to vector<1x64x2xf32>
    tpu.vector_store %arg6[%c7_168, %c0_169, %c0_170], %314 {strides = array<i32>} : memref<16x64x2xf32, #tpu.memory_space<vmem>>, vector<1x64x2xf32>,
    %315 = vector.broadcast %239 : vector<64x1xf32> to vector<64x2xf32>
    %316 = arith.mulf %63, %315 : vector<64x2xf32>
    %317 = vector.broadcast %242 : vector<64x1xf32> to vector<64x2xf32>
    %318 = arith.addf %316, %317 : vector<64x2xf32>
    %cst_171 = arith.constant 0.000000e+00 : f32
    %319 = vector.broadcast %cst_171 : f32 to vector<64x2xf32>
    %320 = arith.maximumf %318, %319 : vector<64x2xf32>
    %c8_172 = arith.constant 8 : index
    %c0_173 = arith.constant 0 : index
    %c0_174 = arith.constant 0 : index
    %321 = vector.load %arg6[%c8_172, %c0_173, %c0_174] : memref<16x64x2xf32, #tpu.memory_space<vmem>>, vector<1x64x2xf32>
    %322 = vector.shape_cast %321 : vector<1x64x2xf32> to vector<64x2xf32>
    %323 = vector.shape_cast %320 : vector<64x2xf32> to vector<1x64x2xf32>
    tpu.vector_store %arg6[%c8_172, %c0_173, %c0_174], %323 {strides = array<i32>} : memref<16x64x2xf32, #tpu.memory_space<vmem>>, vector<1x64x2xf32>,
    %324 = vector.broadcast %239 : vector<64x1xf32> to vector<64x2xf32>
    %325 = arith.mulf %70, %324 : vector<64x2xf32>
    %326 = vector.broadcast %242 : vector<64x1xf32> to vector<64x2xf32>
    %327 = arith.addf %325, %326 : vector<64x2xf32>
    %cst_175 = arith.constant 0.000000e+00 : f32
    %328 = vector.broadcast %cst_175 : f32 to vector<64x2xf32>
    %329 = arith.maximumf %327, %328 : vector<64x2xf32>
    %c9_176 = arith.constant 9 : index
    %c0_177 = arith.constant 0 : index
    %c0_178 = arith.constant 0 : index
    %330 = vector.load %arg6[%c9_176, %c0_177, %c0_178] : memref<16x64x2xf32, #tpu.memory_space<vmem>>, vector<1x64x2xf32>
    %331 = vector.shape_cast %330 : vector<1x64x2xf32> to vector<64x2xf32>
    %332 = vector.shape_cast %329 : vector<64x2xf32> to vector<1x64x2xf32>
    tpu.vector_store %arg6[%c9_176, %c0_177, %c0_178], %332 {strides = array<i32>} : memref<16x64x2xf32, #tpu.memory_space<vmem>>, vector<1x64x2xf32>,
    %333 = vector.broadcast %239 : vector<64x1xf32> to vector<64x2xf32>
    %334 = arith.mulf %77, %333 : vector<64x2xf32>
    %335 = vector.broadcast %242 : vector<64x1xf32> to vector<64x2xf32>
    %336 = arith.addf %334, %335 : vector<64x2xf32>
    %cst_179 = arith.constant 0.000000e+00 : f32
    %337 = vector.broadcast %cst_179 : f32 to vector<64x2xf32>
    %338 = arith.maximumf %336, %337 : vector<64x2xf32>
    %c10_180 = arith.constant 10 : index
    %c0_181 = arith.constant 0 : index
    %c0_182 = arith.constant 0 : index
    %339 = vector.load %arg6[%c10_180, %c0_181, %c0_182] : memref<16x64x2xf32, #tpu.memory_space<vmem>>, vector<1x64x2xf32>
    %340 = vector.shape_cast %339 : vector<1x64x2xf32> to vector<64x2xf32>
    %341 = vector.shape_cast %338 : vector<64x2xf32> to vector<1x64x2xf32>
    tpu.vector_store %arg6[%c10_180, %c0_181, %c0_182], %341 {strides = array<i32>} : memref<16x64x2xf32, #tpu.memory_space<vmem>>, vector<1x64x2xf32>,
    %342 = vector.broadcast %239 : vector<64x1xf32> to vector<64x2xf32>
    %343 = arith.mulf %84, %342 : vector<64x2xf32>
    %344 = vector.broadcast %242 : vector<64x1xf32> to vector<64x2xf32>
    %345 = arith.addf %343, %344 : vector<64x2xf32>
    %cst_183 = arith.constant 0.000000e+00 : f32
    %346 = vector.broadcast %cst_183 : f32 to vector<64x2xf32>
    %347 = arith.maximumf %345, %346 : vector<64x2xf32>
    %c11_184 = arith.constant 11 : index
    %c0_185 = arith.constant 0 : index
    %c0_186 = arith.constant 0 : index
    %348 = vector.load %arg6[%c11_184, %c0_185, %c0_186] : memref<16x64x2xf32, #tpu.memory_space<vmem>>, vector<1x64x2xf32>
    %349 = vector.shape_cast %348 : vector<1x64x2xf32> to vector<64x2xf32>
    %350 = vector.shape_cast %347 : vector<64x2xf32> to vector<1x64x2xf32>
    tpu.vector_store %arg6[%c11_184, %c0_185, %c0_186], %350 {strides = array<i32>} : memref<16x64x2xf32, #tpu.memory_space<vmem>>, vector<1x64x2xf32>,
    %351 = vector.broadcast %239 : vector<64x1xf32> to vector<64x2xf32>
    %352 = arith.mulf %91, %351 : vector<64x2xf32>
    %353 = vector.broadcast %242 : vector<64x1xf32> to vector<64x2xf32>
    %354 = arith.addf %352, %353 : vector<64x2xf32>
    %cst_187 = arith.constant 0.000000e+00 : f32
    %355 = vector.broadcast %cst_187 : f32 to vector<64x2xf32>
    %356 = arith.maximumf %354, %355 : vector<64x2xf32>
    %c12_188 = arith.constant 12 : index
    %c0_189 = arith.constant 0 : index
    %c0_190 = arith.constant 0 : index
    %357 = vector.load %arg6[%c12_188, %c0_189, %c0_190] : memref<16x64x2xf32, #tpu.memory_space<vmem>>, vector<1x64x2xf32>
    %358 = vector.shape_cast %357 : vector<1x64x2xf32> to vector<64x2xf32>
    %359 = vector.shape_cast %356 : vector<64x2xf32> to vector<1x64x2xf32>
    tpu.vector_store %arg6[%c12_188, %c0_189, %c0_190], %359 {strides = array<i32>} : memref<16x64x2xf32, #tpu.memory_space<vmem>>, vector<1x64x2xf32>,
    %360 = vector.broadcast %239 : vector<64x1xf32> to vector<64x2xf32>
    %361 = arith.mulf %98, %360 : vector<64x2xf32>
    %362 = vector.broadcast %242 : vector<64x1xf32> to vector<64x2xf32>
    %363 = arith.addf %361, %362 : vector<64x2xf32>
    %cst_191 = arith.constant 0.000000e+00 : f32
    %364 = vector.broadcast %cst_191 : f32 to vector<64x2xf32>
    %365 = arith.maximumf %363, %364 : vector<64x2xf32>
    %c13_192 = arith.constant 13 : index
    %c0_193 = arith.constant 0 : index
    %c0_194 = arith.constant 0 : index
    %366 = vector.load %arg6[%c13_192, %c0_193, %c0_194] : memref<16x64x2xf32, #tpu.memory_space<vmem>>, vector<1x64x2xf32>
    %367 = vector.shape_cast %366 : vector<1x64x2xf32> to vector<64x2xf32>
    %368 = vector.shape_cast %365 : vector<64x2xf32> to vector<1x64x2xf32>
    tpu.vector_store %arg6[%c13_192, %c0_193, %c0_194], %368 {strides = array<i32>} : memref<16x64x2xf32, #tpu.memory_space<vmem>>, vector<1x64x2xf32>,
    %369 = vector.broadcast %239 : vector<64x1xf32> to vector<64x2xf32>
    %370 = arith.mulf %105, %369 : vector<64x2xf32>
    %371 = vector.broadcast %242 : vector<64x1xf32> to vector<64x2xf32>
    %372 = arith.addf %370, %371 : vector<64x2xf32>
    %cst_195 = arith.constant 0.000000e+00 : f32
    %373 = vector.broadcast %cst_195 : f32 to vector<64x2xf32>
    %374 = arith.maximumf %372, %373 : vector<64x2xf32>
    %c14_196 = arith.constant 14 : index
    %c0_197 = arith.constant 0 : index
    %c0_198 = arith.constant 0 : index
    %375 = vector.load %arg6[%c14_196, %c0_197, %c0_198] : memref<16x64x2xf32, #tpu.memory_space<vmem>>, vector<1x64x2xf32>
    %376 = vector.shape_cast %375 : vector<1x64x2xf32> to vector<64x2xf32>
    %377 = vector.shape_cast %374 : vector<64x2xf32> to vector<1x64x2xf32>
    tpu.vector_store %arg6[%c14_196, %c0_197, %c0_198], %377 {strides = array<i32>} : memref<16x64x2xf32, #tpu.memory_space<vmem>>, vector<1x64x2xf32>,
    %378 = vector.broadcast %239 : vector<64x1xf32> to vector<64x2xf32>
    %379 = arith.mulf %112, %378 : vector<64x2xf32>
    %380 = vector.broadcast %242 : vector<64x1xf32> to vector<64x2xf32>
    %381 = arith.addf %379, %380 : vector<64x2xf32>
    %cst_199 = arith.constant 0.000000e+00 : f32
    %382 = vector.broadcast %cst_199 : f32 to vector<64x2xf32>
    %383 = arith.maximumf %381, %382 : vector<64x2xf32>
    %c15_200 = arith.constant 15 : index
    %c0_201 = arith.constant 0 : index
    %c0_202 = arith.constant 0 : index
    %384 = vector.load %arg6[%c15_200, %c0_201, %c0_202] : memref<16x64x2xf32, #tpu.memory_space<vmem>>, vector<1x64x2xf32>
    %385 = vector.shape_cast %384 : vector<1x64x2xf32> to vector<64x2xf32>
    %386 = vector.shape_cast %383 : vector<64x2xf32> to vector<1x64x2xf32>
    tpu.vector_store %arg6[%c15_200, %c0_201, %c0_202], %386 {strides = array<i32>} : memref<16x64x2xf32, #tpu.memory_space<vmem>>, vector<1x64x2xf32>,
    return
  }
  func.func @transform_0(%arg0: i32) -> (i32, i32, i32) {
    %c0_i32 = arith.constant 0 : i32
    %c0_i32_0 = arith.constant 0 : i32
    %c0_i32_1 = arith.constant 0 : i32
    %c0_i32_2 = arith.constant 0 : i32
    return %c0_i32, %c0_i32_0, %c0_i32_1 : i32, i32, i32
  }
  func.func @transform_1(%arg0: i32) -> (i32, i32, i32) {
    %c0_i32 = arith.constant 0 : i32
    %c0_i32_0 = arith.constant 0 : i32
    %c0_i32_1 = arith.constant 0 : i32
    %c0_i32_2 = arith.constant 0 : i32
    return %c0_i32, %c0_i32_0, %c0_i32_1 : i32, i32, i32
  }
  func.func @transform_2(%arg0: i32) -> (i32, i32) {
    %c0_i32 = arith.constant 0 : i32
    %c0_i32_0 = arith.constant 0 : i32
    %c0_i32_1 = arith.constant 0 : i32
    return %c0_i32, %c0_i32_0 : i32, i32
  }
  func.func @transform_3(%arg0: i32) -> (i32, i32) {
    %c0_i32 = arith.constant 0 : i32
    %c0_i32_0 = arith.constant 0 : i32
    %c0_i32_1 = arith.constant 0 : i32
    return %c0_i32, %c0_i32_0 : i32, i32
  }
  func.func @transform_4(%arg0: i32) -> (i32, i32) {
    %c0_i32 = arith.constant 0 : i32
    %c0_i32_0 = arith.constant 0 : i32
    %c0_i32_1 = arith.constant 0 : i32
    return %c0_i32, %c0_i32_0 : i32, i32
  }
  func.func @transform_5(%arg0: i32) -> (i32, i32, i32) {
    %c0_i32 = arith.constant 0 : i32
    %c0_i32_0 = arith.constant 0 : i32
    %c0_i32_1 = arith.constant 0 : i32
    %c0_i32_2 = arith.constant 0 : i32
    return %c0_i32, %c0_i32_0, %c0_i32_1 : i32, i32, i32
  }
}

module attributes {stable_mosaic.version = 11 : i64} {
  func.func @_phase_matmul_kernel(%arg0: i32, %arg1: memref<4x32x256xbf16, #tpu.memory_space<vmem>>, %arg2: memref<4x256x32xbf16, #tpu.memory_space<vmem>>, %arg3: memref<32x1xf32, #tpu.memory_space<vmem>>, %arg4: memref<32x1xf32, #tpu.memory_space<vmem>>, %arg5: memref<32x1xf32, #tpu.memory_space<vmem>>, %arg6: memref<4x32x32xf32, #tpu.memory_space<vmem>>) attributes {dimension_semantics = [#tpu.dimension_semantics<arbitrary>], iteration_bounds = array<i64: 1>, scalar_prefetch = 0 : i64, scratch_operands = 0 : i64, tpu.core_type = #tpu.core_type<tc>, window_params = [{pipeline_mode = #tpu.pipeline_mode<synchronous>, transform_indices = @transform_0, window_bounds = array<i64: 4, 32, 256>}, {pipeline_mode = #tpu.pipeline_mode<synchronous>, transform_indices = @transform_1, window_bounds = array<i64: 4, 256, 32>}, {pipeline_mode = #tpu.pipeline_mode<synchronous>, transform_indices = @transform_2, window_bounds = array<i64: 32, 1>}, {pipeline_mode = #tpu.pipeline_mode<synchronous>, transform_indices = @transform_3, window_bounds = array<i64: 32, 1>}, {pipeline_mode = #tpu.pipeline_mode<synchronous>, transform_indices = @transform_4, window_bounds = array<i64: 32, 1>}, {pipeline_mode = #tpu.pipeline_mode<synchronous>, transform_indices = @transform_5, window_bounds = array<i64: 4, 32, 32>}]} {
    %c0 = arith.constant 0 : index
    %c0_0 = arith.constant 0 : index
    %0 = vector.load %arg3[%c0, %c0_0] : memref<32x1xf32, #tpu.memory_space<vmem>>, vector<32x1xf32>
    %c0_1 = arith.constant 0 : index
    %c0_2 = arith.constant 0 : index
    %c0_3 = arith.constant 0 : index
    %1 = vector.load %arg1[%c0_1, %c0_2, %c0_3] : memref<4x32x256xbf16, #tpu.memory_space<vmem>>, vector<1x32x256xbf16>
    %2 = vector.shape_cast %1 : vector<1x32x256xbf16> to vector<32x256xbf16>
    %c0_4 = arith.constant 0 : index
    %c0_5 = arith.constant 0 : index
    %c0_6 = arith.constant 0 : index
    %3 = vector.load %arg2[%c0_4, %c0_5, %c0_6] : memref<4x256x32xbf16, #tpu.memory_space<vmem>>, vector<1x256x32xbf16>
    %4 = vector.shape_cast %3 : vector<1x256x32xbf16> to vector<256x32xbf16>
    %cst = arith.constant dense<0.000000e+00> : vector<32x32xf32>
    %5 = tpu.matmul %2, %4, %cst {dimension_numbers = #tpu.dot_dimension_numbers<[1], [0], [0], [1], [0, 0, 1, 1], [], []>} : vector<32x256xbf16>, vector<256x32xbf16>, vector<32x32xf32> -> vector<32x32xf32>
    %6 = vector.broadcast %0 : vector<32x1xf32> to vector<32x32xf32>
    %7 = arith.addf %5, %6 : vector<32x32xf32>
    %c1 = arith.constant 1 : index
    %c0_7 = arith.constant 0 : index
    %c0_8 = arith.constant 0 : index
    %8 = vector.load %arg1[%c1, %c0_7, %c0_8] : memref<4x32x256xbf16, #tpu.memory_space<vmem>>, vector<1x32x256xbf16>
    %9 = vector.shape_cast %8 : vector<1x32x256xbf16> to vector<32x256xbf16>
    %c1_9 = arith.constant 1 : index
    %c0_10 = arith.constant 0 : index
    %c0_11 = arith.constant 0 : index
    %10 = vector.load %arg2[%c1_9, %c0_10, %c0_11] : memref<4x256x32xbf16, #tpu.memory_space<vmem>>, vector<1x256x32xbf16>
    %11 = vector.shape_cast %10 : vector<1x256x32xbf16> to vector<256x32xbf16>
    %cst_12 = arith.constant dense<0.000000e+00> : vector<32x32xf32>
    %12 = tpu.matmul %9, %11, %cst_12 {dimension_numbers = #tpu.dot_dimension_numbers<[1], [0], [0], [1], [0, 0, 1, 1], [], []>} : vector<32x256xbf16>, vector<256x32xbf16>, vector<32x32xf32> -> vector<32x32xf32>
    %13 = vector.broadcast %0 : vector<32x1xf32> to vector<32x32xf32>
    %14 = arith.addf %12, %13 : vector<32x32xf32>
    %c2 = arith.constant 2 : index
    %c0_13 = arith.constant 0 : index
    %c0_14 = arith.constant 0 : index
    %15 = vector.load %arg1[%c2, %c0_13, %c0_14] : memref<4x32x256xbf16, #tpu.memory_space<vmem>>, vector<1x32x256xbf16>
    %16 = vector.shape_cast %15 : vector<1x32x256xbf16> to vector<32x256xbf16>
    %c2_15 = arith.constant 2 : index
    %c0_16 = arith.constant 0 : index
    %c0_17 = arith.constant 0 : index
    %17 = vector.load %arg2[%c2_15, %c0_16, %c0_17] : memref<4x256x32xbf16, #tpu.memory_space<vmem>>, vector<1x256x32xbf16>
    %18 = vector.shape_cast %17 : vector<1x256x32xbf16> to vector<256x32xbf16>
    %cst_18 = arith.constant dense<0.000000e+00> : vector<32x32xf32>
    %19 = tpu.matmul %16, %18, %cst_18 {dimension_numbers = #tpu.dot_dimension_numbers<[1], [0], [0], [1], [0, 0, 1, 1], [], []>} : vector<32x256xbf16>, vector<256x32xbf16>, vector<32x32xf32> -> vector<32x32xf32>
    %20 = vector.broadcast %0 : vector<32x1xf32> to vector<32x32xf32>
    %21 = arith.addf %19, %20 : vector<32x32xf32>
    %c3 = arith.constant 3 : index
    %c0_19 = arith.constant 0 : index
    %c0_20 = arith.constant 0 : index
    %22 = vector.load %arg1[%c3, %c0_19, %c0_20] : memref<4x32x256xbf16, #tpu.memory_space<vmem>>, vector<1x32x256xbf16>
    %23 = vector.shape_cast %22 : vector<1x32x256xbf16> to vector<32x256xbf16>
    %c3_21 = arith.constant 3 : index
    %c0_22 = arith.constant 0 : index
    %c0_23 = arith.constant 0 : index
    %24 = vector.load %arg2[%c3_21, %c0_22, %c0_23] : memref<4x256x32xbf16, #tpu.memory_space<vmem>>, vector<1x256x32xbf16>
    %25 = vector.shape_cast %24 : vector<1x256x32xbf16> to vector<256x32xbf16>
    %cst_24 = arith.constant dense<0.000000e+00> : vector<32x32xf32>
    %26 = tpu.matmul %23, %25, %cst_24 {dimension_numbers = #tpu.dot_dimension_numbers<[1], [0], [0], [1], [0, 0, 1, 1], [], []>} : vector<32x256xbf16>, vector<256x32xbf16>, vector<32x32xf32> -> vector<32x32xf32>
    %27 = vector.broadcast %0 : vector<32x1xf32> to vector<32x32xf32>
    %28 = arith.addf %26, %27 : vector<32x32xf32>
    %cst_25 = arith.constant dense<0.000000e+00> : vector<32xf32>
    %29 = vector.multi_reduction <add>, %7, %cst_25 [1] : vector<32x32xf32> to vector<32xf32>
    %30 = vector.shape_cast %29 : vector<32xf32> to vector<32x1xf32>
    %cst_26 = arith.constant dense<0.000000e+00> : vector<32xf32>
    %31 = vector.multi_reduction <add>, %14, %cst_26 [1] : vector<32x32xf32> to vector<32xf32>
    %32 = vector.shape_cast %31 : vector<32xf32> to vector<32x1xf32>
    %cst_27 = arith.constant dense<0.000000e+00> : vector<32xf32>
    %33 = vector.multi_reduction <add>, %21, %cst_27 [1] : vector<32x32xf32> to vector<32xf32>
    %34 = vector.shape_cast %33 : vector<32xf32> to vector<32x1xf32>
    %cst_28 = arith.constant dense<0.000000e+00> : vector<32xf32>
    %35 = vector.multi_reduction <add>, %28, %cst_28 [1] : vector<32x32xf32> to vector<32xf32>
    %36 = vector.shape_cast %35 : vector<32xf32> to vector<32x1xf32>
    %cst_29 = arith.constant 0.000000e+00 : f32
    %37 = vector.broadcast %cst_29 : f32 to vector<32x1xf32>
    %38 = arith.addf %37, %30 : vector<32x1xf32>
    %39 = arith.addf %38, %32 : vector<32x1xf32>
    %40 = arith.addf %39, %34 : vector<32x1xf32>
    %41 = arith.addf %40, %36 : vector<32x1xf32>
    %42 = arith.mulf %7, %7 : vector<32x32xf32>
    %cst_30 = arith.constant dense<0.000000e+00> : vector<32xf32>
    %43 = vector.multi_reduction <add>, %42, %cst_30 [1] : vector<32x32xf32> to vector<32xf32>
    %44 = vector.shape_cast %43 : vector<32xf32> to vector<32x1xf32>
    %45 = arith.mulf %14, %14 : vector<32x32xf32>
    %cst_31 = arith.constant dense<0.000000e+00> : vector<32xf32>
    %46 = vector.multi_reduction <add>, %45, %cst_31 [1] : vector<32x32xf32> to vector<32xf32>
    %47 = vector.shape_cast %46 : vector<32xf32> to vector<32x1xf32>
    %48 = arith.mulf %21, %21 : vector<32x32xf32>
    %cst_32 = arith.constant dense<0.000000e+00> : vector<32xf32>
    %49 = vector.multi_reduction <add>, %48, %cst_32 [1] : vector<32x32xf32> to vector<32xf32>
    %50 = vector.shape_cast %49 : vector<32xf32> to vector<32x1xf32>
    %51 = arith.mulf %28, %28 : vector<32x32xf32>
    %cst_33 = arith.constant dense<0.000000e+00> : vector<32xf32>
    %52 = vector.multi_reduction <add>, %51, %cst_33 [1] : vector<32x32xf32> to vector<32xf32>
    %53 = vector.shape_cast %52 : vector<32xf32> to vector<32x1xf32>
    %cst_34 = arith.constant 0.000000e+00 : f32
    %54 = vector.broadcast %cst_34 : f32 to vector<32x1xf32>
    %55 = arith.addf %54, %44 : vector<32x1xf32>
    %56 = arith.addf %55, %47 : vector<32x1xf32>
    %57 = arith.addf %56, %50 : vector<32x1xf32>
    %58 = arith.addf %57, %53 : vector<32x1xf32>
    %cst_35 = arith.constant 7.812500e-03 : f32
    %59 = vector.broadcast %cst_35 : f32 to vector<32x1xf32>
    %60 = arith.mulf %41, %59 : vector<32x1xf32>
    %cst_36 = arith.constant 7.812500e-03 : f32
    %61 = vector.broadcast %cst_36 : f32 to vector<32x1xf32>
    %62 = arith.mulf %58, %61 : vector<32x1xf32>
    %63 = arith.mulf %60, %60 : vector<32x1xf32>
    %64 = arith.subf %62, %63 : vector<32x1xf32>
    %cst_37 = arith.constant 0.000000e+00 : f32
    %65 = vector.broadcast %cst_37 : f32 to vector<32x1xf32>
    %66 = arith.maximumf %64, %65 : vector<32x1xf32>
    %c0_38 = arith.constant 0 : index
    %c0_39 = arith.constant 0 : index
    %67 = vector.load %arg4[%c0_38, %c0_39] : memref<32x1xf32, #tpu.memory_space<vmem>>, vector<32x1xf32>
    %cst_40 = arith.constant 9.99999974E-6 : f32
    %68 = vector.broadcast %cst_40 : f32 to vector<32x1xf32>
    %69 = arith.addf %66, %68 : vector<32x1xf32>
    %70 = math.rsqrt %69 : vector<32x1xf32>
    %71 = arith.mulf %67, %70 : vector<32x1xf32>
    %c0_41 = arith.constant 0 : index
    %c0_42 = arith.constant 0 : index
    %72 = vector.load %arg5[%c0_41, %c0_42] : memref<32x1xf32, #tpu.memory_space<vmem>>, vector<32x1xf32>
    %73 = arith.mulf %60, %71 : vector<32x1xf32>
    %74 = arith.subf %72, %73 : vector<32x1xf32>
    %75 = vector.broadcast %71 : vector<32x1xf32> to vector<32x32xf32>
    %76 = arith.mulf %7, %75 : vector<32x32xf32>
    %77 = vector.broadcast %74 : vector<32x1xf32> to vector<32x32xf32>
    %78 = arith.addf %76, %77 : vector<32x32xf32>
    %cst_43 = arith.constant 0.000000e+00 : f32
    %79 = vector.broadcast %cst_43 : f32 to vector<32x32xf32>
    %80 = arith.maximumf %78, %79 : vector<32x32xf32>
    %c0_44 = arith.constant 0 : index
    %c0_45 = arith.constant 0 : index
    %c0_46 = arith.constant 0 : index
    %81 = vector.load %arg6[%c0_44, %c0_45, %c0_46] : memref<4x32x32xf32, #tpu.memory_space<vmem>>, vector<1x32x32xf32>
    %82 = vector.shape_cast %81 : vector<1x32x32xf32> to vector<32x32xf32>
    %83 = vector.shape_cast %80 : vector<32x32xf32> to vector<1x32x32xf32>
    tpu.vector_store %arg6[%c0_44, %c0_45, %c0_46], %83 {strides = array<i32>} : memref<4x32x32xf32, #tpu.memory_space<vmem>>, vector<1x32x32xf32>,
    %84 = vector.broadcast %71 : vector<32x1xf32> to vector<32x32xf32>
    %85 = arith.mulf %14, %84 : vector<32x32xf32>
    %86 = vector.broadcast %74 : vector<32x1xf32> to vector<32x32xf32>
    %87 = arith.addf %85, %86 : vector<32x32xf32>
    %cst_47 = arith.constant 0.000000e+00 : f32
    %88 = vector.broadcast %cst_47 : f32 to vector<32x32xf32>
    %89 = arith.maximumf %87, %88 : vector<32x32xf32>
    %c1_48 = arith.constant 1 : index
    %c0_49 = arith.constant 0 : index
    %c0_50 = arith.constant 0 : index
    %90 = vector.load %arg6[%c1_48, %c0_49, %c0_50] : memref<4x32x32xf32, #tpu.memory_space<vmem>>, vector<1x32x32xf32>
    %91 = vector.shape_cast %90 : vector<1x32x32xf32> to vector<32x32xf32>
    %92 = vector.shape_cast %89 : vector<32x32xf32> to vector<1x32x32xf32>
    tpu.vector_store %arg6[%c1_48, %c0_49, %c0_50], %92 {strides = array<i32>} : memref<4x32x32xf32, #tpu.memory_space<vmem>>, vector<1x32x32xf32>,
    %93 = vector.broadcast %71 : vector<32x1xf32> to vector<32x32xf32>
    %94 = arith.mulf %21, %93 : vector<32x32xf32>
    %95 = vector.broadcast %74 : vector<32x1xf32> to vector<32x32xf32>
    %96 = arith.addf %94, %95 : vector<32x32xf32>
    %cst_51 = arith.constant 0.000000e+00 : f32
    %97 = vector.broadcast %cst_51 : f32 to vector<32x32xf32>
    %98 = arith.maximumf %96, %97 : vector<32x32xf32>
    %c2_52 = arith.constant 2 : index
    %c0_53 = arith.constant 0 : index
    %c0_54 = arith.constant 0 : index
    %99 = vector.load %arg6[%c2_52, %c0_53, %c0_54] : memref<4x32x32xf32, #tpu.memory_space<vmem>>, vector<1x32x32xf32>
    %100 = vector.shape_cast %99 : vector<1x32x32xf32> to vector<32x32xf32>
    %101 = vector.shape_cast %98 : vector<32x32xf32> to vector<1x32x32xf32>
    tpu.vector_store %arg6[%c2_52, %c0_53, %c0_54], %101 {strides = array<i32>} : memref<4x32x32xf32, #tpu.memory_space<vmem>>, vector<1x32x32xf32>,
    %102 = vector.broadcast %71 : vector<32x1xf32> to vector<32x32xf32>
    %103 = arith.mulf %28, %102 : vector<32x32xf32>
    %104 = vector.broadcast %74 : vector<32x1xf32> to vector<32x32xf32>
    %105 = arith.addf %103, %104 : vector<32x32xf32>
    %cst_55 = arith.constant 0.000000e+00 : f32
    %106 = vector.broadcast %cst_55 : f32 to vector<32x32xf32>
    %107 = arith.maximumf %105, %106 : vector<32x32xf32>
    %c3_56 = arith.constant 3 : index
    %c0_57 = arith.constant 0 : index
    %c0_58 = arith.constant 0 : index
    %108 = vector.load %arg6[%c3_56, %c0_57, %c0_58] : memref<4x32x32xf32, #tpu.memory_space<vmem>>, vector<1x32x32xf32>
    %109 = vector.shape_cast %108 : vector<1x32x32xf32> to vector<32x32xf32>
    %110 = vector.shape_cast %107 : vector<32x32xf32> to vector<1x32x32xf32>
    tpu.vector_store %arg6[%c3_56, %c0_57, %c0_58], %110 {strides = array<i32>} : memref<4x32x32xf32, #tpu.memory_space<vmem>>, vector<1x32x32xf32>,
    return
  }
  func.func @transform_0(%arg0: i32) -> (i32, i32, i32) {
    %c0_i32 = arith.constant 0 : i32
    %c0_i32_0 = arith.constant 0 : i32
    %c0_i32_1 = arith.constant 0 : i32
    %c0_i32_2 = arith.constant 0 : i32
    return %c0_i32, %c0_i32_0, %c0_i32_1 : i32, i32, i32
  }
  func.func @transform_1(%arg0: i32) -> (i32, i32, i32) {
    %c0_i32 = arith.constant 0 : i32
    %c0_i32_0 = arith.constant 0 : i32
    %c0_i32_1 = arith.constant 0 : i32
    %c0_i32_2 = arith.constant 0 : i32
    return %c0_i32, %c0_i32_0, %c0_i32_1 : i32, i32, i32
  }
  func.func @transform_2(%arg0: i32) -> (i32, i32) {
    %c0_i32 = arith.constant 0 : i32
    %c0_i32_0 = arith.constant 0 : i32
    %c0_i32_1 = arith.constant 0 : i32
    return %c0_i32, %c0_i32_0 : i32, i32
  }
  func.func @transform_3(%arg0: i32) -> (i32, i32) {
    %c0_i32 = arith.constant 0 : i32
    %c0_i32_0 = arith.constant 0 : i32
    %c0_i32_1 = arith.constant 0 : i32
    return %c0_i32, %c0_i32_0 : i32, i32
  }
  func.func @transform_4(%arg0: i32) -> (i32, i32) {
    %c0_i32 = arith.constant 0 : i32
    %c0_i32_0 = arith.constant 0 : i32
    %c0_i32_1 = arith.constant 0 : i32
    return %c0_i32, %c0_i32_0 : i32, i32
  }
  func.func @transform_5(%arg0: i32) -> (i32, i32, i32) {
    %c0_i32 = arith.constant 0 : i32
    %c0_i32_0 = arith.constant 0 : i32
    %c0_i32_1 = arith.constant 0 : i32
    %c0_i32_2 = arith.constant 0 : i32
    return %c0_i32, %c0_i32_0, %c0_i32_1 : i32, i32, i32
  }
}

module attributes {stable_mosaic.version = 11 : i64} {
  func.func @_phase_matmul_kernel(%arg0: i32, %arg1: memref<4x16x128xbf16, #tpu.memory_space<vmem>>, %arg2: memref<4x128x128xbf16, #tpu.memory_space<vmem>>, %arg3: memref<16x1xf32, #tpu.memory_space<vmem>>, %arg4: memref<16x1xf32, #tpu.memory_space<vmem>>, %arg5: memref<16x1xf32, #tpu.memory_space<vmem>>, %arg6: memref<4x16x128xf32, #tpu.memory_space<vmem>>) attributes {dimension_semantics = [#tpu.dimension_semantics<arbitrary>], iteration_bounds = array<i64: 1>, scalar_prefetch = 0 : i64, scratch_operands = 0 : i64, tpu.core_type = #tpu.core_type<tc>, window_params = [{pipeline_mode = #tpu.pipeline_mode<synchronous>, transform_indices = @transform_0, window_bounds = array<i64: 4, 16, 128>}, {pipeline_mode = #tpu.pipeline_mode<synchronous>, transform_indices = @transform_1, window_bounds = array<i64: 4, 128, 128>}, {pipeline_mode = #tpu.pipeline_mode<synchronous>, transform_indices = @transform_2, window_bounds = array<i64: 16, 1>}, {pipeline_mode = #tpu.pipeline_mode<synchronous>, transform_indices = @transform_3, window_bounds = array<i64: 16, 1>}, {pipeline_mode = #tpu.pipeline_mode<synchronous>, transform_indices = @transform_4, window_bounds = array<i64: 16, 1>}, {pipeline_mode = #tpu.pipeline_mode<synchronous>, transform_indices = @transform_5, window_bounds = array<i64: 4, 16, 128>}]} {
    %c0 = arith.constant 0 : index
    %c0_0 = arith.constant 0 : index
    %0 = vector.load %arg3[%c0, %c0_0] : memref<16x1xf32, #tpu.memory_space<vmem>>, vector<16x1xf32>
    %c0_1 = arith.constant 0 : index
    %c0_2 = arith.constant 0 : index
    %c0_3 = arith.constant 0 : index
    %1 = vector.load %arg1[%c0_1, %c0_2, %c0_3] : memref<4x16x128xbf16, #tpu.memory_space<vmem>>, vector<1x16x128xbf16>
    %2 = vector.shape_cast %1 : vector<1x16x128xbf16> to vector<16x128xbf16>
    %c0_4 = arith.constant 0 : index
    %c0_5 = arith.constant 0 : index
    %c0_6 = arith.constant 0 : index
    %3 = vector.load %arg2[%c0_4, %c0_5, %c0_6] : memref<4x128x128xbf16, #tpu.memory_space<vmem>>, vector<1x128x128xbf16>
    %4 = vector.shape_cast %3 : vector<1x128x128xbf16> to vector<128x128xbf16>
    %cst = arith.constant dense<0.000000e+00> : vector<16x128xf32>
    %5 = tpu.matmul %2, %4, %cst {dimension_numbers = #tpu.dot_dimension_numbers<[1], [0], [0], [1], [0, 0, 1, 1], [], []>} : vector<16x128xbf16>, vector<128x128xbf16>, vector<16x128xf32> -> vector<16x128xf32>
    %6 = vector.broadcast %0 : vector<16x1xf32> to vector<16x128xf32>
    %7 = arith.addf %5, %6 : vector<16x128xf32>
    %c1 = arith.constant 1 : index
    %c0_7 = arith.constant 0 : index
    %c0_8 = arith.constant 0 : index
    %8 = vector.load %arg1[%c1, %c0_7, %c0_8] : memref<4x16x128xbf16, #tpu.memory_space<vmem>>, vector<1x16x128xbf16>
    %9 = vector.shape_cast %8 : vector<1x16x128xbf16> to vector<16x128xbf16>
    %c1_9 = arith.constant 1 : index
    %c0_10 = arith.constant 0 : index
    %c0_11 = arith.constant 0 : index
    %10 = vector.load %arg2[%c1_9, %c0_10, %c0_11] : memref<4x128x128xbf16, #tpu.memory_space<vmem>>, vector<1x128x128xbf16>
    %11 = vector.shape_cast %10 : vector<1x128x128xbf16> to vector<128x128xbf16>
    %cst_12 = arith.constant dense<0.000000e+00> : vector<16x128xf32>
    %12 = tpu.matmul %9, %11, %cst_12 {dimension_numbers = #tpu.dot_dimension_numbers<[1], [0], [0], [1], [0, 0, 1, 1], [], []>} : vector<16x128xbf16>, vector<128x128xbf16>, vector<16x128xf32> -> vector<16x128xf32>
    %13 = vector.broadcast %0 : vector<16x1xf32> to vector<16x128xf32>
    %14 = arith.addf %12, %13 : vector<16x128xf32>
    %c2 = arith.constant 2 : index
    %c0_13 = arith.constant 0 : index
    %c0_14 = arith.constant 0 : index
    %15 = vector.load %arg1[%c2, %c0_13, %c0_14] : memref<4x16x128xbf16, #tpu.memory_space<vmem>>, vector<1x16x128xbf16>
    %16 = vector.shape_cast %15 : vector<1x16x128xbf16> to vector<16x128xbf16>
    %c2_15 = arith.constant 2 : index
    %c0_16 = arith.constant 0 : index
    %c0_17 = arith.constant 0 : index
    %17 = vector.load %arg2[%c2_15, %c0_16, %c0_17] : memref<4x128x128xbf16, #tpu.memory_space<vmem>>, vector<1x128x128xbf16>
    %18 = vector.shape_cast %17 : vector<1x128x128xbf16> to vector<128x128xbf16>
    %cst_18 = arith.constant dense<0.000000e+00> : vector<16x128xf32>
    %19 = tpu.matmul %16, %18, %cst_18 {dimension_numbers = #tpu.dot_dimension_numbers<[1], [0], [0], [1], [0, 0, 1, 1], [], []>} : vector<16x128xbf16>, vector<128x128xbf16>, vector<16x128xf32> -> vector<16x128xf32>
    %20 = vector.broadcast %0 : vector<16x1xf32> to vector<16x128xf32>
    %21 = arith.addf %19, %20 : vector<16x128xf32>
    %c3 = arith.constant 3 : index
    %c0_19 = arith.constant 0 : index
    %c0_20 = arith.constant 0 : index
    %22 = vector.load %arg1[%c3, %c0_19, %c0_20] : memref<4x16x128xbf16, #tpu.memory_space<vmem>>, vector<1x16x128xbf16>
    %23 = vector.shape_cast %22 : vector<1x16x128xbf16> to vector<16x128xbf16>
    %c3_21 = arith.constant 3 : index
    %c0_22 = arith.constant 0 : index
    %c0_23 = arith.constant 0 : index
    %24 = vector.load %arg2[%c3_21, %c0_22, %c0_23] : memref<4x128x128xbf16, #tpu.memory_space<vmem>>, vector<1x128x128xbf16>
    %25 = vector.shape_cast %24 : vector<1x128x128xbf16> to vector<128x128xbf16>
    %cst_24 = arith.constant dense<0.000000e+00> : vector<16x128xf32>
    %26 = tpu.matmul %23, %25, %cst_24 {dimension_numbers = #tpu.dot_dimension_numbers<[1], [0], [0], [1], [0, 0, 1, 1], [], []>} : vector<16x128xbf16>, vector<128x128xbf16>, vector<16x128xf32> -> vector<16x128xf32>
    %27 = vector.broadcast %0 : vector<16x1xf32> to vector<16x128xf32>
    %28 = arith.addf %26, %27 : vector<16x128xf32>
    %cst_25 = arith.constant dense<0.000000e+00> : vector<16xf32>
    %29 = vector.multi_reduction <add>, %7, %cst_25 [1] : vector<16x128xf32> to vector<16xf32>
    %30 = vector.shape_cast %29 : vector<16xf32> to vector<16x1xf32>
    %cst_26 = arith.constant dense<0.000000e+00> : vector<16xf32>
    %31 = vector.multi_reduction <add>, %14, %cst_26 [1] : vector<16x128xf32> to vector<16xf32>
    %32 = vector.shape_cast %31 : vector<16xf32> to vector<16x1xf32>
    %cst_27 = arith.constant dense<0.000000e+00> : vector<16xf32>
    %33 = vector.multi_reduction <add>, %21, %cst_27 [1] : vector<16x128xf32> to vector<16xf32>
    %34 = vector.shape_cast %33 : vector<16xf32> to vector<16x1xf32>
    %cst_28 = arith.constant dense<0.000000e+00> : vector<16xf32>
    %35 = vector.multi_reduction <add>, %28, %cst_28 [1] : vector<16x128xf32> to vector<16xf32>
    %36 = vector.shape_cast %35 : vector<16xf32> to vector<16x1xf32>
    %cst_29 = arith.constant 0.000000e+00 : f32
    %37 = vector.broadcast %cst_29 : f32 to vector<16x1xf32>
    %38 = arith.addf %37, %30 : vector<16x1xf32>
    %39 = arith.addf %38, %32 : vector<16x1xf32>
    %40 = arith.addf %39, %34 : vector<16x1xf32>
    %41 = arith.addf %40, %36 : vector<16x1xf32>
    %42 = arith.mulf %7, %7 : vector<16x128xf32>
    %cst_30 = arith.constant dense<0.000000e+00> : vector<16xf32>
    %43 = vector.multi_reduction <add>, %42, %cst_30 [1] : vector<16x128xf32> to vector<16xf32>
    %44 = vector.shape_cast %43 : vector<16xf32> to vector<16x1xf32>
    %45 = arith.mulf %14, %14 : vector<16x128xf32>
    %cst_31 = arith.constant dense<0.000000e+00> : vector<16xf32>
    %46 = vector.multi_reduction <add>, %45, %cst_31 [1] : vector<16x128xf32> to vector<16xf32>
    %47 = vector.shape_cast %46 : vector<16xf32> to vector<16x1xf32>
    %48 = arith.mulf %21, %21 : vector<16x128xf32>
    %cst_32 = arith.constant dense<0.000000e+00> : vector<16xf32>
    %49 = vector.multi_reduction <add>, %48, %cst_32 [1] : vector<16x128xf32> to vector<16xf32>
    %50 = vector.shape_cast %49 : vector<16xf32> to vector<16x1xf32>
    %51 = arith.mulf %28, %28 : vector<16x128xf32>
    %cst_33 = arith.constant dense<0.000000e+00> : vector<16xf32>
    %52 = vector.multi_reduction <add>, %51, %cst_33 [1] : vector<16x128xf32> to vector<16xf32>
    %53 = vector.shape_cast %52 : vector<16xf32> to vector<16x1xf32>
    %cst_34 = arith.constant 0.000000e+00 : f32
    %54 = vector.broadcast %cst_34 : f32 to vector<16x1xf32>
    %55 = arith.addf %54, %44 : vector<16x1xf32>
    %56 = arith.addf %55, %47 : vector<16x1xf32>
    %57 = arith.addf %56, %50 : vector<16x1xf32>
    %58 = arith.addf %57, %53 : vector<16x1xf32>
    %cst_35 = arith.constant 0.001953125 : f32
    %59 = vector.broadcast %cst_35 : f32 to vector<16x1xf32>
    %60 = arith.mulf %41, %59 : vector<16x1xf32>
    %cst_36 = arith.constant 0.001953125 : f32
    %61 = vector.broadcast %cst_36 : f32 to vector<16x1xf32>
    %62 = arith.mulf %58, %61 : vector<16x1xf32>
    %63 = arith.mulf %60, %60 : vector<16x1xf32>
    %64 = arith.subf %62, %63 : vector<16x1xf32>
    %cst_37 = arith.constant 0.000000e+00 : f32
    %65 = vector.broadcast %cst_37 : f32 to vector<16x1xf32>
    %66 = arith.maximumf %64, %65 : vector<16x1xf32>
    %c0_38 = arith.constant 0 : index
    %c0_39 = arith.constant 0 : index
    %67 = vector.load %arg4[%c0_38, %c0_39] : memref<16x1xf32, #tpu.memory_space<vmem>>, vector<16x1xf32>
    %cst_40 = arith.constant 9.99999974E-6 : f32
    %68 = vector.broadcast %cst_40 : f32 to vector<16x1xf32>
    %69 = arith.addf %66, %68 : vector<16x1xf32>
    %70 = math.rsqrt %69 : vector<16x1xf32>
    %71 = arith.mulf %67, %70 : vector<16x1xf32>
    %c0_41 = arith.constant 0 : index
    %c0_42 = arith.constant 0 : index
    %72 = vector.load %arg5[%c0_41, %c0_42] : memref<16x1xf32, #tpu.memory_space<vmem>>, vector<16x1xf32>
    %73 = arith.mulf %60, %71 : vector<16x1xf32>
    %74 = arith.subf %72, %73 : vector<16x1xf32>
    %75 = vector.broadcast %71 : vector<16x1xf32> to vector<16x128xf32>
    %76 = arith.mulf %7, %75 : vector<16x128xf32>
    %77 = vector.broadcast %74 : vector<16x1xf32> to vector<16x128xf32>
    %78 = arith.addf %76, %77 : vector<16x128xf32>
    %cst_43 = arith.constant 0.000000e+00 : f32
    %79 = vector.broadcast %cst_43 : f32 to vector<16x128xf32>
    %80 = arith.maximumf %78, %79 : vector<16x128xf32>
    %c0_44 = arith.constant 0 : index
    %c0_45 = arith.constant 0 : index
    %c0_46 = arith.constant 0 : index
    %81 = vector.load %arg6[%c0_44, %c0_45, %c0_46] : memref<4x16x128xf32, #tpu.memory_space<vmem>>, vector<1x16x128xf32>
    %82 = vector.shape_cast %81 : vector<1x16x128xf32> to vector<16x128xf32>
    %83 = vector.shape_cast %80 : vector<16x128xf32> to vector<1x16x128xf32>
    tpu.vector_store %arg6[%c0_44, %c0_45, %c0_46], %83 {strides = array<i32>} : memref<4x16x128xf32, #tpu.memory_space<vmem>>, vector<1x16x128xf32>,
    %84 = vector.broadcast %71 : vector<16x1xf32> to vector<16x128xf32>
    %85 = arith.mulf %14, %84 : vector<16x128xf32>
    %86 = vector.broadcast %74 : vector<16x1xf32> to vector<16x128xf32>
    %87 = arith.addf %85, %86 : vector<16x128xf32>
    %cst_47 = arith.constant 0.000000e+00 : f32
    %88 = vector.broadcast %cst_47 : f32 to vector<16x128xf32>
    %89 = arith.maximumf %87, %88 : vector<16x128xf32>
    %c1_48 = arith.constant 1 : index
    %c0_49 = arith.constant 0 : index
    %c0_50 = arith.constant 0 : index
    %90 = vector.load %arg6[%c1_48, %c0_49, %c0_50] : memref<4x16x128xf32, #tpu.memory_space<vmem>>, vector<1x16x128xf32>
    %91 = vector.shape_cast %90 : vector<1x16x128xf32> to vector<16x128xf32>
    %92 = vector.shape_cast %89 : vector<16x128xf32> to vector<1x16x128xf32>
    tpu.vector_store %arg6[%c1_48, %c0_49, %c0_50], %92 {strides = array<i32>} : memref<4x16x128xf32, #tpu.memory_space<vmem>>, vector<1x16x128xf32>,
    %93 = vector.broadcast %71 : vector<16x1xf32> to vector<16x128xf32>
    %94 = arith.mulf %21, %93 : vector<16x128xf32>
    %95 = vector.broadcast %74 : vector<16x1xf32> to vector<16x128xf32>
    %96 = arith.addf %94, %95 : vector<16x128xf32>
    %cst_51 = arith.constant 0.000000e+00 : f32
    %97 = vector.broadcast %cst_51 : f32 to vector<16x128xf32>
    %98 = arith.maximumf %96, %97 : vector<16x128xf32>
    %c2_52 = arith.constant 2 : index
    %c0_53 = arith.constant 0 : index
    %c0_54 = arith.constant 0 : index
    %99 = vector.load %arg6[%c2_52, %c0_53, %c0_54] : memref<4x16x128xf32, #tpu.memory_space<vmem>>, vector<1x16x128xf32>
    %100 = vector.shape_cast %99 : vector<1x16x128xf32> to vector<16x128xf32>
    %101 = vector.shape_cast %98 : vector<16x128xf32> to vector<1x16x128xf32>
    tpu.vector_store %arg6[%c2_52, %c0_53, %c0_54], %101 {strides = array<i32>} : memref<4x16x128xf32, #tpu.memory_space<vmem>>, vector<1x16x128xf32>,
    %102 = vector.broadcast %71 : vector<16x1xf32> to vector<16x128xf32>
    %103 = arith.mulf %28, %102 : vector<16x128xf32>
    %104 = vector.broadcast %74 : vector<16x1xf32> to vector<16x128xf32>
    %105 = arith.addf %103, %104 : vector<16x128xf32>
    %cst_55 = arith.constant 0.000000e+00 : f32
    %106 = vector.broadcast %cst_55 : f32 to vector<16x128xf32>
    %107 = arith.maximumf %105, %106 : vector<16x128xf32>
    %c3_56 = arith.constant 3 : index
    %c0_57 = arith.constant 0 : index
    %c0_58 = arith.constant 0 : index
    %108 = vector.load %arg6[%c3_56, %c0_57, %c0_58] : memref<4x16x128xf32, #tpu.memory_space<vmem>>, vector<1x16x128xf32>
    %109 = vector.shape_cast %108 : vector<1x16x128xf32> to vector<16x128xf32>
    %110 = vector.shape_cast %107 : vector<16x128xf32> to vector<1x16x128xf32>
    tpu.vector_store %arg6[%c3_56, %c0_57, %c0_58], %110 {strides = array<i32>} : memref<4x16x128xf32, #tpu.memory_space<vmem>>, vector<1x16x128xf32>,
    return
  }
  func.func @transform_0(%arg0: i32) -> (i32, i32, i32) {
    %c0_i32 = arith.constant 0 : i32
    %c0_i32_0 = arith.constant 0 : i32
    %c0_i32_1 = arith.constant 0 : i32
    %c0_i32_2 = arith.constant 0 : i32
    return %c0_i32, %c0_i32_0, %c0_i32_1 : i32, i32, i32
  }
  func.func @transform_1(%arg0: i32) -> (i32, i32, i32) {
    %c0_i32 = arith.constant 0 : i32
    %c0_i32_0 = arith.constant 0 : i32
    %c0_i32_1 = arith.constant 0 : i32
    %c0_i32_2 = arith.constant 0 : i32
    return %c0_i32, %c0_i32_0, %c0_i32_1 : i32, i32, i32
  }
  func.func @transform_2(%arg0: i32) -> (i32, i32) {
    %c0_i32 = arith.constant 0 : i32
    %c0_i32_0 = arith.constant 0 : i32
    %c0_i32_1 = arith.constant 0 : i32
    return %c0_i32, %c0_i32_0 : i32, i32
  }
  func.func @transform_3(%arg0: i32) -> (i32, i32) {
    %c0_i32 = arith.constant 0 : i32
    %c0_i32_0 = arith.constant 0 : i32
    %c0_i32_1 = arith.constant 0 : i32
    return %c0_i32, %c0_i32_0 : i32, i32
  }
  func.func @transform_4(%arg0: i32) -> (i32, i32) {
    %c0_i32 = arith.constant 0 : i32
    %c0_i32_0 = arith.constant 0 : i32
    %c0_i32_1 = arith.constant 0 : i32
    return %c0_i32, %c0_i32_0 : i32, i32
  }
  func.func @transform_5(%arg0: i32) -> (i32, i32, i32) {
    %c0_i32 = arith.constant 0 : i32
    %c0_i32_0 = arith.constant 0 : i32
    %c0_i32_1 = arith.constant 0 : i32
    %c0_i32_2 = arith.constant 0 : i32
    return %c0_i32, %c0_i32_0, %c0_i32_1 : i32, i32, i32
  }
}

module attributes {stable_mosaic.version = 11 : i64} {
  func.func @_phase_matmul_kernel(%arg0: i32, %arg1: memref<4x3x64xbf16, #tpu.memory_space<vmem>>, %arg2: memref<4x64x512xbf16, #tpu.memory_space<vmem>>, %arg3: memref<3x1xf32, #tpu.memory_space<vmem>>, %arg4: memref<3x1xf32, #tpu.memory_space<vmem>>, %arg5: memref<3x1xf32, #tpu.memory_space<vmem>>, %arg6: memref<4x3x512xf32, #tpu.memory_space<vmem>>) attributes {dimension_semantics = [#tpu.dimension_semantics<arbitrary>], iteration_bounds = array<i64: 1>, scalar_prefetch = 0 : i64, scratch_operands = 0 : i64, tpu.core_type = #tpu.core_type<tc>, window_params = [{pipeline_mode = #tpu.pipeline_mode<synchronous>, transform_indices = @transform_0, window_bounds = array<i64: 4, 3, 64>}, {pipeline_mode = #tpu.pipeline_mode<synchronous>, transform_indices = @transform_1, window_bounds = array<i64: 4, 64, 512>}, {pipeline_mode = #tpu.pipeline_mode<synchronous>, transform_indices = @transform_2, window_bounds = array<i64: 3, 1>}, {pipeline_mode = #tpu.pipeline_mode<synchronous>, transform_indices = @transform_3, window_bounds = array<i64: 3, 1>}, {pipeline_mode = #tpu.pipeline_mode<synchronous>, transform_indices = @transform_4, window_bounds = array<i64: 3, 1>}, {pipeline_mode = #tpu.pipeline_mode<synchronous>, transform_indices = @transform_5, window_bounds = array<i64: 4, 3, 512>}]} {
    %c0 = arith.constant 0 : index
    %c0_0 = arith.constant 0 : index
    %0 = vector.load %arg3[%c0, %c0_0] : memref<3x1xf32, #tpu.memory_space<vmem>>, vector<3x1xf32>
    %c0_1 = arith.constant 0 : index
    %c0_2 = arith.constant 0 : index
    %c0_3 = arith.constant 0 : index
    %1 = vector.load %arg1[%c0_1, %c0_2, %c0_3] : memref<4x3x64xbf16, #tpu.memory_space<vmem>>, vector<1x3x64xbf16>
    %2 = vector.shape_cast %1 : vector<1x3x64xbf16> to vector<3x64xbf16>
    %c0_4 = arith.constant 0 : index
    %c0_5 = arith.constant 0 : index
    %c0_6 = arith.constant 0 : index
    %3 = vector.load %arg2[%c0_4, %c0_5, %c0_6] : memref<4x64x512xbf16, #tpu.memory_space<vmem>>, vector<1x64x512xbf16>
    %4 = vector.shape_cast %3 : vector<1x64x512xbf16> to vector<64x512xbf16>
    %cst = arith.constant dense<0.000000e+00> : vector<3x512xf32>
    %5 = tpu.matmul %2, %4, %cst {dimension_numbers = #tpu.dot_dimension_numbers<[1], [0], [0], [1], [0, 0, 1, 1], [], []>} : vector<3x64xbf16>, vector<64x512xbf16>, vector<3x512xf32> -> vector<3x512xf32>
    %6 = vector.broadcast %0 : vector<3x1xf32> to vector<3x512xf32>
    %7 = arith.addf %5, %6 : vector<3x512xf32>
    %c1 = arith.constant 1 : index
    %c0_7 = arith.constant 0 : index
    %c0_8 = arith.constant 0 : index
    %8 = vector.load %arg1[%c1, %c0_7, %c0_8] : memref<4x3x64xbf16, #tpu.memory_space<vmem>>, vector<1x3x64xbf16>
    %9 = vector.shape_cast %8 : vector<1x3x64xbf16> to vector<3x64xbf16>
    %c1_9 = arith.constant 1 : index
    %c0_10 = arith.constant 0 : index
    %c0_11 = arith.constant 0 : index
    %10 = vector.load %arg2[%c1_9, %c0_10, %c0_11] : memref<4x64x512xbf16, #tpu.memory_space<vmem>>, vector<1x64x512xbf16>
    %11 = vector.shape_cast %10 : vector<1x64x512xbf16> to vector<64x512xbf16>
    %cst_12 = arith.constant dense<0.000000e+00> : vector<3x512xf32>
    %12 = tpu.matmul %9, %11, %cst_12 {dimension_numbers = #tpu.dot_dimension_numbers<[1], [0], [0], [1], [0, 0, 1, 1], [], []>} : vector<3x64xbf16>, vector<64x512xbf16>, vector<3x512xf32> -> vector<3x512xf32>
    %13 = vector.broadcast %0 : vector<3x1xf32> to vector<3x512xf32>
    %14 = arith.addf %12, %13 : vector<3x512xf32>
    %c2 = arith.constant 2 : index
    %c0_13 = arith.constant 0 : index
    %c0_14 = arith.constant 0 : index
    %15 = vector.load %arg1[%c2, %c0_13, %c0_14] : memref<4x3x64xbf16, #tpu.memory_space<vmem>>, vector<1x3x64xbf16>
    %16 = vector.shape_cast %15 : vector<1x3x64xbf16> to vector<3x64xbf16>
    %c2_15 = arith.constant 2 : index
    %c0_16 = arith.constant 0 : index
    %c0_17 = arith.constant 0 : index
    %17 = vector.load %arg2[%c2_15, %c0_16, %c0_17] : memref<4x64x512xbf16, #tpu.memory_space<vmem>>, vector<1x64x512xbf16>
    %18 = vector.shape_cast %17 : vector<1x64x512xbf16> to vector<64x512xbf16>
    %cst_18 = arith.constant dense<0.000000e+00> : vector<3x512xf32>
    %19 = tpu.matmul %16, %18, %cst_18 {dimension_numbers = #tpu.dot_dimension_numbers<[1], [0], [0], [1], [0, 0, 1, 1], [], []>} : vector<3x64xbf16>, vector<64x512xbf16>, vector<3x512xf32> -> vector<3x512xf32>
    %20 = vector.broadcast %0 : vector<3x1xf32> to vector<3x512xf32>
    %21 = arith.addf %19, %20 : vector<3x512xf32>
    %c3 = arith.constant 3 : index
    %c0_19 = arith.constant 0 : index
    %c0_20 = arith.constant 0 : index
    %22 = vector.load %arg1[%c3, %c0_19, %c0_20] : memref<4x3x64xbf16, #tpu.memory_space<vmem>>, vector<1x3x64xbf16>
    %23 = vector.shape_cast %22 : vector<1x3x64xbf16> to vector<3x64xbf16>
    %c3_21 = arith.constant 3 : index
    %c0_22 = arith.constant 0 : index
    %c0_23 = arith.constant 0 : index
    %24 = vector.load %arg2[%c3_21, %c0_22, %c0_23] : memref<4x64x512xbf16, #tpu.memory_space<vmem>>, vector<1x64x512xbf16>
    %25 = vector.shape_cast %24 : vector<1x64x512xbf16> to vector<64x512xbf16>
    %cst_24 = arith.constant dense<0.000000e+00> : vector<3x512xf32>
    %26 = tpu.matmul %23, %25, %cst_24 {dimension_numbers = #tpu.dot_dimension_numbers<[1], [0], [0], [1], [0, 0, 1, 1], [], []>} : vector<3x64xbf16>, vector<64x512xbf16>, vector<3x512xf32> -> vector<3x512xf32>
    %27 = vector.broadcast %0 : vector<3x1xf32> to vector<3x512xf32>
    %28 = arith.addf %26, %27 : vector<3x512xf32>
    %29 = math.absf %7 : vector<3x512xf32>
    %cst_25 = arith.constant 0.000000e+00 : f32
    %30 = vector.broadcast %cst_25 : f32 to vector<3x512xf32>
    %31 = arith.subf %30, %29 : vector<3x512xf32>
    %32 = math.exp %31 : vector<3x512xf32>
    %cst_26 = arith.constant 0.000000e+00 : f32
    %33 = vector.broadcast %cst_26 : f32 to vector<3x512xf32>
    %34 = arith.cmpf oge, %7, %33 : vector<3x512xf32>
    %cst_27 = arith.constant 1.000000e+00 : f32
    %35 = vector.broadcast %cst_27 : f32 to vector<3x512xf32>
    %36 = arith.addf %35, %32 : vector<3x512xf32>
    %cst_28 = arith.constant 1.000000e+00 : f32
    %37 = vector.broadcast %cst_28 : f32 to vector<3x512xf32>
    %38 = arith.divf %37, %36 : vector<3x512xf32>
    %cst_29 = arith.constant 1.000000e+00 : f32
    %39 = vector.broadcast %cst_29 : f32 to vector<3x512xf32>
    %40 = arith.addf %39, %32 : vector<3x512xf32>
    %41 = arith.divf %32, %40 : vector<3x512xf32>
    %42 = arith.select %34, %38, %41 : vector<3x512xi1>, vector<3x512xf32>
    %c0_30 = arith.constant 0 : index
    %c0_31 = arith.constant 0 : index
    %c0_32 = arith.constant 0 : index
    %43 = vector.load %arg6[%c0_30, %c0_31, %c0_32] : memref<4x3x512xf32, #tpu.memory_space<vmem>>, vector<1x3x512xf32>
    %44 = vector.shape_cast %43 : vector<1x3x512xf32> to vector<3x512xf32>
    %45 = vector.shape_cast %42 : vector<3x512xf32> to vector<1x3x512xf32>
    tpu.vector_store %arg6[%c0_30, %c0_31, %c0_32], %45 {strides = array<i32>} : memref<4x3x512xf32, #tpu.memory_space<vmem>>, vector<1x3x512xf32>,
    %46 = math.absf %14 : vector<3x512xf32>
    %cst_33 = arith.constant 0.000000e+00 : f32
    %47 = vector.broadcast %cst_33 : f32 to vector<3x512xf32>
    %48 = arith.subf %47, %46 : vector<3x512xf32>
    %49 = math.exp %48 : vector<3x512xf32>
    %cst_34 = arith.constant 0.000000e+00 : f32
    %50 = vector.broadcast %cst_34 : f32 to vector<3x512xf32>
    %51 = arith.cmpf oge, %14, %50 : vector<3x512xf32>
    %cst_35 = arith.constant 1.000000e+00 : f32
    %52 = vector.broadcast %cst_35 : f32 to vector<3x512xf32>
    %53 = arith.addf %52, %49 : vector<3x512xf32>
    %cst_36 = arith.constant 1.000000e+00 : f32
    %54 = vector.broadcast %cst_36 : f32 to vector<3x512xf32>
    %55 = arith.divf %54, %53 : vector<3x512xf32>
    %cst_37 = arith.constant 1.000000e+00 : f32
    %56 = vector.broadcast %cst_37 : f32 to vector<3x512xf32>
    %57 = arith.addf %56, %49 : vector<3x512xf32>
    %58 = arith.divf %49, %57 : vector<3x512xf32>
    %59 = arith.select %51, %55, %58 : vector<3x512xi1>, vector<3x512xf32>
    %c1_38 = arith.constant 1 : index
    %c0_39 = arith.constant 0 : index
    %c0_40 = arith.constant 0 : index
    %60 = vector.load %arg6[%c1_38, %c0_39, %c0_40] : memref<4x3x512xf32, #tpu.memory_space<vmem>>, vector<1x3x512xf32>
    %61 = vector.shape_cast %60 : vector<1x3x512xf32> to vector<3x512xf32>
    %62 = vector.shape_cast %59 : vector<3x512xf32> to vector<1x3x512xf32>
    tpu.vector_store %arg6[%c1_38, %c0_39, %c0_40], %62 {strides = array<i32>} : memref<4x3x512xf32, #tpu.memory_space<vmem>>, vector<1x3x512xf32>,
    %63 = math.absf %21 : vector<3x512xf32>
    %cst_41 = arith.constant 0.000000e+00 : f32
    %64 = vector.broadcast %cst_41 : f32 to vector<3x512xf32>
    %65 = arith.subf %64, %63 : vector<3x512xf32>
    %66 = math.exp %65 : vector<3x512xf32>
    %cst_42 = arith.constant 0.000000e+00 : f32
    %67 = vector.broadcast %cst_42 : f32 to vector<3x512xf32>
    %68 = arith.cmpf oge, %21, %67 : vector<3x512xf32>
    %cst_43 = arith.constant 1.000000e+00 : f32
    %69 = vector.broadcast %cst_43 : f32 to vector<3x512xf32>
    %70 = arith.addf %69, %66 : vector<3x512xf32>
    %cst_44 = arith.constant 1.000000e+00 : f32
    %71 = vector.broadcast %cst_44 : f32 to vector<3x512xf32>
    %72 = arith.divf %71, %70 : vector<3x512xf32>
    %cst_45 = arith.constant 1.000000e+00 : f32
    %73 = vector.broadcast %cst_45 : f32 to vector<3x512xf32>
    %74 = arith.addf %73, %66 : vector<3x512xf32>
    %75 = arith.divf %66, %74 : vector<3x512xf32>
    %76 = arith.select %68, %72, %75 : vector<3x512xi1>, vector<3x512xf32>
    %c2_46 = arith.constant 2 : index
    %c0_47 = arith.constant 0 : index
    %c0_48 = arith.constant 0 : index
    %77 = vector.load %arg6[%c2_46, %c0_47, %c0_48] : memref<4x3x512xf32, #tpu.memory_space<vmem>>, vector<1x3x512xf32>
    %78 = vector.shape_cast %77 : vector<1x3x512xf32> to vector<3x512xf32>
    %79 = vector.shape_cast %76 : vector<3x512xf32> to vector<1x3x512xf32>
    tpu.vector_store %arg6[%c2_46, %c0_47, %c0_48], %79 {strides = array<i32>} : memref<4x3x512xf32, #tpu.memory_space<vmem>>, vector<1x3x512xf32>,
    %80 = math.absf %28 : vector<3x512xf32>
    %cst_49 = arith.constant 0.000000e+00 : f32
    %81 = vector.broadcast %cst_49 : f32 to vector<3x512xf32>
    %82 = arith.subf %81, %80 : vector<3x512xf32>
    %83 = math.exp %82 : vector<3x512xf32>
    %cst_50 = arith.constant 0.000000e+00 : f32
    %84 = vector.broadcast %cst_50 : f32 to vector<3x512xf32>
    %85 = arith.cmpf oge, %28, %84 : vector<3x512xf32>
    %cst_51 = arith.constant 1.000000e+00 : f32
    %86 = vector.broadcast %cst_51 : f32 to vector<3x512xf32>
    %87 = arith.addf %86, %83 : vector<3x512xf32>
    %cst_52 = arith.constant 1.000000e+00 : f32
    %88 = vector.broadcast %cst_52 : f32 to vector<3x512xf32>
    %89 = arith.divf %88, %87 : vector<3x512xf32>
    %cst_53 = arith.constant 1.000000e+00 : f32
    %90 = vector.broadcast %cst_53 : f32 to vector<3x512xf32>
    %91 = arith.addf %90, %83 : vector<3x512xf32>
    %92 = arith.divf %83, %91 : vector<3x512xf32>
    %93 = arith.select %85, %89, %92 : vector<3x512xi1>, vector<3x512xf32>
    %c3_54 = arith.constant 3 : index
    %c0_55 = arith.constant 0 : index
    %c0_56 = arith.constant 0 : index
    %94 = vector.load %arg6[%c3_54, %c0_55, %c0_56] : memref<4x3x512xf32, #tpu.memory_space<vmem>>, vector<1x3x512xf32>
    %95 = vector.shape_cast %94 : vector<1x3x512xf32> to vector<3x512xf32>
    %96 = vector.shape_cast %93 : vector<3x512xf32> to vector<1x3x512xf32>
    tpu.vector_store %arg6[%c3_54, %c0_55, %c0_56], %96 {strides = array<i32>} : memref<4x3x512xf32, #tpu.memory_space<vmem>>, vector<1x3x512xf32>,
    return
  }
  func.func @transform_0(%arg0: i32) -> (i32, i32, i32) {
    %c0_i32 = arith.constant 0 : i32
    %c0_i32_0 = arith.constant 0 : i32
    %c0_i32_1 = arith.constant 0 : i32
    %c0_i32_2 = arith.constant 0 : i32
    return %c0_i32, %c0_i32_0, %c0_i32_1 : i32, i32, i32
  }
  func.func @transform_1(%arg0: i32) -> (i32, i32, i32) {
    %c0_i32 = arith.constant 0 : i32
    %c0_i32_0 = arith.constant 0 : i32
    %c0_i32_1 = arith.constant 0 : i32
    %c0_i32_2 = arith.constant 0 : i32
    return %c0_i32, %c0_i32_0, %c0_i32_1 : i32, i32, i32
  }
  func.func @transform_2(%arg0: i32) -> (i32, i32) {
    %c0_i32 = arith.constant 0 : i32
    %c0_i32_0 = arith.constant 0 : i32
    %c0_i32_1 = arith.constant 0 : i32
    return %c0_i32, %c0_i32_0 : i32, i32
  }
  func.func @transform_3(%arg0: i32) -> (i32, i32) {
    %c0_i32 = arith.constant 0 : i32
    %c0_i32_0 = arith.constant 0 : i32
    %c0_i32_1 = arith.constant 0 : i32
    return %c0_i32, %c0_i32_0 : i32, i32
  }
  func.func @transform_4(%arg0: i32) -> (i32, i32) {
    %c0_i32 = arith.constant 0 : i32
    %c0_i32_0 = arith.constant 0 : i32
    %c0_i32_1 = arith.constant 0 : i32
    return %c0_i32, %c0_i32_0 : i32, i32
  }
  func.func @transform_5(%arg0: i32) -> (i32, i32, i32) {
    %c0_i32 = arith.constant 0 : i32
    %c0_i32_0 = arith.constant 0 : i32
    %c0_i32_1 = arith.constant 0 : i32
    %c0_i32_2 = arith.constant 0 : i32
    return %c0_i32, %c0_i32_0, %c0_i32_1 : i32, i32, i32
  }
}

</mosaic_0001>

<bundles_post_ra>
// kernel: generator_forward.5
= control target key start
LH: loop header
LB: loop body
LE: loop exit
PB: predicated region body
PF: predicated region fallthrough
CT: control target
= control target key end

     0   :  { %v1570_v1 = vmov 0   ;;  %vm855_vm0 = vcmask 261120   ;;  %s2103_s1 = inlined_call_operand.vmem [shape: bf16[4,256,32], index: 1, kind: input, shape index: {}]   ;;  %s2104_s0 = inlined_call_operand.vmem [shape: bf16[4,32,256], index: 0, kind: input, shape index: {}]   ;;  %s2105_s2 = inlined_call_operand.vmem [shape: f32[32,1], index: 2, kind: input, shape index: {}]   ;;  %s2106_s3 = inlined_call_operand.vmem [shape: f32[32,1], index: 3, kind: input, shape index: {}]   ;;  %s2107_s4 = inlined_call_operand.vmem [shape: f32[32,1], index: 4, kind: input, shape index: {}]   ;;  %s2108_s5 = inlined_call_operand.vmem [shape: f32[4,32,32], index: 5, kind: output, shape index: {}]  }
   0x1   :  { %v1474_v0 = vld [vmem:[%s2103_s1 + $0x78] sm:$0xff]   ;;  %1472 = vset.pattern.permute.xlu0 %v1570_v1  ;;  %1473 = vset.pattern.permute.xlu1 %v1570_v1  ;;  %v1478_v5 = vld [vmem:[%s2103_s1 + $0x70] sm:$0xff]   ;;  %v1482_v9 = vld [vmem:[%s2103_s1 + $0x68] sm:$0xff]  }
   0x2   :  { %v1475_v2 = vld [vmem:[%s2103_s1 + $0xf8] sm:$0xff]   ;;  %1359 = vmatprep.subr.bf16.mxu0 %v1474_v0  ;;  %v1479_v6 = vld [vmem:[%s2103_s1 + $0xf0] sm:$0xff]   ;;  %v1483_v10 = vld [vmem:[%s2103_s1 + $0xe8] sm:$0xff]  }
   0x3   :  { %v1476_v3 = vld [vmem:[%s2103_s1 + $0x38] sm:$0xff]   ;;  %1387 = vmatprep.subr.bf16.mxu1 %v1475_v2  ;;  %v1480_v7 = vld [vmem:[%s2103_s1 + $0x30] sm:$0xff]   ;;  %v1484_v11 = vld [vmem:[%s2103_s1 + $0x28] sm:$0xff]  }
   0x4   :  { %v1477_v4 = vld [vmem:[%s2103_s1 + $0xb8] sm:$0xff]   ;;  %1360 = vmatpush3.bf16.msra.mxu0 %v1476_v3  ;;  %v1481_v8 = vld [vmem:[%s2103_s1 + $0xb0] sm:$0xff]   ;;  %v1485_v12 = vld [vmem:[%s2103_s1 + $0xa8] sm:$0xff]  }
   0x5   :  { %1388 = vmatpush3.bf16.msra.mxu1 %v1477_v4  ;;  %1361 = vmatprep.subr.bf16.mxu0 %v1478_v5  ;;  %v1486_v13 = vld [vmem:[%s2103_s1 + $0x60] sm:$0xff]   ;;  %v1490_v17 = vld [vmem:[%s2103_s1 + $0x58] sm:$0xff]   ;;  %v1494_v21 = vld [vmem:[%s2103_s1 + $0x50] sm:$0xff]  }
   0x6   :  { %1389 = vmatprep.subr.bf16.mxu1 %v1479_v6  ;;  %v1487_v14 = vld [vmem:[%s2103_s1 + $0xe0] sm:$0xff]   ;;  %v1491_v18 = vld [vmem:[%s2103_s1 + $0xd8] sm:$0xff]   ;;  %v1495_v22 = vld [vmem:[%s2103_s1 + $0xd0] sm:$0xff]  }
   0x7   :  { %v1488_v15 = vld [vmem:[%s2103_s1 + $0x20] sm:$0xff]   ;;  %v1492_v19 = vld [vmem:[%s2103_s1 + $0x18] sm:$0xff]   ;;  %v1496_v23 = vld [vmem:[%s2103_s1 + $0x10] sm:$0xff]  }
   0x8   :  { %1362 = vmatpush3.bf16.msra.mxu0 %v1480_v7  ;;  %v1489_v16 = vld [vmem:[%s2103_s1 + $0xa0] sm:$0xff]   ;;  %v1493_v20 = vld [vmem:[%s2103_s1 + $0x98] sm:$0xff]   ;;  %v1497_v24 = vld [vmem:[%s2103_s1 + $0x90] sm:$0xff]  }
   0x9   :  { %1390 = vmatpush3.bf16.msra.mxu1 %v1481_v8  ;;  %1363 = vmatprep.subr.bf16.mxu0 %v1482_v9  ;;  %v1498_v25 = vld [vmem:[%s2103_s1 + $0x48] sm:$0xff]   ;;  %v1502_v29 = vld [vmem:[%s2103_s1 + $0x40] sm:$0xff]   ;;  %v1512_v37 = vld [vmem:[%s2103_s1 + $0x178] sm:$0xff]  }
   0xa   :  { %1391 = vmatprep.subr.bf16.mxu1 %v1483_v10  ;;  %v1499_v26 = vld [vmem:[%s2103_s1 + $0xc8] sm:$0xff]   ;;  %v1503_v30 = vld [vmem:[%s2103_s1 + $0xc0] sm:$0xff]   ;;  %v1513_v38 = vld [vmem:[%s2103_s1 + $0x1f8] sm:$0xff]  }
   0xb   :  { %v1500_v27 = vld [vmem:[%s2103_s1 + $0x8] sm:$0xff]   ;;  %v1504_v31 = vld [vmem:[%s2103_s1] sm:$0xff]   ;;  %v1514_v39 = vld [vmem:[%s2103_s1 + $0x138] sm:$0xff]  }
   0xc   :  { %1364 = vmatpush3.bf16.msra.mxu0 %v1484_v11  ;;  %v1501_v28 = vld [vmem:[%s2103_s1 + $0x88] sm:$0xff]   ;;  %v1505_v32 = vld [vmem:[%s2103_s1 + $0x80] sm:$0xff]   ;;  %v1515_v40 = vld [vmem:[%s2103_s1 + $0x1b8] sm:$0xff]  }
   0xd   :  { %1392 = vmatpush3.bf16.msra.mxu1 %v1485_v12  ;;  %1365 = vmatprep.subr.bf16.mxu0 %v1486_v13  ;;  %v1506_v33 = vld [vmem:[%s2104_s0] ss:$8 sps:$4 sm:$0xff]   ;;  %v1508_v34 = vld [vmem:[%s2104_s0 + $0x4] ss:$8 sps:$4 sm:$0xff]   ;;  %v1516_v41 = vld [vmem:[%s2103_s1 + $0x170] sm:$0xff]  }
   0xe   :  { %1393 = vmatprep.subr.bf16.mxu1 %v1487_v14  ;;  %v1509_v35 = vld [vmem:[%s2104_s0 + $0x20] ss:$8 sps:$4 sm:$0xff]   ;;  %v1511_v36 = vld [vmem:[%s2104_s0 + $0x24] ss:$8 sps:$4 sm:$0xff]   ;;  %229 = vmatprep.mubr.bf16.mxu0 %v1508_v34  ;;  %v1517_v42 = vld [vmem:[%s2103_s1 + $0x1f0] sm:$0xff]  }
   0xf   :  { %432 = vmatprep.mubr.bf16.mxu1 %v1511_v36  ;;  %v1518_v43 = vld [vmem:[%s2103_s1 + $0x130] sm:$0xff]   ;;  %v1520_v45 = vld [vmem:[%s2103_s1 + $0x168] sm:$0xff]   ;;  %v1524_v49 = vld [vmem:[%s2103_s1 + $0x160] sm:$0xff]  }
  0x10   :  { %1366 = vmatpush3.bf16.msra.mxu0 %v1488_v15  ;;  %v1519_v44 = vld [vmem:[%s2103_s1 + $0x1b0] sm:$0xff]   ;;  %v1521_v46 = vld [vmem:[%s2103_s1 + $0x1e8] sm:$0xff]   ;;  %v1525_v50 = vld [vmem:[%s2103_s1 + $0x1e0] sm:$0xff]  }
  0x11   :  { %1394 = vmatpush3.bf16.msra.mxu1 %v1489_v16  ;;  %1367 = vmatprep.subr.bf16.mxu0 %v1490_v17  ;;  %v1522_v47 = vld [vmem:[%s2103_s1 + $0x128] sm:$0xff]   ;;  %v1526_v51 = vld [vmem:[%s2104_s0 + $0x14] ss:$8 sps:$4 sm:$0xff]   ;;  %v1530_v53 = vld [vmem:[%s2103_s1 + $0x120] sm:$0xff]  }
  0x12   :  { %1395 = vmatprep.subr.bf16.mxu1 %v1491_v18  ;;  %v1523_v48 = vld [vmem:[%s2103_s1 + $0x1a8] sm:$0xff]   ;;  %v1528_v52 = vld [vmem:[%s2104_s0 + $0x34] ss:$8 sps:$4 sm:$0xff]   ;;  %v1531_v54 = vld [vmem:[%s2103_s1 + $0x1a0] sm:$0xff]  }
  0x13   :  { %v1532_v55 = vld [vmem:[%s2104_s0 + $0x10] ss:$8 sps:$4 sm:$0xff]   ;;  %v1542_v1 = vld [vmem:[%s2103_s1 + $0x148] sm:$0xff]   ;;  %v1546_v5 = vld [vmem:[%s2103_s1 + $0x140] sm:$0xff]  }
  0x14   :  { %1368 = vmatpush3.bf16.msra.mxu0 %v1492_v19  ;;  %v1533_v56 = vld [vmem:[%s2104_s0 + $0x30] ss:$8 sps:$4 sm:$0xff]   ;;  %v1543_v2 = vld [vmem:[%s2103_s1 + $0x1c8] sm:$0xff]   ;;  %v1547_v6 = vld [vmem:[%s2103_s1 + $0x1c0] sm:$0xff]  }
  0x15   :  { %1396 = vmatpush3.bf16.msra.mxu1 %v1493_v20  ;;  %1369 = vmatprep.subr.bf16.mxu0 %v1494_v21  ;;  %v1534_v57 = vld [vmem:[%s2103_s1 + $0x158] sm:$0xff]   ;;  %v1538_v61 = vld [vmem:[%s2103_s1 + $0x150] sm:$0xff]   ;;  %v1544_v3 = vld [vmem:[%s2103_s1 + $0x108] sm:$0xff]  }
  0x16   :  { %1397 = vmatprep.subr.bf16.mxu1 %v1495_v22  ;;  %v1535_v58 = vld [vmem:[%s2103_s1 + $0x1d8] sm:$0xff]   ;;  %v1539_v62 = vld [vmem:[%s2103_s1 + $0x1d0] sm:$0xff]   ;;  %v1545_v4 = vld [vmem:[%s2103_s1 + $0x188] sm:$0xff]  }
  0x17   :  { %v1536_v59 = vld [vmem:[%s2103_s1 + $0x118] sm:$0xff]   ;;  %v1540_v63 = vld [vmem:[%s2103_s1 + $0x110] sm:$0xff]   ;;  %v1548_v7 = vld [vmem:[%s2103_s1 + $0x100] sm:$0xff]  }
  0x18   :  { %1370 = vmatpush3.bf16.msra.mxu0 %v1496_v23  ;;  %v1537_v60 = vld [vmem:[%s2103_s1 + $0x198] sm:$0xff]   ;;  %v1541_v0 = vld [vmem:[%s2103_s1 + $0x190] sm:$0xff]   ;;  %v1549_v8 = vld [vmem:[%s2103_s1 + $0x180] sm:$0xff]  }
  0x19   :  { %1398 = vmatpush3.bf16.msra.mxu1 %v1497_v24  ;;  %1371 = vmatprep.subr.bf16.mxu0 %v1498_v25  ;;  %v1550_v9 = vld [vmem:[%s2104_s0 + $0x40] ss:$8 sps:$4 sm:$0xff]   ;;  %v1552_v10 = vld [vmem:[%s2104_s0 + $0x44] ss:$8 sps:$4 sm:$0xff]   ;;  %v1556_v13 = vld [vmem:[%s2104_s0 + $0x54] ss:$8 sps:$4 sm:$0xff]  }
  0x1a   :  { %1399 = vmatprep.subr.bf16.mxu1 %v1499_v26  ;;  %v1553_v11 = vld [vmem:[%s2104_s0 + $0x60] ss:$8 sps:$4 sm:$0xff]   ;;  %v1555_v12 = vld [vmem:[%s2104_s0 + $0x64] ss:$8 sps:$4 sm:$0xff]   ;;  %v1558_v14 = vld [vmem:[%s2104_s0 + $0x74] ss:$8 sps:$4 sm:$0xff]  }
  0x1b   :  { %v21_v15 = vld [vmem:[%s2105_s2] sm:$0xff]  ;;  %v23_v16 = vld [vmem:[%s2105_s2 + $0x10] sm:$0xff]  ;;  %v22_v17 = vld [vmem:[%s2105_s2 + $0x8] sm:$0xff] }
  0x1c   :  { %1372 = vmatpush3.bf16.msra.mxu0 %v1500_v27  ;;  %63 = vperm.xlu0 %1472, %v21_v15   ;;  %v1560_v18 = vld [vmem:[%s2104_s0 + $0x50] ss:$8 sps:$4 sm:$0xff]  }
  0x1d   :  { %1400 = vmatpush3.bf16.msra.mxu1 %v1501_v28  ;;  %1373 = vmatprep.subr.bf16.mxu0 %v1502_v29  ;;  %v24_v19 = vld [vmem:[%s2105_s2 + $0x18] sm:$0xff] }
  0x1e   :  { %1401 = vmatprep.subr.bf16.mxu1 %v1503_v30  ;;  %73 = vperm.xlu1 %1473, %v23_v16   ;;  %v1561_v20 = vld [vmem:[%s2104_s0 + $0x70] ss:$8 sps:$4 sm:$0xff]  }
  0x20   :  { %1374 = vmatpush3.bf16.msra.mxu0 %v1504_v31  ;;  %68 = vperm.xlu0 %1472, %v22_v17  }
  0x21   :  { %1402 = vmatpush3.bf16.msra.mxu1 %v1505_v32  ;;  %1415 = vmatprep.subr.bf16.mxu0 %v1512_v37 }
  0x22   :  { %1443 = vmatprep.subr.bf16.mxu1 %v1513_v38  ;;  %78 = vperm.xlu1 %1473, %v24_v19  }
  0x23   :  { %230 = vmatmul.mubr.bf16.vlgmr.msra.gmra.mxu0 %v1506_v33 }
  0x24   :  { %433 = vmatmul.mubr.bf16.vlgmr.msra.gmra.mxu1 %v1509_v35  ;;  %1416 = vmatpush3.bf16.msra.mxu0 %v1514_v39 }
  0x25   :  { %1444 = vmatpush3.bf16.msra.mxu1 %v1515_v40  ;;  %1417 = vmatprep.subr.bf16.mxu0 %v1516_v41 }
  0x26   :  { %1445 = vmatprep.subr.bf16.mxu1 %v1517_v42  ;;  %237 = vmatprep.mubr.bf16.mxu0 %v1526_v51 }
  0x27   :  { %440 = vmatprep.mubr.bf16.mxu1 %v1528_v52 }
  0x28   :  { %1418 = vmatpush3.bf16.msra.mxu0 %v1518_v43 }
  0x29   :  { %1446 = vmatpush3.bf16.msra.mxu1 %v1519_v44  ;;  %1419 = vmatprep.subr.bf16.mxu0 %v1520_v45 }
  0x2a   :  { %1447 = vmatprep.subr.bf16.mxu1 %v1521_v46 }
  0x2b   :  { %238 = vmatmul.mubr.bf16.gmra.mxu0 %v1532_v55 }
  0x2c   :  { %1420 = vmatpush3.bf16.msra.mxu0 %v1522_v47  ;;  %441 = vmatmul.mubr.bf16.gmra.mxu1 %v1533_v56 }
  0x2d   :  { %1448 = vmatpush3.bf16.msra.mxu1 %v1523_v48  ;;  %1421 = vmatprep.subr.bf16.mxu0 %v1524_v49 }
  0x2e   :  { %1449 = vmatprep.subr.bf16.mxu1 %v1525_v50  ;;  %635 = vmatprep.mubr.bf16.mxu0 %v1552_v10 }
  0x2f   :  { %838 = vmatprep.mubr.bf16.mxu1 %v1555_v12 }
  0x30   :  { %1422 = vmatpush3.bf16.msra.mxu0 %v1530_v53 }
  0x31   :  { %1450 = vmatpush3.bf16.msra.mxu1 %v1531_v54  ;;  %1423 = vmatprep.subr.bf16.mxu0 %v1534_v57 }
  0x32   :  { %1451 = vmatprep.subr.bf16.mxu1 %v1535_v58 }
  0x34   :  { %1424 = vmatpush3.bf16.msra.mxu0 %v1536_v59 }
  0x35   :  { %1452 = vmatpush3.bf16.msra.mxu1 %v1537_v60  ;;  %1425 = vmatprep.subr.bf16.mxu0 %v1538_v61 }
  0x36   :  { %1453 = vmatprep.subr.bf16.mxu1 %v1539_v62 }
  0x38   :  { %1426 = vmatpush3.bf16.msra.mxu0 %v1540_v63 }
  0x39   :  { %1454 = vmatpush3.bf16.msra.mxu1 %v1541_v0  ;;  %1427 = vmatprep.subr.bf16.mxu0 %v1542_v1 }
  0x3a   :  { %1455 = vmatprep.subr.bf16.mxu1 %v1543_v2 }
  0x3c   :  { %1428 = vmatpush3.bf16.msra.mxu0 %v1544_v3 }
  0x3d   :  { %1456 = vmatpush3.bf16.msra.mxu1 %v1545_v4  ;;  %1429 = vmatprep.subr.bf16.mxu0 %v1546_v5 }
  0x3e   :  { %1457 = vmatprep.subr.bf16.mxu1 %v1547_v6 }
  0x40   :  { %1430 = vmatpush3.bf16.msra.mxu0 %v1548_v7 }
  0x41   :  { %1458 = vmatpush3.bf16.msra.mxu1 %v1549_v8 }
  0x43   :  { %636 = vmatmul.mubr.bf16.vlgmr.msra.gmra.mxu0 %v1550_v9 }
  0x44   :  { %839 = vmatmul.mubr.bf16.vlgmr.msra.gmra.mxu1 %v1553_v11  ;;  %643 = vmatprep.mubr.bf16.mxu0 %v1556_v13 }
  0x45   :  { %846 = vmatprep.mubr.bf16.mxu1 %v1558_v14 }
  0x4b   :  { %644 = vmatmul.mubr.bf16.gmra.mxu0 %v1560_v18 }
  0x4c   :  { %847 = vmatmul.mubr.bf16.gmra.mxu1 %v1561_v20 }
  0x97   :  { %v1853_v22 = vpop.permute.xlu0 %63 }
  0x99   :  { %v1886_v50 = vpop.permute.xlu1 %73 }
  0x9b   :  { %v1858_v32 = vpop.permute.xlu0 %68 }
  0x9d   :  { %v1894_v62 = vpop.permute.xlu1 %78 }
  0xe3   :  { %v1375_v21 = vpop.f32.mrf.mxu0 }
  0xe4   :  { %v1403_v23 = vpop.f32.mrf.mxu1 }
  0xe5   :  { %v1376_v24 = vpop.f32.mrf.mxu0 }
  0xe6   :  { %v1377_v25 = vadd.f32 %v1376_v24, %v1375_v21  ;;  %v1404_v26 = vpop.f32.mrf.mxu1 }
  0xe7   :  { %v1405_v27 = vadd.f32 %v1404_v26, %v1403_v23  ;;  %v1378_v28 = vpop.f32.mrf.mxu0 }
  0xe8   :  { %v1406_v29 = vpop.f32.mrf.mxu1  ;;  %v1856_v30 = vadd.f32 %v1377_v25, %v1853_v22 }
  0xe9   :  { %v1379_v31 = vpop.f32.mrf.mxu0  ;;  %v1861_v33 = vadd.f32 %v1405_v27, %v1853_v22 }
  0xea   :  { %v1380_v34 = vadd.f32 %v1379_v31, %v1378_v28  ;;  %v1407_v35 = vpop.f32.mrf.mxu1  ;;  %v856_v36 = vsel %vm855_vm0, %v1856_v30, 0.0  ;;  %v920_v39 = vmul.f32 %v1856_v30, %v1856_v30 }
  0xeb   :  { %v1408_v37 = vadd.f32 %v1407_v35, %v1406_v29  ;;  %v868_v38 = vsel %vm855_vm0, %v1861_v33, 0.0  ;;  %857 = vadd.xlane.f32.xlu0 %v856_v36  ;;  %v936_v44 = vmul.f32 %v1861_v33, %v1861_v33  ;;  %v1381_v49 = vpop.f32.mrf.mxu0 }
  0xec   :  { %v1870_v40 = vadd.f32 %v1380_v34, %v1858_v32  ;;  %869 = vadd.xlane.f32.xlu1 %v868_v38  ;;  %v924_v42 = vsel %vm855_vm0, %v920_v39, 0.0  ;;  %v1409_v51 = vpop.f32.mrf.mxu1 }
  0xed   :  { %v1873_v41 = vadd.f32 %v1408_v37, %v1858_v32  ;;  %v940_v46 = vsel %vm855_vm0, %v936_v44, 0.0  ;;  %v1382_v52 = vpop.f32.mrf.mxu0 }
  0xee   :  { %v921_v45 = vmul.f32 %v1870_v40, %v1870_v40  ;;  %v859_v53 = vsel %vm855_vm0, %v1870_v40, 0.0  ;;  %v1383_v55 = vadd.f32 %v1382_v52, %v1381_v49  ;;  %v1410_v56 = vpop.f32.mrf.mxu1 }
  0xef   :  { %v871_v43 = vsel %vm855_vm0, %v1873_v41, 0.0  ;;  %v937_v48 = vmul.f32 %v1873_v41, %v1873_v41  ;;  %v1411_v57 = vadd.f32 %v1410_v56, %v1409_v51  ;;  %v1384_v58 = vpop.f32.mrf.mxu0 }
  0xf0   :  { %925 = vadd.xlane.f32.xlu1 %v924_v42  ;;  %872 = vadd.xlane.f32.xlu0 %v871_v43  ;;  %v927_v47 = vsel %vm855_vm0, %v921_v45, 0.0  ;;  %v1412_v59 = vpop.f32.mrf.mxu1  ;;  %v1892_v60 = vadd.f32 %v1383_v55, %v1886_v50 }
  0xf1   :  { %v943_v54 = vsel %vm855_vm0, %v937_v48, 0.0  ;;  %v1385_v61 = vpop.f32.mrf.mxu0  ;;  %v1897_v63 = vadd.f32 %v1411_v57, %v1886_v50 }
  0xf2   :  { %v1386_v0 = vadd.f32 %v1385_v61, %v1384_v58  ;;  %v1413_v1 = vpop.f32.mrf.mxu1  ;;  %v862_v2 = vsel %vm855_vm0, %v1892_v60, 0.0  ;;  %v922_v3 = vmul.f32 %v1892_v60, %v1892_v60 }
  0xf3   :  { %v1414_v4 = vadd.f32 %v1413_v1, %v1412_v59  ;;  %v874_v5 = vsel %vm855_vm0, %v1897_v63, 0.0  ;;  %v938_v10 = vmul.f32 %v1897_v63, %v1897_v63 }
  0xf4   :  { %941 = vadd.xlane.f32.xlu1 %v940_v46  ;;  %928 = vadd.xlane.f32.xlu0 %v927_v47  ;;  %v1906_v6 = vadd.f32 %v1386_v0, %v1894_v62  ;;  %v930_v7 = vsel %vm855_vm0, %v922_v3, 0.0 }
  0xf5   :  { %v1912_v9 = vadd.f32 %v1414_v4, %v1894_v62  ;;  %v946_v13 = vsel %vm855_vm0, %v938_v10, 0.0 }
  0xf6   :  { %v865_v8 = vsel %vm855_vm0, %v1906_v6, 0.0  ;;  %v923_v12 = vmul.f32 %v1906_v6, %v1906_v6 }
  0xf7   :  { %v877_v11 = vsel %vm855_vm0, %v1912_v9, 0.0  ;;  %v939_v16 = vmul.f32 %v1912_v9, %v1912_v9 }
  0xf8   :  { %860 = vadd.xlane.f32.xlu1 %v859_v53  ;;  %944 = vadd.xlane.f32.xlu0 %v943_v54  ;;  %v933_v15 = vsel %vm855_vm0, %v923_v12, 0.0 }
  0xf9   :  { %v949_v24 = vsel %vm855_vm0, %v939_v16, 0.0 }
  0xfc   :  { %863 = vadd.xlane.f32.xlu0 %v862_v2  ;;  %875 = vadd.xlane.f32.xlu1 %v874_v5 }
 0x100   :  { %866 = vadd.xlane.f32.xlu0 %v865_v8  ;;  %931 = vadd.xlane.f32.xlu1 %v930_v7 }
 0x103   :  { %v1431_v14 = vpop.f32.mrf.mxu0 }
 0x104   :  { %878 = vadd.xlane.f32.xlu0 %v877_v11  ;;  %947 = vadd.xlane.f32.xlu1 %v946_v13  ;;  %v1459_v17 = vpop.f32.mrf.mxu1 }
 0x105   :  { %v1432_v18 = vpop.f32.mrf.mxu0 }
 0x106   :  { %v1433_v19 = vadd.f32 %v1432_v18, %v1431_v14  ;;  %v1460_v20 = vpop.f32.mrf.mxu1 }
 0x107   :  { %v1461_v21 = vadd.f32 %v1460_v20, %v1459_v17  ;;  %v1434_v23 = vpop.f32.mrf.mxu0 }
 0x108   :  { %934 = vadd.xlane.f32.xlu0 %v933_v15  ;;  %v1926_v25 = vadd.f32 %v1433_v19, %v1853_v22  ;;  %v1462_v26 = vpop.f32.mrf.mxu1 }
 0x109   :  { %v1435_v27 = vpop.f32.mrf.mxu0  ;;  %v1929_v28 = vadd.f32 %v1461_v21, %v1853_v22 }
 0x10a   :  { %v1436_v29 = vadd.f32 %v1435_v27, %v1434_v23  ;;  %v1463_v31 = vpop.f32.mrf.mxu1  ;;  %v880_v34 = vsel %vm855_vm0, %v1926_v25, 0.0  ;;  %v952_v44 = vmul.f32 %v1926_v25, %v1926_v25 }
 0x10b   :  { %v1464_v35 = vadd.f32 %v1463_v31, %v1462_v26  ;;  %v1437_v36 = vpop.f32.mrf.mxu0  ;;  %881 = vadd.xlane.f32.xlu1 %v880_v34  ;;  %v892_v22 = vsel %vm855_vm0, %v1929_v28, 0.0  ;;  %v968_v47 = vmul.f32 %v1929_v28, %v1929_v28 }
 0x10c   :  { %950 = vadd.xlane.f32.xlu0 %v949_v24  ;;  %v1934_v37 = vadd.f32 %v1436_v29, %v1858_v32  ;;  %v1465_v38 = vpop.f32.mrf.mxu1 }
 0x10d   :  { %v1438_v39 = vpop.f32.mrf.mxu0  ;;  %v1937_v42 = vadd.f32 %v1464_v35, %v1858_v32  ;;  %v956_v32 = vsel %vm855_vm0, %v952_v44, 0.0  ;;  %v972_v55 = vsel %vm855_vm0, %v968_v47, 0.0 }
 0x10e   :  { %v883_v43 = vsel %vm855_vm0, %v1934_v37, 0.0  ;;  %v1466_v45 = vpop.f32.mrf.mxu1  ;;  %v1439_v48 = vadd.f32 %v1438_v39, %v1437_v36  ;;  %v953_v51 = vmul.f32 %v1934_v37, %v1934_v37 }
 0x10f   :  { %v1440_v46 = vpop.f32.mrf.mxu0  ;;  %893 = vadd.xlane.f32.xlu1 %v892_v22  ;;  %v895_v49 = vsel %vm855_vm0, %v1937_v42, 0.0  ;;  %v1467_v54 = vadd.f32 %v1466_v45, %v1465_v38  ;;  %v969_v59 = vmul.f32 %v1937_v42, %v1937_v42 }
 0x110   :  { %884 = vadd.xlane.f32.xlu0 %v883_v43  ;;  %v1468_v52 = vpop.f32.mrf.mxu1  ;;  %v1954_v56 = vadd.f32 %v1439_v48, %v1886_v50  ;;  %v959_v58 = vsel %vm855_vm0, %v953_v51, 0.0 }
 0x111   :  { %v1441_v53 = vpop.f32.mrf.mxu0  ;;  %v1960_v0 = vadd.f32 %v1467_v54, %v1886_v50  ;;  %v975_v4 = vsel %vm855_vm0, %v969_v59, 0.0 }
 0x112   :  { %v1442_v57 = vadd.f32 %v1441_v53, %v1440_v46  ;;  %v1469_v61 = vpop.f32.mrf.mxu1  ;;  %v886_v3 = vsel %vm855_vm0, %v1954_v56, 0.0  ;;  %v954_v8 = vmul.f32 %v1954_v56, %v1954_v56 }
 0x113   :  { %957 = vadd.xlane.f32.xlu1 %v956_v32  ;;  %v1470_v2 = vadd.f32 %v1469_v61, %v1468_v52  ;;  %v898_v7 = vsel %vm855_vm0, %v1960_v0, 0.0 }
 0x114   :  { %896 = vadd.xlane.f32.xlu0 %v895_v49  ;;  %v1963_v1 = vadd.f32 %v1442_v57, %v1894_v62  ;;  %v962_v10 = vsel %vm855_vm0, %v954_v8, 0.0 }
 0x115   :  { %v1969_v5 = vadd.f32 %v1470_v2, %v1894_v62  ;;  %v970_v62 = vmul.f32 %v1960_v0, %v1960_v0 }
 0x116   :  { %v889_v50 = vsel %vm855_vm0, %v1963_v1, 0.0  ;;  %v955_v12 = vmul.f32 %v1963_v1, %v1963_v1 }
 0x117   :  { %973 = vadd.xlane.f32.xlu1 %v972_v55  ;;  %v901_v11 = vsel %vm855_vm0, %v1969_v5, 0.0  ;;  %v978_v13 = vsel %vm855_vm0, %v970_v62, 0.0  ;;  %v971_v15 = vmul.f32 %v1969_v5, %v1969_v5 }
 0x118   :  { %960 = vadd.xlane.f32.xlu0 %v959_v58  ;;  %v965_v14 = vsel %vm855_vm0, %v955_v12, 0.0 }
 0x119   :  { %v981_v16 = vsel %vm855_vm0, %v971_v15, 0.0 }
 0x11b   :  { %887 = vadd.xlane.f32.xlu1 %v886_v3 }
 0x11c   :  { %976 = vadd.xlane.f32.xlu0 %v975_v4 }
 0x11f   :  { %899 = vadd.xlane.f32.xlu1 %v898_v7 }
 0x120   :  { %890 = vadd.xlane.f32.xlu0 %v889_v50 }
 0x123   :  { %963 = vadd.xlane.f32.xlu1 %v962_v10 }
 0x124   :  { %902 = vadd.xlane.f32.xlu0 %v901_v11 }
 0x127   :  { %979 = vadd.xlane.f32.xlu1 %v978_v13 }
 0x128   :  { %966 = vadd.xlane.f32.xlu0 %v965_v14 }
 0x12c   :  { %982 = vadd.xlane.f32.xlu0 %v981_v16 }
 0x174   :  { %v858_v17 = vpop.xlane.xlu0 %857 }
 0x175   :  { %v870_v18 = vpop.xlane.xlu1 %869 }
 0x176   :  { %v908_v43 = vadd.f32 %v870_v18, %v858_v17 }
 0x179   :  { %v926_v19 = vpop.xlane.xlu1 %925  ;;  %v873_v20 = vpop.xlane.xlu0 %872 }
 0x17d   :  { %v942_v21 = vpop.xlane.xlu1 %941  ;;  %v929_v23 = vpop.xlane.xlu0 %928 }
 0x17e   :  { %v988_v51 = vadd.f32 %v942_v21, %v926_v19 }
 0x181   :  { %v945_v24 = vpop.xlane.xlu0 %944  ;;  %v861_v26 = vpop.xlane.xlu1 %860 }
 0x182   :  { %v909_v47 = vadd.f32 %v873_v20, %v861_v26  ;;  %v989_v59 = vadd.f32 %v945_v24, %v929_v23 }
 0x185   :  { %v864_v27 = vpop.xlane.xlu0 %863  ;;  %v876_v29 = vpop.xlane.xlu1 %875 }
 0x186   :  { %v910_v62 = vadd.f32 %v876_v29, %v864_v27 }
 0x189   :  { %v867_v31 = vpop.xlane.xlu0 %866  ;;  %v932_v35 = vpop.xlane.xlu1 %931 }
 0x18d   :  { %v879_v34 = vpop.xlane.xlu0 %878  ;;  %v948_v38 = vpop.xlane.xlu1 %947 }
 0x18e   :  { %v911_v20 = vadd.f32 %v879_v34, %v867_v31 }
 0x191   :  { %v935_v36 = vpop.xlane.xlu0 %934 }
 0x194   :  { %v882_v22 = vpop.xlane.xlu1 %881 }
 0x195   :  { %v951_v39 = vpop.xlane.xlu0 %950  ;;  %v912_v46 = vadd.f32 %v908_v43, %v882_v22  ;;  %v990_v22 = vadd.f32 %v948_v38, %v932_v35  ;;  %v1020_v35 = vld [vmem:[%s2106_s3] sm:$0xff] }
 0x198   :  { %v894_v44 = vpop.xlane.xlu1 %893 }
 0x199   :  { %v885_v45 = vpop.xlane.xlu0 %884  ;;  %v916_v48 = vadd.f32 %v912_v46, %v894_v44 }
 0x19a   :  { %v913_v52 = vadd.f32 %v909_v47, %v885_v45 }
 0x19b   :  { %v1989_v53 = vmul.f32 0.0078125, %v916_v48  ;;  %v991_v48 = vadd.f32 %v951_v39, %v935_v36  ;;  %v1021_v36 = vld [vmem:[%s2106_s3 + $0x8] sm:$0xff] }
 0x19c   :  { %v958_v32 = vpop.xlane.xlu1 %957 }
 0x19d   :  { %v897_v49 = vpop.xlane.xlu0 %896  ;;  %v992_v54 = vadd.f32 %v988_v51, %v958_v32  ;;  %v1008_v2 = vmul.f32 %v1989_v53, %v1989_v53 }
 0x19e   :  { %v917_v55 = vadd.f32 %v913_v52, %v897_v49 }
 0x1a0   :  { %v974_v57 = vpop.xlane.xlu1 %973  ;;  %v1993_v3 = vmul.f32 0.0078125, %v917_v55 }
 0x1a1   :  { %v961_v58 = vpop.xlane.xlu0 %960  ;;  %v996_v61 = vadd.f32 %v992_v54, %v974_v57 }
 0x1a2   :  { %v993_v7 = vadd.f32 %v989_v59, %v961_v58  ;;  %v1009_v12 = vmul.f32 %v1993_v3, %v1993_v3 }
 0x1a3   :  { %v1004_v4 = vmul.f32 0.0078125, %v996_v61 }
 0x1a4   :  { %v888_v50 = vpop.xlane.xlu1 %887 }
 0x1a5   :  { %v977_v8 = vpop.xlane.xlu0 %976  ;;  %v1012_v10 = vsub.f32 %v1004_v4, %v1008_v2  ;;  %v914_v18 = vadd.f32 %v910_v62, %v888_v50 }
 0x1a6   :  { %v997_v11 = vadd.f32 %v993_v7, %v977_v8 }
 0x1a7   :  { %v1016_v13 = vmax.f32 %v1012_v10, 0.0 }
 0x1a8   :  { %v1005_v14 = vmul.f32 0.0078125, %v997_v11  ;;  %v900_v15 = vpop.xlane.xlu1 %899  ;;  %v1036_v11 = vld [vmem:[%s2107_s4] sm:$0xff] }
 0x1a9   :  { %v891_v16 = vpop.xlane.xlu0 %890  ;;  %v1024_v17 = vadd.f32 1e-05, %v1016_v13  ;;  %v918_v23 = vadd.f32 %v914_v18, %v900_v15 }
 0x1aa   :  { %v1013_v19 = vsub.f32 %v1005_v14, %v1009_v12  ;;  %v915_v44 = vadd.f32 %v911_v20, %v891_v16  ;;  %v1022_v12 = vld [vmem:[%s2106_s3 + $0x10] sm:$0xff]  ;;  %v1037_v16 = vld [vmem:[%s2107_s4 + $0x8] sm:$0xff] }
 0x1ab   :  { %1562 = vrsqrt.f32 %v1024_v17  ;;  %v1002_v27 = vmul.f32 0.0078125, %v918_v23  ;;  %v1023_v17 = vld [vmem:[%s2106_s3 + $0x18] sm:$0xff] }
 0x1ac   :  { %v1017_v21 = vmax.f32 %v1013_v19, 0.0  ;;  %v964_v24 = vpop.xlane.xlu1 %963 }
 0x1ad   :  { %v903_v26 = vpop.xlane.xlu0 %902  ;;  %v994_v29 = vadd.f32 %v990_v22, %v964_v24  ;;  %v1010_v49 = vmul.f32 %v1002_v27, %v1002_v27  ;;  %v1039_v24 = vld [vmem:[%s2107_s4 + $0x18] sm:$0xff] }
 0x1ae   :  { %v1025_v43 = vadd.f32 1e-05, %v1017_v21  ;;  %v919_v45 = vadd.f32 %v915_v44, %v903_v26 }
 0x1b0   :  { %1564 = vrsqrt.f32 %v1025_v43  ;;  %v980_v46 = vpop.xlane.xlu1 %979  ;;  %v1003_v51 = vmul.f32 0.0078125, %v919_v45 }
 0x1b1   :  { %v967_v47 = vpop.xlane.xlu0 %966  ;;  %v998_v32 = vadd.f32 %v994_v29, %v980_v46 }
 0x1b2   :  { %v995_v31 = vadd.f32 %v991_v48, %v967_v47  ;;  %v1011_v38 = vmul.f32 %v1003_v51, %v1003_v51 }
 0x1b3   :  { %v1006_v52 = vmul.f32 0.0078125, %v998_v32 }
 0x1b5   :  { %v983_v34 = vpop.xlane.xlu0 %982  ;;  %v1014_v54 = vsub.f32 %v1006_v52, %v1010_v49 }
 0x1b6   :  { %v999_v55 = vadd.f32 %v995_v31, %v983_v34 }
 0x1b7   :  { %v1018_v57 = vmax.f32 %v1014_v54, 0.0 }
 0x1b8   :  { %v1007_v58 = vmul.f32 0.0078125, %v999_v55  ;;  %v1563_v59 = vpop.eup %1562 }
 0x1b9   :  { %v1026_v61 = vadd.f32 1e-05, %v1018_v57  ;;  %v1032_v4 = vmul.f32 %v1563_v59, %v1020_v35 }
 0x1ba   :  { %v1015_v2 = vsub.f32 %v1007_v58, %v1011_v38 }
 0x1bb   :  { %1566 = vrsqrt.f32 %v1026_v61  ;;  %1050 = vperm.xlu1 %1473, %v1032_v4   ;;  %v1040_v10 = vmul.f32 %v1032_v4, %v1989_v53  ;;  %v1038_v53 = vld [vmem:[%s2107_s4 + $0x10] sm:$0xff] }
 0x1bc   :  { %v1019_v39 = vmax.f32 %v1015_v2, 0.0 }
 0x1bd   :  { %v1565_v7 = vpop.eup %1564  ;;  %v1044_v62 = vsub.f32 %v1036_v11, %v1040_v10 }
 0x1be   :  { %v1027_v50 = vadd.f32 1e-05, %v1019_v39  ;;  %v1033_v8 = vmul.f32 %v1565_v7, %v1021_v36 }
 0x1c0   :  { %1568 = vrsqrt.f32 %v1027_v50  ;;  %1055 = vperm.xlu0 %1472, %v1033_v8   ;;  %v1041_v15 = vmul.f32 %v1033_v8, %v1993_v3 }
 0x1c2   :  { %v1045_v21 = vsub.f32 %v1037_v16, %v1041_v15 }
 0x1c4   :  { %1074 = vperm.xlu0 %1472, %v1044_v62  }
 0x1c8   :  { %v1567_v13 = vpop.eup %1566 }
 0x1c9   :  { %v1034_v14 = vmul.f32 %v1567_v13, %v1022_v12 }
 0x1cb   :  { %1060 = vperm.xlu1 %1473, %v1034_v14   ;;  %v1042_v18 = vmul.f32 %v1034_v14, %v1002_v27 }
 0x1cd   :  { %v1569_v19 = vpop.eup %1568  ;;  %v1046_v20 = vsub.f32 %v1038_v53, %v1042_v18 }
 0x1ce   :  { %v1035_v23 = vmul.f32 %v1569_v19, %v1023_v17 }
 0x1cf   :  { %1084 = vperm.xlu0 %1472, %v1046_v20   ;;  %1079 = vperm.xlu1 %1473, %v1045_v21  }
 0x1d0   :  { %v1043_v3 = vmul.f32 %v1035_v23, %v1003_v51 }
 0x1d2   :  { %v1047_v26 = vsub.f32 %v1039_v24, %v1043_v3 }
 0x1d3   :  { %1065 = vperm.xlu1 %1473, %v1035_v23  }
 0x1d7   :  { %1089 = vperm.xlu1 %1473, %v1047_v26  }
 0x236   :  { %v1051_v22 = vpop.permute.xlu1 %1050 }
 0x237   :  { %v1068_v44 = vmul.f32 %v1051_v22, %v1856_v30  ;;  %v1104_v27 = vmul.f32 %v1051_v22, %v1861_v33  ;;  %v1121_v29 = vmul.f32 %v1051_v22, %v1926_v25  ;;  %v1138_v45 = vmul.f32 %v1051_v22, %v1929_v28 }
 0x23b   :  { %v1056_v43 = vpop.permute.xlu0 %1055 }
 0x23c   :  { %v1069_v33 = vmul.f32 %v1056_v43, %v1870_v40  ;;  %v1105_v25 = vmul.f32 %v1056_v43, %v1873_v41  ;;  %v1122_v28 = vmul.f32 %v1056_v43, %v1934_v37  ;;  %v1139_v54 = vmul.f32 %v1056_v43, %v1937_v42 }
 0x23f   :  { %v1075_v46 = vpop.permute.xlu0 %1074 }
 0x240   :  { %v1092_v47 = vadd.f32 %v1075_v46, %v1068_v44  ;;  %v1108_v48 = vadd.f32 %v1104_v27, %v1075_v46  ;;  %v1125_v32 = vadd.f32 %v1121_v29, %v1075_v46  ;;  %v1142_v49 = vadd.f32 %v1138_v45, %v1075_v46 }
 0x242   :  { %v1096_v51 = vmax.f32 %v1092_v47, 0.0  ;;  %v1112_v52 = vmax.f32 %v1108_v48, 0.0  ;;  %v1129_v31 = vmax.f32 %v1125_v32, 0.0  ;;  %v1146_v34 = vmax.f32 %v1142_v49, 0.0 }
 0x244   :  { %1100 = vst.msk [vmem:[%s2108_s5] sm:$0xff] %vm855_vm0, %v1096_v51  ;;  %1347 = vst.msk [vmem:[%s2108_s5 + $0x20] sm:$0xff] %vm855_vm0, %v1112_v52 }
 0x245   :  { %1351 = vst.msk [vmem:[%s2108_s5 + $0x40] sm:$0xff] %vm855_vm0, %v1129_v31  ;;  %1355 = vst.msk [vmem:[%s2108_s5 + $0x60] sm:$0xff] %vm855_vm0, %v1146_v34 }
 0x246   :  { %v1061_v30 = vpop.permute.xlu1 %1060 }
 0x247   :  { %v1070_v35 = vmul.f32 %v1061_v30, %v1892_v60  ;;  %v1106_v38 = vmul.f32 %v1061_v30, %v1897_v63  ;;  %v1123_v57 = vmul.f32 %v1061_v30, %v1954_v56  ;;  %v1140_v58 = vmul.f32 %v1061_v30, %v1960_v0 }
 0x24a   :  { %v1080_v55 = vpop.permute.xlu1 %1079  ;;  %v1085_v59 = vpop.permute.xlu0 %1084 }
 0x24b   :  { %v1093_v61 = vadd.f32 %v1080_v55, %v1069_v33  ;;  %v1109_v2 = vadd.f32 %v1105_v25, %v1080_v55  ;;  %v1126_v4 = vadd.f32 %v1122_v28, %v1080_v55  ;;  %v1143_v40 = vadd.f32 %v1139_v54, %v1080_v55 }
 0x24c   :  { %v1094_v36 = vadd.f32 %v1085_v59, %v1070_v35  ;;  %v1110_v41 = vadd.f32 %v1106_v38, %v1085_v59  ;;  %v1127_v39 = vadd.f32 %v1123_v57, %v1085_v59  ;;  %v1144_v37 = vadd.f32 %v1140_v58, %v1085_v59 }
 0x24d   :  { %v1097_v7 = vmax.f32 %v1093_v61, 0.0  ;;  %v1113_v42 = vmax.f32 %v1109_v2, 0.0  ;;  %v1130_v50 = vmax.f32 %v1126_v4, 0.0  ;;  %v1147_v8 = vmax.f32 %v1143_v40, 0.0 }
 0x24e   :  { %v1098_v60 = vmax.f32 %v1094_v36, 0.0  ;;  %v1114_v10 = vmax.f32 %v1110_v41, 0.0  ;;  %v1131_v63 = vmax.f32 %v1127_v39, 0.0  ;;  %v1148_v11 = vmax.f32 %v1144_v37, 0.0  ;;  %v1066_v56 = vpop.permute.xlu1 %1065 }
 0x24f   :  { %1101 = vst.msk [vmem:[%s2108_s5 + $0x8] sm:$0xff] %vm855_vm0, %v1097_v7  ;;  %1348 = vst.msk [vmem:[%s2108_s5 + $0x28] sm:$0xff] %vm855_vm0, %v1113_v42  ;;  %v1071_v0 = vmul.f32 %v1066_v56, %v1906_v6  ;;  %v1107_v62 = vmul.f32 %v1066_v56, %v1912_v9  ;;  %v1124_v12 = vmul.f32 %v1066_v56, %v1963_v1 }
 0x250   :  { %1352 = vst.msk [vmem:[%s2108_s5 + $0x48] sm:$0xff] %vm855_vm0, %v1130_v50  ;;  %1356 = vst.msk [vmem:[%s2108_s5 + $0x68] sm:$0xff] %vm855_vm0, %v1147_v8  ;;  %v1141_v13 = vmul.f32 %v1066_v56, %v1969_v5 }
 0x251   :  { %1102 = vst.msk [vmem:[%s2108_s5 + $0x10] sm:$0xff] %vm855_vm0, %v1098_v60  ;;  %1349 = vst.msk [vmem:[%s2108_s5 + $0x30] sm:$0xff] %vm855_vm0, %v1114_v10 }
 0x252   :  { %1353 = vst.msk [vmem:[%s2108_s5 + $0x50] sm:$0xff] %vm855_vm0, %v1131_v63  ;;  %1357 = vst.msk [vmem:[%s2108_s5 + $0x70] sm:$0xff] %vm855_vm0, %v1148_v11  ;;  %v1090_v14 = vpop.permute.xlu1 %1089 }
 0x253   :  { %v1095_v15 = vadd.f32 %v1090_v14, %v1071_v0  ;;  %v1111_v53 = vadd.f32 %v1107_v62, %v1090_v14  ;;  %v1128_v16 = vadd.f32 %v1124_v12, %v1090_v14  ;;  %v1145_v17 = vadd.f32 %v1141_v13, %v1090_v14 }
 0x255   :  { %v1099_v18 = vmax.f32 %v1095_v15, 0.0  ;;  %v1115_v19 = vmax.f32 %v1111_v53, 0.0  ;;  %v1132_v20 = vmax.f32 %v1128_v16, 0.0  ;;  %v1149_v21 = vmax.f32 %v1145_v17, 0.0 }
 0x257   :  { %1103 = vst.msk [vmem:[%s2108_s5 + $0x18] sm:$0xff] %vm855_vm0, %v1099_v18  ;;  %1350 = vst.msk [vmem:[%s2108_s5 + $0x38] sm:$0xff] %vm855_vm0, %v1115_v19 }
 0x258   :  { %1354 = vst.msk [vmem:[%s2108_s5 + $0x58] sm:$0xff] %vm855_vm0, %v1132_v20  ;;  %1358 = vst.msk [vmem:[%s2108_s5 + $0x78] sm:$0xff] %vm855_vm0, %v1149_v21 }

// kernel: generator_forward.4
= control target key start
LH: loop header
LB: loop body
LE: loop exit
PB: predicated region body
PF: predicated region fallthrough
CT: control target
= control target key end

     0   :  { %vm162_vm0 = vcmask 1041408   ;;  %v5935_v2 = vmov 0   ;;  %vm149_vm1 = vcmask 818176   ;;  %vm2661_vm2 = vcmask 15360   ;;  %s8874_s1 = inlined_call_operand.vmem [shape: bf16[16,100,2], index: 1, kind: input, shape index: {}]   ;;  %s8875_s0 = inlined_call_operand.vmem [shape: bf16[16,64,100], index: 0, kind: input, shape index: {}]   ;;  %s8876_s2 = inlined_call_operand.vmem [shape: f32[64,1], index: 2, kind: input, shape index: {}]   ;;  %s8877_s3 = inlined_call_operand.vmem [shape: f32[64,1], index: 3, kind: input, shape index: {}]   ;;  %s8878_s4 = inlined_call_operand.vmem [shape: f32[64,1], index: 4, kind: input, shape index: {}]   ;;  %s8879_s5 = inlined_call_operand.vmem [shape: f32[16,64,2], index: 5, kind: output, shape index: {}]  }
   0x1   :  { %v5743_v0 = vld [vmem:[%s8874_s1 + $0x30] ss:$0 sps:$4 sm:$0x33]   ;;  %v5745_v1 = vld [vmem:[%s8874_s1 + $0x28] sm:$0xff]   ;;  %5742 = vset.pattern.permute.xlu1 %v5935_v2  ;;  %5741 = vset.pattern.permute.xlu0 %v5935_v2  ;;  %v5746_v4 = vld [vmem:[%s8874_s1 + $0x5c] sm:$0xff]  }
   0x2   :  { %v5744_v3 = vld [vmem:[%s8874_s1 + $0x64] ss:$0 sps:$4 sm:$0x33]   ;;  %5724 = vmatprep.subr.msk.bf16.mxu0 %vm162_vm0, %v5743_v0  ;;  %v164_v5 = vsel %vm162_vm0, %v5743_v0, 0  ;;  %v5748_v8 = vld [vmem:[%s8874_s1 + $0x54] sm:$0xff]   ;;  %v5750_v10 = vld [vmem:[%s8874_s1 + $0x4c] sm:$0xff]  }
   0x3   :  { %v5747_v6 = vld [vmem:[%s8874_s1 + $0x20] sm:$0xff]   ;;  %5725 = vmatprep.subr.msk.bf16.mxu1 %vm162_vm0, %v5744_v3  ;;  %5373 = vmatpush3.bf16.msra.mxu0 %v164_v5  ;;  %v326_v7 = vsel %vm162_vm0, %v5744_v3, 0  ;;  %v5749_v9 = vld [vmem:[%s8874_s1 + $0x18] sm:$0xff]   ;;  %v5751_v11 = vld [vmem:[%s8874_s1 + $0x10] sm:$0xff]  }
   0x4   :  { %5395 = vmatpush3.bf16.msra.mxu1 %v326_v7  ;;  %5374 = vmatprep.subr.bf16.mxu0 %v5745_v1  ;;  %v5752_v12 = vld [vmem:[%s8874_s1 + $0x44] sm:$0xff]   ;;  %v5754_v16 = vld [vmem:[%s8874_s1 + $0x3c] sm:$0xff]   ;;  %v5756_v18 = vld [vmem:[%s8874_s1 + $0x34] sm:$0xff]  }
   0x5   :  { %5396 = vmatprep.subr.bf16.mxu1 %v5746_v4  ;;  %v5757_v13 = vld [vmem:[%s8875_s0] sm:$0xff]   ;;  %v5753_v15 = vld [vmem:[%s8874_s1 + $0x8] sm:$0xff]   ;;  %v5761_v19 = vld [vmem:[%s8874_s1 + $0x98] ss:$0 sps:$4 sm:$0x33]  }
   0x6   :  { %v5758_v14 = vld [vmem:[%s8875_s0 + $0x20] sm:$0xff]   ;;  %5386 = vmatprep.mubr.msk.bf16.mxu0 %vm149_vm1, %v5757_v13  ;;  %v5762_v20 = vld [vmem:[%s8874_s1 + $0xcc] ss:$0 sps:$4 sm:$0x33]   ;;  %v5763_v23 = vld [vmem:[%s8874_s1 + $0x90] sm:$0xff]   ;;  %v488_v24 = vsel %vm162_vm0, %v5761_v19, 0 }
   0x7   :  { %5375 = vmatpush3.bf16.msra.mxu0 %v5745_v1  ;;  %5408 = vmatprep.mubr.msk.bf16.mxu1 %vm149_vm1, %v5758_v14  ;;  %v5755_v17 = vld [vmem:[%s8874_s1] sm:$0xff]   ;;  %v5759_v21 = vld [vmem:[%s8875_s0 + $0x8] sm:$0xff]   ;;  %v650_v26 = vsel %vm162_vm0, %v5762_v20, 0  ;;  %v5765_v27 = vld [vmem:[%s8875_s0 + $0x10] sm:$0xff]  }
   0x8   :  { %5397 = vmatpush3.bf16.msra.mxu1 %v5746_v4  ;;  %5376 = vmatprep.subr.bf16.mxu0 %v5747_v6  ;;  %v5760_v22 = vld [vmem:[%s8875_s0 + $0x28] sm:$0xff]   ;;  %v5766_v28 = vld [vmem:[%s8875_s0 + $0x30] sm:$0xff]   ;;  %v5767_v29 = vld [vmem:[%s8875_s0 + $0x18] sm:$0xff]  }
   0x9   :  { %5398 = vmatprep.subr.bf16.mxu1 %v5748_v8  ;;  %v5764_v25 = vld [vmem:[%s8874_s1 + $0xc4] sm:$0xff]   ;;  %v5770_v31 = vld [vmem:[%s8874_s1 + $0xbc] sm:$0xff]   ;;  %v5772_v34 = vld [vmem:[%s8874_s1 + $0xb4] sm:$0xff]  }
   0xa   :  { %v5769_v30 = vld [vmem:[%s8874_s1 + $0x88] sm:$0xff]   ;;  %v5768_v32 = vld [vmem:[%s8875_s0 + $0x38] sm:$0xff]   ;;  %v5771_v33 = vld [vmem:[%s8874_s1 + $0x80] sm:$0xff]  }
   0xb   :  { %5377 = vmatpush3.bf16.msra.mxu0 %v5747_v6  ;;  %v5779_v35 = vld [vmem:[%s8875_s0 + $0x40] sm:$0xff]   ;;  %v5773_v37 = vld [vmem:[%s8874_s1 + $0x78] sm:$0xff]   ;;  %v5774_v38 = vld [vmem:[%s8874_s1 + $0xac] sm:$0xff]  }
   0xc   :  { %5399 = vmatpush3.bf16.msra.mxu1 %v5748_v8  ;;  %5378 = vmatprep.subr.bf16.mxu0 %v5749_v9  ;;  %v5780_v36 = vld [vmem:[%s8875_s0 + $0x60] sm:$0xff]   ;;  %v5775_v39 = vld [vmem:[%s8874_s1 + $0x70] sm:$0xff]   ;;  %v5777_v41 = vld [vmem:[%s8874_s1 + $0x68] sm:$0xff]  }
   0xd   :  { %5400 = vmatprep.subr.bf16.mxu1 %v5750_v10  ;;  %v5776_v40 = vld [vmem:[%s8874_s1 + $0xa4] sm:$0xff]   ;;  %v5778_v42 = vld [vmem:[%s8874_s1 + $0x9c] sm:$0xff]   ;;  %v5784_v44 = vld [vmem:[%s8874_s1 + $0x134] ss:$0 sps:$4 sm:$0x33]  }
   0xe   :  { %v5783_v43 = vld [vmem:[%s8874_s1 + $0x100] ss:$0 sps:$4 sm:$0x33]   ;;  %v5781_v45 = vld [vmem:[%s8875_s0 + $0x48] sm:$0xff]   ;;  %v5785_v47 = vld [vmem:[%s8874_s1 + $0xf8] sm:$0xff]   ;;  %v974_v50 = vsel %vm162_vm0, %v5784_v44, 0 }
   0xf   :  { %5379 = vmatpush3.bf16.msra.mxu0 %v5749_v9  ;;  %v5782_v46 = vld [vmem:[%s8875_s0 + $0x68] sm:$0xff]   ;;  %v812_v48 = vsel %vm162_vm0, %v5783_v43, 0  ;;  %v5787_v51 = vld [vmem:[%s8875_s0 + $0x50] sm:$0xff]   ;;  %v5789_v53 = vld [vmem:[%s8875_s0 + $0x58] sm:$0xff]  }
  0x10   :  { %5401 = vmatpush3.bf16.msra.mxu1 %v5750_v10  ;;  %5380 = vmatprep.subr.bf16.mxu0 %v5751_v11  ;;  %v5786_v49 = vld [vmem:[%s8874_s1 + $0x12c] sm:$0xff]   ;;  %v5790_v56 = vld [vmem:[%s8875_s0 + $0x78] sm:$0xff]   ;;  %v5792_v57 = vld [vmem:[%s8874_s1 + $0x124] sm:$0xff]  }
  0x11   :  { %5402 = vmatprep.subr.bf16.mxu1 %v5752_v12  ;;  %v5788_v52 = vld [vmem:[%s8875_s0 + $0x70] sm:$0xff]   ;;  %v5793_v58 = vld [vmem:[%s8874_s1 + $0xe8] sm:$0xff]   ;;  %v5794_v59 = vld [vmem:[%s8874_s1 + $0x11c] sm:$0xff]  }
  0x12   :  { %v5791_v54 = vld [vmem:[%s8874_s1 + $0xf0] sm:$0xff]   ;;  %v24_v60 = vld [vmem:[%s8876_s2 + $0x18] sm:$0xff]  ;;  %v21_v61 = vld [vmem:[%s8876_s2] sm:$0xff] }
  0x13   :  { %5381 = vmatpush3.bf16.msra.mxu0 %v5751_v11  ;;  %v23_v55 = vld [vmem:[%s8876_s2 + $0x10] sm:$0xff]  ;;  %v5801_v62 = vld [vmem:[%s8875_s0 + $0x80] sm:$0xff]   ;;  %52 = vperm.xlu0 %5741, %v21_v61   ;;  %v26_v2 = vld [vmem:[%s8876_s2 + $0x28] sm:$0xff] }
  0x14   :  { %5403 = vmatpush3.bf16.msra.mxu1 %v5752_v12  ;;  %5382 = vmatprep.subr.bf16.mxu0 %v5753_v15  ;;  %v5802_v63 = vld [vmem:[%s8875_s0 + $0xa0] sm:$0xff]   ;;  %v5796_v1 = vld [vmem:[%s8874_s1 + $0x114] sm:$0xff]   ;;  %v22_v3 = vld [vmem:[%s8876_s2 + $0x8] sm:$0xff] }
  0x15   :  { %5404 = vmatprep.subr.bf16.mxu1 %v5754_v16  ;;  %62 = vperm.xlu1 %5742, %v23_v55   ;;  %v5795_v0 = vld [vmem:[%s8874_s1 + $0xe0] sm:$0xff]   ;;  %v5797_v4 = vld [vmem:[%s8874_s1 + $0xd8] sm:$0xff]   ;;  %v5798_v5 = vld [vmem:[%s8874_s1 + $0x10c] sm:$0xff]  }
  0x16   :  { %v28_v6 = vld [vmem:[%s8876_s2 + $0x38] sm:$0xff]  ;;  %v25_v7 = vld [vmem:[%s8876_s2 + $0x20] sm:$0xff]  ;;  %v5799_v8 = vld [vmem:[%s8874_s1 + $0xd0] sm:$0xff]  }
  0x17   :  { %5383 = vmatpush3.bf16.msra.mxu0 %v5753_v15  ;;  %57 = vperm.xlu0 %5741, %v22_v3   ;;  %v5800_v9 = vld [vmem:[%s8874_s1 + $0x104] sm:$0xff]   ;;  %v27_v11 = vld [vmem:[%s8876_s2 + $0x30] sm:$0xff]  ;;  %v5806_v12 = vld [vmem:[%s8874_s1 + $0x19c] ss:$0 sps:$4 sm:$0x33]  }
  0x18   :  { %5405 = vmatpush3.bf16.msra.mxu1 %v5754_v16  ;;  %5384 = vmatprep.subr.bf16.mxu0 %v5755_v17  ;;  %v5805_v10 = vld [vmem:[%s8874_s1 + $0x168] ss:$0 sps:$4 sm:$0x33]   ;;  %v5807_v16 = vld [vmem:[%s8874_s1 + $0x160] sm:$0xff]   ;;  %v5853_v3 = vld [vmem:[%s8875_s0 + $0x110] sm:$0xff]  }
  0x19   :  { %5406 = vmatprep.subr.bf16.mxu1 %v5756_v18  ;;  %67 = vperm.xlu1 %5742, %v24_v60   ;;  %v5803_v13 = vld [vmem:[%s8875_s0 + $0x88] sm:$0xff]   ;;  %v1136_v15 = vsel %vm162_vm0, %v5805_v10, 0 }
  0x1a   :  { %v5804_v14 = vld [vmem:[%s8875_s0 + $0xa8] sm:$0xff]  }
  0x1b   :  { %5385 = vmatpush3.bf16.msra.mxu0 %v5755_v17  ;;  %72 = vperm.xlu0 %5741, %v25_v7   ;;  %v5808_v17 = vld [vmem:[%s8874_s1 + $0x194] sm:$0xff]   ;;  %v5841_v55 = vld [vmem:[%s8874_s1 + $0x1a8] sm:$0xff]  }
  0x1c   :  { %5407 = vmatpush3.bf16.msra.mxu1 %v5756_v18  ;;  %5726 = vmatprep.subr.msk.bf16.mxu0 %vm162_vm0, %v5761_v19  ;;  %v1298_v18 = vsel %vm162_vm0, %v5806_v12, 0  ;;  %v5809_v19 = vld [vmem:[%s8875_s0 + $0x90] sm:$0xff]   ;;  %v5850_v60 = vld [vmem:[%s8874_s1 + $0x26c] ss:$0 sps:$4 sm:$0x33]   ;;  %v5855_v7 = vld [vmem:[%s8875_s0 + $0x118] sm:$0xff]  }
  0x1d   :  { %5727 = vmatprep.subr.msk.bf16.mxu1 %vm162_vm0, %v5762_v20  ;;  %77 = vperm.xlu1 %5742, %v26_v2   ;;  %v5810_v20 = vld [vmem:[%s8875_s0 + $0xb0] sm:$0xff]   ;;  %v5847_v61 = vld [vmem:[%s8875_s0 + $0x108] sm:$0xff]   ;;  %v1946_v2 = vsel %vm162_vm0, %v5850_v60, 0 }
  0x1e   :  { %5387 = vmatmul.mubr.msk.bf16.vlgmr.msra.gmra.mxu0 %vm149_vm1, %v5759_v21  ;;  %v5813_v21 = vld [vmem:[%s8874_s1 + $0x158] sm:$0xff]  }
  0x1f   :  { %5409 = vmatmul.mubr.msk.bf16.vlgmr.msra.gmra.mxu1 %vm149_vm1, %v5760_v22  ;;  %5417 = vmatpush3.bf16.msra.mxu0 %v488_v24  ;;  %v5814_v22 = vld [vmem:[%s8874_s1 + $0x18c] sm:$0xff]   ;;  %v5812_v24 = vld [vmem:[%s8875_s0 + $0xb8] sm:$0xff]  }
  0x20   :  { %5439 = vmatpush3.bf16.msra.mxu1 %v650_v26  ;;  %5418 = vmatprep.subr.bf16.mxu0 %v5763_v23  ;;  %v5816_v26 = vld [vmem:[%s8874_s1 + $0x184] sm:$0xff]  }
  0x21   :  { %5440 = vmatprep.subr.bf16.mxu1 %v5764_v25  ;;  %5390 = vmatprep.mubr.msk.bf16.mxu0 %vm149_vm1, %v5765_v27  ;;  %v5823_v27 = vld [vmem:[%s8875_s0 + $0xc0] sm:$0xff]  }
  0x22   :  { %5412 = vmatprep.mubr.msk.bf16.mxu1 %vm149_vm1, %v5766_v28  ;;  %87 = vperm.xlu1 %5742, %v28_v6   ;;  %v5824_v28 = vld [vmem:[%s8875_s0 + $0xe0] sm:$0xff]  }
  0x23   :  { %5419 = vmatpush3.bf16.msra.mxu0 %v5763_v23  ;;  %82 = vperm.xlu0 %5741, %v27_v11   ;;  %v5811_v23 = vld [vmem:[%s8875_s0 + $0x98] sm:$0xff]   ;;  %v5867_v11 = vld [vmem:[%s8875_s0 + $0x140] sm:$0xff]  }
  0x24   :  { %5441 = vmatpush3.bf16.msra.mxu1 %v5764_v25  ;;  %5420 = vmatprep.subr.bf16.mxu0 %v5769_v30  ;;  %v5815_v25 = vld [vmem:[%s8874_s1 + $0x150] sm:$0xff]   ;;  %v5858_v6 = vld [vmem:[%s8874_s1 + $0x25c] sm:$0xff]  }
  0x25   :  { %5442 = vmatprep.subr.bf16.mxu1 %v5770_v31 }
  0x26   :  { %5391 = vmatmul.mubr.msk.bf16.gmra.mxu0 %vm149_vm1, %v5767_v29  ;;  %v5817_v29 = vld [vmem:[%s8874_s1 + $0x148] sm:$0xff]  }
  0x27   :  { %5413 = vmatmul.mubr.msk.bf16.gmra.mxu1 %vm149_vm1, %v5768_v32  ;;  %5421 = vmatpush3.bf16.msra.mxu0 %v5769_v30  ;;  %v5818_v30 = vld [vmem:[%s8874_s1 + $0x17c] sm:$0xff]   ;;  %v5820_v32 = vld [vmem:[%s8874_s1 + $0x174] sm:$0xff]  }
  0x28   :  { %5443 = vmatpush3.bf16.msra.mxu1 %v5770_v31  ;;  %5422 = vmatprep.subr.bf16.mxu0 %v5771_v33  ;;  %v5819_v31 = vld [vmem:[%s8874_s1 + $0x140] sm:$0xff]  }
  0x29   :  { %5444 = vmatprep.subr.bf16.mxu1 %v5772_v34  ;;  %5430 = vmatprep.mubr.msk.bf16.mxu0 %vm149_vm1, %v5779_v35  ;;  %v5827_v35 = vld [vmem:[%s8874_s1 + $0x1d0] ss:$0 sps:$4 sm:$0x33]  }
  0x2a   :  { %5452 = vmatprep.mubr.msk.bf16.mxu1 %vm149_vm1, %v5780_v36  ;;  %v5828_v36 = vld [vmem:[%s8874_s1 + $0x204] ss:$0 sps:$4 sm:$0x33]  }
  0x2b   :  { %5423 = vmatpush3.bf16.msra.mxu0 %v5771_v33  ;;  %v5821_v33 = vld [vmem:[%s8874_s1 + $0x138] sm:$0xff]  }
  0x2c   :  { %5445 = vmatpush3.bf16.msra.mxu1 %v5772_v34  ;;  %5424 = vmatprep.subr.bf16.mxu0 %v5773_v37  ;;  %v5822_v34 = vld [vmem:[%s8874_s1 + $0x16c] sm:$0xff]  }
  0x2d   :  { %5446 = vmatprep.subr.bf16.mxu1 %v5774_v38 }
  0x2f   :  { %5425 = vmatpush3.bf16.msra.mxu0 %v5773_v37  ;;  %v5825_v37 = vld [vmem:[%s8875_s0 + $0xc8] sm:$0xff]  }
  0x30   :  { %5447 = vmatpush3.bf16.msra.mxu1 %v5774_v38  ;;  %5426 = vmatprep.subr.bf16.mxu0 %v5775_v39  ;;  %v5826_v38 = vld [vmem:[%s8875_s0 + $0xe8] sm:$0xff]  }
  0x31   :  { %5448 = vmatprep.subr.bf16.mxu1 %v5776_v40 }
  0x33   :  { %5427 = vmatpush3.bf16.msra.mxu0 %v5775_v39  ;;  %v5829_v39 = vld [vmem:[%s8874_s1 + $0x1c8] sm:$0xff]  }
  0x34   :  { %5449 = vmatpush3.bf16.msra.mxu1 %v5776_v40  ;;  %5428 = vmatprep.subr.bf16.mxu0 %v5777_v41  ;;  %v1460_v40 = vsel %vm162_vm0, %v5827_v35, 0 }
  0x35   :  { %5450 = vmatprep.subr.bf16.mxu1 %v5778_v42 }
  0x37   :  { %5429 = vmatpush3.bf16.msra.mxu0 %v5777_v41  ;;  %v5830_v41 = vld [vmem:[%s8874_s1 + $0x1fc] sm:$0xff]  }
  0x38   :  { %5451 = vmatpush3.bf16.msra.mxu1 %v5778_v42  ;;  %5728 = vmatprep.subr.msk.bf16.mxu0 %vm162_vm0, %v5783_v43  ;;  %v1622_v42 = vsel %vm162_vm0, %v5828_v36, 0  ;;  %v5831_v43 = vld [vmem:[%s8875_s0 + $0xd0] sm:$0xff]  }
  0x39   :  { %5729 = vmatprep.subr.msk.bf16.mxu1 %vm162_vm0, %v5784_v44  ;;  %v5832_v44 = vld [vmem:[%s8875_s0 + $0xf0] sm:$0xff]  }
  0x3a   :  { %5431 = vmatmul.mubr.msk.bf16.vlgmr.msra.gmra.mxu0 %vm149_vm1, %v5781_v45  ;;  %v5833_v45 = vld [vmem:[%s8875_s0 + $0xd8] sm:$0xff]  }
  0x3b   :  { %5453 = vmatmul.mubr.msk.bf16.vlgmr.msra.gmra.mxu1 %vm149_vm1, %v5782_v46  ;;  %5461 = vmatpush3.bf16.msra.mxu0 %v812_v48  ;;  %v5835_v46 = vld [vmem:[%s8874_s1 + $0x1c0] sm:$0xff]   ;;  %v5834_v48 = vld [vmem:[%s8875_s0 + $0xf8] sm:$0xff]  }
  0x3c   :  { %5483 = vmatpush3.bf16.msra.mxu1 %v974_v50  ;;  %5462 = vmatprep.subr.bf16.mxu0 %v5785_v47  ;;  %v5838_v50 = vld [vmem:[%s8874_s1 + $0x1ec] sm:$0xff]  }
  0x3d   :  { %5484 = vmatprep.subr.bf16.mxu1 %v5786_v49  ;;  %5434 = vmatprep.mubr.msk.bf16.mxu0 %vm149_vm1, %v5787_v51  ;;  %v5845_v51 = vld [vmem:[%s8875_s0 + $0x100] sm:$0xff]  }
  0x3e   :  { %5456 = vmatprep.mubr.msk.bf16.mxu1 %vm149_vm1, %v5788_v52  ;;  %v5846_v52 = vld [vmem:[%s8875_s0 + $0x120] sm:$0xff]  }
  0x3f   :  { %5463 = vmatpush3.bf16.msra.mxu0 %v5785_v47  ;;  %v5836_v47 = vld [vmem:[%s8874_s1 + $0x1f4] sm:$0xff]  }
  0x40   :  { %5485 = vmatpush3.bf16.msra.mxu1 %v5786_v49  ;;  %5464 = vmatprep.subr.bf16.mxu0 %v5791_v54  ;;  %v5837_v49 = vld [vmem:[%s8874_s1 + $0x1b8] sm:$0xff]  }
  0x41   :  { %5486 = vmatprep.subr.bf16.mxu1 %v5792_v57 }
  0x42   :  { %5435 = vmatmul.mubr.msk.bf16.gmra.mxu0 %vm149_vm1, %v5789_v53  ;;  %v5839_v53 = vld [vmem:[%s8874_s1 + $0x1b0] sm:$0xff]  }
  0x43   :  { %5457 = vmatmul.mubr.msk.bf16.gmra.mxu1 %vm149_vm1, %v5790_v56  ;;  %5465 = vmatpush3.bf16.msra.mxu0 %v5791_v54  ;;  %v5840_v54 = vld [vmem:[%s8874_s1 + $0x1e4] sm:$0xff]   ;;  %v5842_v56 = vld [vmem:[%s8874_s1 + $0x1dc] sm:$0xff]  }
  0x44   :  { %5487 = vmatpush3.bf16.msra.mxu1 %v5792_v57  ;;  %5466 = vmatprep.subr.bf16.mxu0 %v5793_v58  ;;  %v5843_v57 = vld [vmem:[%s8874_s1 + $0x1a0] sm:$0xff]  }
  0x45   :  { %5488 = vmatprep.subr.bf16.mxu1 %v5794_v59  ;;  %5474 = vmatprep.mubr.msk.bf16.mxu0 %vm149_vm1, %v5801_v62  ;;  %v5848_v62 = vld [vmem:[%s8875_s0 + $0x128] sm:$0xff]  }
  0x46   :  { %5496 = vmatprep.mubr.msk.bf16.mxu1 %vm149_vm1, %v5802_v63  ;;  %v5851_v63 = vld [vmem:[%s8874_s1 + $0x230] sm:$0xff]  }
  0x47   :  { %5467 = vmatpush3.bf16.msra.mxu0 %v5793_v58  ;;  %v5844_v58 = vld [vmem:[%s8874_s1 + $0x1d4] sm:$0xff]  }
  0x48   :  { %5489 = vmatpush3.bf16.msra.mxu1 %v5794_v59  ;;  %5468 = vmatprep.subr.bf16.mxu0 %v5795_v0  ;;  %v5849_v59 = vld [vmem:[%s8874_s1 + $0x238] ss:$0 sps:$4 sm:$0x33]  }
  0x49   :  { %5490 = vmatprep.subr.bf16.mxu1 %v5796_v1 }
  0x4b   :  { %5469 = vmatpush3.bf16.msra.mxu0 %v5795_v0  ;;  %v1784_v0 = vsel %vm162_vm0, %v5849_v59, 0 }
  0x4c   :  { %5491 = vmatpush3.bf16.msra.mxu1 %v5796_v1  ;;  %5470 = vmatprep.subr.bf16.mxu0 %v5797_v4  ;;  %v5852_v1 = vld [vmem:[%s8874_s1 + $0x264] sm:$0xff]  }
  0x4d   :  { %5492 = vmatprep.subr.bf16.mxu1 %v5798_v5 }
  0x4f   :  { %5471 = vmatpush3.bf16.msra.mxu0 %v5797_v4  ;;  %v5854_v4 = vld [vmem:[%s8875_s0 + $0x130] sm:$0xff]  }
  0x50   :  { %5493 = vmatpush3.bf16.msra.mxu1 %v5798_v5  ;;  %5472 = vmatprep.subr.bf16.mxu0 %v5799_v8  ;;  %v5857_v5 = vld [vmem:[%s8874_s1 + $0x228] sm:$0xff]  }
  0x51   :  { %5494 = vmatprep.subr.bf16.mxu1 %v5800_v9 }
  0x53   :  { %5473 = vmatpush3.bf16.msra.mxu0 %v5799_v8  ;;  %v5856_v8 = vld [vmem:[%s8875_s0 + $0x138] sm:$0xff]  }
  0x54   :  { %5495 = vmatpush3.bf16.msra.mxu1 %v5800_v9  ;;  %5730 = vmatprep.subr.msk.bf16.mxu0 %vm162_vm0, %v5805_v10  ;;  %v5859_v9 = vld [vmem:[%s8874_s1 + $0x220] sm:$0xff]   ;;  %v5860_v10 = vld [vmem:[%s8874_s1 + $0x254] sm:$0xff]  }
  0x55   :  { %5731 = vmatprep.subr.msk.bf16.mxu1 %vm162_vm0, %v5806_v12  ;;  %v5861_v12 = vld [vmem:[%s8874_s1 + $0x218] sm:$0xff]  }
  0x56   :  { %5475 = vmatmul.mubr.msk.bf16.vlgmr.msra.gmra.mxu0 %vm149_vm1, %v5803_v13  ;;  %v5868_v13 = vld [vmem:[%s8875_s0 + $0x160] sm:$0xff]  }
  0x57   :  { %5497 = vmatmul.mubr.msk.bf16.vlgmr.msra.gmra.mxu1 %vm149_vm1, %v5804_v14  ;;  %5505 = vmatpush3.bf16.msra.mxu0 %v1136_v15  ;;  %v5862_v14 = vld [vmem:[%s8874_s1 + $0x24c] sm:$0xff]  }
  0x58   :  { %5527 = vmatpush3.bf16.msra.mxu1 %v1298_v18  ;;  %5506 = vmatprep.subr.bf16.mxu0 %v5807_v16  ;;  %v5863_v15 = vld [vmem:[%s8874_s1 + $0x210] sm:$0xff]   ;;  %v5866_v18 = vld [vmem:[%s8874_s1 + $0x23c] sm:$0xff]  }
  0x59   :  { %5528 = vmatprep.subr.bf16.mxu1 %v5808_v17  ;;  %5478 = vmatprep.mubr.msk.bf16.mxu0 %vm149_vm1, %v5809_v19  ;;  %v5871_v19 = vld [vmem:[%s8874_s1 + $0x2a0] ss:$0 sps:$4 sm:$0x33]  }
  0x5a   :  { %5500 = vmatprep.mubr.msk.bf16.mxu1 %vm149_vm1, %v5810_v20  ;;  %v5872_v20 = vld [vmem:[%s8874_s1 + $0x2d4] ss:$0 sps:$4 sm:$0x33]  }
  0x5b   :  { %5507 = vmatpush3.bf16.msra.mxu0 %v5807_v16  ;;  %v5864_v16 = vld [vmem:[%s8874_s1 + $0x244] sm:$0xff]  }
  0x5c   :  { %5529 = vmatpush3.bf16.msra.mxu1 %v5808_v17  ;;  %5508 = vmatprep.subr.bf16.mxu0 %v5813_v21  ;;  %v5865_v17 = vld [vmem:[%s8874_s1 + $0x208] sm:$0xff]  }
  0x5d   :  { %5530 = vmatprep.subr.bf16.mxu1 %v5814_v22 }
  0x5e   :  { %5479 = vmatmul.mubr.msk.bf16.gmra.mxu0 %vm149_vm1, %v5811_v23  ;;  %v5873_v23 = vld [vmem:[%s8874_s1 + $0x298] sm:$0xff]  }
  0x5f   :  { %5501 = vmatmul.mubr.msk.bf16.gmra.mxu1 %vm149_vm1, %v5812_v24  ;;  %5509 = vmatpush3.bf16.msra.mxu0 %v5813_v21  ;;  %v5869_v21 = vld [vmem:[%s8875_s0 + $0x148] sm:$0xff]   ;;  %v2108_v24 = vsel %vm162_vm0, %v5871_v19, 0 }
  0x60   :  { %5531 = vmatpush3.bf16.msra.mxu1 %v5814_v22  ;;  %5510 = vmatprep.subr.bf16.mxu0 %v5815_v25  ;;  %v5870_v22 = vld [vmem:[%s8875_s0 + $0x168] sm:$0xff]  }
  0x61   :  { %5532 = vmatprep.subr.bf16.mxu1 %v5816_v26  ;;  %5518 = vmatprep.mubr.msk.bf16.mxu0 %vm149_vm1, %v5823_v27  ;;  %v5875_v27 = vld [vmem:[%s8875_s0 + $0x150] sm:$0xff]  }
  0x62   :  { %5540 = vmatprep.mubr.msk.bf16.mxu1 %vm149_vm1, %v5824_v28  ;;  %v5876_v28 = vld [vmem:[%s8875_s0 + $0x170] sm:$0xff]  }
  0x63   :  { %5511 = vmatpush3.bf16.msra.mxu0 %v5815_v25  ;;  %v5874_v25 = vld [vmem:[%s8874_s1 + $0x2cc] sm:$0xff]  }
  0x64   :  { %5533 = vmatpush3.bf16.msra.mxu1 %v5816_v26  ;;  %5512 = vmatprep.subr.bf16.mxu0 %v5817_v29  ;;  %v2270_v26 = vsel %vm162_vm0, %v5872_v20, 0 }
  0x65   :  { %5534 = vmatprep.subr.bf16.mxu1 %v5818_v30 }
  0x67   :  { %5513 = vmatpush3.bf16.msra.mxu0 %v5817_v29  ;;  %v5879_v29 = vld [vmem:[%s8874_s1 + $0x290] sm:$0xff]  }
  0x68   :  { %5535 = vmatpush3.bf16.msra.mxu1 %v5818_v30  ;;  %5514 = vmatprep.subr.bf16.mxu0 %v5819_v31  ;;  %v5880_v30 = vld [vmem:[%s8874_s1 + $0x2c4] sm:$0xff]  }
  0x69   :  { %5536 = vmatprep.subr.bf16.mxu1 %v5820_v32 }
  0x6b   :  { %5515 = vmatpush3.bf16.msra.mxu0 %v5819_v31  ;;  %v5877_v31 = vld [vmem:[%s8875_s0 + $0x158] sm:$0xff]  }
  0x6c   :  { %5537 = vmatpush3.bf16.msra.mxu1 %v5820_v32  ;;  %5516 = vmatprep.subr.bf16.mxu0 %v5821_v33  ;;  %v5878_v32 = vld [vmem:[%s8875_s0 + $0x178] sm:$0xff]  }
  0x6d   :  { %5538 = vmatprep.subr.bf16.mxu1 %v5822_v34 }
  0x6f   :  { %5517 = vmatpush3.bf16.msra.mxu0 %v5821_v33  ;;  %v5881_v33 = vld [vmem:[%s8874_s1 + $0x288] sm:$0xff]  }
  0x70   :  { %5539 = vmatpush3.bf16.msra.mxu1 %v5822_v34  ;;  %5732 = vmatprep.subr.msk.bf16.mxu0 %vm162_vm0, %v5827_v35  ;;  %v5882_v34 = vld [vmem:[%s8874_s1 + $0x2bc] sm:$0xff]  }
  0x71   :  { %5733 = vmatprep.subr.msk.bf16.mxu1 %vm162_vm0, %v5828_v36  ;;  %v5889_v35 = vld [vmem:[%s8875_s0 + $0x180] sm:$0xff]  }
  0x72   :  { %5519 = vmatmul.mubr.msk.bf16.vlgmr.msra.gmra.mxu0 %vm149_vm1, %v5825_v37  ;;  %v5890_v36 = vld [vmem:[%s8875_s0 + $0x1a0] sm:$0xff]  }
  0x73   :  { %5541 = vmatmul.mubr.msk.bf16.vlgmr.msra.gmra.mxu1 %vm149_vm1, %v5826_v38  ;;  %5549 = vmatpush3.bf16.msra.mxu0 %v1460_v40  ;;  %v5883_v37 = vld [vmem:[%s8874_s1 + $0x280] sm:$0xff]   ;;  %v5884_v38 = vld [vmem:[%s8874_s1 + $0x2b4] sm:$0xff]   ;;  %v5886_v40 = vld [vmem:[%s8874_s1 + $0x2ac] sm:$0xff]  }
  0x74   :  { %5571 = vmatpush3.bf16.msra.mxu1 %v1622_v42  ;;  %5550 = vmatprep.subr.bf16.mxu0 %v5829_v39  ;;  %v5888_v42 = vld [vmem:[%s8874_s1 + $0x2a4] sm:$0xff]  }
  0x75   :  { %5572 = vmatprep.subr.bf16.mxu1 %v5830_v41  ;;  %5522 = vmatprep.mubr.msk.bf16.mxu0 %vm149_vm1, %v5831_v43  ;;  %v5893_v43 = vld [vmem:[%s8874_s1 + $0x308] ss:$0 sps:$4 sm:$0x33]  }
  0x76   :  { %5544 = vmatprep.mubr.msk.bf16.mxu1 %vm149_vm1, %v5832_v44  ;;  %v5894_v44 = vld [vmem:[%s8874_s1 + $0x33c] ss:$0 sps:$4 sm:$0x33]  }
  0x77   :  { %5551 = vmatpush3.bf16.msra.mxu0 %v5829_v39  ;;  %v5885_v39 = vld [vmem:[%s8874_s1 + $0x278] sm:$0xff]  }
  0x78   :  { %5573 = vmatpush3.bf16.msra.mxu1 %v5830_v41  ;;  %5552 = vmatprep.subr.bf16.mxu0 %v5835_v46  ;;  %v5887_v41 = vld [vmem:[%s8874_s1 + $0x270] sm:$0xff]  }
  0x79   :  { %5574 = vmatprep.subr.bf16.mxu1 %v5836_v47 }
  0x7a   :  { %5523 = vmatmul.mubr.msk.bf16.gmra.mxu0 %vm149_vm1, %v5833_v45  ;;  %v5891_v45 = vld [vmem:[%s8875_s0 + $0x188] sm:$0xff]  }
  0x7b   :  { %5545 = vmatmul.mubr.msk.bf16.gmra.mxu1 %vm149_vm1, %v5834_v48  ;;  %5553 = vmatpush3.bf16.msra.mxu0 %v5835_v46  ;;  %v5892_v46 = vld [vmem:[%s8875_s0 + $0x1a8] sm:$0xff]   ;;  %v5895_v48 = vld [vmem:[%s8874_s1 + $0x300] sm:$0xff]  }
  0x7c   :  { %5575 = vmatpush3.bf16.msra.mxu1 %v5836_v47  ;;  %5554 = vmatprep.subr.bf16.mxu0 %v5837_v49  ;;  %v2432_v47 = vsel %vm162_vm0, %v5893_v43, 0 }
  0x7d   :  { %5576 = vmatprep.subr.bf16.mxu1 %v5838_v50  ;;  %5562 = vmatprep.mubr.msk.bf16.mxu0 %vm149_vm1, %v5845_v51  ;;  %v5897_v51 = vld [vmem:[%s8875_s0 + $0x190] sm:$0xff]  }
  0x7e   :  { %5584 = vmatprep.mubr.msk.bf16.mxu1 %vm149_vm1, %v5846_v52  ;;  %v5898_v52 = vld [vmem:[%s8875_s0 + $0x1b0] sm:$0xff]  }
  0x7f   :  { %5555 = vmatpush3.bf16.msra.mxu0 %v5837_v49  ;;  %v2594_v49 = vsel %vm162_vm0, %v5894_v44, 0 }
  0x80   :  { %5577 = vmatpush3.bf16.msra.mxu1 %v5838_v50  ;;  %5556 = vmatprep.subr.bf16.mxu0 %v5839_v53  ;;  %v5896_v50 = vld [vmem:[%s8874_s1 + $0x334] sm:$0xff]  }
  0x81   :  { %5578 = vmatprep.subr.bf16.mxu1 %v5840_v54 }
  0x83   :  { %5557 = vmatpush3.bf16.msra.mxu0 %v5839_v53  ;;  %v5901_v53 = vld [vmem:[%s8874_s1 + $0x2f8] sm:$0xff]  }
  0x84   :  { %5579 = vmatpush3.bf16.msra.mxu1 %v5840_v54  ;;  %5558 = vmatprep.subr.bf16.mxu0 %v5841_v55  ;;  %v5902_v54 = vld [vmem:[%s8874_s1 + $0x32c] sm:$0xff]  }
  0x85   :  { %5580 = vmatprep.subr.bf16.mxu1 %v5842_v56 }
  0x87   :  { %5559 = vmatpush3.bf16.msra.mxu0 %v5841_v55  ;;  %v5899_v55 = vld [vmem:[%s8875_s0 + $0x198] sm:$0xff]  }
  0x88   :  { %5581 = vmatpush3.bf16.msra.mxu1 %v5842_v56  ;;  %5560 = vmatprep.subr.bf16.mxu0 %v5843_v57  ;;  %v5900_v56 = vld [vmem:[%s8875_s0 + $0x1b8] sm:$0xff]  }
  0x89   :  { %5582 = vmatprep.subr.bf16.mxu1 %v5844_v58 }
  0x8b   :  { %5561 = vmatpush3.bf16.msra.mxu0 %v5843_v57  ;;  %v5903_v57 = vld [vmem:[%s8874_s1 + $0x2f0] sm:$0xff]  }
  0x8c   :  { %5583 = vmatpush3.bf16.msra.mxu1 %v5844_v58  ;;  %5734 = vmatprep.subr.msk.bf16.mxu0 %vm162_vm0, %v5849_v59  ;;  %v5904_v58 = vld [vmem:[%s8874_s1 + $0x324] sm:$0xff]  }
  0x8d   :  { %5735 = vmatprep.subr.msk.bf16.mxu1 %vm162_vm0, %v5850_v60  ;;  %v5911_v59 = vld [vmem:[%s8875_s0 + $0x1c0] sm:$0xff]  }
  0x8e   :  { %5563 = vmatmul.mubr.msk.bf16.vlgmr.msra.gmra.mxu0 %vm149_vm1, %v5847_v61  ;;  %v5912_v60 = vld [vmem:[%s8875_s0 + $0x1e0] sm:$0xff]   ;;  %v5905_v61 = vld [vmem:[%s8874_s1 + $0x2e8] sm:$0xff]  }
  0x8f   :  { %5585 = vmatmul.mubr.msk.bf16.vlgmr.msra.gmra.mxu1 %vm149_vm1, %v5848_v62  ;;  %5593 = vmatpush3.bf16.msra.mxu0 %v1784_v0  ;;  %v5906_v62 = vld [vmem:[%s8874_s1 + $0x31c] sm:$0xff]   ;;  %v5908_v0 = vld [vmem:[%s8874_s1 + $0x314] sm:$0xff]  }
  0x90   :  { %5615 = vmatpush3.bf16.msra.mxu1 %v1946_v2  ;;  %5594 = vmatprep.subr.bf16.mxu0 %v5851_v63  ;;  %v5910_v2 = vld [vmem:[%s8874_s1 + $0x30c] sm:$0xff]  }
  0x91   :  { %5616 = vmatprep.subr.bf16.mxu1 %v5852_v1  ;;  %5566 = vmatprep.mubr.msk.bf16.mxu0 %vm149_vm1, %v5853_v3  ;;  %v6590_v3 = vpop.permute.xlu1 %62 }
  0x92   :  { %5588 = vmatprep.mubr.msk.bf16.mxu1 %vm149_vm1, %v5854_v4 }
  0x93   :  { %5595 = vmatpush3.bf16.msra.mxu0 %v5851_v63  ;;  %v5907_v63 = vld [vmem:[%s8874_s1 + $0x2e0] sm:$0xff]  }
  0x94   :  { %5617 = vmatpush3.bf16.msra.mxu1 %v5852_v1  ;;  %5596 = vmatprep.subr.bf16.mxu0 %v5857_v5  ;;  %v5909_v1 = vld [vmem:[%s8874_s1 + $0x2d8] sm:$0xff]  }
  0x95   :  { %5618 = vmatprep.subr.bf16.mxu1 %v5858_v6 }
  0x96   :  { %5567 = vmatmul.mubr.msk.bf16.gmra.mxu0 %vm149_vm1, %v5855_v7 }
  0x97   :  { %5589 = vmatmul.mubr.msk.bf16.gmra.mxu1 %vm149_vm1, %v5856_v8  ;;  %5597 = vmatpush3.bf16.msra.mxu0 %v5857_v5  ;;  %v5914_v5 = vld [vmem:[%s8875_s0 + $0x1c8] sm:$0xff]  }
  0x98   :  { %5619 = vmatpush3.bf16.msra.mxu1 %v5858_v6  ;;  %5598 = vmatprep.subr.bf16.mxu0 %v5859_v9  ;;  %v5913_v8 = vld [vmem:[%s8875_s0 + $0x1e8] sm:$0xff]  }
  0x99   :  { %5620 = vmatprep.subr.bf16.mxu1 %v5860_v10  ;;  %5606 = vmatprep.mubr.msk.bf16.mxu0 %vm149_vm1, %v5867_v11 }
  0x9a   :  { %5628 = vmatprep.mubr.msk.bf16.mxu1 %vm149_vm1, %v5868_v13  ;;  %v5916_v13 = vld [vmem:[%s8875_s0 + $0x1f0] sm:$0xff]  }
  0x9b   :  { %5599 = vmatpush3.bf16.msra.mxu0 %v5859_v9  ;;  %v6601_v9 = vpop.permute.xlu0 %52 }
  0x9c   :  { %5621 = vmatpush3.bf16.msra.mxu1 %v5860_v10  ;;  %5600 = vmatprep.subr.bf16.mxu0 %v5861_v12 }
  0x9d   :  { %5622 = vmatprep.subr.bf16.mxu1 %v5862_v14 }
  0x9f   :  { %5601 = vmatpush3.bf16.msra.mxu0 %v5861_v12  ;;  %v5915_v12 = vld [vmem:[%s8875_s0 + $0x1d0] sm:$0xff]  }
  0xa0   :  { %5623 = vmatpush3.bf16.msra.mxu1 %v5862_v14  ;;  %5602 = vmatprep.subr.bf16.mxu0 %v5863_v15 }
  0xa1   :  { %5624 = vmatprep.subr.bf16.mxu1 %v5864_v16 }
  0xa3   :  { %5603 = vmatpush3.bf16.msra.mxu0 %v5863_v15 }
  0xa4   :  { %5625 = vmatpush3.bf16.msra.mxu1 %v5864_v16  ;;  %5604 = vmatprep.subr.bf16.mxu0 %v5865_v17 }
  0xa5   :  { %5626 = vmatprep.subr.bf16.mxu1 %v5866_v18 }
  0xa7   :  { %5605 = vmatpush3.bf16.msra.mxu0 %v5865_v17 }
  0xa8   :  { %5627 = vmatpush3.bf16.msra.mxu1 %v5866_v18  ;;  %5736 = vmatprep.subr.msk.bf16.mxu0 %vm162_vm0, %v5871_v19 }
  0xa9   :  { %5737 = vmatprep.subr.msk.bf16.mxu1 %vm162_vm0, %v5872_v20  ;;  %v6624_v20 = vpop.permute.xlu1 %67 }
  0xaa   :  { %5607 = vmatmul.mubr.msk.bf16.vlgmr.msra.gmra.mxu0 %vm149_vm1, %v5869_v21 }
  0xab   :  { %5629 = vmatmul.mubr.msk.bf16.vlgmr.msra.gmra.mxu1 %vm149_vm1, %v5870_v22  ;;  %5637 = vmatpush3.bf16.msra.mxu0 %v2108_v24 }
  0xac   :  { %5659 = vmatpush3.bf16.msra.mxu1 %v2270_v26  ;;  %5638 = vmatprep.subr.bf16.mxu0 %v5873_v23 }
  0xad   :  { %5660 = vmatprep.subr.bf16.mxu1 %v5874_v25  ;;  %5610 = vmatprep.mubr.msk.bf16.mxu0 %vm149_vm1, %v5875_v27  ;;  %v5918_v27 = vld [vmem:[%s8875_s0 + $0x1f8] sm:$0xff]  }
  0xae   :  { %5632 = vmatprep.mubr.msk.bf16.mxu1 %vm149_vm1, %v5876_v28 }
  0xaf   :  { %5639 = vmatpush3.bf16.msra.mxu0 %v5873_v23 }
  0xb0   :  { %5661 = vmatpush3.bf16.msra.mxu1 %v5874_v25  ;;  %5640 = vmatprep.subr.bf16.mxu0 %v5879_v29  ;;  %v5917_v25 = vld [vmem:[%s8875_s0 + $0x1d8] sm:$0xff]  }
  0xb1   :  { %5662 = vmatprep.subr.bf16.mxu1 %v5880_v30 }
  0xb2   :  { %5611 = vmatmul.mubr.msk.bf16.gmra.mxu0 %vm149_vm1, %v5877_v31 }
  0xb3   :  { %5633 = vmatmul.mubr.msk.bf16.gmra.mxu1 %vm149_vm1, %v5878_v32  ;;  %5641 = vmatpush3.bf16.msra.mxu0 %v5879_v29 }
  0xb4   :  { %5663 = vmatpush3.bf16.msra.mxu1 %v5880_v30  ;;  %5642 = vmatprep.subr.bf16.mxu0 %v5881_v33 }
  0xb5   :  { %5664 = vmatprep.subr.bf16.mxu1 %v5882_v34  ;;  %5650 = vmatprep.mubr.msk.bf16.mxu0 %vm149_vm1, %v5889_v35 }
  0xb6   :  { %5672 = vmatprep.mubr.msk.bf16.mxu1 %vm149_vm1, %v5890_v36 }
  0xb7   :  { %5643 = vmatpush3.bf16.msra.mxu0 %v5881_v33  ;;  %v6653_v33 = vpop.permute.xlu0 %57 }
  0xb8   :  { %5665 = vmatpush3.bf16.msra.mxu1 %v5882_v34  ;;  %5644 = vmatprep.subr.bf16.mxu0 %v5883_v37 }
  0xb9   :  { %5666 = vmatprep.subr.bf16.mxu1 %v5884_v38 }
  0xbb   :  { %5645 = vmatpush3.bf16.msra.mxu0 %v5883_v37 }
  0xbc   :  { %5667 = vmatpush3.bf16.msra.mxu1 %v5884_v38  ;;  %5646 = vmatprep.subr.bf16.mxu0 %v5885_v39 }
  0xbd   :  { %5668 = vmatprep.subr.bf16.mxu1 %v5886_v40 }
  0xbf   :  { %5647 = vmatpush3.bf16.msra.mxu0 %v5885_v39 }
  0xc0   :  { %5669 = vmatpush3.bf16.msra.mxu1 %v5886_v40  ;;  %5648 = vmatprep.subr.bf16.mxu0 %v5887_v41 }
  0xc1   :  { %5670 = vmatprep.subr.bf16.mxu1 %v5888_v42 }
  0xc3   :  { %5649 = vmatpush3.bf16.msra.mxu0 %v5887_v41 }
  0xc4   :  { %5671 = vmatpush3.bf16.msra.mxu1 %v5888_v42  ;;  %5738 = vmatprep.subr.msk.bf16.mxu0 %vm162_vm0, %v5893_v43  ;;  %v6670_v43 = vpop.permute.xlu0 %72 }
  0xc5   :  { %5739 = vmatprep.subr.msk.bf16.mxu1 %vm162_vm0, %v5894_v44 }
  0xc6   :  { %5651 = vmatmul.mubr.msk.bf16.vlgmr.msra.gmra.mxu0 %vm149_vm1, %v5891_v45 }
  0xc7   :  { %5673 = vmatmul.mubr.msk.bf16.vlgmr.msra.gmra.mxu1 %vm149_vm1, %v5892_v46  ;;  %5681 = vmatpush3.bf16.msra.mxu0 %v2432_v47 }
  0xc8   :  { %5703 = vmatpush3.bf16.msra.mxu1 %v2594_v49  ;;  %5682 = vmatprep.subr.bf16.mxu0 %v5895_v48  ;;  %v6679_v49 = vpop.permute.xlu1 %77 }
  0xc9   :  { %5704 = vmatprep.subr.bf16.mxu1 %v5896_v50  ;;  %5654 = vmatprep.mubr.msk.bf16.mxu0 %vm149_vm1, %v5897_v51 }
  0xca   :  { %5676 = vmatprep.mubr.msk.bf16.mxu1 %vm149_vm1, %v5898_v52 }
  0xcb   :  { %5683 = vmatpush3.bf16.msra.mxu0 %v5895_v48 }
  0xcc   :  { %5705 = vmatpush3.bf16.msra.mxu1 %v5896_v50  ;;  %5684 = vmatprep.subr.bf16.mxu0 %v5901_v53  ;;  %v6681_v50 = vpop.permute.xlu0 %82 }
  0xcd   :  { %5706 = vmatprep.subr.bf16.mxu1 %v5902_v54 }
  0xce   :  { %5655 = vmatmul.mubr.msk.bf16.gmra.mxu0 %vm149_vm1, %v5899_v55 }
  0xcf   :  { %5677 = vmatmul.mubr.msk.bf16.gmra.mxu1 %vm149_vm1, %v5900_v56  ;;  %5685 = vmatpush3.bf16.msra.mxu0 %v5901_v53 }
  0xd0   :  { %5707 = vmatpush3.bf16.msra.mxu1 %v5902_v54  ;;  %5686 = vmatprep.subr.bf16.mxu0 %v5903_v57 }
  0xd1   :  { %5708 = vmatprep.subr.bf16.mxu1 %v5904_v58  ;;  %5694 = vmatprep.mubr.msk.bf16.mxu0 %vm149_vm1, %v5911_v59 }
  0xd2   :  { %5716 = vmatprep.mubr.msk.bf16.mxu1 %vm149_vm1, %v5912_v60 }
  0xd3   :  { %5687 = vmatpush3.bf16.msra.mxu0 %v5903_v57 }
  0xd4   :  { %5709 = vmatpush3.bf16.msra.mxu1 %v5904_v58  ;;  %5688 = vmatprep.subr.bf16.mxu0 %v5905_v61 }
  0xd5   :  { %5710 = vmatprep.subr.bf16.mxu1 %v5906_v62 }
  0xd7   :  { %5689 = vmatpush3.bf16.msra.mxu0 %v5905_v61 }
  0xd8   :  { %5711 = vmatpush3.bf16.msra.mxu1 %v5906_v62  ;;  %5690 = vmatprep.subr.bf16.mxu0 %v5907_v63 }
  0xd9   :  { %5712 = vmatprep.subr.bf16.mxu1 %v5908_v0 }
  0xdb   :  { %5691 = vmatpush3.bf16.msra.mxu0 %v5907_v63  ;;  %v6699_v63 = vpop.permute.xlu1 %87 }
  0xdc   :  { %5713 = vmatpush3.bf16.msra.mxu1 %v5908_v0  ;;  %5692 = vmatprep.subr.bf16.mxu0 %v5909_v1 }
  0xdd   :  { %5714 = vmatprep.subr.bf16.mxu1 %v5910_v2 }
  0xde   :  { %v5388_v4 = vpop.f32.mrf.mxu0 }
  0xdf   :  { %v6596_v6 = vadd.f32 %v5388_v4, %v6590_v3  ;;  %v5410_v7 = vpop.f32.mrf.mxu1  ;;  %5693 = vmatpush3.bf16.msra.mxu0 %v5909_v1 }
  0xe0   :  { %v6604_v10 = vadd.f32 %v5410_v7, %v6590_v3  ;;  %5715 = vmatpush3.bf16.msra.mxu1 %v5910_v2  ;;  %v200_v11 = vpop.f32.mrf.mxu0 }
  0xe1   :  { %9026 = vst [vmem:[#allocation2_spill] sm:$0xff] %v6596_v6  ;;  %v6613_v14 = vadd.f32 %v200_v11, %v6601_v9  ;;  %v362_v15 = vpop.f32.mrf.mxu1  ;;  %v2668_v16 = vsel %vm2661_vm2, %v6596_v6, 0.0  ;;  %v3176_v26 = vmul.f32 %v6596_v6, %v6596_v6 }
  0xe2   :  { %9027 = vst [vmem:[#allocation3_spill] sm:$0xff] %v6604_v10  ;;  %v6618_v17 = vadd.f32 %v362_v15, %v6601_v9  ;;  %v2692_v18 = vsel %vm2661_vm2, %v6604_v10, 0.0  ;;  %5695 = vmatmul.mubr.msk.bf16.vlgmr.msra.gmra.mxu0 %vm149_vm1, %v5914_v5  ;;  %2669 = vadd.xlane.f32.xlu0 %v2668_v16  ;;  %v5389_v19 = vpop.f32.mrf.mxu0  ;;  %v3208_v32 = vmul.f32 %v6604_v10, %v6604_v10 }
  0xe3   :  { %9028 = vst [vmem:[#allocation4_spill] sm:$0xff] %v6613_v14  ;;  %5717 = vmatmul.mubr.msk.bf16.vlgmr.msra.gmra.mxu1 %vm149_vm1, %v5913_v8  ;;  %2693 = vadd.xlane.f32.xlu1 %v2692_v18  ;;  %v6629_v21 = vadd.f32 %v5389_v19, %v6624_v20  ;;  %v2662_v22 = vsel %vm2661_vm2, %v6613_v14, 0.0  ;;  %v5411_v23 = vpop.f32.mrf.mxu1  ;;  %v3188_v31 = vsel %vm2661_vm2, %v3176_v26, 0.0  ;;  %v3174_v37 = vmul.f32 %v6613_v14, %v6613_v14 }
  0xe4   :  { %9029 = vst [vmem:[#allocation5_spill] sm:$0xff] %v6618_v17  ;;  %5698 = vmatprep.mubr.msk.bf16.mxu0 %vm149_vm1, %v5915_v12  ;;  %5720 = vmatprep.mubr.msk.bf16.mxu1 %vm149_vm1, %v5916_v13  ;;  %v2686_v24 = vsel %vm2661_vm2, %v6618_v17, 0.0  ;;  %v6644_v28 = vadd.f32 %v5411_v23, %v6624_v20  ;;  %v3220_v36 = vsel %vm2661_vm2, %v3208_v32, 0.0  ;;  %v203_v40 = vpop.f32.mrf.mxu0  ;;  %v3206_v42 = vmul.f32 %v6618_v17, %v6618_v17 }
  0xe5   :  { %9030 = vst [vmem:[#allocation6_spill] sm:$0xff] %v6629_v21  ;;  %v2671_v29 = vsel %vm2661_vm2, %v6629_v21, 0.0  ;;  %v365_v30 = vpop.f32.mrf.mxu1  ;;  %v3177_v39 = vmul.f32 %v6629_v21, %v6629_v21  ;;  %v3182_v41 = vsel %vm2661_vm2, %v3174_v37, 0.0  ;;  %v6673_v44 = vadd.f32 %v203_v40, %v6653_v33 }
  0xe6   :  { %2663 = vadd.xlane.f32.xlu0 %v2662_v22  ;;  %9031 = vst [vmem:[#allocation7_spill] sm:$0xff] %v6644_v28  ;;  %v6656_v34 = vadd.f32 %v365_v30, %v6653_v33  ;;  %v2695_v35 = vsel %vm2661_vm2, %v6644_v28, 0.0  ;;  %v3209_v46 = vmul.f32 %v6644_v28, %v6644_v28  ;;  %v5392_v47 = vpop.f32.mrf.mxu0  ;;  %v3214_v48 = vsel %vm2661_vm2, %v3206_v42, 0.0 }
  0xe7   :  { %2687 = vadd.xlane.f32.xlu1 %v2686_v24  ;;  %9033 = vst [vmem:[#allocation9_spill] sm:$0xff] %v6673_v44  ;;  %v3191_v45 = vsel %vm2661_vm2, %v3177_v39, 0.0  ;;  %v3175_v52 = vmul.f32 %v6673_v44, %v6673_v44  ;;  %v5414_v53 = vpop.f32.mrf.mxu1  ;;  %v6687_v54 = vadd.f32 %v5392_v47, %v6681_v50  ;;  %v2665_v56 = vsel %vm2661_vm2, %v6673_v44, 0.0 }
  0xe8   :  { %9032 = vst [vmem:[#allocation8_spill] sm:$0xff] %v6656_v34  ;;  %v2689_v38 = vsel %vm2661_vm2, %v6656_v34, 0.0  ;;  %v3223_v51 = vsel %vm2661_vm2, %v3209_v46, 0.0  ;;  %v216_v55 = vpop.f32.mrf.mxu0  ;;  %v3207_v58 = vmul.f32 %v6656_v34, %v6656_v34  ;;  %v6695_v59 = vadd.f32 %v5414_v53, %v6681_v50 }
  0xe9   :  { %9034 = vst [vmem:[#allocation10_spill] sm:$0xff] %v6687_v54  ;;  %v3185_v57 = vsel %vm2661_vm2, %v3175_v52, 0.0  ;;  %v378_v60 = vpop.f32.mrf.mxu1  ;;  %v2680_v62 = vsel %vm2661_vm2, %v6687_v54, 0.0  ;;  %v6706_v2 = vadd.f32 %v216_v55, %v6670_v43  ;;  %v3180_v22 = vmul.f32 %v6687_v54, %v6687_v54 }
  0xea   :  { %5699 = vmatmul.mubr.msk.bf16.gmra.mxu0 %vm149_vm1, %v5917_v25  ;;  %2672 = vadd.xlane.f32.xlu0 %v2671_v29  ;;  %9035 = vst [vmem:[#allocation11_spill] sm:$0xff] %v6695_v59  ;;  %v5393_v61 = vpop.f32.mrf.mxu0  ;;  %v3217_v1 = vsel %vm2661_vm2, %v3207_v58, 0.0  ;;  %v2704_v5 = vsel %vm2661_vm2, %v6695_v59, 0.0  ;;  %v6716_v11 = vadd.f32 %v378_v60, %v6670_v43  ;;  %v3212_v26 = vmul.f32 %v6695_v59, %v6695_v59 }
  0xeb   :  { %5721 = vmatmul.mubr.msk.bf16.gmra.mxu1 %vm149_vm1, %v5918_v27  ;;  %3189 = vadd.xlane.f32.xlu1 %v3188_v31  ;;  %v6702_v0 = vadd.f32 %v5393_v61, %v6699_v63  ;;  %9037 = vst [vmem:[#allocation13_spill] sm:$0xff] %v6706_v2  ;;  %v5415_v4 = vpop.f32.mrf.mxu1  ;;  %v2674_v13 = vsel %vm2661_vm2, %v6706_v2, 0.0  ;;  %v3200_v25 = vsel %vm2661_vm2, %v3180_v22, 0.0  ;;  %v3178_v31 = vmul.f32 %v6706_v2, %v6706_v2 }
  0xec   :  { %v6711_v7 = vadd.f32 %v5415_v4, %v6699_v63  ;;  %9039 = vst [vmem:[#allocation15_spill] sm:$0xff] %v6716_v11  ;;  %v219_v12 = vpop.f32.mrf.mxu0  ;;  %v2698_v19 = vsel %vm2661_vm2, %v6716_v11, 0.0  ;;  %v3232_v30 = vsel %vm2661_vm2, %v3212_v26, 0.0 }
  0xed   :  { %9036 = vst [vmem:[#allocation12_spill] sm:$0xff] %v6702_v0  ;;  %v2683_v8 = vsel %vm2661_vm2, %v6702_v0, 0.0  ;;  %v6721_v15 = vadd.f32 %v219_v12, %v6679_v49  ;;  %v381_v18 = vpop.f32.mrf.mxu1  ;;  %v3181_v29 = vmul.f32 %v6702_v0, %v6702_v0  ;;  %v3194_v37 = vsel %vm2661_vm2, %v3178_v31, 0.0 }
  0xee   :  { %2696 = vadd.xlane.f32.xlu0 %v2695_v35  ;;  %9038 = vst [vmem:[#allocation14_spill] sm:$0xff] %v6711_v7  ;;  %v2707_v16 = vsel %vm2661_vm2, %v6711_v7, 0.0  ;;  %v6730_v23 = vadd.f32 %v381_v18, %v6679_v49  ;;  %v3213_v35 = vmul.f32 %v6711_v7, %v6711_v7 }
  0xef   :  { %3221 = vadd.xlane.f32.xlu1 %v3220_v36  ;;  %9040 = vst [vmem:[#allocation16_spill] sm:$0xff] %v6721_v15  ;;  %v2677_v24 = vsel %vm2661_vm2, %v6721_v15, 0.0  ;;  %v3203_v32 = vsel %vm2661_vm2, %v3181_v29, 0.0  ;;  %v3179_v40 = vmul.f32 %v6721_v15, %v6721_v15 }
  0xf0   :  { %9041 = vst [vmem:[#allocation17_spill] sm:$0xff] %v6730_v23  ;;  %v2701_v27 = vsel %vm2661_vm2, %v6730_v23, 0.0  ;;  %v3235_v39 = vsel %vm2661_vm2, %v3213_v35, 0.0 }
  0xf1   :  { %v3197_v47 = vsel %vm2661_vm2, %v3179_v40, 0.0 }
  0xf2   :  { %2690 = vadd.xlane.f32.xlu0 %v2689_v38  ;;  %v3210_v38 = vmul.f32 %v6716_v11, %v6716_v11 }
  0xf3   :  { %3183 = vadd.xlane.f32.xlu1 %v3182_v41 }
  0xf4   :  { %v3226_v46 = vsel %vm2661_vm2, %v3210_v38, 0.0 }
  0xf6   :  { %3192 = vadd.xlane.f32.xlu0 %v3191_v45 }
  0xf7   :  { %3215 = vadd.xlane.f32.xlu1 %v3214_v48  ;;  %v3211_v48 = vmul.f32 %v6730_v23, %v6730_v23 }
  0xfa   :  { %3224 = vadd.xlane.f32.xlu0 %v3223_v51  ;;  %v5432_v36 = vpop.f32.mrf.mxu0 }
  0xfb   :  { %2666 = vadd.xlane.f32.xlu1 %v2665_v56  ;;  %v6754_v41 = vadd.f32 %v5432_v36, %v6590_v3  ;;  %v5454_v42 = vpop.f32.mrf.mxu1 }
  0xfc   :  { %v524_v45 = vpop.f32.mrf.mxu0  ;;  %v6761_v51 = vadd.f32 %v5454_v42, %v6590_v3 }
  0xfd   :  { %9042 = vst [vmem:[#allocation18_spill] sm:$0xff] %v6754_v41  ;;  %v686_v52 = vpop.f32.mrf.mxu1  ;;  %v2716_v55 = vsel %vm2661_vm2, %v6754_v41, 0.0  ;;  %v6770_v58 = vadd.f32 %v524_v45, %v6601_v9 }
  0xfe   :  { %3186 = vadd.xlane.f32.xlu0 %v3185_v57  ;;  %9043 = vst [vmem:[#allocation19_spill] sm:$0xff] %v6761_v51  ;;  %v5433_v53 = vpop.f32.mrf.mxu0  ;;  %v3229_v57 = vsel %vm2661_vm2, %v3211_v48, 0.0  ;;  %v2740_v61 = vsel %vm2661_vm2, %v6761_v51, 0.0  ;;  %v6780_v4 = vadd.f32 %v686_v52, %v6601_v9  ;;  %v3272_v26 = vmul.f32 %v6761_v51, %v6761_v51 }
  0xff   :  { %2681 = vadd.xlane.f32.xlu1 %v2680_v62  ;;  %v6766_v56 = vadd.f32 %v5433_v53, %v6624_v20  ;;  %9045 = vst [vmem:[#allocation21_spill] sm:$0xff] %v6770_v58  ;;  %v5455_v60 = vpop.f32.mrf.mxu1  ;;  %v3238_v31 = vmul.f32 %v6770_v58, %v6770_v58 }
 0x100   :  { %v6775_v62 = vadd.f32 %v5455_v60, %v6624_v20  ;;  %9047 = vst [vmem:[#allocation23_spill] sm:$0xff] %v6780_v4  ;;  %v2734_v18 = vsel %vm2661_vm2, %v6780_v4, 0.0  ;;  %v3270_v38 = vmul.f32 %v6780_v4, %v6780_v4 }
 0x101   :  { %9044 = vst [vmem:[#allocation20_spill] sm:$0xff] %v6766_v56  ;;  %v3241_v29 = vmul.f32 %v6766_v56, %v6766_v56 }
 0x102   :  { %3218 = vadd.xlane.f32.xlu0 %v3217_v1  ;;  %9046 = vst [vmem:[#allocation22_spill] sm:$0xff] %v6775_v62  ;;  %v2719_v1 = vsel %vm2661_vm2, %v6766_v56, 0.0  ;;  %v3273_v35 = vmul.f32 %v6775_v62, %v6775_v62 }
 0x103   :  { %2705 = vadd.xlane.f32.xlu1 %v2704_v5  ;;  %v527_v5 = vpop.f32.mrf.mxu0 }
 0x104   :  { %v6785_v12 = vadd.f32 %v527_v5, %v6653_v33 }
 0x105   :  { %v5436_v36 = vpop.f32.mrf.mxu0 }
 0x106   :  { %2684 = vadd.xlane.f32.xlu0 %v2683_v8  ;;  %v2710_v8 = vsel %vm2661_vm2, %v6770_v58, 0.0  ;;  %9048 = vst [vmem:[#allocation24_spill] sm:$0xff] %v6785_v12  ;;  %v3239_v40 = vmul.f32 %v6785_v12, %v6785_v12  ;;  %v6818_v42 = vadd.f32 %v5436_v36, %v6681_v50 }
 0x107   :  { %2675 = vadd.xlane.f32.xlu1 %v2674_v13  ;;  %v2743_v13 = vsel %vm2661_vm2, %v6775_v62, 0.0 }
 0x108   :  { %9050 = vst [vmem:[#allocation26_spill] sm:$0xff] %v6818_v42  ;;  %v3249_v48 = vsel %vm2661_vm2, %v3239_v40, 0.0  ;;  %v2728_v60 = vsel %vm2661_vm2, %v6818_v42, 0.0 }
 0x10a   :  { %2708 = vadd.xlane.f32.xlu0 %v2707_v16  ;;  %v689_v16 = vpop.f32.mrf.mxu1 }
 0x10b   :  { %2699 = vadd.xlane.f32.xlu1 %v2698_v19  ;;  %v3240_v19 = vmul.f32 %v6754_v41, %v6754_v41  ;;  %v6794_v22 = vadd.f32 %v689_v16, %v6653_v33 }
 0x10c   :  { %v5458_v45 = vpop.f32.mrf.mxu1 }
 0x10d   :  { %9049 = vst [vmem:[#allocation25_spill] sm:$0xff] %v6794_v22  ;;  %v3271_v52 = vmul.f32 %v6794_v22, %v6794_v22  ;;  %v6825_v53 = vadd.f32 %v5458_v45, %v6681_v50 }
 0x10e   :  { %2678 = vadd.xlane.f32.xlu0 %v2677_v24  ;;  %v2713_v24 = vsel %vm2661_vm2, %v6785_v12, 0.0 }
 0x10f   :  { %3201 = vadd.xlane.f32.xlu1 %v3200_v25  ;;  %v3252_v25 = vsel %vm2661_vm2, %v3240_v19, 0.0  ;;  %9051 = vst [vmem:[#allocation27_spill] sm:$0xff] %v6825_v53 }
 0x112   :  { %2702 = vadd.xlane.f32.xlu0 %v2701_v27  ;;  %v2737_v27 = vsel %vm2661_vm2, %v6794_v22, 0.0 }
 0x113   :  { %3233 = vadd.xlane.f32.xlu1 %v3232_v30  ;;  %v3284_v30 = vsel %vm2661_vm2, %v3272_v26, 0.0 }
 0x116   :  { %3204 = vadd.xlane.f32.xlu0 %v3203_v32  ;;  %v3255_v32 = vsel %vm2661_vm2, %v3241_v29, 0.0 }
 0x117   :  { %3195 = vadd.xlane.f32.xlu1 %v3194_v37  ;;  %v3246_v37 = vsel %vm2661_vm2, %v3238_v31, 0.0  ;;  %v3244_v31 = vmul.f32 %v6818_v42, %v6818_v42 }
 0x119   :  { %v3264_v36 = vsel %vm2661_vm2, %v3244_v31, 0.0 }
 0x11a   :  { %3236 = vadd.xlane.f32.xlu0 %v3235_v39  ;;  %v3287_v39 = vsel %vm2661_vm2, %v3273_v35, 0.0 }
 0x11b   :  { %3227 = vadd.xlane.f32.xlu1 %v3226_v46  ;;  %v540_v46 = vpop.f32.mrf.mxu0 }
 0x11c   :  { %v6834_v5 = vadd.f32 %v540_v46, %v6670_v43 }
 0x11e   :  { %3198 = vadd.xlane.f32.xlu0 %v3197_v47  ;;  %v3278_v47 = vsel %vm2661_vm2, %v3270_v38, 0.0  ;;  %9053 = vst [vmem:[#allocation29_spill] sm:$0xff] %v6834_v5  ;;  %v3242_v45 = vmul.f32 %v6834_v5, %v6834_v5 }
 0x11f   :  { %2717 = vadd.xlane.f32.xlu1 %v2716_v55  ;;  %v702_v55 = vpop.f32.mrf.mxu1 }
 0x120   :  { %v6844_v19 = vadd.f32 %v702_v55, %v6670_v43 }
 0x122   :  { %3230 = vadd.xlane.f32.xlu0 %v3229_v57  ;;  %v5437_v57 = vpop.f32.mrf.mxu0  ;;  %9055 = vst [vmem:[#allocation31_spill] sm:$0xff] %v6844_v19  ;;  %v3274_v55 = vmul.f32 %v6844_v19, %v6844_v19 }
 0x123   :  { %2741 = vadd.xlane.f32.xlu1 %v2740_v61  ;;  %v6830_v61 = vadd.f32 %v5437_v57, %v6699_v63 }
 0x125   :  { %9052 = vst [vmem:[#allocation28_spill] sm:$0xff] %v6830_v61 }
 0x126   :  { %2720 = vadd.xlane.f32.xlu0 %v2719_v1  ;;  %v3281_v1 = vsel %vm2661_vm2, %v3271_v52, 0.0  ;;  %v3258_v52 = vsel %vm2661_vm2, %v3242_v45, 0.0 }
 0x127   :  { %2711 = vadd.xlane.f32.xlu1 %v2710_v8  ;;  %v5459_v8 = vpop.f32.mrf.mxu1 }
 0x128   :  { %v6839_v16 = vadd.f32 %v5459_v8, %v6699_v63 }
 0x129   :  { %v705_v29 = vpop.f32.mrf.mxu1 }
 0x12a   :  { %2744 = vadd.xlane.f32.xlu0 %v2743_v13  ;;  %v2752_v13 = vsel %vm2661_vm2, %v6825_v53, 0.0  ;;  %9054 = vst [vmem:[#allocation30_spill] sm:$0xff] %v6839_v16 }
 0x12b   :  { %2735 = vadd.xlane.f32.xlu1 %v2734_v18  ;;  %v2731_v18 = vsel %vm2661_vm2, %v6830_v61, 0.0  ;;  %v5498_v8 = vpop.f32.mrf.mxu1 }
 0x12e   :  { %2714 = vadd.xlane.f32.xlu0 %v2713_v24  ;;  %v543_v24 = vpop.f32.mrf.mxu0 }
 0x12f   :  { %3253 = vadd.xlane.f32.xlu1 %v3252_v25  ;;  %v2722_v25 = vsel %vm2661_vm2, %v6834_v5, 0.0  ;;  %v6849_v26 = vadd.f32 %v543_v24, %v6679_v49 }
 0x131   :  { %9056 = vst [vmem:[#allocation32_spill] sm:$0xff] %v6849_v26  ;;  %v2725_v35 = vsel %vm2661_vm2, %v6849_v26, 0.0 }
 0x132   :  { %2738 = vadd.xlane.f32.xlu0 %v2737_v27  ;;  %v2755_v27 = vsel %vm2661_vm2, %v6839_v16, 0.0 }
 0x133   :  { %3285 = vadd.xlane.f32.xlu1 %v3284_v30  ;;  %v2746_v30 = vsel %vm2661_vm2, %v6844_v19, 0.0 }
 0x136   :  { %3256 = vadd.xlane.f32.xlu0 %v3255_v32  ;;  %v6858_v32 = vadd.f32 %v705_v29, %v6679_v49  ;;  %v1010_v29 = vpop.f32.mrf.mxu1 }
 0x137   :  { %3247 = vadd.xlane.f32.xlu1 %v3246_v37  ;;  %v3276_v37 = vmul.f32 %v6825_v53, %v6825_v53 }
 0x138   :  { %9057 = vst [vmem:[#allocation33_spill] sm:$0xff] %v6858_v32  ;;  %v2749_v38 = vsel %vm2661_vm2, %v6858_v32, 0.0 }
 0x139   :  { %v3296_v40 = vsel %vm2661_vm2, %v3276_v37, 0.0 }
 0x13a   :  { %3288 = vadd.xlane.f32.xlu0 %v3287_v39  ;;  %v3245_v39 = vmul.f32 %v6830_v61, %v6830_v61 }
 0x13b   :  { %3279 = vadd.xlane.f32.xlu1 %v3278_v47  ;;  %v3277_v47 = vmul.f32 %v6839_v16, %v6839_v16 }
 0x13c   :  { %v3267_v46 = vsel %vm2661_vm2, %v3245_v39, 0.0 }
 0x13d   :  { %v3299_v57 = vsel %vm2661_vm2, %v3277_v47, 0.0 }
 0x13e   :  { %3250 = vadd.xlane.f32.xlu0 %v3249_v48  ;;  %v5476_v48 = vpop.f32.mrf.mxu0 }
 0x13f   :  { %2729 = vadd.xlane.f32.xlu1 %v2728_v60  ;;  %v3243_v60 = vmul.f32 %v6849_v26, %v6849_v26 }
 0x141   :  { %v3261_v24 = vsel %vm2661_vm2, %v3243_v60, 0.0 }
 0x142   :  { %3282 = vadd.xlane.f32.xlu0 %v3281_v1  ;;  %v6882_v1 = vadd.f32 %v5476_v48, %v6590_v3 }
 0x143   :  { %2753 = vadd.xlane.f32.xlu1 %v2752_v13  ;;  %v848_v13 = vpop.f32.mrf.mxu0 }
 0x144   :  { %9058 = vst [vmem:[#allocation34_spill] sm:$0xff] %v6882_v1  ;;  %v2764_v31 = vsel %vm2661_vm2, %v6882_v1, 0.0  ;;  %v6898_v37 = vadd.f32 %v848_v13, %v6601_v9 }
 0x146   :  { %2732 = vadd.xlane.f32.xlu0 %v2731_v18  ;;  %v3290_v18 = vsel %vm2661_vm2, %v3274_v55, 0.0  ;;  %9061 = vst [vmem:[#allocation37_spill] sm:$0xff] %v6898_v37  ;;  %v2758_v48 = vsel %vm2661_vm2, %v6898_v37, 0.0 }
 0x147   :  { %2723 = vadd.xlane.f32.xlu1 %v2722_v25  ;;  %v3275_v25 = vmul.f32 %v6858_v32, %v6858_v32 }
 0x14a   :  { %2756 = vadd.xlane.f32.xlu0 %v2755_v27  ;;  %v6889_v27 = vadd.f32 %v5498_v8, %v6590_v3  ;;  %v3304_v8 = vmul.f32 %v6882_v1, %v6882_v1 }
 0x14b   :  { %2747 = vadd.xlane.f32.xlu1 %v2746_v30  ;;  %v5477_v30 = vpop.f32.mrf.mxu0 }
 0x14c   :  { %9059 = vst [vmem:[#allocation35_spill] sm:$0xff] %v6889_v27  ;;  %v2788_v39 = vsel %vm2661_vm2, %v6889_v27, 0.0 }
 0x14d   :  { %v851_v47 = vpop.f32.mrf.mxu0 }
 0x14e   :  { %2726 = vadd.xlane.f32.xlu0 %v2725_v35  ;;  %v6894_v35 = vadd.f32 %v5477_v30, %v6624_v20  ;;  %v3316_v30 = vsel %vm2661_vm2, %v3304_v8, 0.0 }
 0x14f   :  { %3265 = vadd.xlane.f32.xlu1 %v3264_v36  ;;  %v3293_v36 = vsel %vm2661_vm2, %v3275_v25, 0.0 }
 0x150   :  { %9060 = vst [vmem:[#allocation36_spill] sm:$0xff] %v6894_v35  ;;  %v2767_v45 = vsel %vm2661_vm2, %v6894_v35, 0.0 }
 0x152   :  { %2750 = vadd.xlane.f32.xlu0 %v2749_v38  ;;  %v5499_v38 = vpop.f32.mrf.mxu1 }
 0x153   :  { %3297 = vadd.xlane.f32.xlu1 %v3296_v40  ;;  %v6903_v40 = vadd.f32 %v5499_v38, %v6624_v20 }
 0x155   :  { %9062 = vst [vmem:[#allocation38_spill] sm:$0xff] %v6903_v40  ;;  %v2791_v55 = vsel %vm2661_vm2, %v6903_v40, 0.0 }
 0x156   :  { %3268 = vadd.xlane.f32.xlu0 %v3267_v46  ;;  %v6908_v46 = vadd.f32 %v1010_v29, %v6601_v9 }
 0x157   :  { %3259 = vadd.xlane.f32.xlu1 %v3258_v52  ;;  %v6913_v52 = vadd.f32 %v851_v47, %v6653_v33  ;;  %v3305_v47 = vmul.f32 %v6894_v35, %v6894_v35 }
 0x158   :  { %9063 = vst [vmem:[#allocation39_spill] sm:$0xff] %v6908_v46  ;;  %v2782_v60 = vsel %vm2661_vm2, %v6908_v46, 0.0 }
 0x159   :  { %9064 = vst [vmem:[#allocation40_spill] sm:$0xff] %v6913_v52  ;;  %v2761_v29 = vsel %vm2661_vm2, %v6913_v52, 0.0  ;;  %v3319_v8 = vsel %vm2661_vm2, %v3305_v47, 0.0  ;;  %v3303_v47 = vmul.f32 %v6913_v52, %v6913_v52 }
 0x15a   :  { %3300 = vadd.xlane.f32.xlu0 %v3299_v57  ;;  %v1013_v57 = vpop.f32.mrf.mxu1 }
 0x15b   :  { %3291 = vadd.xlane.f32.xlu1 %v3290_v18 }
 0x15e   :  { %3262 = vadd.xlane.f32.xlu0 %v3261_v24  ;;  %v6922_v24 = vadd.f32 %v1013_v57, %v6653_v33 }
 0x15f   :  { %2765 = vadd.xlane.f32.xlu1 %v2764_v31  ;;  %v3336_v31 = vmul.f32 %v6889_v27, %v6889_v27 }
 0x160   :  { %9065 = vst [vmem:[#allocation41_spill] sm:$0xff] %v6922_v24 }
 0x162   :  { %3294 = vadd.xlane.f32.xlu0 %v3293_v36 }
 0x163   :  { %2789 = vadd.xlane.f32.xlu1 %v2788_v39 }
 0x166   :  { %2768 = vadd.xlane.f32.xlu0 %v2767_v45  ;;  %v2785_v45 = vsel %vm2661_vm2, %v6922_v24, 0.0 }
 0x167   :  { %2759 = vadd.xlane.f32.xlu1 %v2758_v48  ;;  %v3348_v48 = vsel %vm2661_vm2, %v3336_v31, 0.0 }
 0x16a   :  { %2792 = vadd.xlane.f32.xlu0 %v2791_v55  ;;  %v3302_v55 = vmul.f32 %v6898_v37, %v6898_v37 }
 0x16b   :  { %2783 = vadd.xlane.f32.xlu1 %v2782_v60  ;;  %v2670_v13 = vpop.xlane.xlu0 %2669 }
 0x16c   :  { %v2694_v18 = vpop.xlane.xlu1 %2693 }
 0x16d   :  { %v6924_v25 = vadd.f32 %v2694_v18, %v2670_v13  ;;  %v3337_v13 = vmul.f32 %v6903_v40, %v6903_v40  ;;  %v5480_v18 = vpop.f32.mrf.mxu0 }
 0x16e   :  { %2762 = vadd.xlane.f32.xlu0 %v2761_v29  ;;  %v3310_v29 = vsel %vm2661_vm2, %v3302_v55, 0.0  ;;  %v6954_v16 = vadd.f32 %v5480_v18, %v6681_v50  ;;  %v5502_v55 = vpop.f32.mrf.mxu1 }
 0x16f   :  { %3317 = vadd.xlane.f32.xlu1 %v3316_v30  ;;  %v2664_v36 = vpop.xlane.xlu0 %2663  ;;  %v3334_v30 = vmul.f32 %v6908_v46, %v6908_v46 }
 0x170   :  { %v2688_v38 = vpop.xlane.xlu1 %2687  ;;  %9066 = vst [vmem:[#allocation42_spill] sm:$0xff] %v6954_v16  ;;  %v2776_v18 = vsel %vm2661_vm2, %v6954_v16, 0.0 }
 0x171   :  { %v6931_v39 = vadd.f32 %v2688_v38, %v2664_v36  ;;  %v3342_v61 = vsel %vm2661_vm2, %v3334_v30, 0.0 }
 0x172   :  { %2786 = vadd.xlane.f32.xlu0 %v2785_v45 }
 0x173   :  { %3349 = vadd.xlane.f32.xlu1 %v3348_v48  ;;  %v2673_v57 = vpop.xlane.xlu0 %2672  ;;  %v3351_v48 = vsel %vm2661_vm2, %v3337_v13, 0.0  ;;  %v6961_v13 = vadd.f32 %v5502_v55, %v6681_v50 }
 0x174   :  { %v3190_v60 = vpop.xlane.xlu1 %3189 }
 0x175   :  { %9067 = vst [vmem:[#allocation43_spill] sm:$0xff] %v6961_v13  ;;  %v2800_v42 = vsel %vm2661_vm2, %v6961_v13, 0.0 }
 0x176   :  { %3320 = vadd.xlane.f32.xlu0 %v3319_v8  ;;  %v864_v8 = vpop.f32.mrf.mxu0 }
 0x177   :  { %3311 = vadd.xlane.f32.xlu1 %v3310_v29  ;;  %v2697_v31 = vpop.xlane.xlu0 %2696  ;;  %v6972_v53 = vadd.f32 %v864_v8, %v6670_v43 }
 0x178   :  { %v3222_v36 = vpop.xlane.xlu1 %3221  ;;  %v6946_v38 = vadd.f32 %v2697_v31, %v2673_v57  ;;  %v3313_v57 = vsel %vm2661_vm2, %v3303_v47, 0.0  ;;  %v1026_v31 = vpop.f32.mrf.mxu1 }
 0x179   :  { %v6948_v45 = vadd.f32 %v3222_v36, %v3190_v60  ;;  %v3335_v60 = vmul.f32 %v6922_v24, %v6922_v24  ;;  %v5481_v36 = vpop.f32.mrf.mxu0  ;;  %9069 = vst [vmem:[#allocation45_spill] sm:$0xff] %v6972_v53  ;;  %v6986_v8 = vadd.f32 %v1026_v31, %v6670_v43  ;;  %v3308_v31 = vmul.f32 %v6954_v16, %v6954_v16 }
 0x17a   :  { %3352 = vadd.xlane.f32.xlu0 %v3351_v48  ;;  %v5503_v55 = vpop.f32.mrf.mxu1 }
 0x17b   :  { %3343 = vadd.xlane.f32.xlu1 %v3342_v61  ;;  %v2691_v29 = vpop.xlane.xlu0 %2690  ;;  %v6966_v61 = vadd.f32 %v5481_v36, %v6699_v63  ;;  %v3345_v47 = vsel %vm2661_vm2, %v3335_v60, 0.0  ;;  %v6979_v36 = vadd.f32 %v5503_v55, %v6699_v63  ;;  %9071 = vst [vmem:[#allocation47_spill] sm:$0xff] %v6986_v8  ;;  %v3328_v23 = vsel %vm2661_vm2, %v3308_v31, 0.0 }
 0x17c   :  { %v3184_v7 = vpop.xlane.xlu1 %3183  ;;  %v1029_v55 = vpop.f32.mrf.mxu1 }
 0x17d   :  { %9068 = vst [vmem:[#allocation44_spill] sm:$0xff] %v6966_v61  ;;  %9070 = vst [vmem:[#allocation46_spill] sm:$0xff] %v6979_v36  ;;  %v2779_v60 = vsel %vm2661_vm2, %v6966_v61, 0.0  ;;  %v7002_v32 = vadd.f32 %v1029_v55, %v6679_v49  ;;  %v3306_v55 = vmul.f32 %v6972_v53, %v6972_v53  ;;  %v3341_v15 = vmul.f32 %v6979_v36, %v6979_v36 }
 0x17e   :  { %3314 = vadd.xlane.f32.xlu0 %v3313_v57 }
 0x17f   :  { %2777 = vadd.xlane.f32.xlu1 %v2776_v18  ;;  %v3193_v30 = vpop.xlane.xlu0 %3192  ;;  %9073 = vst [vmem:[#allocation49_spill] sm:$0xff] %v7002_v32 }
 0x180   :  { %v3216_v48 = vpop.xlane.xlu1 %3215 }
 0x181   :  { %v6968_v0 = vadd.f32 %v3216_v48, %v3184_v7  ;;  %v867_v48 = vpop.f32.mrf.mxu0 }
 0x182   :  { %3346 = vadd.xlane.f32.xlu0 %v3345_v47  ;;  %v2770_v47 = vsel %vm2661_vm2, %v6972_v53, 0.0 }
 0x183   :  { %2801 = vadd.xlane.f32.xlu1 %v2800_v42  ;;  %v3225_v57 = vpop.xlane.xlu0 %3224  ;;  %v5520_v19 = vpop.f32.mrf.mxu0 }
 0x184   :  { %v2667_v18 = vpop.xlane.xlu1 %2666  ;;  %v6976_v59 = vadd.f32 %v3225_v57, %v3193_v30  ;;  %v6991_v57 = vadd.f32 %v867_v48, %v6679_v49 }
 0x185   :  { %v6981_v7 = vadd.f32 %v2691_v29, %v2667_v18  ;;  %v2803_v29 = vsel %vm2661_vm2, %v6979_v36, 0.0  ;;  %v2794_v18 = vsel %vm2661_vm2, %v6986_v8, 0.0 }
 0x186   :  { %2780 = vadd.xlane.f32.xlu0 %v2779_v60  ;;  %9072 = vst [vmem:[#allocation48_spill] sm:$0xff] %v6991_v57  ;;  %v2773_v26 = vsel %vm2661_vm2, %v6991_v57, 0.0 }
 0x187   :  { %2771 = vadd.xlane.f32.xlu1 %v2770_v47  ;;  %v3187_v42 = vpop.xlane.xlu0 %3186 }
 0x188   :  { %v2682_v30 = vpop.xlane.xlu1 %2681 }
 0x18a   :  { %2804 = vadd.xlane.f32.xlu0 %v2803_v29  ;;  %v3340_v29 = vmul.f32 %v6961_v13, %v6961_v13 }
 0x18b   :  { %2795 = vadd.xlane.f32.xlu1 %v2794_v18  ;;  %v3219_v54 = vpop.xlane.xlu0 %3218 }
 0x18c   :  { %v2706_v60 = vpop.xlane.xlu1 %2705  ;;  %v6999_v47 = vadd.f32 %v3219_v54, %v3187_v42  ;;  %v2797_v54 = vsel %vm2661_vm2, %v7002_v32, 0.0  ;;  %v3309_v42 = vmul.f32 %v6966_v61, %v6966_v61  ;;  %v3322_v61 = vsel %vm2661_vm2, %v3306_v55, 0.0 }
 0x18d   :  { %v7004_v48 = vadd.f32 %v2706_v60, %v2682_v30  ;;  %v3360_v30 = vsel %vm2661_vm2, %v3340_v29, 0.0  ;;  %v3338_v29 = vmul.f32 %v6986_v8, %v6986_v8 }
 0x18e   :  { %2774 = vadd.xlane.f32.xlu0 %v2773_v26  ;;  %v3331_v13 = vsel %vm2661_vm2, %v3309_v42, 0.0  ;;  %v7032_v42 = vadd.f32 %v5520_v19, %v6590_v3 }
 0x18f   :  { %3329 = vadd.xlane.f32.xlu1 %v3328_v23  ;;  %v2685_v18 = vpop.xlane.xlu0 %2684  ;;  %v3354_v36 = vsel %vm2661_vm2, %v3338_v29, 0.0 }
 0x190   :  { %v2676_v16 = vpop.xlane.xlu1 %2675  ;;  %9074 = vst [vmem:[#allocation50_spill] sm:$0xff] %v7032_v42  ;;  %v2812_v29 = vsel %vm2661_vm2, %v7032_v42, 0.0  ;;  %v3368_v2 = vmul.f32 %v7032_v42, %v7032_v42 }
 0x192   :  { %2798 = vadd.xlane.f32.xlu0 %v2797_v54  ;;  %v3380_v52 = vsel %vm2661_vm2, %v3368_v2, 0.0 }
 0x193   :  { %3361 = vadd.xlane.f32.xlu1 %v3360_v30  ;;  %v2709_v26 = vpop.xlane.xlu0 %2708 }
 0x194   :  { %v2700_v31 = vpop.xlane.xlu1 %2699  ;;  %v7018_v60 = vadd.f32 %v2709_v26, %v2685_v18  ;;  %v3363_v18 = vsel %vm2661_vm2, %v3341_v15, 0.0  ;;  %v5542_v26 = vpop.f32.mrf.mxu1 }
 0x195   :  { %v7020_v23 = vadd.f32 %v2700_v31, %v2676_v16  ;;  %v3307_v16 = vmul.f32 %v6991_v57, %v6991_v57  ;;  %v1172_v31 = vpop.f32.mrf.mxu0  ;;  %v3339_v57 = vmul.f32 %v7002_v32, %v7002_v32  ;;  %v7043_v19 = vadd.f32 %v5542_v26, %v6590_v3 }
 0x196   :  { %3332 = vadd.xlane.f32.xlu0 %v3331_v13  ;;  %v1334_v53 = vpop.f32.mrf.mxu1 }
 0x197   :  { %3323 = vadd.xlane.f32.xlu1 %v3322_v61  ;;  %v2679_v54 = vpop.xlane.xlu0 %2678  ;;  %v3325_v15 = vsel %vm2661_vm2, %v3307_v16, 0.0  ;;  %9075 = vst [vmem:[#allocation51_spill] sm:$0xff] %v7043_v19  ;;  %v5521_v5 = vpop.f32.mrf.mxu0  ;;  %v7052_v16 = vadd.f32 %v1172_v31, %v6601_v9  ;;  %v2836_v26 = vsel %vm2661_vm2, %v7043_v19, 0.0  ;;  %v7066_v31 = vadd.f32 %v1334_v53, %v6601_v9 }
 0x198   :  { %v3202_v30 = vpop.xlane.xlu1 %3201 }
 0x199   :  { %9077 = vst [vmem:[#allocation53_spill] sm:$0xff] %v7052_v16  ;;  %9079 = vst [vmem:[#allocation55_spill] sm:$0xff] %v7066_v31  ;;  %v1175_v11 = vpop.f32.mrf.mxu0  ;;  %v2830_v53 = vsel %vm2661_vm2, %v7066_v31, 0.0  ;;  %v3366_v2 = vmul.f32 %v7052_v16, %v7052_v16 }
 0x19a   :  { %3364 = vadd.xlane.f32.xlu0 %v3363_v18  ;;  %v3357_v18 = vsel %vm2661_vm2, %v3339_v57, 0.0 }
 0x19b   :  { %3355 = vadd.xlane.f32.xlu1 %v3354_v36  ;;  %v2703_v13 = vpop.xlane.xlu0 %2702  ;;  %v3374_v34 = vsel %vm2661_vm2, %v3366_v2, 0.0 }
 0x19c   :  { %v3234_v55 = vpop.xlane.xlu1 %3233  ;;  %v7035_v8 = vadd.f32 %v2703_v13, %v2679_v54  ;;  %v5543_v13 = vpop.f32.mrf.mxu1 }
 0x19d   :  { %v7037_v61 = vadd.f32 %v3234_v55, %v3202_v30  ;;  %v7048_v30 = vadd.f32 %v5521_v5, %v6624_v20 }
 0x19e   :  { %3326 = vadd.xlane.f32.xlu0 %v3325_v15 }
 0x19f   :  { %2813 = vadd.xlane.f32.xlu1 %v2812_v29  ;;  %v3205_v36 = vpop.xlane.xlu0 %3204  ;;  %9076 = vst [vmem:[#allocation52_spill] sm:$0xff] %v7048_v30  ;;  %v7059_v29 = vadd.f32 %v5543_v13, %v6624_v20  ;;  %v2815_v57 = vsel %vm2661_vm2, %v7048_v30, 0.0  ;;  %v1337_v13 = vpop.f32.mrf.mxu1 }
 0x1a0   :  { %v3196_v54 = vpop.xlane.xlu1 %3195 }
 0x1a1   :  { %9078 = vst [vmem:[#allocation54_spill] sm:$0xff] %v7059_v29  ;;  %v5546_v2 = vpop.f32.mrf.mxu1 }
 0x1a2   :  { %3358 = vadd.xlane.f32.xlu0 %v3357_v18  ;;  %v2806_v18 = vsel %vm2661_vm2, %v7052_v16, 0.0 }
 0x1a3   :  { %2837 = vadd.xlane.f32.xlu1 %v2836_v26  ;;  %v3237_v55 = vpop.xlane.xlu0 %3236 }
 0x1a4   :  { %v3228_v32 = vpop.xlane.xlu1 %3227  ;;  %v7056_v15 = vadd.f32 %v3237_v55, %v3205_v36  ;;  %v7071_v55 = vadd.f32 %v1175_v11, %v6653_v33  ;;  %v7083_v11 = vadd.f32 %v1337_v13, %v6653_v33  ;;  %v3369_v13 = vmul.f32 %v7048_v30, %v7048_v30 }
 0x1a5   :  { %v7061_v5 = vadd.f32 %v3228_v32, %v3196_v54  ;;  %v2839_v54 = vsel %vm2661_vm2, %v7059_v29, 0.0 }
 0x1a6   :  { %2816 = vadd.xlane.f32.xlu0 %v2815_v57  ;;  %9080 = vst [vmem:[#allocation56_spill] sm:$0xff] %v7071_v55  ;;  %9081 = vst [vmem:[#allocation57_spill] sm:$0xff] %v7083_v11 }
 0x1a7   :  { %2807 = vadd.xlane.f32.xlu1 %v2806_v18  ;;  %v3199_v26 = vpop.xlane.xlu0 %3198 }
 0x1a8   :  { %v2718_v36 = vpop.xlane.xlu1 %2717 }
 0x1a9   :  { %v3064_v32 = vadd.f32 %v6924_v25, %v2718_v36  ;;  %v2809_v36 = vsel %vm2661_vm2, %v7071_v55, 0.0 }
 0x1aa   :  { %2840 = vadd.xlane.f32.xlu0 %v2839_v54  ;;  %v3400_v54 = vmul.f32 %v7043_v19, %v7043_v19 }
 0x1ab   :  { %2831 = vadd.xlane.f32.xlu1 %v2830_v53  ;;  %v3231_v57 = vpop.xlane.xlu0 %3230 }
 0x1ac   :  { %v2742_v18 = vpop.xlane.xlu1 %2741  ;;  %v7080_v24 = vadd.f32 %v3231_v57, %v3199_v26 }
 0x1ad   :  { %v7085_v25 = vadd.f32 %v3064_v32, %v2742_v18  ;;  %v2833_v32 = vsel %vm2661_vm2, %v7083_v11, 0.0  ;;  %v3412_v18 = vsel %vm2661_vm2, %v3400_v54, 0.0  ;;  %v3398_v54 = vmul.f32 %v7066_v31, %v7066_v31 }
 0x1ae   :  { %2810 = vadd.xlane.f32.xlu0 %v2809_v36 }
 0x1af   :  { %3381 = vadd.xlane.f32.xlu1 %v3380_v52  ;;  %v2721_v53 = vpop.xlane.xlu0 %2720  ;;  %v3406_v44 = vsel %vm2661_vm2, %v3398_v54, 0.0 }
 0x1b0   :  { %v2712_v22 = vpop.xlane.xlu1 %2711  ;;  %v3065_v26 = vadd.f32 %v6946_v38, %v2721_v53  ;;  %v5524_v53 = vpop.f32.mrf.mxu0 }
 0x1b1   :  { %v3062_v57 = vadd.f32 %v6931_v39, %v2712_v22  ;;  %v3383_v22 = vsel %vm2661_vm2, %v3369_v13, 0.0  ;;  %v3401_v39 = vmul.f32 %v7059_v29, %v7059_v29  ;;  %v3367_v13 = vmul.f32 %v7071_v55, %v7071_v55 }
 0x1b2   :  { %2834 = vadd.xlane.f32.xlu0 %v2833_v32 }
 0x1b3   :  { %3413 = vadd.xlane.f32.xlu1 %v3412_v18  ;;  %v2745_v52 = vpop.xlane.xlu0 %2744 }
 0x1b4   :  { %v2736_v36 = vpop.xlane.xlu1 %2735  ;;  %v7101_v12 = vadd.f32 %v3065_v26, %v2745_v52  ;;  %v3415_v52 = vsel %vm2661_vm2, %v3401_v39, 0.0  ;;  %v3399_v39 = vmul.f32 %v7083_v11, %v7083_v11 }
 0x1b5   :  { %v7103_v38 = vadd.f32 %v3062_v57, %v2736_v36  ;;  %v7117_v36 = vadd.f32 %v5524_v53, %v6681_v50  ;;  %v7128_v53 = vadd.f32 %v5546_v2, %v6681_v50 }
 0x1b6   :  { %3384 = vadd.xlane.f32.xlu0 %v3383_v22  ;;  %v1188_v22 = vpop.f32.mrf.mxu0 }
 0x1b7   :  { %3375 = vadd.xlane.f32.xlu1 %v3374_v34  ;;  %v2715_v32 = vpop.xlane.xlu0 %2714  ;;  %9082 = vst [vmem:[#allocation58_spill] sm:$0xff] %v7117_v36  ;;  %9083 = vst [vmem:[#allocation59_spill] sm:$0xff] %v7128_v53  ;;  %v2824_v54 = vsel %vm2661_vm2, %v7117_v36, 0.0  ;;  %v7139_v2 = vadd.f32 %v1188_v22, %v6670_v43  ;;  %v2848_v11 = vsel %vm2661_vm2, %v7128_v53, 0.0 }
 0x1b8   :  { %v3254_v18 = vpop.xlane.xlu1 %3253  ;;  %v3063_v26 = vadd.f32 %v6981_v7, %v2715_v32  ;;  %v1350_v32 = vpop.f32.mrf.mxu1 }
 0x1b9   :  { %v3704_v57 = vadd.f32 %v6948_v45, %v3254_v18  ;;  %v3377_v45 = vsel %vm2661_vm2, %v3367_v13, 0.0  ;;  %v5525_v18 = vpop.f32.mrf.mxu0  ;;  %v3409_v13 = vsel %vm2661_vm2, %v3399_v39, 0.0  ;;  %9085 = vst [vmem:[#allocation61_spill] sm:$0xff] %v7139_v2  ;;  %v7153_v22 = vadd.f32 %v1350_v32, %v6670_v43 }
 0x1ba   :  { %3416 = vadd.xlane.f32.xlu0 %v3415_v52 }
 0x1bb   :  { %3407 = vadd.xlane.f32.xlu1 %v3406_v44  ;;  %v2739_v34 = vpop.xlane.xlu0 %2738  ;;  %9087 = vst [vmem:[#allocation63_spill] sm:$0xff] %v7153_v22  ;;  %v1191_v39 = vpop.f32.mrf.mxu0 }
 0x1bc   :  { %v3286_v29 = vpop.xlane.xlu1 %3285  ;;  %v7120_v30 = vadd.f32 %v3063_v26, %v2739_v34  ;;  %v5547_v34 = vpop.f32.mrf.mxu1 }
 0x1bd   :  { %v7122_v7 = vadd.f32 %v3704_v57, %v3286_v29  ;;  %v7134_v57 = vadd.f32 %v5525_v18, %v6699_v63 }
 0x1be   :  { %3378 = vadd.xlane.f32.xlu0 %v3377_v45  ;;  %v1353_v32 = vpop.f32.mrf.mxu1 }
 0x1bf   :  { %2825 = vadd.xlane.f32.xlu1 %v2824_v54  ;;  %v3257_v44 = vpop.xlane.xlu0 %3256  ;;  %9084 = vst [vmem:[#allocation60_spill] sm:$0xff] %v7134_v57 }
 0x1c0   :  { %v3248_v26 = vpop.xlane.xlu1 %3247  ;;  %v3705_v29 = vadd.f32 %v6976_v59, %v3257_v44  ;;  %v7146_v59 = vadd.f32 %v5547_v34, %v6699_v63  ;;  %v2818_v44 = vsel %vm2661_vm2, %v7139_v2, 0.0 }
 0x1c1   :  { %v3702_v52 = vadd.f32 %v6968_v0, %v3248_v26  ;;  %v2827_v0 = vsel %vm2661_vm2, %v7134_v57, 0.0 }
 0x1c2   :  { %3410 = vadd.xlane.f32.xlu0 %v3409_v13  ;;  %9086 = vst [vmem:[#allocation62_spill] sm:$0xff] %v7146_v59  ;;  %v7159_v13 = vadd.f32 %v1191_v39, %v6679_v49  ;;  %v2851_v34 = vsel %vm2661_vm2, %v7146_v59, 0.0  ;;  %v7171_v39 = vadd.f32 %v1353_v32, %v6679_v49  ;;  %v3373_v32 = vmul.f32 %v7134_v57, %v7134_v57 }
 0x1c3   :  { %2849 = vadd.xlane.f32.xlu1 %v2848_v11  ;;  %v3289_v45 = vpop.xlane.xlu0 %3288 }
 0x1c4   :  { %v3280_v54 = vpop.xlane.xlu1 %3279  ;;  %v7143_v55 = vadd.f32 %v3705_v29, %v3289_v45  ;;  %9088 = vst [vmem:[#allocation64_spill] sm:$0xff] %v7159_v13  ;;  %v2842_v45 = vsel %vm2661_vm2, %v7153_v22, 0.0  ;;  %9089 = vst [vmem:[#allocation65_spill] sm:$0xff] %v7171_v39 }
 0x1c5   :  { %v7148_v18 = vadd.f32 %v3702_v52, %v3280_v54  ;;  %v3372_v54 = vmul.f32 %v7117_v36, %v7117_v36 }
 0x1c6   :  { %2828 = vadd.xlane.f32.xlu0 %v2827_v0 }
 0x1c7   :  { %2819 = vadd.xlane.f32.xlu1 %v2818_v44  ;;  %v3251_v11 = vpop.xlane.xlu0 %3250 }
 0x1c8   :  { %v2730_v26 = vpop.xlane.xlu1 %2729  ;;  %v3703_v29 = vadd.f32 %v6999_v47, %v3251_v11  ;;  %v2821_v11 = vsel %vm2661_vm2, %v7159_v13, 0.0 }
 0x1c9   :  { %v3068_v52 = vadd.f32 %v7004_v48, %v2730_v26  ;;  %v3392_v26 = vsel %vm2661_vm2, %v3372_v54, 0.0  ;;  %v3370_v54 = vmul.f32 %v7139_v2, %v7139_v2 }
 0x1ca   :  { %2852 = vadd.xlane.f32.xlu0 %v2851_v34  ;;  %v3404_v34 = vmul.f32 %v7128_v53, %v7128_v53 }
 0x1cb   :  { %2843 = vadd.xlane.f32.xlu1 %v2842_v45  ;;  %v3283_v0 = vpop.xlane.xlu0 %3282  ;;  %v3386_v57 = vsel %vm2661_vm2, %v3370_v54, 0.0  ;;  %v5586_v54 = vpop.f32.mrf.mxu1 }
 0x1cc   :  { %v2754_v44 = vpop.xlane.xlu1 %2753  ;;  %v7168_v47 = vadd.f32 %v3703_v29, %v3283_v0 }
 0x1cd   :  { %v7173_v48 = vadd.f32 %v3068_v52, %v2754_v44  ;;  %v2845_v52 = vsel %vm2661_vm2, %v7171_v39, 0.0  ;;  %v3424_v44 = vsel %vm2661_vm2, %v3404_v34, 0.0  ;;  %v3402_v34 = vmul.f32 %v7153_v22, %v7153_v22 }
 0x1ce   :  { %2822 = vadd.xlane.f32.xlu0 %v2821_v11 }
 0x1cf   :  { %3393 = vadd.xlane.f32.xlu1 %v3392_v26  ;;  %v2733_v45 = vpop.xlane.xlu0 %2732 }
 0x1d0   :  { %v2724_v36 = vpop.xlane.xlu1 %2723  ;;  %v3069_v29 = vadd.f32 %v7018_v60, %v2733_v45  ;;  %v5564_v45 = vpop.f32.mrf.mxu0 }
 0x1d1   :  { %v3066_v0 = vadd.f32 %v7020_v23, %v2724_v36  ;;  %v3395_v23 = vsel %vm2661_vm2, %v3373_v32, 0.0  ;;  %v3405_v36 = vmul.f32 %v7146_v59, %v7146_v59  ;;  %v3371_v32 = vmul.f32 %v7159_v13, %v7159_v13 }
 0x1d2   :  { %2846 = vadd.xlane.f32.xlu0 %v2845_v52  ;;  %v3418_v59 = vsel %vm2661_vm2, %v3402_v34, 0.0 }
 0x1d3   :  { %3425 = vadd.xlane.f32.xlu1 %v3424_v44  ;;  %v2757_v11 = vpop.xlane.xlu0 %2756 }
 0x1d4   :  { %v2748_v26 = vpop.xlane.xlu1 %2747  ;;  %v7189_v53 = vadd.f32 %v3069_v29, %v2757_v11  ;;  %v3427_v11 = vsel %vm2661_vm2, %v3405_v36, 0.0  ;;  %v3403_v36 = vmul.f32 %v7171_v39, %v7171_v39 }
 0x1d5   :  { %v7191_v60 = vadd.f32 %v3066_v0, %v2748_v26  ;;  %v7205_v26 = vadd.f32 %v5564_v45, %v6590_v3  ;;  %v7216_v45 = vadd.f32 %v5586_v54, %v6590_v3 }
 0x1d6   :  { %3396 = vadd.xlane.f32.xlu0 %v3395_v23  ;;  %v1496_v23 = vpop.f32.mrf.mxu0 }
 0x1d7   :  { %3387 = vadd.xlane.f32.xlu1 %v3386_v57  ;;  %v2727_v52 = vpop.xlane.xlu0 %2726  ;;  %9090 = vst [vmem:[#allocation66_spill] sm:$0xff] %v7205_v26  ;;  %v2860_v34 = vsel %vm2661_vm2, %v7205_v26, 0.0  ;;  %v7227_v54 = vadd.f32 %v1496_v23, %v6601_v9  ;;  %v2884_v39 = vsel %vm2661_vm2, %v7216_v45, 0.0 }
 0x1d8   :  { %v3266_v44 = vpop.xlane.xlu1 %3265  ;;  %v3067_v29 = vadd.f32 %v7035_v8, %v2727_v52  ;;  %v1658_v52 = vpop.f32.mrf.mxu1 }
 0x1d9   :  { %v3708_v0 = vadd.f32 %v7037_v61, %v3266_v44  ;;  %v3389_v61 = vsel %vm2661_vm2, %v3371_v32, 0.0  ;;  %v5565_v44 = vpop.f32.mrf.mxu0  ;;  %v3421_v32 = vsel %vm2661_vm2, %v3403_v36, 0.0  ;;  %9092 = vst [vmem:[#allocation68_spill] sm:$0xff] %v7227_v54  ;;  %v7241_v23 = vadd.f32 %v1658_v52, %v6601_v9 }
 0x1da   :  { %3428 = vadd.xlane.f32.xlu0 %v3427_v11 }
 0x1db   :  { %3419 = vadd.xlane.f32.xlu1 %v3418_v59  ;;  %v2751_v57 = vpop.xlane.xlu0 %2750  ;;  %v1499_v36 = vpop.f32.mrf.mxu0 }
 0x1dc   :  { %v3298_v22 = vpop.xlane.xlu1 %3297  ;;  %v7208_v2 = vadd.f32 %v3067_v29, %v2751_v57  ;;  %v5587_v57 = vpop.f32.mrf.mxu1 }
 0x1dd   :  { %v7210_v8 = vadd.f32 %v3708_v0, %v3298_v22  ;;  %v7222_v0 = vadd.f32 %v5565_v44, %v6624_v20 }
 0x1de   :  { %3390 = vadd.xlane.f32.xlu0 %v3389_v61  ;;  %v1661_v52 = vpop.f32.mrf.mxu1 }
 0x1df   :  { %2861 = vadd.xlane.f32.xlu1 %v2860_v34  ;;  %v3269_v59 = vpop.xlane.xlu0 %3268  ;;  %9091 = vst [vmem:[#allocation67_spill] sm:$0xff] %v7222_v0 }
 0x1e0   :  { %v3260_v29 = vpop.xlane.xlu1 %3259  ;;  %v3709_v22 = vadd.f32 %v7056_v15, %v3269_v59  ;;  %v7234_v15 = vadd.f32 %v5587_v57, %v6624_v20  ;;  %v2854_v59 = vsel %vm2661_vm2, %v7227_v54, 0.0 }
 0x1e1   :  { %v3706_v11 = vadd.f32 %v7061_v5, %v3260_v29  ;;  %v2863_v5 = vsel %vm2661_vm2, %v7222_v0, 0.0 }
 0x1e2   :  { %3422 = vadd.xlane.f32.xlu0 %v3421_v32  ;;  %9093 = vst [vmem:[#allocation69_spill] sm:$0xff] %v7234_v15  ;;  %v7247_v32 = vadd.f32 %v1499_v36, %v6653_v33  ;;  %v2887_v57 = vsel %vm2661_vm2, %v7234_v15, 0.0  ;;  %v7259_v36 = vadd.f32 %v1661_v52, %v6653_v33 }
 0x1e3   :  { %2885 = vadd.xlane.f32.xlu1 %v2884_v39  ;;  %v3301_v61 = vpop.xlane.xlu0 %3300 }
 0x1e4   :  { %v3292_v34 = vpop.xlane.xlu1 %3291  ;;  %v7231_v13 = vadd.f32 %v3709_v22, %v3301_v61  ;;  %9094 = vst [vmem:[#allocation70_spill] sm:$0xff] %v7247_v32  ;;  %v2878_v61 = vsel %vm2661_vm2, %v7241_v23, 0.0  ;;  %9095 = vst [vmem:[#allocation71_spill] sm:$0xff] %v7259_v36 }
 0x1e5   :  { %v7236_v44 = vadd.f32 %v3706_v11, %v3292_v34  ;;  %v3432_v34 = vmul.f32 %v7205_v26, %v7205_v26 }
 0x1e6   :  { %2864 = vadd.xlane.f32.xlu0 %v2863_v5 }
 0x1e7   :  { %2855 = vadd.xlane.f32.xlu1 %v2854_v59  ;;  %v3263_v39 = vpop.xlane.xlu0 %3262  ;;  %v3444_v40 = vsel %vm2661_vm2, %v3432_v34, 0.0  ;;  %v5590_v34 = vpop.f32.mrf.mxu1 }
 0x1e8   :  { %v2766_v29 = vpop.xlane.xlu1 %2765  ;;  %v3707_v22 = vadd.f32 %v7080_v24, %v3263_v39  ;;  %v2857_v39 = vsel %vm2661_vm2, %v7247_v32, 0.0 }
 0x1e9   :  { %v3080_v11 = vadd.f32 %v7085_v25, %v2766_v29  ;;  %v5568_v29 = vpop.f32.mrf.mxu0 }
 0x1ea   :  { %2888 = vadd.xlane.f32.xlu0 %v2887_v57  ;;  %v3430_v57 = vmul.f32 %v7227_v54, %v7227_v54 }
 0x1eb   :  { %2879 = vadd.xlane.f32.xlu1 %v2878_v61  ;;  %v3295_v5 = vpop.xlane.xlu0 %3294 }
 0x1ec   :  { %v2790_v59 = vpop.xlane.xlu1 %2789  ;;  %v7256_v24 = vadd.f32 %v3707_v22, %v3295_v5  ;;  %v3433_v5 = vmul.f32 %v7222_v0, %v7222_v0  ;;  %v3438_v62 = vsel %vm2661_vm2, %v3430_v57, 0.0  ;;  %v1674_v0 = vpop.f32.mrf.mxu1 }
 0x1ed   :  { %v7261_v25 = vadd.f32 %v3080_v11, %v2790_v59  ;;  %v2881_v11 = vsel %vm2661_vm2, %v7259_v36, 0.0  ;;  %v7275_v59 = vadd.f32 %v5568_v29, %v6681_v50  ;;  %v7286_v29 = vadd.f32 %v5590_v34, %v6681_v50 }
 0x1ee   :  { %2858 = vadd.xlane.f32.xlu0 %v2857_v39  ;;  %v1512_v39 = vpop.f32.mrf.mxu0 }
 0x1ef   :  { %3445 = vadd.xlane.f32.xlu1 %v3444_v40  ;;  %v2769_v61 = vpop.xlane.xlu0 %2768  ;;  %9096 = vst [vmem:[#allocation72_spill] sm:$0xff] %v7275_v59  ;;  %9097 = vst [vmem:[#allocation73_spill] sm:$0xff] %v7286_v29  ;;  %v2872_v57 = vsel %vm2661_vm2, %v7275_v59, 0.0  ;;  %v7297_v34 = vadd.f32 %v1512_v39, %v6670_v43 }
 0x1f0   :  { %v2760_v35 = vpop.xlane.xlu1 %2759  ;;  %v3081_v22 = vadd.f32 %v7101_v12, %v2769_v61  ;;  %v3431_v61 = vmul.f32 %v7247_v32, %v7247_v32  ;;  %v5569_v28 = vpop.f32.mrf.mxu0  ;;  %v2896_v32 = vsel %vm2661_vm2, %v7286_v29, 0.0 }
 0x1f1   :  { %v3078_v52 = vadd.f32 %v7103_v38, %v2760_v35  ;;  %v3447_v38 = vsel %vm2661_vm2, %v3433_v5, 0.0  ;;  %9099 = vst [vmem:[#allocation75_spill] sm:$0xff] %v7297_v34 }
 0x1f2   :  { %2882 = vadd.xlane.f32.xlu0 %v2881_v11  ;;  %v3441_v5 = vsel %vm2661_vm2, %v3431_v61, 0.0  ;;  %v7311_v61 = vadd.f32 %v1674_v0, %v6670_v43 }
 0x1f3   :  { %3439 = vadd.xlane.f32.xlu1 %v3438_v62  ;;  %v2793_v40 = vpop.xlane.xlu0 %2792 }
 0x1f4   :  { %v2784_v56 = vpop.xlane.xlu1 %2783  ;;  %v7278_v12 = vadd.f32 %v3081_v22, %v2793_v40  ;;  %v5591_v40 = vpop.f32.mrf.mxu1  ;;  %9101 = vst [vmem:[#allocation77_spill] sm:$0xff] %v7311_v61 }
 0x1f5   :  { %v7280_v35 = vadd.f32 %v3078_v52, %v2784_v56  ;;  %v7292_v52 = vadd.f32 %v5569_v28, %v6699_v63  ;;  %v7304_v28 = vadd.f32 %v5591_v40, %v6699_v63 }
 0x1f6   :  { %3448 = vadd.xlane.f32.xlu0 %v3447_v38 }
 0x1f7   :  { %2873 = vadd.xlane.f32.xlu1 %v2872_v57  ;;  %v2763_v62 = vpop.xlane.xlu0 %2762  ;;  %9098 = vst [vmem:[#allocation74_spill] sm:$0xff] %v7292_v52  ;;  %v1515_v57 = vpop.f32.mrf.mxu0  ;;  %9100 = vst [vmem:[#allocation76_spill] sm:$0xff] %v7304_v28  ;;  %v2875_v39 = vsel %vm2661_vm2, %v7292_v52, 0.0  ;;  %v2899_v0 = vsel %vm2661_vm2, %v7304_v28, 0.0 }
 0x1f8   :  { %v3318_v22 = vpop.xlane.xlu1 %3317  ;;  %v3079_v56 = vadd.f32 %v7120_v30, %v2763_v62 }
 0x1f9   :  { %v3720_v11 = vadd.f32 %v7122_v7, %v3318_v22  ;;  %v5608_v62 = vpop.f32.mrf.mxu0 }
 0x1fa   :  { %3442 = vadd.xlane.f32.xlu0 %v3441_v5 }
 0x1fb   :  { %2897 = vadd.xlane.f32.xlu1 %v2896_v32  ;;  %v2787_v38 = vpop.xlane.xlu0 %2786  ;;  %v2866_v32 = vsel %vm2661_vm2, %v7297_v34, 0.0  ;;  %v1820_v31 = vpop.f32.mrf.mxu0 }
 0x1fc   :  { %v3350_v21 = vpop.xlane.xlu1 %3349  ;;  %v7301_v30 = vadd.f32 %v3079_v56, %v2787_v38  ;;  %v1677_v56 = vpop.f32.mrf.mxu1  ;;  %v7323_v38 = vadd.f32 %v5608_v62, %v6590_v3 }
 0x1fd   :  { %v7306_v7 = vadd.f32 %v3720_v11, %v3350_v21  ;;  %v7317_v21 = vadd.f32 %v1515_v57, %v6679_v49  ;;  %v7330_v57 = vadd.f32 %v1677_v56, %v6679_v49  ;;  %v5609_v46 = vpop.f32.mrf.mxu0 }
 0x1fe   :  { %2876 = vadd.xlane.f32.xlu0 %v2875_v39  ;;  %v5630_v54 = vpop.f32.mrf.mxu1  ;;  %v2890_v39 = vsel %vm2661_vm2, %v7311_v61, 0.0 }
 0x1ff   :  { %2867 = vadd.xlane.f32.xlu1 %v2866_v32  ;;  %v3321_v22 = vpop.xlane.xlu0 %3320  ;;  %9102 = vst [vmem:[#allocation78_spill] sm:$0xff] %v7317_v21  ;;  %9103 = vst [vmem:[#allocation79_spill] sm:$0xff] %v7330_v57  ;;  %v2869_v62 = vsel %vm2661_vm2, %v7317_v21, 0.0  ;;  %v1823_v4 = vpop.f32.mrf.mxu0 }
 0x200   :  { %v3312_v5 = vpop.xlane.xlu1 %3311  ;;  %v3721_v40 = vadd.f32 %v7143_v55, %v3321_v22  ;;  %v1982_v16 = vpop.f32.mrf.mxu1 }
 0x201   :  { %v3718_v11 = vadd.f32 %v7148_v18, %v3312_v5  ;;  %v7337_v5 = vadd.f32 %v5630_v54, %v6590_v3  ;;  %v2893_v54 = vsel %vm2661_vm2, %v7330_v57, 0.0  ;;  %v5612_v17 = vpop.f32.mrf.mxu0 }
 0x202   :  { %2900 = vadd.xlane.f32.xlu0 %v2899_v0  ;;  %v2908_v0 = vsel %vm2661_vm2, %v7323_v38, 0.0  ;;  %v5631_v37 = vpop.f32.mrf.mxu1 }
 0x203   :  { %2891 = vadd.xlane.f32.xlu1 %v2890_v39  ;;  %v3353_v32 = vpop.xlane.xlu0 %3352  ;;  %v1836_v26 = vpop.f32.mrf.mxu0 }
 0x204   :  { %v3344_v55 = vpop.xlane.xlu1 %3343  ;;  %v7327_v22 = vadd.f32 %v3721_v40, %v3353_v32  ;;  %v1985_v58 = vpop.f32.mrf.mxu1 }
 0x205   :  { %v7332_v18 = vadd.f32 %v3718_v11, %v3344_v55  ;;  %v7343_v11 = vadd.f32 %v5609_v46, %v6624_v20  ;;  %v7349_v55 = vadd.f32 %v1820_v31, %v6601_v9  ;;  %v7356_v46 = vadd.f32 %v5631_v37, %v6624_v20  ;;  %v5613_v42 = vpop.f32.mrf.mxu0 }
 0x206   :  { %2870 = vadd.xlane.f32.xlu0 %v2869_v62  ;;  %v2932_v62 = vsel %vm2661_vm2, %v7337_v5, 0.0  ;;  %v5634_v14 = vpop.f32.mrf.mxu1 }
 0x207   :  { %2909 = vadd.xlane.f32.xlu1 %v2908_v0  ;;  %v3315_v40 = vpop.xlane.xlu0 %3314  ;;  %9104 = vst [vmem:[#allocation80_spill] sm:$0xff] %v7343_v11  ;;  %9105 = vst [vmem:[#allocation81_spill] sm:$0xff] %v7356_v46  ;;  %v2911_v31 = vsel %vm2661_vm2, %v7343_v11, 0.0  ;;  %v1839_v1 = vpop.f32.mrf.mxu0 }
 0x208   :  { %v2778_v39 = vpop.xlane.xlu1 %2777  ;;  %v3719_v56 = vadd.f32 %v7168_v47, %v3315_v40  ;;  %v1998_v19 = vpop.f32.mrf.mxu1 }
 0x209   :  { %v3084_v32 = vadd.f32 %v7173_v48, %v2778_v39  ;;  %v7363_v39 = vadd.f32 %v1982_v16, %v6601_v9  ;;  %v2935_v16 = vsel %vm2661_vm2, %v7356_v46, 0.0  ;;  %v5652_v51 = vpop.f32.mrf.mxu0 }
 0x20a   :  { %2894 = vadd.xlane.f32.xlu0 %v2893_v54  ;;  %v2902_v54 = vsel %vm2661_vm2, %v7349_v55, 0.0  ;;  %v5635_v27 = vpop.f32.mrf.mxu1  ;;  %v7427_v41 = vadd.f32 %v5652_v51, %v6590_v3 }
 0x20b   :  { %2933 = vadd.xlane.f32.xlu1 %v2932_v62  ;;  %v3347_v0 = vpop.xlane.xlu0 %3346  ;;  %9106 = vst [vmem:[#allocation82_spill] sm:$0xff] %v7363_v39  ;;  %v2144_v6 = vpop.f32.mrf.mxu0 }
 0x20c   :  { %v2802_v47 = vpop.xlane.xlu1 %2801  ;;  %v7353_v40 = vadd.f32 %v3719_v56, %v3347_v0  ;;  %9116 = vst [vmem:[#allocation92_spill] sm:$0xff] %v7427_v41 }
 0x20d   :  { %v7358_v48 = vadd.f32 %v3084_v32, %v2802_v47  ;;  %v7369_v32 = vadd.f32 %v1823_v4, %v6653_v33  ;;  %v7375_v47 = vadd.f32 %v5612_v17, %v6681_v50  ;;  %v7382_v4 = vadd.f32 %v1985_v58, %v6653_v33 }
 0x20e   :  { %2912 = vadd.xlane.f32.xlu0 %v2911_v31  ;;  %v2926_v31 = vsel %vm2661_vm2, %v7363_v39, 0.0 }
 0x20f   :  { %2903 = vadd.xlane.f32.xlu1 %v2902_v54  ;;  %v2781_v56 = vpop.xlane.xlu0 %2780  ;;  %9107 = vst [vmem:[#allocation83_spill] sm:$0xff] %v7369_v32  ;;  %9108 = vst [vmem:[#allocation84_spill] sm:$0xff] %v7375_v47  ;;  %v2905_v17 = vsel %vm2661_vm2, %v7369_v32, 0.0 }
 0x210   :  { %v2772_v62 = vpop.xlane.xlu1 %2771  ;;  %v3085_v37 = vadd.f32 %v7189_v53, %v2781_v56  ;;  %9109 = vst [vmem:[#allocation85_spill] sm:$0xff] %v7382_v4 }
 0x211   :  { %v3082_v0 = vadd.f32 %v7191_v60, %v2772_v62  ;;  %v7389_v62 = vadd.f32 %v5634_v14, %v6681_v50  ;;  %v2929_v14 = vsel %vm2661_vm2, %v7382_v4, 0.0 }
 0x212   :  { %2936 = vadd.xlane.f32.xlu0 %v2935_v16  ;;  %v2920_v16 = vsel %vm2661_vm2, %v7375_v47, 0.0 }
 0x213   :  { %2927 = vadd.xlane.f32.xlu1 %v2926_v31  ;;  %v2805_v54 = vpop.xlane.xlu0 %2804  ;;  %9110 = vst [vmem:[#allocation86_spill] sm:$0xff] %v7389_v62 }
 0x214   :  { %v2796_v53 = vpop.xlane.xlu1 %2795  ;;  %v7379_v56 = vadd.f32 %v3085_v37, %v2805_v54 }
 0x215   :  { %v7384_v60 = vadd.f32 %v3082_v0, %v2796_v53  ;;  %v7395_v0 = vadd.f32 %v5613_v42, %v6699_v63  ;;  %v7401_v53 = vadd.f32 %v1836_v26, %v6670_v43  ;;  %v7408_v42 = vadd.f32 %v5635_v27, %v6699_v63 }
 0x216   :  { %2906 = vadd.xlane.f32.xlu0 %v2905_v17  ;;  %v2944_v17 = vsel %vm2661_vm2, %v7389_v62, 0.0  ;;  %v5653_v62 = vpop.f32.mrf.mxu0 }
 0x217   :  { %2921 = vadd.xlane.f32.xlu1 %v2920_v16  ;;  %v2775_v37 = vpop.xlane.xlu0 %2774  ;;  %9111 = vst [vmem:[#allocation87_spill] sm:$0xff] %v7395_v0  ;;  %9112 = vst [vmem:[#allocation88_spill] sm:$0xff] %v7401_v53  ;;  %v2923_v26 = vsel %vm2661_vm2, %v7395_v0, 0.0 }
 0x218   :  { %v3330_v31 = vpop.xlane.xlu1 %3329  ;;  %v3083_v58 = vadd.f32 %v7208_v2, %v2775_v37  ;;  %9113 = vst [vmem:[#allocation89_spill] sm:$0xff] %v7408_v42 }
 0x219   :  { %v3724_v54 = vadd.f32 %v7210_v8, %v3330_v31  ;;  %v7415_v31 = vadd.f32 %v1998_v19, %v6670_v43  ;;  %v2947_v19 = vsel %vm2661_vm2, %v7408_v42, 0.0 }
 0x21a   :  { %2930 = vadd.xlane.f32.xlu0 %v2929_v14  ;;  %v2914_v14 = vsel %vm2661_vm2, %v7401_v53, 0.0 }
 0x21b   :  { %2945 = vadd.xlane.f32.xlu1 %v2944_v17  ;;  %v2799_v16 = vpop.xlane.xlu0 %2798  ;;  %9114 = vst [vmem:[#allocation90_spill] sm:$0xff] %v7415_v31 }
 0x21c   :  { %v3362_v2 = vpop.xlane.xlu1 %3361  ;;  %v7405_v37 = vadd.f32 %v3083_v58, %v2799_v16  ;;  %v2001_v58 = vpop.f32.mrf.mxu1 }
 0x21d   :  { %v7410_v8 = vadd.f32 %v3724_v54, %v3362_v2  ;;  %v7421_v54 = vadd.f32 %v1839_v1, %v6679_v49  ;;  %v7434_v1 = vadd.f32 %v2001_v58, %v6679_v49 }
 0x21e   :  { %2924 = vadd.xlane.f32.xlu0 %v2923_v26  ;;  %v5674_v10 = vpop.f32.mrf.mxu1  ;;  %v2938_v26 = vsel %vm2661_vm2, %v7415_v31, 0.0  ;;  %v2147_v31 = vpop.f32.mrf.mxu0 }
 0x21f   :  { %2915 = vadd.xlane.f32.xlu1 %v2914_v14  ;;  %v3333_v17 = vpop.xlane.xlu0 %3332  ;;  %9115 = vst [vmem:[#allocation91_spill] sm:$0xff] %v7421_v54  ;;  %9117 = vst [vmem:[#allocation93_spill] sm:$0xff] %v7434_v1  ;;  %v2917_v51 = vsel %vm2661_vm2, %v7421_v54, 0.0 }
 0x220   :  { %v3324_v16 = vpop.xlane.xlu1 %3323  ;;  %v3725_v27 = vadd.f32 %v7231_v13, %v3333_v17  ;;  %v2306_v42 = vpop.f32.mrf.mxu1 }
 0x221   :  { %v3722_v2 = vadd.f32 %v7236_v44, %v3324_v16  ;;  %v7441_v16 = vadd.f32 %v5674_v10, %v6590_v3  ;;  %v2941_v10 = vsel %vm2661_vm2, %v7434_v1, 0.0  ;;  %v5656_v1 = vpop.f32.mrf.mxu0 }
 0x222   :  { %2948 = vadd.xlane.f32.xlu0 %v2947_v19  ;;  %v2956_v19 = vsel %vm2661_vm2, %v7427_v41, 0.0  ;;  %v5675_v46 = vpop.f32.mrf.mxu1 }
 0x223   :  { %2939 = vadd.xlane.f32.xlu1 %v2938_v26  ;;  %v3365_v14 = vpop.xlane.xlu0 %3364  ;;  %9118 = vst [vmem:[#allocation94_spill] sm:$0xff] %v7441_v16 }
 0x224   :  { %v3356_v13 = vpop.xlane.xlu1 %3355  ;;  %v7431_v17 = vadd.f32 %v3725_v27, %v3365_v14  ;;  %v2309_v41 = vpop.f32.mrf.mxu1 }
 0x225   :  { %v7436_v44 = vadd.f32 %v3722_v2, %v3356_v13  ;;  %v7447_v2 = vadd.f32 %v5653_v62, %v6624_v20  ;;  %v7453_v13 = vadd.f32 %v2144_v6, %v6601_v9  ;;  %v7460_v62 = vadd.f32 %v5675_v46, %v6624_v20 }
 0x226   :  { %2918 = vadd.xlane.f32.xlu0 %v2917_v51  ;;  %v2980_v51 = vsel %vm2661_vm2, %v7441_v16, 0.0  ;;  %v5678_v16 = vpop.f32.mrf.mxu1 }
 0x227   :  { %2957 = vadd.xlane.f32.xlu1 %v2956_v19  ;;  %v3327_v27 = vpop.xlane.xlu0 %3326  ;;  %9119 = vst [vmem:[#allocation95_spill] sm:$0xff] %v7447_v2  ;;  %9120 = vst [vmem:[#allocation96_spill] sm:$0xff] %v7453_v13  ;;  %v2959_v6 = vsel %vm2661_vm2, %v7447_v2, 0.0  ;;  %v2160_v2 = vpop.f32.mrf.mxu0 }
 0x228   :  { %v2814_v26 = vpop.xlane.xlu1 %2813  ;;  %v3723_v58 = vadd.f32 %v7256_v24, %v3327_v27  ;;  %9121 = vst [vmem:[#allocation97_spill] sm:$0xff] %v7460_v62 }
 0x229   :  { %v3096_v14 = vadd.f32 %v7261_v25, %v2814_v26  ;;  %v7467_v26 = vadd.f32 %v2306_v42, %v6601_v9  ;;  %v2983_v42 = vsel %vm2661_vm2, %v7460_v62, 0.0  ;;  %v2322_v62 = vpop.f32.mrf.mxu1 }
 0x22a   :  { %2942 = vadd.xlane.f32.xlu0 %v2941_v10  ;;  %v2950_v10 = vsel %vm2661_vm2, %v7453_v13, 0.0  ;;  %v5657_v13 = vpop.f32.mrf.mxu0 }
 0x22b   :  { %2981 = vadd.xlane.f32.xlu1 %v2980_v51  ;;  %v3359_v19 = vpop.xlane.xlu0 %3358  ;;  %9122 = vst [vmem:[#allocation98_spill] sm:$0xff] %v7467_v26 }
 0x22c   :  { %v2838_v24 = vpop.xlane.xlu1 %2837  ;;  %v7457_v27 = vadd.f32 %v3723_v58, %v3359_v19 }
 0x22d   :  { %v7462_v25 = vadd.f32 %v3096_v14, %v2838_v24  ;;  %v7473_v14 = vadd.f32 %v2147_v31, %v6653_v33  ;;  %v7479_v24 = vadd.f32 %v5656_v1, %v6681_v50  ;;  %v7486_v31 = vadd.f32 %v2309_v41, %v6653_v33 }
 0x22e   :  { %2960 = vadd.xlane.f32.xlu0 %v2959_v6  ;;  %v2974_v6 = vsel %vm2661_vm2, %v7467_v26, 0.0  ;;  %v5679_v26 = vpop.f32.mrf.mxu1 }
 0x22f   :  { %2951 = vadd.xlane.f32.xlu1 %v2950_v10  ;;  %v2817_v58 = vpop.xlane.xlu0 %2816  ;;  %9123 = vst [vmem:[#allocation99_spill] sm:$0xff] %v7473_v14  ;;  %9124 = vst [vmem:[#allocation100_spill] sm:$0xff] %v7479_v24  ;;  %v2953_v1 = vsel %vm2661_vm2, %v7473_v14, 0.0 }
 0x230   :  { %v2808_v51 = vpop.xlane.xlu1 %2807  ;;  %v3097_v46 = vadd.f32 %v7278_v12, %v2817_v58  ;;  %9125 = vst [vmem:[#allocation101_spill] sm:$0xff] %v7486_v31 }
 0x231   :  { %v3094_v19 = vadd.f32 %v7280_v35, %v2808_v51  ;;  %v7493_v51 = vadd.f32 %v5678_v16, %v6681_v50  ;;  %v2977_v16 = vsel %vm2661_vm2, %v7486_v31, 0.0 }
 0x232   :  { %2984 = vadd.xlane.f32.xlu0 %v2983_v42  ;;  %v2968_v42 = vsel %vm2661_vm2, %v7479_v24, 0.0  ;;  %v2163_v24 = vpop.f32.mrf.mxu0 }
 0x233   :  { %2975 = vadd.xlane.f32.xlu1 %v2974_v6  ;;  %v2841_v10 = vpop.xlane.xlu0 %2840  ;;  %9126 = vst [vmem:[#allocation102_spill] sm:$0xff] %v7493_v51 }
 0x234   :  { %v2832_v12 = vpop.xlane.xlu1 %2831  ;;  %v7483_v58 = vadd.f32 %v3097_v46, %v2841_v10  ;;  %v5696_v31 = vpop.f32.mrf.mxu0 }
 0x235   :  { %v7488_v35 = vadd.f32 %v3094_v19, %v2832_v12  ;;  %v7499_v19 = vadd.f32 %v5657_v13, %v6699_v63  ;;  %v7505_v12 = vadd.f32 %v2160_v2, %v6670_v43  ;;  %v7512_v13 = vadd.f32 %v5679_v26, %v6699_v63 }
 0x236   :  { %2954 = vadd.xlane.f32.xlu0 %v2953_v1  ;;  %v2992_v1 = vsel %vm2661_vm2, %v7493_v51, 0.0  ;;  %v7531_v51 = vadd.f32 %v5696_v31, %v6590_v3 }
 0x237   :  { %2969 = vadd.xlane.f32.xlu1 %v2968_v42  ;;  %v2811_v46 = vpop.xlane.xlu0 %2810  ;;  %9127 = vst [vmem:[#allocation103_spill] sm:$0xff] %v7499_v19  ;;  %9128 = vst [vmem:[#allocation104_spill] sm:$0xff] %v7505_v12  ;;  %v2971_v2 = vsel %vm2661_vm2, %v7499_v19, 0.0 }
 0x238   :  { %v3382_v6 = vpop.xlane.xlu1 %3381  ;;  %v3095_v41 = vadd.f32 %v7301_v30, %v2811_v46  ;;  %9129 = vst [vmem:[#allocation105_spill] sm:$0xff] %v7512_v13  ;;  %9132 = vst [vmem:[#allocation108_spill] sm:$0xff] %v7531_v51 }
 0x239   :  { %v3736_v10 = vadd.f32 %v7306_v7, %v3382_v6  ;;  %v7519_v6 = vadd.f32 %v2322_v62, %v6670_v43  ;;  %v2995_v62 = vsel %vm2661_vm2, %v7512_v13, 0.0 }
 0x23a   :  { %2978 = vadd.xlane.f32.xlu0 %v2977_v16  ;;  %v2962_v16 = vsel %vm2661_vm2, %v7505_v12, 0.0  ;;  %v2468_v12 = vpop.f32.mrf.mxu0 }
 0x23b   :  { %2993 = vadd.xlane.f32.xlu1 %v2992_v1  ;;  %v2835_v42 = vpop.xlane.xlu0 %2834  ;;  %9130 = vst [vmem:[#allocation106_spill] sm:$0xff] %v7519_v6 }
 0x23c   :  { %v3414_v30 = vpop.xlane.xlu1 %3413  ;;  %v7509_v46 = vadd.f32 %v3095_v41, %v2835_v42  ;;  %v2325_v41 = vpop.f32.mrf.mxu1 }
 0x23d   :  { %v7514_v7 = vadd.f32 %v3736_v10, %v3414_v30  ;;  %v7525_v10 = vadd.f32 %v2163_v24, %v6679_v49  ;;  %v7538_v24 = vadd.f32 %v2325_v41, %v6679_v49  ;;  %v5697_v14 = vpop.f32.mrf.mxu0 }
 0x23e   :  { %2972 = vadd.xlane.f32.xlu0 %v2971_v2  ;;  %v5718_v19 = vpop.f32.mrf.mxu1  ;;  %v2986_v2 = vsel %vm2661_vm2, %v7519_v6, 0.0 }
 0x23f   :  { %2963 = vadd.xlane.f32.xlu1 %v2962_v16  ;;  %v3385_v1 = vpop.xlane.xlu0 %3384  ;;  %9131 = vst [vmem:[#allocation107_spill] sm:$0xff] %v7525_v10  ;;  %9133 = vst [vmem:[#allocation109_spill] sm:$0xff] %v7538_v24  ;;  %v2965_v31 = vsel %vm2661_vm2, %v7525_v10, 0.0  ;;  %v2471_v6 = vpop.f32.mrf.mxu0 }
 0x240   :  { %v3376_v42 = vpop.xlane.xlu1 %3375  ;;  %v3737_v26 = vadd.f32 %v7327_v22, %v3385_v1  ;;  %v2630_v13 = vpop.f32.mrf.mxu1 }
 0x241   :  { %v3734_v30 = vadd.f32 %v7332_v18, %v3376_v42  ;;  %v7545_v42 = vadd.f32 %v5718_v19, %v6590_v3  ;;  %v2989_v3 = vsel %vm2661_vm2, %v7538_v24, 0.0  ;;  %v7557_v19 = vadd.f32 %v2468_v12, %v6601_v9  ;;  %v5700_v24 = vpop.f32.mrf.mxu0 }
 0x242   :  { %2996 = vadd.xlane.f32.xlu0 %v2995_v62  ;;  %v3004_v62 = vsel %vm2661_vm2, %v7531_v51, 0.0 }
 0x243   :  { %2987 = vadd.xlane.f32.xlu1 %v2986_v2  ;;  %v3417_v16 = vpop.xlane.xlu0 %3416  ;;  %9134 = vst [vmem:[#allocation110_spill] sm:$0xff] %v7545_v42  ;;  %9136 = vst [vmem:[#allocation112_spill] sm:$0xff] %v7557_v19 }
 0x244   :  { %v3408_v22 = vpop.xlane.xlu1 %3407  ;;  %v7535_v1 = vadd.f32 %v3737_v26, %v3417_v16 }
 0x245   :  { %v7540_v18 = vadd.f32 %v3734_v30, %v3408_v22  ;;  %v7551_v30 = vadd.f32 %v5697_v14, %v6624_v20  ;;  %v5719_v22 = vpop.f32.mrf.mxu1 }
 0x246   :  { %2966 = vadd.xlane.f32.xlu0 %v2965_v31  ;;  %v3028_v31 = vsel %vm2661_vm2, %v7545_v42, 0.0  ;;  %v7564_v14 = vadd.f32 %v5719_v22, %v6624_v20 }
 0x247   :  { %3005 = vadd.xlane.f32.xlu1 %v3004_v62  ;;  %v3379_v26 = vpop.xlane.xlu0 %3378  ;;  %9135 = vst [vmem:[#allocation111_spill] sm:$0xff] %v7551_v30  ;;  %v3007_v12 = vsel %vm2661_vm2, %v7551_v30, 0.0  ;;  %v2633_v51 = vpop.f32.mrf.mxu1 }
 0x248   :  { %v2826_v2 = vpop.xlane.xlu1 %2825  ;;  %v3735_v41 = vadd.f32 %v7353_v40, %v3379_v26  ;;  %9137 = vst [vmem:[#allocation113_spill] sm:$0xff] %v7564_v14 }
 0x249   :  { %v3100_v16 = vadd.f32 %v7358_v48, %v2826_v2  ;;  %v7571_v2 = vadd.f32 %v2630_v13, %v6601_v9  ;;  %v3031_v9 = vsel %vm2661_vm2, %v7564_v14, 0.0  ;;  %v7583_v13 = vadd.f32 %v5700_v24, %v6681_v50 }
 0x24a   :  { %2990 = vadd.xlane.f32.xlu0 %v2989_v3  ;;  %v2998_v3 = vsel %vm2661_vm2, %v7557_v19, 0.0 }
 0x24b   :  { %3029 = vadd.xlane.f32.xlu1 %v3028_v31  ;;  %v3411_v62 = vpop.xlane.xlu0 %3410  ;;  %9138 = vst [vmem:[#allocation114_spill] sm:$0xff] %v7571_v2  ;;  %9140 = vst [vmem:[#allocation116_spill] sm:$0xff] %v7583_v13 }
 0x24c   :  { %v2850_v40 = vpop.xlane.xlu1 %2849  ;;  %v7561_v26 = vadd.f32 %v3735_v41, %v3411_v62  ;;  %v5722_v62 = vpop.f32.mrf.mxu1 }
 0x24d   :  { %v7566_v48 = vadd.f32 %v3100_v16, %v2850_v40  ;;  %v7577_v16 = vadd.f32 %v2471_v6, %v6653_v33  ;;  %v2484_v40 = vpop.f32.mrf.mxu0  ;;  %v7590_v6 = vadd.f32 %v2633_v51, %v6653_v33 }
 0x24e   :  { %3008 = vadd.xlane.f32.xlu0 %v3007_v12  ;;  %v3022_v12 = vsel %vm2661_vm2, %v7571_v2, 0.0  ;;  %v2646_v14 = vpop.f32.mrf.mxu1 }
 0x24f   :  { %2999 = vadd.xlane.f32.xlu1 %v2998_v3  ;;  %v2829_v41 = vpop.xlane.xlu0 %2828  ;;  %9139 = vst [vmem:[#allocation115_spill] sm:$0xff] %v7577_v16  ;;  %9141 = vst [vmem:[#allocation117_spill] sm:$0xff] %v7590_v6  ;;  %v3001_v24 = vsel %vm2661_vm2, %v7577_v16, 0.0  ;;  %v5701_v42 = vpop.f32.mrf.mxu0 }
 0x250   :  { %v2820_v31 = vpop.xlane.xlu1 %2819  ;;  %v3101_v20 = vadd.f32 %v7379_v56, %v2829_v41  ;;  %v7603_v51 = vadd.f32 %v5701_v42, %v6699_v63 }
 0x251   :  { %v3098_v22 = vadd.f32 %v7384_v60, %v2820_v31  ;;  %v7597_v31 = vadd.f32 %v5722_v62, %v6681_v50  ;;  %v3025_v50 = vsel %vm2661_vm2, %v7590_v6, 0.0  ;;  %v7609_v62 = vadd.f32 %v2484_v40, %v6670_v43 }
 0x252   :  { %3032 = vadd.xlane.f32.xlu0 %v3031_v9  ;;  %v3016_v9 = vsel %vm2661_vm2, %v7583_v13, 0.0  ;;  %9143 = vst [vmem:[#allocation119_spill] sm:$0xff] %v7603_v51  ;;  %v7623_v40 = vadd.f32 %v2646_v14, %v6670_v43 }
 0x253   :  { %3023 = vadd.xlane.f32.xlu1 %v3022_v12  ;;  %v2853_v3 = vpop.xlane.xlu0 %2852  ;;  %9142 = vst [vmem:[#allocation118_spill] sm:$0xff] %v7597_v31  ;;  %9144 = vst [vmem:[#allocation120_spill] sm:$0xff] %v7609_v62 }
 0x254   :  { %v2844_v56 = vpop.xlane.xlu1 %2843  ;;  %v7587_v41 = vadd.f32 %v3101_v20, %v2853_v3  ;;  %v5723_v3 = vpop.f32.mrf.mxu1  ;;  %9146 = vst [vmem:[#allocation122_spill] sm:$0xff] %v7623_v40  ;;  %v3034_v14 = vsel %vm2661_vm2, %v7623_v40, 0.0 }
 0x255   :  { %v7592_v60 = vadd.f32 %v3098_v22, %v2844_v56  ;;  %v3040_v56 = vsel %vm2661_vm2, %v7597_v31, 0.0  ;;  %v7616_v42 = vadd.f32 %v5723_v3, %v6699_v63 }
 0x256   :  { %3002 = vadd.xlane.f32.xlu0 %v3001_v24  ;;  %v2649_v43 = vpop.f32.mrf.mxu1 }
 0x257   :  { %3017 = vadd.xlane.f32.xlu1 %v3016_v9  ;;  %v2823_v20 = vpop.xlane.xlu0 %2822  ;;  %9145 = vst [vmem:[#allocation121_spill] sm:$0xff] %v7616_v42  ;;  %v3043_v3 = vsel %vm2661_vm2, %v7616_v42, 0.0 }
 0x258   :  { %v3394_v12 = vpop.xlane.xlu1 %3393  ;;  %v3099_v33 = vadd.f32 %v7405_v37, %v2823_v20  ;;  %v3019_v20 = vsel %vm2661_vm2, %v7603_v51, 0.0 }
 0x259   :  { %v3740_v22 = vadd.f32 %v7410_v8, %v3394_v12  ;;  %v2487_v12 = vpop.f32.mrf.mxu0 }
 0x25a   :  { %3026 = vadd.xlane.f32.xlu0 %v3025_v50  ;;  %v3010_v50 = vsel %vm2661_vm2, %v7609_v62, 0.0  ;;  %v7629_v63 = vadd.f32 %v2487_v12, %v6679_v49  ;;  %v7641_v12 = vadd.f32 %v2649_v43, %v6679_v49 }
 0x25b   :  { %3041 = vadd.xlane.f32.xlu1 %v3040_v56  ;;  %v2847_v24 = vpop.xlane.xlu0 %2846 }
 0x25c   :  { %v3426_v9 = vpop.xlane.xlu1 %3425  ;;  %v7613_v37 = vadd.f32 %v3099_v33, %v2847_v24  ;;  %9147 = vst [vmem:[#allocation123_spill] sm:$0xff] %v7629_v63  ;;  %9148 = vst [vmem:[#allocation124_spill] sm:$0xff] %v7641_v12  ;;  %v3037_v49 = vsel %vm2661_vm2, %v7641_v12, 0.0 }
 0x25d   :  { %v7618_v8 = vadd.f32 %v3740_v22, %v3426_v9  ;;  %v3434_v9 = vmul.f32 %v7297_v34, %v7297_v34 }
 0x25e   :  { %3020 = vadd.xlane.f32.xlu0 %v3019_v20 }
 0x25f   :  { %3011 = vadd.xlane.f32.xlu1 %v3010_v50  ;;  %v3397_v56 = vpop.xlane.xlu0 %3396 }
 0x260   :  { %v3388_v33 = vpop.xlane.xlu1 %3387  ;;  %v3741_v24 = vadd.f32 %v7431_v17, %v3397_v56  ;;  %v3013_v56 = vsel %vm2661_vm2, %v7629_v63, 0.0 }
 0x261   :  { %v3738_v22 = vadd.f32 %v7436_v44, %v3388_v33  ;;  %v3450_v33 = vsel %vm2661_vm2, %v3434_v9, 0.0  ;;  %v3462_v9 = vmul.f32 %v7241_v23, %v7241_v23 }
 0x262   :  { %3044 = vadd.xlane.f32.xlu0 %v3043_v3  ;;  %v3436_v3 = vmul.f32 %v7275_v59, %v7275_v59 }
 0x263   :  { %3035 = vadd.xlane.f32.xlu1 %v3034_v14  ;;  %v3429_v20 = vpop.xlane.xlu0 %3428 }
 0x264   :  { %v3420_v50 = vpop.xlane.xlu1 %3419  ;;  %v7638_v17 = vadd.f32 %v3741_v24, %v3429_v20  ;;  %v3456_v43 = vsel %vm2661_vm2, %v3436_v3, 0.0  ;;  %v3464_v3 = vmul.f32 %v7216_v45, %v7216_v45 }
 0x265   :  { %v7643_v44 = vadd.f32 %v3738_v22, %v3420_v50  ;;  %v3435_v22 = vmul.f32 %v7317_v21, %v7317_v21 }
 0x266   :  { %3014 = vadd.xlane.f32.xlu0 %v3013_v56 }
 0x267   :  { %3451 = vadd.xlane.f32.xlu1 %v3450_v33  ;;  %v3391_v14 = vpop.xlane.xlu0 %3390 }
 0x268   :  { %v2862_v34 = vpop.xlane.xlu1 %2861  ;;  %v3739_v24 = vadd.f32 %v7457_v27, %v3391_v14  ;;  %v3470_v14 = vsel %vm2661_vm2, %v3462_v9, 0.0  ;;  %v3466_v9 = vmul.f32 %v7311_v61, %v7311_v61  ;;  %v9164_v61 = vld [vmem:[#allocation106_spill] sm:$0xff] }
 0x269   :  { %v3112_v20 = vadd.f32 %v7462_v25, %v2862_v34  ;;  %v3453_v34 = vsel %vm2661_vm2, %v3435_v22, 0.0  ;;  %v3437_v25 = vmul.f32 %v7292_v52, %v7292_v52  ;;  %v3463_v22 = vmul.f32 %v7259_v36, %v7259_v36 }
 0x26a   :  { %3038 = vadd.xlane.f32.xlu0 %v3037_v49 }
 0x26b   :  { %3457 = vadd.xlane.f32.xlu1 %v3456_v43  ;;  %v3423_v50 = vpop.xlane.xlu0 %3422 }
 0x26c   :  { %v2886_v56 = vpop.xlane.xlu1 %2885  ;;  %v7659_v33 = vadd.f32 %v3739_v24, %v3423_v50  ;;  %v3476_v50 = vsel %vm2661_vm2, %v3464_v3, 0.0  ;;  %v3468_v3 = vmul.f32 %v7286_v29, %v7286_v29 }
 0x26d   :  { %v7661_v27 = vadd.f32 %v3112_v20, %v2886_v56  ;;  %v3459_v20 = vsel %vm2661_vm2, %v3437_v25, 0.0  ;;  %v3482_v25 = vsel %vm2661_vm2, %v3466_v9, 0.0  ;;  %v3494_v9 = vmul.f32 %v7349_v55, %v7349_v55 }
 0x26e   :  { %3454 = vadd.xlane.f32.xlu0 %v3453_v34 }
 0x26f   :  { %3471 = vadd.xlane.f32.xlu1 %v3470_v14  ;;  %v2865_v49 = vpop.xlane.xlu0 %2864 }
 0x270   :  { %v2856_v43 = vpop.xlane.xlu1 %2855  ;;  %v3113_v59 = vadd.f32 %v7483_v58, %v2865_v49  ;;  %v3473_v58 = vsel %vm2661_vm2, %v3463_v22, 0.0  ;;  %v3467_v22 = vmul.f32 %v7330_v57, %v7330_v57 }
 0x271   :  { %v3110_v24 = vadd.f32 %v7488_v35, %v2856_v43  ;;  %v3465_v35 = vmul.f32 %v7234_v15, %v7234_v15 }
 0x272   :  { %3460 = vadd.xlane.f32.xlu0 %v3459_v20 }
 0x273   :  { %3477 = vadd.xlane.f32.xlu1 %v3476_v50  ;;  %v2889_v56 = vpop.xlane.xlu0 %2888  ;;  %v3488_v50 = vsel %vm2661_vm2, %v3468_v3, 0.0  ;;  %v3496_v3 = vmul.f32 %v7323_v38, %v7323_v38 }
 0x274   :  { %v2880_v34 = vpop.xlane.xlu1 %2879  ;;  %v7677_v14 = vadd.f32 %v3113_v59, %v2889_v56 }
 0x275   :  { %v7679_v52 = vadd.f32 %v3110_v24, %v2880_v34  ;;  %v3479_v24 = vsel %vm2661_vm2, %v3465_v35, 0.0  ;;  %v3469_v35 = vmul.f32 %v7304_v28, %v7304_v28 }
 0x276   :  { %3474 = vadd.xlane.f32.xlu0 %v3473_v58 }
 0x277   :  { %3483 = vadd.xlane.f32.xlu1 %v3482_v25  ;;  %v2859_v49 = vpop.xlane.xlu0 %2858  ;;  %v3502_v25 = vsel %vm2661_vm2, %v3494_v9, 0.0  ;;  %v3498_v9 = vmul.f32 %v7401_v53, %v7401_v53 }
 0x278   :  { %v3446_v43 = vpop.xlane.xlu1 %3445  ;;  %v3111_v20 = vadd.f32 %v7509_v46, %v2859_v49 }
 0x279   :  { %v7689_v59 = vadd.f32 %v7514_v7, %v3446_v43  ;;  %v3485_v7 = vsel %vm2661_vm2, %v3467_v22, 0.0  ;;  %v3495_v22 = vmul.f32 %v7369_v32, %v7369_v32  ;;  %v9166_v32 = vld [vmem:[#allocation102_spill] sm:$0xff] }
 0x27a   :  { %3480 = vadd.xlane.f32.xlu0 %v3479_v24  ;;  %v3491_v24 = vsel %vm2661_vm2, %v3469_v35, 0.0  ;;  %v3497_v35 = vmul.f32 %v7343_v11, %v7343_v11  ;;  %v3623_v11 = vmul.f32 %v7577_v16, %v7577_v16 }
 0x27b   :  { %3489 = vadd.xlane.f32.xlu1 %v3488_v50  ;;  %v2883_v56 = vpop.xlane.xlu0 %2882  ;;  %v3508_v50 = vsel %vm2661_vm2, %v3496_v3, 0.0  ;;  %v3500_v3 = vmul.f32 %v7375_v47, %v7375_v47 }
 0x27c   :  { %v3440_v34 = vpop.xlane.xlu1 %3439  ;;  %v7697_v58 = vadd.f32 %v3111_v20, %v2883_v56  ;;  %v3633_v15 = vsel %vm2661_vm2, %v3623_v11, 0.0  ;;  %v3627_v11 = vmul.f32 %v7629_v63, %v7629_v63 }
 0x27d   :  { %v7700_v46 = vadd.f32 %v7540_v18, %v3440_v34 }
 0x27e   :  { %3486 = vadd.xlane.f32.xlu0 %v3485_v7 }
 0x27f   :  { %3503 = vadd.xlane.f32.xlu1 %v3502_v25  ;;  %v3449_v49 = vpop.xlane.xlu0 %3448  ;;  %v3514_v25 = vsel %vm2661_vm2, %v3498_v9, 0.0  ;;  %v3526_v9 = vmul.f32 %v7363_v39, %v7363_v39 }
 0x280   :  { %v2874_v43 = vpop.xlane.xlu1 %2873  ;;  %v7709_v20 = vadd.f32 %v7535_v1, %v3449_v49 }
 0x281   :  { %v3116_v18 = vadd.f32 %v7566_v48, %v2874_v43  ;;  %v3505_v48 = vsel %vm2661_vm2, %v3495_v22, 0.0  ;;  %v3499_v22 = vmul.f32 %v7421_v54, %v7421_v54 }
 0x282   :  { %3492 = vadd.xlane.f32.xlu0 %v3491_v24 }
 0x283   :  { %3509 = vadd.xlane.f32.xlu1 %v3508_v50  ;;  %v3443_v56 = vpop.xlane.xlu0 %3442  ;;  %v3520_v50 = vsel %vm2661_vm2, %v3500_v3, 0.0  ;;  %v3528_v3 = vmul.f32 %v7337_v5, %v7337_v5 }
 0x284   :  { %v2898_v34 = vpop.xlane.xlu1 %2897  ;;  %v7719_v7 = vadd.f32 %v7561_v26, %v3443_v56 }
 0x285   :  { %v7721_v1 = vadd.f32 %v3116_v18, %v2898_v34  ;;  %v3511_v18 = vsel %vm2661_vm2, %v3497_v35, 0.0  ;;  %v3534_v35 = vsel %vm2661_vm2, %v3526_v9, 0.0  ;;  %v9149_v9 = vld [vmem:[#allocation90_spill] sm:$0xff] }
 0x286   :  { %3506 = vadd.xlane.f32.xlu0 %v3505_v48 }
 0x287   :  { %3515 = vadd.xlane.f32.xlu1 %v3514_v25  ;;  %v2877_v49 = vpop.xlane.xlu0 %2876 }
 0x288   :  { %v2868_v43 = vpop.xlane.xlu1 %2867  ;;  %v3117_v24 = vadd.f32 %v7587_v41, %v2877_v49  ;;  %v3517_v41 = vsel %vm2661_vm2, %v3499_v22, 0.0  ;;  %v3527_v22 = vmul.f32 %v7382_v4, %v7382_v4 }
 0x289   :  { %v3114_v26 = vadd.f32 %v7592_v60, %v2868_v43  ;;  %v3501_v60 = vmul.f32 %v7395_v0, %v7395_v0 }
 0x28a   :  { %3512 = vadd.xlane.f32.xlu0 %v3511_v18 }
 0x28b   :  { %3521 = vadd.xlane.f32.xlu1 %v3520_v50  ;;  %v2901_v56 = vpop.xlane.xlu0 %2900  ;;  %v3540_v50 = vsel %vm2661_vm2, %v3528_v3, 0.0  ;;  %v9151_v3 = vld [vmem:[#allocation86_spill] sm:$0xff] }
 0x28c   :  { %v2892_v34 = vpop.xlane.xlu1 %2891  ;;  %v7737_v48 = vadd.f32 %v3117_v24, %v2901_v56  ;;  %v3530_v56 = vmul.f32 %v9149_v9, %v9149_v9 }
 0x28d   :  { %v7739_v25 = vadd.f32 %v3114_v26, %v2892_v34  ;;  %v3523_v26 = vsel %vm2661_vm2, %v3501_v60, 0.0 }
 0x28e   :  { %3518 = vadd.xlane.f32.xlu0 %v3517_v41 }
 0x28f   :  { %3535 = vadd.xlane.f32.xlu1 %v3534_v35  ;;  %v2871_v49 = vpop.xlane.xlu0 %2870 }
 0x290   :  { %v2910_v43 = vpop.xlane.xlu1 %2909  ;;  %v3115_v18 = vadd.f32 %v7613_v37, %v2871_v49  ;;  %v3537_v37 = vsel %vm2661_vm2, %v3527_v22, 0.0  ;;  %v3546_v49 = vsel %vm2661_vm2, %v3530_v56, 0.0  ;;  %v9153_v56 = vld [vmem:[#allocation96_spill] sm:$0xff] }
 0x291   :  { %v3128_v24 = vadd.f32 %v7661_v27, %v2910_v43  ;;  %v9150_v27 = vld [vmem:[#allocation81_spill] sm:$0xff]  ;;  %v3532_v43 = vmul.f32 %v9151_v3, %v9151_v3 }
 0x292   :  { %3524 = vadd.xlane.f32.xlu0 %v3523_v26  ;;  %v3529_v60 = vmul.f32 %v9150_v27, %v9150_v27 }
 0x293   :  { %3541 = vadd.xlane.f32.xlu1 %v3540_v50  ;;  %v2895_v34 = vpop.xlane.xlu0 %2894 }
 0x294   :  { %v2934_v41 = vpop.xlane.xlu1 %2933  ;;  %v7755_v35 = vadd.f32 %v3115_v18, %v2895_v34  ;;  %v9152_v34 = vld [vmem:[#allocation93_spill] sm:$0xff] }
 0x295   :  { %v7757_v0 = vadd.f32 %v3128_v24, %v2934_v41  ;;  %v3543_v24 = vsel %vm2661_vm2, %v3529_v60, 0.0  ;;  %v3531_v22 = vmul.f32 %v9152_v34, %v9152_v34  ;;  %v3552_v41 = vsel %vm2661_vm2, %v3532_v43, 0.0  ;;  %v9155_v43 = vld [vmem:[#allocation92_spill] sm:$0xff] }
 0x296   :  { %3538 = vadd.xlane.f32.xlu0 %v3537_v37  ;;  %v3558_v37 = vmul.f32 %v9153_v56, %v9153_v56 }
 0x297   :  { %3547 = vadd.xlane.f32.xlu1 %v3546_v49  ;;  %v2913_v26 = vpop.xlane.xlu0 %2912 }
 0x298   :  { %v2904_v50 = vpop.xlane.xlu1 %2903  ;;  %v3129_v28 = vadd.f32 %v7677_v14, %v2913_v26  ;;  %v9154_v14 = vld [vmem:[#allocation89_spill] sm:$0xff]  ;;  %v3566_v26 = vsel %vm2661_vm2, %v3558_v37, 0.0  ;;  %v9157_v37 = vld [vmem:[#allocation104_spill] sm:$0xff] }
 0x299   :  { %v3126_v18 = vadd.f32 %v7679_v52, %v2904_v50  ;;  %v3549_v52 = vsel %vm2661_vm2, %v3531_v22, 0.0  ;;  %v3533_v60 = vmul.f32 %v9154_v14, %v9154_v14  ;;  %v3560_v50 = vmul.f32 %v9155_v43, %v9155_v43 }
 0x29a   :  { %3544 = vadd.xlane.f32.xlu0 %v3543_v24 }
 0x29b   :  { %3553 = vadd.xlane.f32.xlu1 %v3552_v41  ;;  %v2937_v3 = vpop.xlane.xlu0 %2936 }
 0x29c   :  { %v2928_v49 = vpop.xlane.xlu1 %2927  ;;  %v7773_v47 = vadd.f32 %v3129_v28, %v2937_v3  ;;  %v3555_v3 = vsel %vm2661_vm2, %v3533_v60, 0.0 }
 0x29d   :  { %v7775_v29 = vadd.f32 %v3126_v18, %v2928_v49  ;;  %v9156_v18 = vld [vmem:[#allocation99_spill] sm:$0xff]  ;;  %v3572_v49 = vsel %vm2661_vm2, %v3560_v50, 0.0 }
 0x29e   :  { %3550 = vadd.xlane.f32.xlu0 %v3549_v52  ;;  %v3559_v22 = vmul.f32 %v9156_v18, %v9156_v18  ;;  %v3562_v52 = vmul.f32 %v9157_v37, %v9157_v37  ;;  %v9165_v18 = vld [vmem:[#allocation97_spill] sm:$0xff] }
 0x29f   :  { %3567 = vadd.xlane.f32.xlu1 %v3566_v26  ;;  %v2907_v24 = vpop.xlane.xlu0 %2906  ;;  %v3593_v4 = vmul.f32 %v9165_v18, %v9165_v18  ;;  %v9168_v18 = vld [vmem:[#allocation105_spill] sm:$0xff] }
 0x2a0   :  { %v2922_v41 = vpop.xlane.xlu1 %2921  ;;  %v3127_v34 = vadd.f32 %v7697_v58, %v2907_v24  ;;  %v3569_v58 = vsel %vm2661_vm2, %v3559_v22, 0.0  ;;  %v3578_v24 = vsel %vm2661_vm2, %v3562_v52, 0.0 }
 0x2a1   :  { %v7785_v28 = vadd.f32 %v7721_v1, %v2922_v41  ;;  %v9158_v1 = vld [vmem:[#allocation95_spill] sm:$0xff]  ;;  %v9159_v41 = vld [vmem:[#allocation100_spill] sm:$0xff] }
 0x2a2   :  { %3556 = vadd.xlane.f32.xlu0 %v3555_v3  ;;  %v3561_v60 = vmul.f32 %v9158_v1, %v9158_v1  ;;  %v3564_v50 = vmul.f32 %v9159_v41, %v9159_v41  ;;  %v9161_v41 = vld [vmem:[#allocation103_spill] sm:$0xff]  ;;  %v3597_v1 = vmul.f32 %v9168_v18, %v9168_v18 }
 0x2a3   :  { %3573 = vadd.xlane.f32.xlu1 %v3572_v49  ;;  %v2931_v26 = vpop.xlane.xlu0 %2930  ;;  %v3565_v9 = vmul.f32 %v9161_v41, %v9161_v41  ;;  %v3594_v41 = vmul.f32 %v9164_v61, %v9164_v61  ;;  %v9167_v61 = vld [vmem:[#allocation109_spill] sm:$0xff] }
 0x2a4   :  { %v7793_v14 = vpop.xlane.xlu1 %2945  ;;  %v7795_v54 = vadd.f32 %v3127_v34, %v2931_v26  ;;  %v3575_v21 = vsel %vm2661_vm2, %v3561_v60, 0.0  ;;  %v3563_v34 = vmul.f32 %v7525_v10, %v7525_v10  ;;  %v3584_v22 = vsel %vm2661_vm2, %v3564_v50, 0.0  ;;  %v9160_v26 = vld [vmem:[#allocation98_spill] sm:$0xff] }
 0x2a5   :  { %v3590_v52 = vmul.f32 %v9160_v26, %v9160_v26  ;;  %v9162_v60 = vld [vmem:[#allocation94_spill] sm:$0xff]  ;;  %v3587_v10 = vsel %vm2661_vm2, %v3565_v9, 0.0  ;;  %v3610_v9 = vsel %vm2661_vm2, %v3594_v41, 0.0  ;;  %v3595_v36 = vmul.f32 %v9167_v61, %v9167_v61  ;;  %v9169_v61 = vld [vmem:[#allocation108_spill] sm:$0xff] }
 0x2a6   :  { %3570 = vadd.xlane.f32.xlu0 %v3569_v58  ;;  %v3622_v41 = vmul.f32 %v7557_v19, %v7557_v19 }
 0x2a7   :  { %3579 = vadd.xlane.f32.xlu1 %v3578_v24  ;;  %v2925_v3 = vpop.xlane.xlu0 %2924  ;;  %v3581_v24 = vsel %vm2661_vm2, %v3563_v34, 0.0 }
 0x2a8   :  { %v2916_v57 = vpop.xlane.xlu1 %2915  ;;  %v3133_v49 = vadd.f32 %v7737_v48, %v2925_v3  ;;  %v3598_v48 = vsel %vm2661_vm2, %v3590_v52, 0.0  ;;  %v3592_v3 = vmul.f32 %v9162_v60, %v9162_v60 }
 0x2aa   :  { %3576 = vadd.xlane.f32.xlu0 %v3575_v21  ;;  %v3604_v34 = vsel %vm2661_vm2, %v3592_v3, 0.0 }
 0x2ab   :  { %3585 = vadd.xlane.f32.xlu1 %v3584_v22  ;;  %v2949_v58 = vpop.xlane.xlu0 %2948  ;;  %v9163_v22 = vld [vmem:[#allocation101_spill] sm:$0xff] }
 0x2ac   :  { %v2940_v37 = vpop.xlane.xlu1 %2939  ;;  %v3591_v53 = vmul.f32 %v9163_v22, %v9163_v22  ;;  %v3596_v22 = vmul.f32 %v9166_v32, %v9166_v32  ;;  %v3141_v19 = vadd.f32 %v3133_v49, %v2949_v58 }
 0x2ae   :  { %3582 = vadd.xlane.f32.xlu0 %v3581_v24 }
 0x2af   :  { %3599 = vadd.xlane.f32.xlu1 %v3598_v48  ;;  %v2919_v50 = vpop.xlane.xlu0 %2918  ;;  %v3601_v48 = vsel %vm2661_vm2, %v3591_v53, 0.0  ;;  %v3616_v53 = vsel %vm2661_vm2, %v3596_v22, 0.0  ;;  %v3624_v22 = vmul.f32 %v9169_v61, %v9169_v61 }
 0x2b0   :  { %v7816_v21 = vpop.xlane.xlu1 %2957 }
 0x2b2   :  { %3588 = vadd.xlane.f32.xlu0 %v3587_v10 }
 0x2b3   :  { %3605 = vadd.xlane.f32.xlu1 %v3604_v34  ;;  %v2943_v52 = vpop.xlane.xlu0 %2942  ;;  %v3607_v34 = vsel %vm2661_vm2, %v3593_v4, 0.0  ;;  %v3630_v4 = vsel %vm2661_vm2, %v3622_v41, 0.0  ;;  %v3626_v41 = vmul.f32 %v7609_v62, %v7609_v62 }
 0x2b4   :  { %v7824_v24 = vpop.xlane.xlu1 %2981 }
 0x2b5   :  { %v3642_v16 = vsel %vm2661_vm2, %v3626_v41, 0.0  ;;  %v3645_v41 = vsel %vm2661_vm2, %v3627_v11, 0.0  ;;  %v3658_v11 = vmul.f32 %v7623_v40, %v7623_v40 }
 0x2b6   :  { %3602 = vadd.xlane.f32.xlu0 %v3601_v48 }
 0x2b7   :  { %3611 = vadd.xlane.f32.xlu1 %v3610_v9  ;;  %v7832_v10 = vpop.xlane.xlu0 %2960  ;;  %v3613_v9 = vsel %vm2661_vm2, %v3595_v36, 0.0  ;;  %v3636_v36 = vsel %vm2661_vm2, %v3624_v22, 0.0  ;;  %v3628_v22 = vmul.f32 %v7583_v13, %v7583_v13 }
 0x2b8   :  { %v7834_v3 = vpop.xlane.xlu1 %2951 }
 0x2ba   :  { %3608 = vadd.xlane.f32.xlu0 %v3607_v34 }
 0x2bb   :  { %3617 = vadd.xlane.f32.xlu1 %v3616_v53  ;;  %v7842_v48 = vpop.xlane.xlu0 %2984  ;;  %v3619_v53 = vsel %vm2661_vm2, %v3597_v1, 0.0  ;;  %v3625_v1 = vmul.f32 %v7551_v30, %v7551_v30 }
 0x2bc   :  { %v7844_v32 = vpop.xlane.xlu1 %2975 }
 0x2be   :  { %3614 = vadd.xlane.f32.xlu0 %v3613_v9 }
 0x2bf   :  { %3631 = vadd.xlane.f32.xlu1 %v3630_v4  ;;  %v7852_v34 = vpop.xlane.xlu0 %2954  ;;  %v3130_v4 = vadd.f32 %v7739_v25, %v2916_v57  ;;  %v3639_v57 = vsel %vm2661_vm2, %v3625_v1, 0.0  ;;  %v3648_v25 = vsel %vm2661_vm2, %v3628_v22, 0.0 }
 0x2c0   :  { %v7854_v27 = vpop.xlane.xlu1 %2969 }
 0x2c2   :  { %3620 = vadd.xlane.f32.xlu0 %v3619_v53  ;;  %v3138_v53 = vadd.f32 %v3130_v4, %v2940_v37  ;;  %v3131_v37 = vadd.f32 %v7755_v35, %v2919_v50  ;;  %v3629_v4 = vmul.f32 %v7603_v51, %v7603_v51 }
 0x2c3   :  { %3637 = vadd.xlane.f32.xlu1 %v3636_v36  ;;  %v7862_v9 = vpop.xlane.xlu0 %2978 }
 0x2c4   :  { %v7864_v18 = vpop.xlane.xlu1 %2993  ;;  %v3139_v1 = vadd.f32 %v3131_v37, %v2943_v52  ;;  %v3142_v37 = vadd.f32 %v7775_v29, %v7834_v3 }
 0x2c6   :  { %3634 = vadd.xlane.f32.xlu0 %v3633_v15  ;;  %v3654_v15 = vmul.f32 %v7571_v2, %v7571_v2 }
 0x2c7   :  { %3643 = vadd.xlane.f32.xlu1 %v3642_v16  ;;  %v2973_v36 = vpop.xlane.xlu0 %2972 }
 0x2c8   :  { %v2964_v62 = vpop.xlane.xlu1 %2963  ;;  %v3149_v26 = vadd.f32 %v3141_v19, %v2973_v36  ;;  %v3144_v19 = vadd.f32 %v7757_v0, %v7816_v21  ;;  %v3662_v22 = vsel %vm2661_vm2, %v3654_v15, 0.0  ;;  %v3651_v21 = vsel %vm2661_vm2, %v3629_v4, 0.0 }
 0x2c9   :  { %v3146_v56 = vadd.f32 %v3138_v53, %v2964_v62  ;;  %v9170_v53 = vld [vmem:[#allocation110_spill] sm:$0xff] }
 0x2ca   :  { %3640 = vadd.xlane.f32.xlu0 %v3639_v57  ;;  %v3656_v35 = vmul.f32 %v9170_v53, %v9170_v53  ;;  %v3655_v57 = vmul.f32 %v7590_v6, %v7590_v6 }
 0x2cb   :  { %3649 = vadd.xlane.f32.xlu1 %v3648_v25  ;;  %v2997_v49 = vpop.xlane.xlu0 %2996 }
 0x2cc   :  { %v2988_v16 = vpop.xlane.xlu1 %2987  ;;  %v7880_v58 = vadd.f32 %v3149_v26, %v2997_v49  ;;  %v3152_v26 = vadd.f32 %v3144_v19, %v7824_v24  ;;  %v3668_v52 = vsel %vm2661_vm2, %v3656_v35, 0.0  ;;  %v3145_v24 = vadd.f32 %v7773_v47, %v7832_v10 }
 0x2cd   :  { %v7884_v62 = vadd.f32 %v3146_v56, %v2988_v16  ;;  %v3665_v19 = vsel %vm2661_vm2, %v3655_v57, 0.0  ;;  %v3660_v47 = vmul.f32 %v7597_v31, %v7597_v31  ;;  %v3150_v10 = vadd.f32 %v3142_v37, %v7844_v32 }
 0x2ce   :  { %3646 = vadd.xlane.f32.xlu0 %v3645_v41  ;;  %v9171_v41 = vld [vmem:[#allocation113_spill] sm:$0xff]  ;;  %v3143_v32 = vadd.f32 %v7795_v54, %v7852_v34 }
 0x2cf   :  { %3663 = vadd.xlane.f32.xlu1 %v3662_v22  ;;  %v2967_v50 = vpop.xlane.xlu0 %2966  ;;  %v3657_v4 = vmul.f32 %v9171_v41, %v9171_v41  ;;  %v3674_v22 = vsel %vm2661_vm2, %v3658_v11, 0.0 }
 0x2d0   :  { %v3006_v36 = vpop.xlane.xlu1 %3005  ;;  %v3147_v0 = vadd.f32 %v3139_v1, %v2967_v50  ;;  %v3153_v1 = vadd.f32 %v3145_v24, %v7842_v48  ;;  %v3680_v48 = vsel %vm2661_vm2, %v3660_v47, 0.0  ;;  %v3661_v24 = vmul.f32 %v7616_v42, %v7616_v42 }
 0x2d1   :  { %v3160_v56 = vadd.f32 %v3152_v26, %v3006_v36  ;;  %v3671_v50 = vsel %vm2661_vm2, %v3657_v4, 0.0  ;;  %v3659_v36 = vmul.f32 %v7641_v12, %v7641_v12 }
 0x2d2   :  { %3652 = vadd.xlane.f32.xlu0 %v3651_v21 }
 0x2d3   :  { %3669 = vadd.xlane.f32.xlu1 %v3668_v52  ;;  %v2991_v25 = vpop.xlane.xlu0 %2990 }
 0x2d4   :  { %v3030_v15 = vpop.xlane.xlu1 %3029  ;;  %v3155_v49 = vadd.f32 %v3147_v0, %v2991_v25  ;;  %v3140_v0 = vadd.f32 %v7785_v28, %v7793_v14  ;;  %v3677_v25 = vsel %vm2661_vm2, %v3659_v36, 0.0 }
 0x2d5   :  { %v7903_v16 = vadd.f32 %v3160_v56, %v3030_v15  ;;  %v3151_v15 = vadd.f32 %v3143_v32, %v7862_v9 }
 0x2d6   :  { %3666 = vadd.xlane.f32.xlu0 %v3665_v19  ;;  %v3148_v52 = vadd.f32 %v3140_v0, %v7854_v27  ;;  %v3683_v19 = vsel %vm2661_vm2, %v3661_v24, 0.0 }
 0x2d7   :  { %3675 = vadd.xlane.f32.xlu1 %v3674_v22  ;;  %v3009_v35 = vpop.xlane.xlu0 %3008  ;;  %v7968_v41 = vmul.f32 0.03125, %v7903_v16 }
 0x2d8   :  { %v3000_v29 = vpop.xlane.xlu1 %2999  ;;  %v3161_v3 = vadd.f32 %v3153_v1, %v3009_v35  ;;  %v3156_v14 = vadd.f32 %v3148_v52, %v7864_v18 }
 0x2d9   :  { %v3158_v26 = vadd.f32 %v3150_v10, %v3000_v29 }
 0x2da   :  { %3672 = vadd.xlane.f32.xlu0 %v3671_v50 }
 0x2db   :  { %3681 = vadd.xlane.f32.xlu1 %v3680_v48  ;;  %v3033_v56 = vpop.xlane.xlu0 %3032 }
 0x2dc   :  { %v3024_v21 = vpop.xlane.xlu1 %3023  ;;  %v7921_v57 = vadd.f32 %v3161_v3, %v3033_v56 }
 0x2dd   :  { %v7924_v11 = vadd.f32 %v3158_v26, %v3024_v21 }
 0x2de   :  { %3678 = vadd.xlane.f32.xlu0 %v3677_v25  ;;  %v7971_v39 = vmul.f32 0.03125, %v7921_v57 }
 0x2df   :  { %v3003_v28 = vpop.xlane.xlu0 %3002  ;;  %v7965_v31 = vmul.f32 0.03125, %v7924_v11 }
 0x2e0   :  { %v3018_v37 = vpop.xlane.xlu1 %3017  ;;  %v3159_v54 = vadd.f32 %v3151_v15, %v3003_v28 }
 0x2e1   :  { %v3164_v34 = vadd.f32 %v3156_v14, %v3018_v37 }
 0x2e2   :  { %3684 = vadd.xlane.f32.xlu0 %v3683_v19 }
 0x2e3   :  { %v3027_v27 = vpop.xlane.xlu0 %3026 }
 0x2e4   :  { %v3042_v4 = vpop.xlane.xlu1 %3041  ;;  %v7932_v1 = vadd.f32 %v3159_v54, %v3027_v27 }
 0x2e5   :  { %v7934_v22 = vadd.f32 %v3164_v34, %v3042_v4 }
 0x2e7   :  { %v3021_v47 = vpop.xlane.xlu0 %3020 }
 0x2e8   :  { %v3012_v10 = vpop.xlane.xlu1 %3011  ;;  %v3165_v9 = vadd.f32 %v7880_v58, %v3021_v47 }
 0x2e9   :  { %v3162_v35 = vadd.f32 %v7884_v62, %v3012_v10 }
 0x2eb   :  { %v3045_v18 = vpop.xlane.xlu0 %3044 }
 0x2ec   :  { %v3036_v29 = vpop.xlane.xlu1 %3035  ;;  %v7938_v3 = vadd.f32 %v3165_v9, %v3045_v18 }
 0x2ed   :  { %v7940_v26 = vadd.f32 %v3162_v35, %v3036_v29 }
 0x2ef   :  { %v3015_v50 = vpop.xlane.xlu0 %3014 }
 0x2f0   :  { %v3452_v36 = vpop.xlane.xlu1 %3451  ;;  %v3163_v48 = vadd.f32 %v3155_v49, %v3015_v50 }
 0x2f1   :  { %v3754_v0 = vadd.f32 %v7643_v44, %v3452_v36 }
 0x2f3   :  { %v3039_v56 = vpop.xlane.xlu0 %3038 }
 0x2f4   :  { %v3458_v32 = vpop.xlane.xlu1 %3457  ;;  %v7943_v21 = vadd.f32 %v3163_v48, %v3039_v56 }
 0x2f5   :  { %v3756_v52 = vadd.f32 %v7618_v8, %v3458_v32 }
 0x2f7   :  { %v3455_v58 = vpop.xlane.xlu0 %3454 }
 0x2f8   :  { %v3472_v25 = vpop.xlane.xlu1 %3471  ;;  %v3755_v62 = vadd.f32 %v7659_v33, %v3455_v58 }
 0x2f9   :  { %v3758_v24 = vadd.f32 %v7700_v46, %v3472_v25 }
 0x2fb   :  { %v3461_v15 = vpop.xlane.xlu0 %3460 }
 0x2fc   :  { %v3478_v14 = vpop.xlane.xlu1 %3477  ;;  %v3757_v28 = vadd.f32 %v7638_v17, %v3461_v15 }
 0x2fd   :  { %v3760_v49 = vadd.f32 %v7689_v59, %v3478_v14 }
 0x2ff   :  { %v3475_v37 = vpop.xlane.xlu0 %3474 }
 0x300   :  { %v3484_v44 = vpop.xlane.xlu1 %3483  ;;  %v3759_v54 = vadd.f32 %v7719_v7, %v3475_v37 }
 0x301   :  { %v3762_v34 = vadd.f32 %v3754_v0, %v3484_v44 }
 0x303   :  { %v3481_v19 = vpop.xlane.xlu0 %3480 }
 0x304   :  { %v3490_v27 = vpop.xlane.xlu1 %3489  ;;  %v3761_v8 = vadd.f32 %v7709_v20, %v3481_v19 }
 0x305   :  { %v3764_v4 = vadd.f32 %v3756_v52, %v3490_v27 }
 0x307   :  { %v3487_v47 = vpop.xlane.xlu0 %3486 }
 0x308   :  { %v3504_v33 = vpop.xlane.xlu1 %3503  ;;  %v3763_v10 = vadd.f32 %v3755_v62, %v3487_v47 }
 0x309   :  { %v3766_v46 = vadd.f32 %v3758_v24, %v3504_v33 }
 0x30b   :  { %v3493_v9 = vpop.xlane.xlu0 %3492 }
 0x30c   :  { %v3510_v35 = vpop.xlane.xlu1 %3509  ;;  %v3765_v18 = vadd.f32 %v3757_v28, %v3493_v9 }
 0x30d   :  { %v3768_v17 = vadd.f32 %v3760_v49, %v3510_v35 }
 0x30f   :  { %v3507_v29 = vpop.xlane.xlu0 %3506 }
 0x310   :  { %v3516_v59 = vpop.xlane.xlu1 %3515  ;;  %v3767_v50 = vadd.f32 %v3759_v54, %v3507_v29 }
 0x311   :  { %v3770_v36 = vadd.f32 %v3762_v34, %v3516_v59 }
 0x313   :  { %v3513_v48 = vpop.xlane.xlu0 %3512 }
 0x314   :  { %v3522_v7 = vpop.xlane.xlu1 %3521  ;;  %v3769_v0 = vadd.f32 %v3761_v8, %v3513_v48 }
 0x315   :  { %v3772_v56 = vadd.f32 %v3764_v4, %v3522_v7 }
 0x317   :  { %v3519_v32 = vpop.xlane.xlu0 %3518 }
 0x318   :  { %v3536_v58 = vpop.xlane.xlu1 %3535  ;;  %v3771_v20 = vadd.f32 %v3763_v10, %v3519_v32 }
 0x319   :  { %v3774_v52 = vadd.f32 %v3766_v46, %v3536_v58 }
 0x31b   :  { %v3525_v25 = vpop.xlane.xlu0 %3524 }
 0x31c   :  { %v3542_v15 = vpop.xlane.xlu1 %3541  ;;  %v7952_v62 = vadd.f32 %v3765_v18, %v3525_v25 }
 0x31d   :  { %v3776_v42 = vadd.f32 %v3768_v17, %v3542_v15  ;;  %v3830_v17 = vmul.f32 %v7965_v31, %v7965_v31 }
 0x31f   :  { %v3539_v24 = vpop.xlane.xlu0 %3538 }
 0x320   :  { %v3548_v14 = vpop.xlane.xlu1 %3547  ;;  %v3775_v40 = vadd.f32 %v3767_v50, %v3539_v24 }
 0x321   :  { %v3778_v28 = vadd.f32 %v3770_v36, %v3548_v14 }
 0x323   :  { %v3545_v49 = vpop.xlane.xlu0 %3544 }
 0x324   :  { %v3554_v37 = vpop.xlane.xlu1 %3553  ;;  %v3777_v50 = vadd.f32 %v3769_v0, %v3545_v49 }
 0x325   :  { %v3780_v44 = vadd.f32 %v3772_v56, %v3554_v37 }
 0x327   :  { %v3551_v54 = vpop.xlane.xlu0 %3550 }
 0x328   :  { %v3568_v34 = vpop.xlane.xlu1 %3567  ;;  %v7954_v19 = vadd.f32 %v3771_v20, %v3551_v54 }
 0x329   :  { %v3782_v14 = vadd.f32 %v3774_v52, %v3568_v34 }
 0x32b   :  { %v7956_v27 = vpop.xlane.xlu0 %3556 }
 0x32c   :  { %v3574_v8 = vpop.xlane.xlu1 %3573 }
 0x32d   :  { %v3784_v13 = vadd.f32 %v3776_v42, %v3574_v8 }
 0x32f   :  { %v3571_v4 = vpop.xlane.xlu0 %3570 }
 0x330   :  { %v3580_v47 = vpop.xlane.xlu1 %3579  ;;  %v3783_v52 = vadd.f32 %v3775_v40, %v3571_v4  ;;  %v3833_v40 = vmul.f32 %v7971_v39, %v7971_v39 }
 0x331   :  { %v3786_v15 = vadd.f32 %v3778_v28, %v3580_v47  ;;  %v7983_v28 = vmul.f32 0.03125, %v7940_v26  ;;  %v7986_v47 = vmul.f32 0.03125, %v7934_v22 }
 0x333   :  { %v3577_v33 = vpop.xlane.xlu0 %3576 }
 0x334   :  { %v3586_v10 = vpop.xlane.xlu1 %3585 }
 0x335   :  { %v3788_v8 = vadd.f32 %v3780_v44, %v3586_v10  ;;  %v3834_v44 = vmul.f32 %v7983_v28, %v7983_v28 }
 0x337   :  { %v3583_v46 = vpop.xlane.xlu0 %3582 }
 0x338   :  { %v3600_v9 = vpop.xlane.xlu1 %3599 }
 0x339   :  { %v3790_v51 = vadd.f32 %v3782_v14, %v3600_v9 }
 0x33b   :  { %v7958_v35 = vpop.xlane.xlu0 %3588 }
 0x33c   :  { %v3606_v18 = vpop.xlane.xlu1 %3605 }
 0x33d   :  { %v3792_v30 = vadd.f32 %v3784_v13, %v3606_v18  ;;  %v3832_v13 = vmul.f32 %v7968_v41, %v7968_v41 }
 0x33f   :  { %v3603_v29 = vpop.xlane.xlu0 %3602 }
 0x340   :  { %v3612_v59 = vpop.xlane.xlu1 %3611  ;;  %v3791_v24 = vadd.f32 %v3783_v52, %v3603_v29 }
 0x343   :  { %v3609_v36 = vpop.xlane.xlu0 %3608 }
 0x344   :  { %v3618_v48 = vpop.xlane.xlu1 %3617 }
 0x347   :  { %v7960_v7 = vpop.xlane.xlu0 %3614 }
 0x348   :  { %v3632_v56 = vpop.xlane.xlu1 %3631 }
 0x349   :  { %v3798_v12 = vadd.f32 %v3790_v51, %v3632_v56  ;;  %v7976_v51 = vmul.f32 0.03125, %v7932_v1  ;;  %v3796_v56 = vadd.f32 %v3788_v8, %v3618_v48 }
 0x34b   :  { %v7962_v32 = vpop.xlane.xlu0 %3620  ;;  %v3831_v9 = vmul.f32 %v7976_v51, %v7976_v51 }
 0x34c   :  { %v3638_v58 = vpop.xlane.xlu1 %3637 }
 0x34d   :  { %v3800_v11 = vadd.f32 %v3792_v30, %v3638_v58  ;;  %v3785_v30 = vadd.f32 %v3777_v50, %v3577_v33  ;;  %v3787_v33 = vadd.f32 %v7954_v19, %v3583_v46  ;;  %v7997_v50 = vmul.f32 0.03125, %v7943_v21 }
 0x34f   :  { %v3635_v20 = vpop.xlane.xlu0 %3634  ;;  %v3793_v18 = vadd.f32 %v3785_v30, %v3609_v36  ;;  %v3781_v36 = vadd.f32 %v7952_v62, %v7956_v27  ;;  %v3795_v48 = vadd.f32 %v3787_v33, %v7960_v7 }
 0x350   :  { %v3644_v25 = vpop.xlane.xlu1 %3643 }
 0x353   :  { %v3641_v37 = vpop.xlane.xlu0 %3640 }
 0x354   :  { %v3650_v54 = vpop.xlane.xlu1 %3649  ;;  %v3801_v10 = vadd.f32 %v3793_v18, %v3641_v37  ;;  %v3789_v37 = vadd.f32 %v3781_v36, %v7958_v35  ;;  %v3888_v36 = vld [vmem:[%s8878_s4 + $0x10] sm:$0xff] }
 0x357   :  { %v3647_v63 = vpop.xlane.xlu0 %3646 }
 0x358   :  { %v3664_v6 = vpop.xlane.xlu1 %3663 }
 0x359   :  { %v3806_v2 = vadd.f32 %v3798_v12, %v3664_v6  ;;  %v3794_v6 = vadd.f32 %v3786_v15, %v3612_v59 }
 0x35b   :  { %v3822_v34 = vmul.f32 0.03125, %v3806_v2  ;;  %v3653_v42 = vpop.xlane.xlu0 %3652  ;;  %v3799_v2 = vadd.f32 %v3791_v24, %v3635_v20  ;;  %v3802_v1 = vadd.f32 %v3794_v6, %v3644_v25  ;;  %v3804_v25 = vadd.f32 %v3796_v56, %v3650_v54 }
 0x35c   :  { %v3670_v16 = vpop.xlane.xlu1 %3669  ;;  %v3803_v54 = vadd.f32 %v3795_v48, %v3647_v63  ;;  %v3836_v6 = vmul.f32 %v7986_v47, %v7986_v47  ;;  %v3835_v63 = vmul.f32 %v7997_v50, %v7997_v50  ;;  %v3858_v48 = vld [vmem:[%s8877_s3 + $0x20] sm:$0xff] }
 0x35d   :  { %v3838_v12 = vsub.f32 %v3822_v34, %v3830_v17  ;;  %v3808_v57 = vadd.f32 %v3800_v11, %v3670_v16 }
 0x35f   :  { %v3846_v4 = vmax.f32 %v3838_v12, 0.0  ;;  %v3824_v0 = vmul.f32 0.03125, %v3808_v57  ;;  %v3667_v49 = vpop.xlane.xlu0 %3666  ;;  %v3797_v12 = vadd.f32 %v3789_v37, %v7962_v32  ;;  %v3860_v37 = vld [vmem:[%s8877_s3 + $0x30] sm:$0xff] }
 0x360   :  { %v3676_v29 = vpop.xlane.xlu1 %3675  ;;  %v3807_v59 = vadd.f32 %v3799_v2, %v3667_v49  ;;  %v8004_v2 = vmul.f32 0.03125, %v7938_v3 }
 0x361   :  { %v3862_v58 = vadd.f32 1e-05, %v3846_v4  ;;  %v3840_v26 = vsub.f32 %v3824_v0, %v3832_v13  ;;  %v3810_v14 = vadd.f32 %v3802_v1, %v3676_v29  ;;  %v3805_v1 = vadd.f32 %v3797_v12, %v3653_v42  ;;  %v3854_v42 = vld [vmem:[%s8877_s3] sm:$0xff] }
 0x362   :  { %v3823_v20 = vmul.f32 0.03125, %v3807_v59  ;;  %v3837_v3 = vmul.f32 %v8004_v2, %v8004_v2 }
 0x363   :  { %5919 = vrsqrt.f32 %v3862_v58  ;;  %v3848_v22 = vmax.f32 %v3840_v26, 0.0  ;;  %v3826_v52 = vmul.f32 0.03125, %v3810_v14  ;;  %v3673_v17 = vpop.xlane.xlu0 %3672 }
 0x364   :  { %v3839_v15 = vsub.f32 %v3823_v20, %v3831_v9  ;;  %v3682_v11 = vpop.xlane.xlu1 %3681  ;;  %v3809_v34 = vadd.f32 %v3801_v10, %v3673_v17  ;;  %v3856_v10 = vld [vmem:[%s8877_s3 + $0x10] sm:$0xff]  ;;  %v3855_v17 = vld [vmem:[%s8877_s3 + $0x8] sm:$0xff] }
 0x365   :  { %v3864_v24 = vadd.f32 1e-05, %v3848_v22  ;;  %v3842_v19 = vsub.f32 %v3826_v52, %v3834_v44  ;;  %v3812_v46 = vadd.f32 %v3804_v25, %v3682_v11 }
 0x366   :  { %v3847_v16 = vmax.f32 %v3839_v15, 0.0  ;;  %v3825_v13 = vmul.f32 0.03125, %v3809_v34 }
 0x367   :  { %5921 = vrsqrt.f32 %v3864_v24  ;;  %v3850_v62 = vmax.f32 %v3842_v19, 0.0  ;;  %v3828_v27 = vmul.f32 0.03125, %v3812_v46  ;;  %v3679_v7 = vpop.xlane.xlu0 %3678  ;;  %v3857_v19 = vld [vmem:[%s8877_s3 + $0x18] sm:$0xff] }
 0x368   :  { %v3863_v57 = vadd.f32 1e-05, %v3847_v16  ;;  %v3841_v21 = vsub.f32 %v3825_v13, %v3833_v40  ;;  %v3811_v30 = vadd.f32 %v3803_v54, %v3679_v7  ;;  %v3859_v7 = vld [vmem:[%s8877_s3 + $0x28] sm:$0xff] }
 0x369   :  { %v3866_v35 = vadd.f32 1e-05, %v3850_v62  ;;  %v3844_v8 = vsub.f32 %v3828_v27, %v3836_v6  ;;  %v3889_v62 = vld [vmem:[%s8878_s4 + $0x18] sm:$0xff] }
 0x36a   :  { %5923 = vrsqrt.f32 %v3863_v57  ;;  %v3849_v4 = vmax.f32 %v3841_v21, 0.0  ;;  %v3827_v0 = vmul.f32 0.03125, %v3811_v30 }
 0x36b   :  { %5925 = vrsqrt.f32 %v3866_v35  ;;  %v3852_v49 = vmax.f32 %v3844_v8, 0.0  ;;  %v3685_v9 = vpop.xlane.xlu0 %3684  ;;  %v3861_v35 = vld [vmem:[%s8877_s3 + $0x38] sm:$0xff]  ;;  %v3887_v8 = vld [vmem:[%s8878_s4 + $0x8] sm:$0xff] }
 0x36c   :  { %v3865_v18 = vadd.f32 1e-05, %v3849_v4  ;;  %v3843_v32 = vsub.f32 %v3827_v0, %v3835_v63  ;;  %v3813_v29 = vadd.f32 %v3805_v1, %v3685_v9 }
 0x36d   :  { %v3868_v40 = vadd.f32 1e-05, %v3852_v49  ;;  %v3890_v49 = vld [vmem:[%s8878_s4 + $0x20] sm:$0xff] }
 0x36e   :  { %5927 = vrsqrt.f32 %v3865_v18  ;;  %v3851_v59 = vmax.f32 %v3843_v32, 0.0  ;;  %v3829_v56 = vmul.f32 0.03125, %v3813_v29  ;;  %v3891_v18 = vld [vmem:[%s8878_s4 + $0x28] sm:$0xff]  ;;  %v3893_v29 = vld [vmem:[%s8878_s4 + $0x38] sm:$0xff] }
 0x36f   :  { %5929 = vrsqrt.f32 %v3868_v40 }
 0x370   :  { %v5920_v58 = vpop.eup %5919  ;;  %v3867_v26 = vadd.f32 1e-05, %v3851_v59  ;;  %v3845_v14 = vsub.f32 %v3829_v56, %v3837_v3  ;;  %v9172_v59 = vld [vmem:[#allocation2_spill] sm:$0xff] }
 0x371   :  { %v3878_v44 = vmul.f32 %v5920_v58, %v3854_v42  ;;  %v9173_v42 = vld [vmem:[#allocation3_spill] sm:$0xff] }
 0x372   :  { %5931 = vrsqrt.f32 %v3867_v26  ;;  %v3853_v33 = vmax.f32 %v3845_v14, 0.0  ;;  %v9174_v26 = vld [vmem:[#allocation18_spill] sm:$0xff] }
 0x373   :  { %v3894_v20 = vmul.f32 %v3878_v44, %v7965_v31 }
 0x374   :  { %v5922_v25 = vpop.eup %5921  ;;  %v3869_v22 = vadd.f32 1e-05, %v3853_v33 }
 0x375   :  { %v3880_v52 = vmul.f32 %v5922_v25, %v3856_v10  ;;  %v9176_v10 = vld [vmem:[#allocation34_spill] sm:$0xff]  ;;  %v9177_v25 = vld [vmem:[#allocation35_spill] sm:$0xff] }
 0x376   :  { %5933 = vrsqrt.f32 %v3869_v22 }
 0x377   :  { %v5924_v15 = vpop.eup %5923  ;;  %3922 = vperm.xlu1 %5742, %v3880_v52   ;;  %v3896_v31 = vmul.f32 %v3880_v52, %v7968_v41  ;;  %v9178_v52 = vld [vmem:[#allocation50_spill] sm:$0xff] }
 0x378   :  { %v5926_v11 = vpop.eup %5925  ;;  %v3879_v34 = vmul.f32 %v5924_v15, %v3855_v17  ;;  %v9180_v15 = vld [vmem:[#allocation66_spill] sm:$0xff] }
 0x379   :  { %v3904_v24 = vsub.f32 %v3888_v36, %v3896_v31  ;;  %v3882_v46 = vmul.f32 %v5926_v11, %v3858_v48  ;;  %v9179_v36 = vld [vmem:[#allocation51_spill] sm:$0xff] }
 0x37a   :  { %v3895_v54 = vmul.f32 %v3879_v34, %v7976_v51  ;;  %v3886_v51 = vld [vmem:[%s8878_s4] sm:$0xff] }
 0x37b   :  { %v5928_v16 = vpop.eup %5927  ;;  %3912 = vperm.xlu1 %5742, %v3878_v44   ;;  %3970 = vperm.xlu0 %5741, %v3904_v24   ;;  %v3898_v13 = vmul.f32 %v3882_v46, %v7983_v28  ;;  %v3902_v63 = vsub.f32 %v3886_v51, %v3894_v20  ;;  %v9175_v44 = vld [vmem:[#allocation19_spill] sm:$0xff] }
 0x37c   :  { %v5930_v41 = vpop.eup %5929  ;;  %v3881_v6 = vmul.f32 %v5928_v16, %v3857_v19  ;;  %v3903_v0 = vsub.f32 %v3887_v8, %v3895_v54  ;;  %v9190_v8 = vld [vmem:[#allocation82_spill] sm:$0xff] }
 0x37d   :  { %v3884_v27 = vmul.f32 %v5930_v41, %v3860_v37  ;;  %v3906_v9 = vsub.f32 %v3890_v49, %v3898_v13  ;;  %v9181_v13 = vld [vmem:[#allocation4_spill] sm:$0xff] }
 0x37e   :  { %v3897_v12 = vmul.f32 %v3881_v6, %v7971_v39  ;;  %v9193_v49 = vld [vmem:[#allocation112_spill] sm:$0xff] }
 0x37f   :  { %v5932_v57 = vpop.eup %5931  ;;  %3917 = vperm.xlu0 %5741, %v3879_v34   ;;  %3927 = vperm.xlu1 %5742, %v3881_v6   ;;  %v3900_v28 = vmul.f32 %v3884_v27, %v7986_v47  ;;  %v9182_v6 = vld [vmem:[#allocation5_spill] sm:$0xff] }
 0x380   :  { %v3905_v21 = vsub.f32 %v3889_v62, %v3897_v12  ;;  %v3883_v30 = vmul.f32 %v5932_v57, %v3859_v7  ;;  %v9188_v12 = vld [vmem:[#allocation55_spill] sm:$0xff] }
 0x382   :  { %v3899_v1 = vmul.f32 %v3883_v30, %v7997_v50  ;;  %v3892_v50 = vld [vmem:[%s8878_s4 + $0x30] sm:$0xff] }
 0x383   :  { %v5934_v4 = vpop.eup %5933  ;;  %3960 = vperm.xlu0 %5741, %v3902_v63   ;;  %3975 = vperm.xlu1 %5742, %v3905_v21   ;;  %v9189_v21 = vld [vmem:[#allocation68_spill] sm:$0xff] }
 0x384   :  { %v3885_v39 = vmul.f32 %v5934_v4, %v3861_v35  ;;  %v3907_v32 = vsub.f32 %v3891_v18, %v3899_v1  ;;  %v9191_v4 = vld [vmem:[#allocation96_spill] sm:$0xff] }
 0x386   :  { %v3901_v47 = vmul.f32 %v3885_v39, %v8004_v2  ;;  %v3908_v2 = vsub.f32 %v3892_v50, %v3900_v28  ;;  %v9194_v50 = vld [vmem:[#allocation114_spill] sm:$0xff] }
 0x387   :  { %3942 = vperm.xlu0 %5741, %v3884_v27   ;;  %3965 = vperm.xlu1 %5742, %v3903_v0   ;;  %v9192_v0 = vld [vmem:[#allocation98_spill] sm:$0xff] }
 0x388   :  { %v3909_v40 = vsub.f32 %v3893_v29, %v3901_v47 }
 0x38b   :  { %3932 = vperm.xlu0 %5741, %v3882_v46   ;;  %3947 = vperm.xlu1 %5742, %v3885_v39  }
 0x38f   :  { %3980 = vperm.xlu0 %5741, %v3906_v9   ;;  %3937 = vperm.xlu1 %5742, %v3883_v30  }
 0x393   :  { %3990 = vperm.xlu0 %5741, %v3908_v2   ;;  %3985 = vperm.xlu1 %5742, %v3907_v32  }
 0x397   :  { %3995 = vperm.xlu1 %5742, %v3909_v40  }
 0x3f2   :  { %v3923_v3 = vpop.permute.xlu1 %3922 }
 0x3f3   :  { %v3952_v56 = vmul.f32 %v3923_v3, %v9172_v59  ;;  %v4024_v58 = vmul.f32 %v3923_v3, %v9173_v42  ;;  %v4057_v14 = vmul.f32 %v3923_v3, %v9174_v26  ;;  %v4090_v33 = vmul.f32 %v3923_v3, %v9175_v44 }
 0x3f4   :  { %v4123_v20 = vmul.f32 %v3923_v3, %v9176_v10  ;;  %v4156_v22 = vmul.f32 %v3923_v3, %v9177_v25  ;;  %v4189_v17 = vmul.f32 %v3923_v3, %v9178_v52  ;;  %v4222_v48 = vmul.f32 %v3923_v3, %v9179_v36 }
 0x3f5   :  { %v4255_v31 = vmul.f32 %v3923_v3, %v9180_v15  ;;  %v4288_v11 = vmul.f32 %v3923_v3, %v7216_v45  ;;  %v4321_v34 = vmul.f32 %v3923_v3, %v7323_v38  ;;  %v4354_v24 = vmul.f32 %v3923_v3, %v7337_v5  ;;  %v9183_v45 = vld [vmem:[#allocation21_spill] sm:$0xff]  ;;  %v9184_v38 = vld [vmem:[#allocation23_spill] sm:$0xff] }
 0x3f6   :  { %v4387_v19 = vmul.f32 %v3923_v3, %v9155_v43  ;;  %v4420_v46 = vmul.f32 %v3923_v3, %v9162_v60  ;;  %v4453_v37 = vmul.f32 %v3923_v3, %v9169_v61  ;;  %v4486_v54 = vmul.f32 %v3923_v3, %v9170_v53  ;;  %v3913_v16 = vpop.permute.xlu1 %3912  ;;  %v9185_v43 = vld [vmem:[#allocation37_spill] sm:$0xff]  ;;  %v9186_v60 = vld [vmem:[#allocation39_spill] sm:$0xff]  ;;  %v3971_v28 = vpop.permute.xlu0 %3970 }
 0x3f7   :  { %v8083_v41 = vmul.f32 %v3913_v16, %v9181_v13  ;;  %v8086_v62 = vmul.f32 %v3913_v16, %v9182_v6  ;;  %v8089_v27 = vmul.f32 %v3913_v16, %v9183_v45  ;;  %v8092_v5 = vmul.f32 %v3913_v16, %v9184_v38  ;;  %v9187_v53 = vld [vmem:[#allocation53_spill] sm:$0xff] }
 0x3f8   :  { %v8095_v7 = vmul.f32 %v3913_v16, %v9185_v43  ;;  %v8098_v61 = vmul.f32 %v3913_v16, %v9186_v60  ;;  %v8101_v51 = vmul.f32 %v3913_v16, %v9187_v53  ;;  %v8104_v57 = vmul.f32 %v3913_v16, %v9188_v12  ;;  %v9197_v43 = vld [vmem:[#allocation20_spill] sm:$0xff]  ;;  %v9198_v53 = vld [vmem:[#allocation22_spill] sm:$0xff] }
 0x3f9   :  { %v8107_v30 = vmul.f32 %v3913_v16, %v9189_v21  ;;  %v8110_v63 = vmul.f32 %v3913_v16, %v7241_v23  ;;  %v8113_v35 = vmul.f32 %v3913_v16, %v7349_v55  ;;  %v8116_v1 = vmul.f32 %v3913_v16, %v9190_v8  ;;  %v9200_v8 = vld [vmem:[#allocation38_spill] sm:$0xff] }
 0x3fa   :  { %v8119_v39 = vmul.f32 %v3913_v16, %v9191_v4  ;;  %v8122_v47 = vmul.f32 %v3913_v16, %v9192_v0  ;;  %v8125_v9 = vmul.f32 %v3913_v16, %v9193_v49  ;;  %v8128_v18 = vmul.f32 %v3913_v16, %v9194_v50  ;;  %v9201_v0 = vld [vmem:[#allocation52_spill] sm:$0xff]  ;;  %v9202_v50 = vld [vmem:[#allocation54_spill] sm:$0xff] }
 0x3fb   :  { %v4000_v23 = vadd.f32 %v3971_v28, %v3952_v56  ;;  %v4032_v2 = vadd.f32 %v4024_v58, %v3971_v28  ;;  %v4065_v32 = vadd.f32 %v4057_v14, %v3971_v28  ;;  %v4098_v55 = vadd.f32 %v4090_v33, %v3971_v28 }
 0x3fc   :  { %v4131_v29 = vadd.f32 %v4123_v20, %v3971_v28  ;;  %v4164_v40 = vadd.f32 %v4156_v22, %v3971_v28  ;;  %v4197_v3 = vadd.f32 %v4189_v17, %v3971_v28  ;;  %v4230_v59 = vadd.f32 %v4222_v48, %v3971_v28 }
 0x3fd   :  { %v4008_v42 = vmax.f32 %v4000_v23, 0.0  ;;  %v4040_v26 = vmax.f32 %v4032_v2, 0.0  ;;  %v4073_v44 = vmax.f32 %v4065_v32, 0.0  ;;  %v4106_v10 = vmax.f32 %v4098_v55, 0.0  ;;  %v3918_v2 = vpop.permute.xlu0 %3917  ;;  %v9203_v32 = vld [vmem:[#allocation67_spill] sm:$0xff] }
 0x3fe   :  { %v4139_v25 = vmax.f32 %v4131_v29, 0.0  ;;  %v4172_v52 = vmax.f32 %v4164_v40, 0.0  ;;  %v4205_v36 = vmax.f32 %v4197_v3, 0.0  ;;  %v4238_v15 = vmax.f32 %v4230_v59, 0.0  ;;  %v9204_v29 = vld [vmem:[#allocation69_spill] sm:$0xff]  ;;  %v9205_v3 = vld [vmem:[#allocation80_spill] sm:$0xff] }
 0x3ff   :  { %4016 = vst.msk [vmem:[%s8879_s5 + $0x10] sm:$0xff] %vm2661_vm2, %v4008_v42  ;;  %5078 = vst.msk [vmem:[%s8879_s5 + $0x50] sm:$0xff] %vm2661_vm2, %v4040_v26  ;;  %v4263_v56 = vadd.f32 %v4255_v31, %v3971_v28  ;;  %v4296_v58 = vadd.f32 %v4288_v11, %v3971_v28  ;;  %v4329_v14 = vadd.f32 %v4321_v34, %v3971_v28  ;;  %v3928_v31 = vpop.permute.xlu1 %3927  ;;  %v9206_v42 = vld [vmem:[#allocation81_spill] sm:$0xff] }
 0x400   :  { %5086 = vst.msk [vmem:[%s8879_s5 + $0x90] sm:$0xff] %vm2661_vm2, %v4073_v44  ;;  %5094 = vst.msk [vmem:[%s8879_s5 + $0xd0] sm:$0xff] %vm2661_vm2, %v4106_v10  ;;  %v4362_v33 = vadd.f32 %v4354_v24, %v3971_v28  ;;  %v4395_v20 = vadd.f32 %v4387_v19, %v3971_v28  ;;  %v4428_v22 = vadd.f32 %v4420_v46, %v3971_v28  ;;  %v9195_v19 = vld [vmem:[#allocation6_spill] sm:$0xff]  ;;  %v9207_v44 = vld [vmem:[#allocation95_spill] sm:$0xff] }
 0x401   :  { %5102 = vst.msk [vmem:[%s8879_s5 + $0x110] sm:$0xff] %vm2661_vm2, %v4139_v25  ;;  %5110 = vst.msk [vmem:[%s8879_s5 + $0x150] sm:$0xff] %vm2661_vm2, %v4172_v52  ;;  %v4461_v17 = vadd.f32 %v4453_v37, %v3971_v28  ;;  %v4494_v48 = vadd.f32 %v4486_v54, %v3971_v28  ;;  %v4271_v11 = vmax.f32 %v4263_v56, 0.0  ;;  %v4304_v34 = vmax.f32 %v4296_v58, 0.0  ;;  %v9196_v37 = vld [vmem:[#allocation7_spill] sm:$0xff]  ;;  %v9199_v28 = vld [vmem:[#allocation36_spill] sm:$0xff] }
 0x402   :  { %5118 = vst.msk [vmem:[%s8879_s5 + $0x190] sm:$0xff] %vm2661_vm2, %v4205_v36  ;;  %5126 = vst.msk [vmem:[%s8879_s5 + $0x1d0] sm:$0xff] %vm2661_vm2, %v4238_v15  ;;  %v4337_v24 = vmax.f32 %v4329_v14, 0.0  ;;  %v4370_v16 = vmax.f32 %v4362_v33, 0.0  ;;  %v4403_v13 = vmax.f32 %v4395_v20, 0.0  ;;  %v4436_v6 = vmax.f32 %v4428_v22, 0.0 }
 0x403   :  { %v4469_v45 = vmax.f32 %v4461_v17, 0.0  ;;  %v4502_v38 = vmax.f32 %v4494_v48, 0.0  ;;  %5134 = vst.msk [vmem:[%s8879_s5 + $0x210] sm:$0xff] %vm2661_vm2, %v4271_v11  ;;  %5142 = vst.msk [vmem:[%s8879_s5 + $0x250] sm:$0xff] %vm2661_vm2, %v4304_v34  ;;  %v3953_v46 = vmul.f32 %v3928_v31, %v9195_v19  ;;  %v4025_v54 = vmul.f32 %v3928_v31, %v9196_v37  ;;  %v9208_v25 = vld [vmem:[#allocation97_spill] sm:$0xff]  ;;  %v9209_v36 = vld [vmem:[#allocation111_spill] sm:$0xff]  ;;  %v3976_v37 = vpop.permute.xlu1 %3975 }
 0x404   :  { %5150 = vst.msk [vmem:[%s8879_s5 + $0x290] sm:$0xff] %vm2661_vm2, %v4337_v24  ;;  %5158 = vst.msk [vmem:[%s8879_s5 + $0x2d0] sm:$0xff] %vm2661_vm2, %v4370_v16  ;;  %v4058_v60 = vmul.f32 %v3928_v31, %v9197_v43  ;;  %v4091_v12 = vmul.f32 %v3928_v31, %v9198_v53  ;;  %v4124_v21 = vmul.f32 %v3928_v31, %v9199_v28  ;;  %v9210_v56 = vld [vmem:[#allocation113_spill] sm:$0xff]  ;;  %v9212_v20 = vld [vmem:[#allocation8_spill] sm:$0xff] }
 0x405   :  { %5166 = vst.msk [vmem:[%s8879_s5 + $0x310] sm:$0xff] %vm2661_vm2, %v4403_v13  ;;  %5174 = vst.msk [vmem:[%s8879_s5 + $0x350] sm:$0xff] %vm2661_vm2, %v4436_v6  ;;  %v4157_v4 = vmul.f32 %v3928_v31, %v9200_v8  ;;  %v4190_v49 = vmul.f32 %v3928_v31, %v9201_v0  ;;  %v4223_v23 = vmul.f32 %v3928_v31, %v9202_v50  ;;  %v9211_v14 = vld [vmem:[#allocation9_spill] sm:$0xff]  ;;  %v9213_v17 = vld [vmem:[#allocation24_spill] sm:$0xff] }
 0x406   :  { %5182 = vst.msk [vmem:[%s8879_s5 + $0x390] sm:$0xff] %vm2661_vm2, %v4469_v45  ;;  %5190 = vst.msk [vmem:[%s8879_s5 + $0x3d0] sm:$0xff] %vm2661_vm2, %v4502_v38  ;;  %v4256_v55 = vmul.f32 %v3928_v31, %v9203_v32  ;;  %v4289_v40 = vmul.f32 %v3928_v31, %v9204_v29  ;;  %v4322_v59 = vmul.f32 %v3928_v31, %v9205_v3  ;;  %v9214_v11 = vld [vmem:[#allocation25_spill] sm:$0xff]  ;;  %v9215_v24 = vld [vmem:[#allocation40_spill] sm:$0xff] }
 0x407   :  { %v4355_v26 = vmul.f32 %v3928_v31, %v9206_v42  ;;  %v4388_v10 = vmul.f32 %v3928_v31, %v9207_v44  ;;  %v4421_v52 = vmul.f32 %v3928_v31, %v9208_v25  ;;  %v4454_v15 = vmul.f32 %v3928_v31, %v9209_v36  ;;  %v9216_v13 = vld [vmem:[#allocation41_spill] sm:$0xff]  ;;  %v9217_v45 = vld [vmem:[#allocation56_spill] sm:$0xff]  ;;  %v9219_v43 = vld [vmem:[#allocation70_spill] sm:$0xff] }
 0x408   :  { %v4487_v58 = vmul.f32 %v3928_v31, %v9210_v56  ;;  %v8211_v33 = vmul.f32 %v3918_v2, %v9211_v14  ;;  %v8214_v22 = vmul.f32 %v3918_v2, %v9212_v20  ;;  %v8217_v48 = vmul.f32 %v3918_v2, %v9213_v17  ;;  %v9218_v38 = vld [vmem:[#allocation57_spill] sm:$0xff]  ;;  %v9220_v28 = vld [vmem:[#allocation71_spill] sm:$0xff] }
 0x409   :  { %v8220_v34 = vmul.f32 %v3918_v2, %v9214_v11  ;;  %v8223_v16 = vmul.f32 %v3918_v2, %v9215_v24  ;;  %v8226_v6 = vmul.f32 %v3918_v2, %v9216_v13  ;;  %v8229_v31 = vmul.f32 %v3918_v2, %v9217_v45  ;;  %v9221_v0 = vld [vmem:[#allocation83_spill] sm:$0xff]  ;;  %v9222_v32 = vld [vmem:[#allocation85_spill] sm:$0xff] }
 0x40a   :  { %v8232_v19 = vmul.f32 %v3918_v2, %v9218_v38  ;;  %v8235_v53 = vmul.f32 %v3918_v2, %v9219_v43  ;;  %v8238_v8 = vmul.f32 %v3918_v2, %v9220_v28  ;;  %v8241_v50 = vmul.f32 %v3918_v2, %v9221_v0  ;;  %v9224_v3 = vld [vmem:[#allocation99_spill] sm:$0xff]  ;;  %v9226_v44 = vld [vmem:[#allocation101_spill] sm:$0xff] }
 0x40b   :  { %v8244_v29 = vmul.f32 %v3918_v2, %v9222_v32  ;;  %v8247_v42 = vmul.f32 %v3918_v2, %v9224_v3  ;;  %v8250_v25 = vmul.f32 %v3918_v2, %v9226_v44  ;;  %v9228_v36 = vld [vmem:[#allocation115_spill] sm:$0xff]  ;;  %v9229_v14 = vld [vmem:[#allocation117_spill] sm:$0xff]  ;;  %v4001_v17 = vadd.f32 %v3976_v37, %v3953_v46 }
 0x40c   :  { %v8253_v56 = vmul.f32 %v3918_v2, %v9228_v36  ;;  %v8256_v20 = vmul.f32 %v3918_v2, %v9229_v14  ;;  %v4033_v11 = vadd.f32 %v4025_v54, %v3976_v37  ;;  %v4066_v24 = vadd.f32 %v4058_v60, %v3976_v37  ;;  %v3961_v2 = vpop.permute.xlu0 %3960 }
 0x40d   :  { %9223 = vst [vmem:[#allocation92_spill] sm:$0xff] %v8244_v29  ;;  %9225 = vst [vmem:[#allocation94_spill] sm:$0xff] %v8247_v42  ;;  %v4099_v13 = vadd.f32 %v4091_v12, %v3976_v37  ;;  %v4132_v45 = vadd.f32 %v4124_v21, %v3976_v37  ;;  %v4165_v38 = vadd.f32 %v4157_v4, %v3976_v37  ;;  %v4009_v0 = vmax.f32 %v4001_v17, 0.0 }
 0x40e   :  { %9227 = vst [vmem:[#allocation108_spill] sm:$0xff] %v8250_v25  ;;  %v4198_v43 = vadd.f32 %v4190_v49, %v3976_v37  ;;  %v4231_v28 = vadd.f32 %v4223_v23, %v3976_v37  ;;  %v4041_v32 = vmax.f32 %v4033_v11, 0.0  ;;  %v4074_v3 = vmax.f32 %v4066_v24, 0.0 }
 0x40f   :  { %v4107_v42 = vmax.f32 %v4099_v13, 0.0  ;;  %v4140_v44 = vmax.f32 %v4132_v45, 0.0  ;;  %v4173_v25 = vmax.f32 %v4165_v38, 0.0  ;;  %4017 = vst.msk [vmem:[%s8879_s5 + $0x18] sm:$0xff] %vm2661_vm2, %v4009_v0  ;;  %v4264_v46 = vadd.f32 %v4256_v55, %v3976_v37 }
 0x410   :  { %v4206_v29 = vmax.f32 %v4198_v43, 0.0  ;;  %v4239_v36 = vmax.f32 %v4231_v28, 0.0  ;;  %5079 = vst.msk [vmem:[%s8879_s5 + $0x58] sm:$0xff] %vm2661_vm2, %v4041_v32  ;;  %5087 = vst.msk [vmem:[%s8879_s5 + $0x98] sm:$0xff] %vm2661_vm2, %v4074_v3  ;;  %v4297_v54 = vadd.f32 %v4289_v40, %v3976_v37  ;;  %v4330_v60 = vadd.f32 %v4322_v59, %v3976_v37  ;;  %v3966_v28 = vpop.permute.xlu1 %3965 }
 0x411   :  { %5095 = vst.msk [vmem:[%s8879_s5 + $0xd8] sm:$0xff] %vm2661_vm2, %v4107_v42  ;;  %v4363_v12 = vadd.f32 %v4355_v26, %v3976_v37  ;;  %5103 = vst.msk [vmem:[%s8879_s5 + $0x118] sm:$0xff] %vm2661_vm2, %v4140_v44  ;;  %v4396_v21 = vadd.f32 %v4388_v10, %v3976_v37  ;;  %v4429_v4 = vadd.f32 %v4421_v52, %v3976_v37  ;;  %v4272_v55 = vmax.f32 %v4264_v46, 0.0 }
 0x412   :  { %5111 = vst.msk [vmem:[%s8879_s5 + $0x158] sm:$0xff] %vm2661_vm2, %v4173_v25  ;;  %5119 = vst.msk [vmem:[%s8879_s5 + $0x198] sm:$0xff] %vm2661_vm2, %v4206_v29  ;;  %v4462_v49 = vadd.f32 %v4454_v15, %v3976_v37  ;;  %v4495_v23 = vadd.f32 %v4487_v58, %v3976_v37  ;;  %v4305_v40 = vmax.f32 %v4297_v54, 0.0  ;;  %v4338_v59 = vmax.f32 %v4330_v60, 0.0 }
 0x413   :  { %5127 = vst.msk [vmem:[%s8879_s5 + $0x1d8] sm:$0xff] %vm2661_vm2, %v4239_v36  ;;  %v4371_v26 = vmax.f32 %v4363_v12, 0.0  ;;  %v4404_v42 = vmax.f32 %v4396_v21, 0.0  ;;  %v4437_v25 = vmax.f32 %v4429_v4, 0.0  ;;  %5135 = vst.msk [vmem:[%s8879_s5 + $0x218] sm:$0xff] %vm2661_vm2, %v4272_v55  ;;  %v3998_v10 = vadd.f32 %v3961_v2, %v8083_v41  ;;  %v8370_v12 = vpop.permute.xlu0 %3942 }
 0x414   :  { %v4470_v14 = vmax.f32 %v4462_v49, 0.0  ;;  %v4503_v17 = vmax.f32 %v4495_v23, 0.0  ;;  %5143 = vst.msk [vmem:[%s8879_s5 + $0x258] sm:$0xff] %vm2661_vm2, %v4305_v40  ;;  %5151 = vst.msk [vmem:[%s8879_s5 + $0x298] sm:$0xff] %vm2661_vm2, %v4338_v59  ;;  %v4030_v52 = vadd.f32 %v8086_v62, %v3961_v2  ;;  %v4063_v15 = vadd.f32 %v8089_v27, %v3961_v2 }
 0x415   :  { %5159 = vst.msk [vmem:[%s8879_s5 + $0x2d8] sm:$0xff] %vm2661_vm2, %v4371_v26  ;;  %v4096_v58 = vadd.f32 %v8092_v5, %v3961_v2  ;;  %5167 = vst.msk [vmem:[%s8879_s5 + $0x318] sm:$0xff] %vm2661_vm2, %v4404_v42  ;;  %v4129_v41 = vadd.f32 %v8095_v7, %v3961_v2  ;;  %v4162_v62 = vadd.f32 %v8098_v61, %v3961_v2  ;;  %v4006_v37 = vmax.f32 %v3998_v10, 0.0  ;;  %v8412_v26 = vpop.permute.xlu1 %3947 }
 0x416   :  { %5175 = vst.msk [vmem:[%s8879_s5 + $0x358] sm:$0xff] %vm2661_vm2, %v4437_v25  ;;  %5183 = vst.msk [vmem:[%s8879_s5 + $0x398] sm:$0xff] %vm2661_vm2, %v4470_v14  ;;  %v4195_v27 = vadd.f32 %v8101_v51, %v3961_v2  ;;  %v4228_v5 = vadd.f32 %v8104_v57, %v3961_v2  ;;  %v4038_v29 = vmax.f32 %v4030_v52, 0.0  ;;  %v4071_v11 = vmax.f32 %v4063_v15, 0.0 }
 0x417   :  { %5191 = vst.msk [vmem:[%s8879_s5 + $0x3d8] sm:$0xff] %vm2661_vm2, %v4503_v17  ;;  %v4104_v24 = vmax.f32 %v4096_v58, 0.0  ;;  %v4137_v13 = vmax.f32 %v4129_v41, 0.0  ;;  %v4170_v45 = vmax.f32 %v4162_v62, 0.0  ;;  %4014 = vst.msk [vmem:[%s8879_s5] sm:$0xff] %vm2661_vm2, %v4006_v37  ;;  %v4261_v7 = vadd.f32 %v8107_v30, %v3961_v2  ;;  %v3933_v10 = vpop.permute.xlu0 %3932 }
 0x418   :  { %v4203_v38 = vmax.f32 %v4195_v27, 0.0  ;;  %v4236_v43 = vmax.f32 %v4228_v5, 0.0  ;;  %5076 = vst.msk [vmem:[%s8879_s5 + $0x40] sm:$0xff] %vm2661_vm2, %v4038_v29  ;;  %5084 = vst.msk [vmem:[%s8879_s5 + $0x80] sm:$0xff] %vm2661_vm2, %v4071_v11  ;;  %v4294_v61 = vadd.f32 %v8110_v63, %v3961_v2  ;;  %v4327_v51 = vadd.f32 %v8113_v35, %v3961_v2  ;;  %v9234_v29 = vld [vmem:[#allocation15_spill] sm:$0xff] }
 0x419   :  { %5092 = vst.msk [vmem:[%s8879_s5 + $0xc0] sm:$0xff] %vm2661_vm2, %v4104_v24  ;;  %v4360_v57 = vadd.f32 %v8116_v1, %v3961_v2  ;;  %5100 = vst.msk [vmem:[%s8879_s5 + $0x100] sm:$0xff] %vm2661_vm2, %v4137_v13  ;;  %v4393_v30 = vadd.f32 %v8119_v39, %v3961_v2  ;;  %v4426_v63 = vadd.f32 %v8122_v47, %v3961_v2  ;;  %v4269_v0 = vmax.f32 %v4261_v7, 0.0  ;;  %v9235_v24 = vld [vmem:[#allocation29_spill] sm:$0xff] }
 0x41a   :  { %5108 = vst.msk [vmem:[%s8879_s5 + $0x140] sm:$0xff] %vm2661_vm2, %v4170_v45  ;;  %5116 = vst.msk [vmem:[%s8879_s5 + $0x180] sm:$0xff] %vm2661_vm2, %v4203_v38  ;;  %v4459_v35 = vadd.f32 %v8125_v9, %v3961_v2  ;;  %v4492_v1 = vadd.f32 %v8128_v18, %v3961_v2  ;;  %v4302_v32 = vmax.f32 %v4294_v61, 0.0  ;;  %v4335_v3 = vmax.f32 %v4327_v51, 0.0  ;;  %v9236_v45 = vld [vmem:[#allocation31_spill] sm:$0xff] }
 0x41b   :  { %5124 = vst.msk [vmem:[%s8879_s5 + $0x1c0] sm:$0xff] %vm2661_vm2, %v4236_v43  ;;  %v4368_v44 = vmax.f32 %v4360_v57, 0.0  ;;  %v4401_v36 = vmax.f32 %v4393_v30, 0.0  ;;  %v4434_v46 = vmax.f32 %v4426_v63, 0.0  ;;  %5132 = vst.msk [vmem:[%s8879_s5 + $0x200] sm:$0xff] %vm2661_vm2, %v4269_v0  ;;  %v3999_v39 = vadd.f32 %v3966_v28, %v8211_v33  ;;  %v9237_v43 = vld [vmem:[#allocation45_spill] sm:$0xff] }
 0x41c   :  { %v4467_v54 = vmax.f32 %v4459_v35, 0.0  ;;  %v4500_v60 = vmax.f32 %v4492_v1, 0.0  ;;  %5140 = vst.msk [vmem:[%s8879_s5 + $0x240] sm:$0xff] %vm2661_vm2, %v4302_v32  ;;  %5148 = vst.msk [vmem:[%s8879_s5 + $0x280] sm:$0xff] %vm2661_vm2, %v4335_v3  ;;  %v4031_v47 = vadd.f32 %v8214_v22, %v3966_v28  ;;  %v4064_v9 = vadd.f32 %v8217_v48, %v3966_v28  ;;  %v9238_v61 = vld [vmem:[#allocation47_spill] sm:$0xff]  ;;  %v9239_v57 = vld [vmem:[#allocation61_spill] sm:$0xff]  ;;  %v3938_v1 = vpop.permute.xlu1 %3937 }
 0x41d   :  { %5156 = vst.msk [vmem:[%s8879_s5 + $0x2c0] sm:$0xff] %vm2661_vm2, %v4368_v44  ;;  %v4097_v18 = vadd.f32 %v8220_v34, %v3966_v28  ;;  %5164 = vst.msk [vmem:[%s8879_s5 + $0x300] sm:$0xff] %vm2661_vm2, %v4401_v36  ;;  %v4130_v33 = vadd.f32 %v8223_v16, %v3966_v28  ;;  %v4163_v22 = vadd.f32 %v8226_v6, %v3966_v28  ;;  %v4007_v21 = vmax.f32 %v3999_v39, 0.0  ;;  %v9240_v63 = vld [vmem:[#allocation63_spill] sm:$0xff]  ;;  %v9242_v32 = vld [vmem:[#allocation77_spill] sm:$0xff] }
 0x41e   :  { %5172 = vst.msk [vmem:[%s8879_s5 + $0x340] sm:$0xff] %vm2661_vm2, %v4434_v46  ;;  %5180 = vst.msk [vmem:[%s8879_s5 + $0x380] sm:$0xff] %vm2661_vm2, %v4467_v54  ;;  %v4196_v48 = vadd.f32 %v8229_v31, %v3966_v28  ;;  %v4229_v34 = vadd.f32 %v8232_v19, %v3966_v28  ;;  %v4039_v4 = vmax.f32 %v4031_v47, 0.0  ;;  %v4072_v49 = vmax.f32 %v4064_v9, 0.0  ;;  %v9230_v19 = vld [vmem:[#allocation92_spill] sm:$0xff]  ;;  %v9244_v46 = vld [vmem:[#allocation90_spill] sm:$0xff] }
 0x41f   :  { %5188 = vst.msk [vmem:[%s8879_s5 + $0x3c0] sm:$0xff] %vm2661_vm2, %v4500_v60  ;;  %v4105_v23 = vmax.f32 %v4097_v18, 0.0  ;;  %v4138_v2 = vmax.f32 %v4130_v33, 0.0  ;;  %v4171_v55 = vmax.f32 %v4163_v22, 0.0  ;;  %4015 = vst.msk [vmem:[%s8879_s5 + $0x8] sm:$0xff] %vm2661_vm2, %v4007_v21  ;;  %v4262_v16 = vadd.f32 %v8235_v53, %v3966_v28  ;;  %v9231_v53 = vld [vmem:[#allocation94_spill] sm:$0xff] }
 0x420   :  { %v4204_v40 = vmax.f32 %v4196_v48, 0.0  ;;  %v4237_v59 = vmax.f32 %v4229_v34, 0.0  ;;  %5077 = vst.msk [vmem:[%s8879_s5 + $0x48] sm:$0xff] %vm2661_vm2, %v4039_v4  ;;  %5085 = vst.msk [vmem:[%s8879_s5 + $0x88] sm:$0xff] %vm2661_vm2, %v4072_v49  ;;  %v4295_v6 = vadd.f32 %v8238_v8, %v3966_v28  ;;  %v4328_v31 = vadd.f32 %v8241_v50, %v3966_v28  ;;  %v9232_v50 = vld [vmem:[#allocation108_spill] sm:$0xff]  ;;  %v9246_v47 = vld [vmem:[#allocation106_spill] sm:$0xff] }
 0x421   :  { %5093 = vst.msk [vmem:[%s8879_s5 + $0xc8] sm:$0xff] %vm2661_vm2, %v4105_v23  ;;  %v4361_v42 = vadd.f32 %v9230_v19, %v3966_v28  ;;  %5101 = vst.msk [vmem:[%s8879_s5 + $0x108] sm:$0xff] %vm2661_vm2, %v4138_v2  ;;  %v4394_v8 = vadd.f32 %v9231_v53, %v3966_v28  ;;  %v4427_v25 = vadd.f32 %v9232_v50, %v3966_v28  ;;  %v4270_v52 = vmax.f32 %v4262_v16, 0.0  ;;  %v9243_v44 = vld [vmem:[#allocation88_spill] sm:$0xff]  ;;  %v9248_v22 = vld [vmem:[#allocation122_spill] sm:$0xff]  ;;  %v3981_v50 = vpop.permute.xlu0 %3980 }
 0x422   :  { %5109 = vst.msk [vmem:[%s8879_s5 + $0x148] sm:$0xff] %vm2661_vm2, %v4171_v55  ;;  %5117 = vst.msk [vmem:[%s8879_s5 + $0x188] sm:$0xff] %vm2661_vm2, %v4204_v40  ;;  %v4460_v14 = vadd.f32 %v8253_v56, %v3966_v28  ;;  %v4493_v17 = vadd.f32 %v8256_v20, %v3966_v28  ;;  %v4303_v15 = vmax.f32 %v4295_v6, 0.0  ;;  %v4336_v58 = vmax.f32 %v4328_v31, 0.0  ;;  %v9233_v56 = vld [vmem:[#allocation13_spill] sm:$0xff]  ;;  %v9241_v28 = vld [vmem:[#allocation75_spill] sm:$0xff] }
 0x423   :  { %5125 = vst.msk [vmem:[%s8879_s5 + $0x1c8] sm:$0xff] %vm2661_vm2, %v4237_v59  ;;  %v4369_v41 = vmax.f32 %v4361_v42, 0.0  ;;  %v4402_v62 = vmax.f32 %v4394_v8, 0.0  ;;  %v4435_v27 = vmax.f32 %v4427_v25, 0.0  ;;  %5133 = vst.msk [vmem:[%s8879_s5 + $0x208] sm:$0xff] %vm2661_vm2, %v4270_v52  ;;  %v3954_v20 = vmul.f32 %v3933_v10, %v9233_v56  ;;  %v9245_v60 = vld [vmem:[#allocation104_spill] sm:$0xff] }
 0x424   :  { %v4468_v5 = vmax.f32 %v4460_v14, 0.0  ;;  %v4501_v37 = vmax.f32 %v4493_v17, 0.0  ;;  %5141 = vst.msk [vmem:[%s8879_s5 + $0x248] sm:$0xff] %vm2661_vm2, %v4303_v15  ;;  %5149 = vst.msk [vmem:[%s8879_s5 + $0x288] sm:$0xff] %vm2661_vm2, %v4336_v58  ;;  %v4026_v11 = vmul.f32 %v3933_v10, %v9234_v29  ;;  %v4059_v13 = vmul.f32 %v3933_v10, %v9235_v24  ;;  %v9247_v18 = vld [vmem:[#allocation120_spill] sm:$0xff]  ;;  %v9250_v4 = vld [vmem:[#allocation17_spill] sm:$0xff] }
 0x425   :  { %5157 = vst.msk [vmem:[%s8879_s5 + $0x2c8] sm:$0xff] %vm2661_vm2, %v4369_v41  ;;  %v4092_v38 = vmul.f32 %v3933_v10, %v9236_v45  ;;  %5165 = vst.msk [vmem:[%s8879_s5 + $0x308] sm:$0xff] %vm2661_vm2, %v4402_v62  ;;  %v4125_v7 = vmul.f32 %v3933_v10, %v9237_v43  ;;  %v4158_v51 = vmul.f32 %v3933_v10, %v9238_v61  ;;  %v9249_v34 = vld [vmem:[#allocation16_spill] sm:$0xff]  ;;  %v9252_v55 = vld [vmem:[#allocation33_spill] sm:$0xff] }
 0x426   :  { %5173 = vst.msk [vmem:[%s8879_s5 + $0x348] sm:$0xff] %vm2661_vm2, %v4435_v27  ;;  %5181 = vst.msk [vmem:[%s8879_s5 + $0x388] sm:$0xff] %vm2661_vm2, %v4468_v5  ;;  %v4191_v30 = vmul.f32 %v3933_v10, %v9239_v57  ;;  %v4224_v35 = vmul.f32 %v3933_v10, %v9240_v63  ;;  %v4257_v0 = vmul.f32 %v3933_v10, %v9241_v28  ;;  %v9251_v23 = vld [vmem:[#allocation32_spill] sm:$0xff]  ;;  %v9254_v6 = vld [vmem:[#allocation49_spill] sm:$0xff] }
 0x427   :  { %5189 = vst.msk [vmem:[%s8879_s5 + $0x3c8] sm:$0xff] %vm2661_vm2, %v4501_v37  ;;  %v4290_v3 = vmul.f32 %v3933_v10, %v9242_v32  ;;  %v4323_v36 = vmul.f32 %v3933_v10, %v9243_v44  ;;  %v4356_v54 = vmul.f32 %v3933_v10, %v9244_v46  ;;  %v4389_v39 = vmul.f32 %v3933_v10, %v9245_v60  ;;  %v9253_v59 = vld [vmem:[#allocation48_spill] sm:$0xff]  ;;  %v9256_v53 = vld [vmem:[#allocation65_spill] sm:$0xff]  ;;  %v9257_v25 = vld [vmem:[#allocation78_spill] sm:$0xff] }
 0x428   :  { %v4422_v9 = vmul.f32 %v3933_v10, %v9246_v47  ;;  %v4455_v33 = vmul.f32 %v3933_v10, %v9247_v18  ;;  %v4488_v48 = vmul.f32 %v3933_v10, %v9248_v22  ;;  %v3955_v21 = vmul.f32 %v3938_v1, %v9249_v34  ;;  %v9255_v19 = vld [vmem:[#allocation64_spill] sm:$0xff]  ;;  %v9258_v17 = vld [vmem:[#allocation79_spill] sm:$0xff]  ;;  %v9260_v58 = vld [vmem:[#allocation93_spill] sm:$0xff] }
 0x429   :  { %v4027_v49 = vmul.f32 %v3938_v1, %v9250_v4  ;;  %v4060_v2 = vmul.f32 %v3938_v1, %v9251_v23  ;;  %v4093_v40 = vmul.f32 %v3938_v1, %v9252_v55  ;;  %v8507_v16 = vmul.f32 %v3938_v1, %v9253_v59  ;;  %v9259_v52 = vld [vmem:[#allocation91_spill] sm:$0xff]  ;;  %v9262_v5 = vld [vmem:[#allocation109_spill] sm:$0xff]  ;;  %v9264_v24 = vld [vmem:[#allocation124_spill] sm:$0xff] }
 0x42a   :  { %v8510_v31 = vmul.f32 %v3938_v1, %v9254_v6  ;;  %v8513_v42 = vmul.f32 %v3938_v1, %v9255_v19  ;;  %v8516_v8 = vmul.f32 %v3938_v1, %v9256_v53  ;;  %v8519_v14 = vmul.f32 %v3938_v1, %v9257_v25  ;;  %v9261_v62 = vld [vmem:[#allocation107_spill] sm:$0xff] }
 0x42b   :  { %v8522_v10 = vmul.f32 %v3938_v1, %v9258_v17  ;;  %v8525_v15 = vmul.f32 %v3938_v1, %v9259_v52  ;;  %v8528_v41 = vmul.f32 %v3938_v1, %v9260_v58  ;;  %v8531_v27 = vmul.f32 %v3938_v1, %v9261_v62  ;;  %v9263_v56 = vld [vmem:[#allocation123_spill] sm:$0xff] }
 0x42c   :  { %v8534_v37 = vmul.f32 %v3938_v1, %v9262_v5  ;;  %v8537_v29 = vmul.f32 %v3938_v1, %v9263_v56  ;;  %v8540_v45 = vmul.f32 %v3938_v1, %v9264_v24  ;;  %v4002_v43 = vadd.f32 %v3981_v50, %v3954_v20  ;;  %v3986_v1 = vpop.permute.xlu1 %3985 }
 0x42d   :  { %v4034_v61 = vadd.f32 %v4026_v11, %v3981_v50  ;;  %v4067_v57 = vadd.f32 %v4059_v13, %v3981_v50  ;;  %v4100_v63 = vadd.f32 %v4092_v38, %v3981_v50  ;;  %v4133_v28 = vadd.f32 %v4125_v7, %v3981_v50 }
 0x42e   :  { %v4166_v32 = vadd.f32 %v4158_v51, %v3981_v50  ;;  %v4199_v44 = vadd.f32 %v4191_v30, %v3981_v50  ;;  %v4232_v46 = vadd.f32 %v4224_v35, %v3981_v50  ;;  %v4010_v60 = vmax.f32 %v4002_v43, 0.0 }
 0x42f   :  { %v4042_v47 = vmax.f32 %v4034_v61, 0.0  ;;  %v4075_v18 = vmax.f32 %v4067_v57, 0.0  ;;  %v4108_v22 = vmax.f32 %v4100_v63, 0.0  ;;  %v4141_v34 = vmax.f32 %v4133_v28, 0.0 }
 0x430   :  { %v4174_v4 = vmax.f32 %v4166_v32, 0.0  ;;  %v4207_v23 = vmax.f32 %v4199_v44, 0.0  ;;  %v4240_v55 = vmax.f32 %v4232_v46, 0.0  ;;  %4018 = vst.msk [vmem:[%s8879_s5 + $0x20] sm:$0xff] %vm2661_vm2, %v4010_v60  ;;  %v4265_v20 = vadd.f32 %v4257_v0, %v3981_v50  ;;  %v9267_v46 = vld [vmem:[#allocation26_spill] sm:$0xff] }
 0x431   :  { %5080 = vst.msk [vmem:[%s8879_s5 + $0x60] sm:$0xff] %vm2661_vm2, %v4042_v47  ;;  %5088 = vst.msk [vmem:[%s8879_s5 + $0xa0] sm:$0xff] %vm2661_vm2, %v4075_v18  ;;  %v4298_v11 = vadd.f32 %v4290_v3, %v3981_v50  ;;  %v4331_v13 = vadd.f32 %v4323_v36, %v3981_v50  ;;  %v4364_v38 = vadd.f32 %v4356_v54, %v3981_v50  ;;  %v9268_v47 = vld [vmem:[#allocation27_spill] sm:$0xff] }
 0x432   :  { %5096 = vst.msk [vmem:[%s8879_s5 + $0xe0] sm:$0xff] %vm2661_vm2, %v4108_v22  ;;  %5104 = vst.msk [vmem:[%s8879_s5 + $0x120] sm:$0xff] %vm2661_vm2, %v4141_v34  ;;  %v4397_v7 = vadd.f32 %v4389_v39, %v3981_v50  ;;  %v4430_v51 = vadd.f32 %v4422_v9, %v3981_v50  ;;  %v4463_v30 = vadd.f32 %v4455_v33, %v3981_v50  ;;  %v4273_v0 = vmax.f32 %v4265_v20, 0.0  ;;  %v9269_v22 = vld [vmem:[#allocation42_spill] sm:$0xff] }
 0x433   :  { %5112 = vst.msk [vmem:[%s8879_s5 + $0x160] sm:$0xff] %vm2661_vm2, %v4174_v4  ;;  %5120 = vst.msk [vmem:[%s8879_s5 + $0x1a0] sm:$0xff] %vm2661_vm2, %v4207_v23  ;;  %v4496_v35 = vadd.f32 %v4488_v48, %v3981_v50  ;;  %v4306_v3 = vmax.f32 %v4298_v11, 0.0  ;;  %v4339_v36 = vmax.f32 %v4331_v13, 0.0  ;;  %v4372_v54 = vmax.f32 %v4364_v38, 0.0  ;;  %v9270_v4 = vld [vmem:[#allocation43_spill] sm:$0xff]  ;;  %v3991_v38 = vpop.permute.xlu0 %3990 }
 0x434   :  { %5128 = vst.msk [vmem:[%s8879_s5 + $0x1e0] sm:$0xff] %vm2661_vm2, %v4240_v55  ;;  %v4405_v59 = vmax.f32 %v4397_v7, 0.0  ;;  %v4438_v6 = vmax.f32 %v4430_v51, 0.0  ;;  %v4471_v19 = vmax.f32 %v4463_v30, 0.0  ;;  %5136 = vst.msk [vmem:[%s8879_s5 + $0x220] sm:$0xff] %vm2661_vm2, %v4273_v0  ;;  %v4003_v39 = vadd.f32 %v3986_v1, %v3955_v21  ;;  %v9271_v55 = vld [vmem:[#allocation58_spill] sm:$0xff] }
 0x435   :  { %v4504_v53 = vmax.f32 %v4496_v35, 0.0  ;;  %5144 = vst.msk [vmem:[%s8879_s5 + $0x260] sm:$0xff] %vm2661_vm2, %v4306_v3  ;;  %5152 = vst.msk [vmem:[%s8879_s5 + $0x2a0] sm:$0xff] %vm2661_vm2, %v4339_v36  ;;  %v4035_v9 = vadd.f32 %v4027_v49, %v3986_v1  ;;  %v4068_v33 = vadd.f32 %v4060_v2, %v3986_v1  ;;  %v4101_v48 = vadd.f32 %v4093_v40, %v3986_v1  ;;  %v9272_v11 = vld [vmem:[#allocation59_spill] sm:$0xff]  ;;  %v9273_v7 = vld [vmem:[#allocation72_spill] sm:$0xff] }
 0x436   :  { %5160 = vst.msk [vmem:[%s8879_s5 + $0x2e0] sm:$0xff] %vm2661_vm2, %v4372_v54  ;;  %5168 = vst.msk [vmem:[%s8879_s5 + $0x320] sm:$0xff] %vm2661_vm2, %v4405_v59  ;;  %v4134_v21 = vadd.f32 %v8507_v16, %v3986_v1  ;;  %v4167_v49 = vadd.f32 %v8510_v31, %v3986_v1  ;;  %v4200_v2 = vadd.f32 %v8513_v42, %v3986_v1  ;;  %v4011_v50 = vmax.f32 %v4003_v39, 0.0  ;;  %v9274_v30 = vld [vmem:[#allocation73_spill] sm:$0xff]  ;;  %v9276_v3 = vld [vmem:[#allocation86_spill] sm:$0xff] }
 0x437   :  { %5176 = vst.msk [vmem:[%s8879_s5 + $0x360] sm:$0xff] %vm2661_vm2, %v4438_v6  ;;  %5184 = vst.msk [vmem:[%s8879_s5 + $0x3a0] sm:$0xff] %vm2661_vm2, %v4471_v19  ;;  %v4233_v40 = vadd.f32 %v8516_v8, %v3986_v1  ;;  %v4043_v25 = vmax.f32 %v4035_v9, 0.0  ;;  %v4076_v17 = vmax.f32 %v4068_v33, 0.0  ;;  %v4109_v52 = vmax.f32 %v4101_v48, 0.0  ;;  %v9277_v54 = vld [vmem:[#allocation100_spill] sm:$0xff] }
 0x438   :  { %5192 = vst.msk [vmem:[%s8879_s5 + $0x3e0] sm:$0xff] %vm2661_vm2, %v4504_v53  ;;  %v4142_v58 = vmax.f32 %v4134_v21, 0.0  ;;  %v4175_v62 = vmax.f32 %v4167_v49, 0.0  ;;  %v4208_v5 = vmax.f32 %v4200_v2, 0.0  ;;  %4019 = vst.msk [vmem:[%s8879_s5 + $0x28] sm:$0xff] %vm2661_vm2, %v4011_v50  ;;  %v4266_v16 = vadd.f32 %v8519_v14, %v3986_v1  ;;  %v9278_v6 = vld [vmem:[#allocation102_spill] sm:$0xff] }
 0x439   :  { %v4241_v56 = vmax.f32 %v4233_v40, 0.0  ;;  %5081 = vst.msk [vmem:[%s8879_s5 + $0x68] sm:$0xff] %vm2661_vm2, %v4043_v25  ;;  %5089 = vst.msk [vmem:[%s8879_s5 + $0xa8] sm:$0xff] %vm2661_vm2, %v4076_v17  ;;  %v4299_v31 = vadd.f32 %v8522_v10, %v3986_v1  ;;  %v4332_v42 = vadd.f32 %v8525_v15, %v3986_v1  ;;  %v4365_v8 = vadd.f32 %v8528_v41, %v3986_v1  ;;  %v9279_v53 = vld [vmem:[#allocation116_spill] sm:$0xff]  ;;  %v9280_v9 = vld [vmem:[#allocation118_spill] sm:$0xff] }
 0x43a   :  { %5097 = vst.msk [vmem:[%s8879_s5 + $0xe8] sm:$0xff] %vm2661_vm2, %v4109_v52  ;;  %5105 = vst.msk [vmem:[%s8879_s5 + $0x128] sm:$0xff] %vm2661_vm2, %v4142_v58  ;;  %v4398_v14 = vadd.f32 %v8531_v27, %v3986_v1  ;;  %v4431_v10 = vadd.f32 %v8534_v37, %v3986_v1  ;;  %v4464_v15 = vadd.f32 %v8537_v29, %v3986_v1  ;;  %v4274_v24 = vmax.f32 %v4266_v16, 0.0  ;;  %v9265_v27 = vld [vmem:[#allocation10_spill] sm:$0xff]  ;;  %v9266_v29 = vld [vmem:[#allocation11_spill] sm:$0xff] }
 0x43b   :  { %5113 = vst.msk [vmem:[%s8879_s5 + $0x168] sm:$0xff] %vm2661_vm2, %v4175_v62  ;;  %5121 = vst.msk [vmem:[%s8879_s5 + $0x1a8] sm:$0xff] %vm2661_vm2, %v4208_v5  ;;  %v4497_v41 = vadd.f32 %v8540_v45, %v3986_v1  ;;  %v4307_v43 = vmax.f32 %v4299_v31, 0.0  ;;  %v4340_v61 = vmax.f32 %v4332_v42, 0.0  ;;  %v4373_v57 = vmax.f32 %v4365_v8, 0.0  ;;  %v9275_v1 = vld [vmem:[#allocation84_spill] sm:$0xff] }
 0x43c   :  { %5129 = vst.msk [vmem:[%s8879_s5 + $0x1e8] sm:$0xff] %vm2661_vm2, %v4241_v56  ;;  %v4406_v63 = vmax.f32 %v4398_v14, 0.0  ;;  %v4439_v28 = vmax.f32 %v4431_v10, 0.0  ;;  %v4472_v32 = vmax.f32 %v4464_v15, 0.0  ;;  %5137 = vst.msk [vmem:[%s8879_s5 + $0x228] sm:$0xff] %vm2661_vm2, %v4274_v24  ;;  %v3956_v37 = vmul.f32 %v8370_v12, %v9265_v27 }
 0x43d   :  { %v4505_v44 = vmax.f32 %v4497_v41, 0.0  ;;  %5145 = vst.msk [vmem:[%s8879_s5 + $0x268] sm:$0xff] %vm2661_vm2, %v4307_v43  ;;  %5153 = vst.msk [vmem:[%s8879_s5 + $0x2a8] sm:$0xff] %vm2661_vm2, %v4340_v61  ;;  %v4028_v45 = vmul.f32 %v8370_v12, %v9266_v29  ;;  %v4061_v60 = vmul.f32 %v8370_v12, %v9267_v46  ;;  %v4094_v18 = vmul.f32 %v8370_v12, %v9268_v47  ;;  %v9281_v29 = vld [vmem:[#allocation12_spill] sm:$0xff]  ;;  %v9282_v46 = vld [vmem:[#allocation14_spill] sm:$0xff] }
 0x43e   :  { %5161 = vst.msk [vmem:[%s8879_s5 + $0x2e8] sm:$0xff] %vm2661_vm2, %v4373_v57  ;;  %5169 = vst.msk [vmem:[%s8879_s5 + $0x328] sm:$0xff] %vm2661_vm2, %v4406_v63  ;;  %v4127_v34 = vmul.f32 %v8370_v12, %v9269_v22  ;;  %v4160_v23 = vmul.f32 %v8370_v12, %v9270_v4  ;;  %v4193_v20 = vmul.f32 %v8370_v12, %v9271_v55  ;;  %v9283_v47 = vld [vmem:[#allocation28_spill] sm:$0xff]  ;;  %v9284_v22 = vld [vmem:[#allocation30_spill] sm:$0xff] }
 0x43f   :  { %5177 = vst.msk [vmem:[%s8879_s5 + $0x368] sm:$0xff] %vm2661_vm2, %v4439_v28  ;;  %5185 = vst.msk [vmem:[%s8879_s5 + $0x3a8] sm:$0xff] %vm2661_vm2, %v4472_v32  ;;  %v4226_v13 = vmul.f32 %v8370_v12, %v9272_v11  ;;  %v4259_v51 = vmul.f32 %v8370_v12, %v9273_v7  ;;  %v4292_v35 = vmul.f32 %v8370_v12, %v9274_v30  ;;  %v9285_v4 = vld [vmem:[#allocation44_spill] sm:$0xff]  ;;  %v9286_v55 = vld [vmem:[#allocation46_spill] sm:$0xff] }
 0x440   :  { %5193 = vst.msk [vmem:[%s8879_s5 + $0x3e8] sm:$0xff] %vm2661_vm2, %v4505_v44  ;;  %v4325_v0 = vmul.f32 %v8370_v12, %v9275_v1  ;;  %v4358_v36 = vmul.f32 %v8370_v12, %v9276_v3  ;;  %v4391_v59 = vmul.f32 %v8370_v12, %v9277_v54  ;;  %v4424_v19 = vmul.f32 %v8370_v12, %v9278_v6  ;;  %v9287_v11 = vld [vmem:[#allocation60_spill] sm:$0xff]  ;;  %v9289_v30 = vld [vmem:[#allocation74_spill] sm:$0xff]  ;;  %v9291_v3 = vld [vmem:[#allocation87_spill] sm:$0xff] }
 0x441   :  { %v4457_v39 = vmul.f32 %v8370_v12, %v9279_v53  ;;  %v4490_v33 = vmul.f32 %v8370_v12, %v9280_v9  ;;  %v4004_v48 = vadd.f32 %v3991_v38, %v3956_v37  ;;  %v4036_v21 = vadd.f32 %v4028_v45, %v3991_v38  ;;  %v9290_v1 = vld [vmem:[#allocation76_spill] sm:$0xff]  ;;  %v9292_v54 = vld [vmem:[#allocation89_spill] sm:$0xff]  ;;  %v9293_v6 = vld [vmem:[#allocation103_spill] sm:$0xff] }
 0x442   :  { %v4069_v49 = vadd.f32 %v4061_v60, %v3991_v38  ;;  %v4102_v2 = vadd.f32 %v4094_v18, %v3991_v38  ;;  %v4135_v40 = vadd.f32 %v4127_v34, %v3991_v38  ;;  %v4168_v50 = vadd.f32 %v4160_v23, %v3991_v38  ;;  %v9294_v53 = vld [vmem:[#allocation105_spill] sm:$0xff]  ;;  %v9295_v9 = vld [vmem:[#allocation119_spill] sm:$0xff] }
 0x443   :  { %v4201_v25 = vadd.f32 %v4193_v20, %v3991_v38  ;;  %v4234_v17 = vadd.f32 %v4226_v13, %v3991_v38  ;;  %v4012_v52 = vmax.f32 %v4004_v48, 0.0  ;;  %v4044_v58 = vmax.f32 %v4036_v21, 0.0  ;;  %v9296_v48 = vld [vmem:[#allocation121_spill] sm:$0xff] }
 0x444   :  { %v4077_v62 = vmax.f32 %v4069_v49, 0.0  ;;  %v4110_v5 = vmax.f32 %v4102_v2, 0.0  ;;  %v4143_v56 = vmax.f32 %v4135_v40, 0.0  ;;  %v4176_v16 = vmax.f32 %v4168_v50, 0.0 }
 0x445   :  { %v4209_v31 = vmax.f32 %v4201_v25, 0.0  ;;  %v4242_v42 = vmax.f32 %v4234_v17, 0.0  ;;  %4020 = vst.msk [vmem:[%s8879_s5 + $0x30] sm:$0xff] %vm2661_vm2, %v4012_v52  ;;  %5082 = vst.msk [vmem:[%s8879_s5 + $0x70] sm:$0xff] %vm2661_vm2, %v4044_v58  ;;  %v4267_v12 = vadd.f32 %v4259_v51, %v3991_v38  ;;  %v4300_v8 = vadd.f32 %v4292_v35, %v3991_v38  ;;  %v3996_v51 = vpop.permute.xlu1 %3995 }
 0x446   :  { %5090 = vst.msk [vmem:[%s8879_s5 + $0xb0] sm:$0xff] %vm2661_vm2, %v4077_v62  ;;  %5098 = vst.msk [vmem:[%s8879_s5 + $0xf0] sm:$0xff] %vm2661_vm2, %v4110_v5  ;;  %v4333_v14 = vadd.f32 %v4325_v0, %v3991_v38  ;;  %v4366_v10 = vadd.f32 %v4358_v36, %v3991_v38  ;;  %v4399_v15 = vadd.f32 %v4391_v59, %v3991_v38 }
 0x447   :  { %5106 = vst.msk [vmem:[%s8879_s5 + $0x130] sm:$0xff] %vm2661_vm2, %v4143_v56  ;;  %5114 = vst.msk [vmem:[%s8879_s5 + $0x170] sm:$0xff] %vm2661_vm2, %v4176_v16  ;;  %v4432_v41 = vadd.f32 %v4424_v19, %v3991_v38  ;;  %v4465_v24 = vadd.f32 %v4457_v39, %v3991_v38  ;;  %v4498_v43 = vadd.f32 %v4490_v33, %v3991_v38  ;;  %v4275_v61 = vmax.f32 %v4267_v12, 0.0  ;;  %v9288_v38 = vld [vmem:[#allocation62_spill] sm:$0xff] }
 0x448   :  { %5122 = vst.msk [vmem:[%s8879_s5 + $0x1b0] sm:$0xff] %vm2661_vm2, %v4209_v31  ;;  %5130 = vst.msk [vmem:[%s8879_s5 + $0x1f0] sm:$0xff] %vm2661_vm2, %v4242_v42  ;;  %v4308_v57 = vmax.f32 %v4300_v8, 0.0  ;;  %v4341_v63 = vmax.f32 %v4333_v14, 0.0  ;;  %v4374_v28 = vmax.f32 %v4366_v10, 0.0  ;;  %v4407_v32 = vmax.f32 %v4399_v15, 0.0 }
 0x449   :  { %v4440_v44 = vmax.f32 %v4432_v41, 0.0  ;;  %v4473_v27 = vmax.f32 %v4465_v24, 0.0  ;;  %v4506_v37 = vmax.f32 %v4498_v43, 0.0  ;;  %5138 = vst.msk [vmem:[%s8879_s5 + $0x230] sm:$0xff] %vm2661_vm2, %v4275_v61  ;;  %v3957_v45 = vmul.f32 %v8412_v26, %v9281_v29 }
 0x44a   :  { %5146 = vst.msk [vmem:[%s8879_s5 + $0x270] sm:$0xff] %vm2661_vm2, %v4308_v57  ;;  %5154 = vst.msk [vmem:[%s8879_s5 + $0x2b0] sm:$0xff] %vm2661_vm2, %v4341_v63  ;;  %v4029_v60 = vmul.f32 %v8412_v26, %v9282_v46  ;;  %v4062_v18 = vmul.f32 %v8412_v26, %v9283_v47  ;;  %v4095_v34 = vmul.f32 %v8412_v26, %v9284_v22 }
 0x44b   :  { %5162 = vst.msk [vmem:[%s8879_s5 + $0x2f0] sm:$0xff] %vm2661_vm2, %v4374_v28  ;;  %5170 = vst.msk [vmem:[%s8879_s5 + $0x330] sm:$0xff] %vm2661_vm2, %v4407_v32  ;;  %v4128_v23 = vmul.f32 %v8412_v26, %v9285_v4  ;;  %v4161_v20 = vmul.f32 %v8412_v26, %v9286_v55  ;;  %v4194_v13 = vmul.f32 %v8412_v26, %v9287_v11 }
 0x44c   :  { %5178 = vst.msk [vmem:[%s8879_s5 + $0x370] sm:$0xff] %vm2661_vm2, %v4440_v44  ;;  %5186 = vst.msk [vmem:[%s8879_s5 + $0x3b0] sm:$0xff] %vm2661_vm2, %v4473_v27  ;;  %v4227_v7 = vmul.f32 %v8412_v26, %v9288_v38  ;;  %v4260_v35 = vmul.f32 %v8412_v26, %v9289_v30  ;;  %v4293_v0 = vmul.f32 %v8412_v26, %v9290_v1 }
 0x44d   :  { %5194 = vst.msk [vmem:[%s8879_s5 + $0x3f0] sm:$0xff] %vm2661_vm2, %v4506_v37  ;;  %v4326_v36 = vmul.f32 %v8412_v26, %v9291_v3  ;;  %v4359_v59 = vmul.f32 %v8412_v26, %v9292_v54  ;;  %v4392_v19 = vmul.f32 %v8412_v26, %v9293_v6  ;;  %v4425_v39 = vmul.f32 %v8412_v26, %v9294_v53 }
 0x44e   :  { %v4458_v33 = vmul.f32 %v8412_v26, %v9295_v9  ;;  %v4491_v21 = vmul.f32 %v8412_v26, %v9296_v48  ;;  %v4005_v49 = vadd.f32 %v3996_v51, %v3957_v45  ;;  %v4037_v2 = vadd.f32 %v4029_v60, %v3996_v51 }
 0x44f   :  { %v4070_v40 = vadd.f32 %v4062_v18, %v3996_v51  ;;  %v4103_v50 = vadd.f32 %v4095_v34, %v3996_v51  ;;  %v4136_v25 = vadd.f32 %v4128_v23, %v3996_v51  ;;  %v4169_v17 = vadd.f32 %v4161_v20, %v3996_v51 }
 0x450   :  { %v4202_v52 = vadd.f32 %v4194_v13, %v3996_v51  ;;  %v4235_v58 = vadd.f32 %v4227_v7, %v3996_v51  ;;  %v4013_v62 = vmax.f32 %v4005_v49, 0.0  ;;  %v4045_v5 = vmax.f32 %v4037_v2, 0.0 }
 0x451   :  { %v4078_v56 = vmax.f32 %v4070_v40, 0.0  ;;  %v4111_v16 = vmax.f32 %v4103_v50, 0.0  ;;  %v4144_v31 = vmax.f32 %v4136_v25, 0.0  ;;  %v4177_v42 = vmax.f32 %v4169_v17, 0.0 }
 0x452   :  { %v4210_v12 = vmax.f32 %v4202_v52, 0.0  ;;  %v4243_v8 = vmax.f32 %v4235_v58, 0.0  ;;  %4021 = vst.msk [vmem:[%s8879_s5 + $0x38] sm:$0xff] %vm2661_vm2, %v4013_v62  ;;  %5083 = vst.msk [vmem:[%s8879_s5 + $0x78] sm:$0xff] %vm2661_vm2, %v4045_v5  ;;  %v4268_v26 = vadd.f32 %v4260_v35, %v3996_v51  ;;  %v4301_v14 = vadd.f32 %v4293_v0, %v3996_v51 }
 0x453   :  { %5091 = vst.msk [vmem:[%s8879_s5 + $0xb8] sm:$0xff] %vm2661_vm2, %v4078_v56  ;;  %5099 = vst.msk [vmem:[%s8879_s5 + $0xf8] sm:$0xff] %vm2661_vm2, %v4111_v16  ;;  %v4334_v10 = vadd.f32 %v4326_v36, %v3996_v51  ;;  %v4367_v15 = vadd.f32 %v4359_v59, %v3996_v51  ;;  %v4400_v41 = vadd.f32 %v4392_v19, %v3996_v51 }
 0x454   :  { %5107 = vst.msk [vmem:[%s8879_s5 + $0x138] sm:$0xff] %vm2661_vm2, %v4144_v31  ;;  %5115 = vst.msk [vmem:[%s8879_s5 + $0x178] sm:$0xff] %vm2661_vm2, %v4177_v42  ;;  %v4433_v24 = vadd.f32 %v4425_v39, %v3996_v51  ;;  %v4466_v43 = vadd.f32 %v4458_v33, %v3996_v51  ;;  %v4499_v61 = vadd.f32 %v4491_v21, %v3996_v51  ;;  %v4276_v57 = vmax.f32 %v4268_v26, 0.0 }
 0x455   :  { %5123 = vst.msk [vmem:[%s8879_s5 + $0x1b8] sm:$0xff] %vm2661_vm2, %v4210_v12  ;;  %5131 = vst.msk [vmem:[%s8879_s5 + $0x1f8] sm:$0xff] %vm2661_vm2, %v4243_v8  ;;  %v4309_v63 = vmax.f32 %v4301_v14, 0.0  ;;  %v4342_v28 = vmax.f32 %v4334_v10, 0.0  ;;  %v4375_v32 = vmax.f32 %v4367_v15, 0.0  ;;  %v4408_v44 = vmax.f32 %v4400_v41, 0.0 }
 0x456   :  { %v4441_v27 = vmax.f32 %v4433_v24, 0.0  ;;  %v4474_v37 = vmax.f32 %v4466_v43, 0.0  ;;  %v4507_v29 = vmax.f32 %v4499_v61, 0.0  ;;  %5139 = vst.msk [vmem:[%s8879_s5 + $0x238] sm:$0xff] %vm2661_vm2, %v4276_v57 }
 0x457   :  { %5147 = vst.msk [vmem:[%s8879_s5 + $0x278] sm:$0xff] %vm2661_vm2, %v4309_v63  ;;  %5155 = vst.msk [vmem:[%s8879_s5 + $0x2b8] sm:$0xff] %vm2661_vm2, %v4342_v28 }
 0x458   :  { %5163 = vst.msk [vmem:[%s8879_s5 + $0x2f8] sm:$0xff] %vm2661_vm2, %v4375_v32  ;;  %5171 = vst.msk [vmem:[%s8879_s5 + $0x338] sm:$0xff] %vm2661_vm2, %v4408_v44 }
 0x459   :  { %5179 = vst.msk [vmem:[%s8879_s5 + $0x378] sm:$0xff] %vm2661_vm2, %v4441_v27  ;;  %5187 = vst.msk [vmem:[%s8879_s5 + $0x3b8] sm:$0xff] %vm2661_vm2, %v4474_v37 }
 0x45a   :  { %5195 = vst.msk [vmem:[%s8879_s5 + $0x3f8] sm:$0xff] %vm2661_vm2, %v4507_v29 }

// kernel: generator_forward.6
= control target key start
LH: loop header
LB: loop body
LE: loop exit
PB: predicated region body
PF: predicated region fallthrough
CT: control target
= control target key end

     0   :  { %v887_v0 = vmov 0.0   ;;  %vm888_vm0 = vmmov 0   ;;  %v889_v4 = vmov 0   ;;  %s1158_s1 = inlined_call_operand.vmem [shape: bf16[4,128,128], index: 1, kind: input, shape index: {}]   ;;  %s1159_s0 = inlined_call_operand.vmem [shape: bf16[4,16,128], index: 0, kind: input, shape index: {}]   ;;  %s1160_s2 = inlined_call_operand.vmem [shape: f32[16,1], index: 2, kind: input, shape index: {}]   ;;  %s1161_s3 = inlined_call_operand.vmem [shape: f32[16,1], index: 3, kind: input, shape index: {}]   ;;  %s1162_s4 = inlined_call_operand.vmem [shape: f32[16,1], index: 4, kind: input, shape index: {}]   ;;  %s1163_s5 = inlined_call_operand.vmem [shape: f32[4,16,128], index: 5, kind: output, shape index: {}]  }
   0x1   :  { %762 = vmatprep.subr.bf16.mxu0 %v887_v0  ;;  %782 = vmatprep.subr.bf16.mxu1 %v887_v0  ;;  %v847_v1 = vld [vmem:[%s1158_s1 + $0x38] sm:$0xff]   ;;  %v849_v3 = vld [vmem:[%s1158_s1 + $0x30] sm:$0xff]   ;;  %v851_v6 = vld [vmem:[%s1158_s1 + $0x28] sm:$0xff]  }
   0x2   :  { %v848_v2 = vld [vmem:[%s1158_s1 + $0x78] sm:$0xff]   ;;  %778 = vmatprep.mubr.msk.bf16.mxu0 %vm888_vm0, %v887_v0  ;;  %798 = vmatprep.mubr.msk.bf16.mxu1 %vm888_vm0, %v887_v0  ;;  %v850_v5 = vld [vmem:[%s1158_s1 + $0x70] sm:$0xff]   ;;  %v852_v7 = vld [vmem:[%s1158_s1 + $0x68] sm:$0xff]  }
   0x3   :  { %763 = vmatpush3.bf16.msra.mxu0 %v847_v1  ;;  %845 = vset.pattern.permute.xlu0 %v889_v4  ;;  %v853_v8 = vld [vmem:[%s1158_s1 + $0x20] sm:$0xff]   ;;  %v855_v10 = vld [vmem:[%s1158_s1 + $0x18] sm:$0xff]   ;;  %v857_v12 = vld [vmem:[%s1158_s1 + $0x10] sm:$0xff]  }
   0x4   :  { %783 = vmatpush3.bf16.msra.mxu1 %v848_v2  ;;  %764 = vmatprep.subr.bf16.mxu0 %v887_v0  ;;  %v854_v9 = vld [vmem:[%s1158_s1 + $0x60] sm:$0xff]   ;;  %v856_v11 = vld [vmem:[%s1158_s1 + $0x58] sm:$0xff]   ;;  %v858_v13 = vld [vmem:[%s1158_s1 + $0x50] sm:$0xff]  }
   0x5   :  { %784 = vmatprep.subr.bf16.mxu1 %v887_v0  ;;  %846 = vset.pattern.permute.xlu1 %v889_v4  ;;  %v859_v14 = vld [vmem:[%s1158_s1 + $0x8] sm:$0xff]   ;;  %v861_v16 = vld [vmem:[%s1158_s1] sm:$0xff]   ;;  %v865_v20 = vld [vmem:[%s1158_s1 + $0xb8] sm:$0xff]  }
   0x6   :  { %v860_v15 = vld [vmem:[%s1158_s1 + $0x48] sm:$0xff]   ;;  %v862_v17 = vld [vmem:[%s1158_s1 + $0x40] sm:$0xff]   ;;  %v866_v21 = vld [vmem:[%s1158_s1 + $0xf8] sm:$0xff]  }
   0x7   :  { %765 = vmatpush3.bf16.msra.mxu0 %v849_v3  ;;  %v863_v18 = vld [vmem:[%s1159_s0] sm:$0xff]   ;;  %v864_v19 = vld [vmem:[%s1159_s0 + $0x8] sm:$0xff]   ;;  %v867_v22 = vld [vmem:[%s1158_s1 + $0xb0] sm:$0xff]  }
   0x8   :  { %785 = vmatpush3.bf16.msra.mxu1 %v850_v5  ;;  %766 = vmatprep.subr.bf16.mxu0 %v887_v0  ;;  %v868_v23 = vld [vmem:[%s1158_s1 + $0xf0] sm:$0xff]   ;;  %v21_v24 = vld [vmem:[%s1160_s2] sm:$0xff]  ;;  %v869_v25 = vld [vmem:[%s1158_s1 + $0xa8] sm:$0xff]  }
   0x9   :  { %786 = vmatprep.subr.bf16.mxu1 %v887_v0  ;;  %43 = vperm.xlu0 %845, %v21_v24   ;;  %v22_v26 = vld [vmem:[%s1160_s2 + $0x8] sm:$0xff]  ;;  %v871_v28 = vld [vmem:[%s1158_s1 + $0xa0] sm:$0xff]   ;;  %v873_v30 = vld [vmem:[%s1158_s1 + $0x98] sm:$0xff]  }
   0xa   :  { %v870_v27 = vld [vmem:[%s1158_s1 + $0xe8] sm:$0xff]   ;;  %v872_v29 = vld [vmem:[%s1158_s1 + $0xe0] sm:$0xff]   ;;  %v874_v31 = vld [vmem:[%s1158_s1 + $0xd8] sm:$0xff]  }
   0xb   :  { %767 = vmatpush3.bf16.msra.mxu0 %v851_v6  ;;  %v875_v32 = vld [vmem:[%s1158_s1 + $0x90] sm:$0xff]   ;;  %v877_v34 = vld [vmem:[%s1158_s1 + $0x88] sm:$0xff]   ;;  %v879_v36 = vld [vmem:[%s1158_s1 + $0x80] sm:$0xff]  }
   0xc   :  { %787 = vmatpush3.bf16.msra.mxu1 %v852_v7  ;;  %768 = vmatprep.subr.bf16.mxu0 %v887_v0  ;;  %v876_v33 = vld [vmem:[%s1158_s1 + $0xd0] sm:$0xff]   ;;  %v878_v35 = vld [vmem:[%s1158_s1 + $0xc8] sm:$0xff]   ;;  %v880_v37 = vld [vmem:[%s1158_s1 + $0xc0] sm:$0xff]  }
   0xd   :  { %788 = vmatprep.subr.bf16.mxu1 %v887_v0  ;;  %48 = vperm.xlu0 %845, %v22_v26   ;;  %v881_v38 = vld [vmem:[%s1159_s0 + $0x10] sm:$0xff]   ;;  %v882_v39 = vld [vmem:[%s1159_s0 + $0x18] sm:$0xff]  }
   0xf   :  { %769 = vmatpush3.bf16.msra.mxu0 %v853_v8 }
  0x10   :  { %789 = vmatpush3.bf16.msra.mxu1 %v854_v9  ;;  %770 = vmatprep.subr.bf16.mxu0 %v887_v0 }
  0x11   :  { %790 = vmatprep.subr.bf16.mxu1 %v887_v0 }
  0x13   :  { %771 = vmatpush3.bf16.msra.mxu0 %v855_v10 }
  0x14   :  { %791 = vmatpush3.bf16.msra.mxu1 %v856_v11  ;;  %772 = vmatprep.subr.bf16.mxu0 %v887_v0 }
  0x15   :  { %792 = vmatprep.subr.bf16.mxu1 %v887_v0 }
  0x17   :  { %773 = vmatpush3.bf16.msra.mxu0 %v857_v12 }
  0x18   :  { %793 = vmatpush3.bf16.msra.mxu1 %v858_v13  ;;  %774 = vmatprep.subr.bf16.mxu0 %v887_v0 }
  0x19   :  { %794 = vmatprep.subr.bf16.mxu1 %v887_v0 }
  0x1b   :  { %775 = vmatpush3.bf16.msra.mxu0 %v859_v14 }
  0x1c   :  { %795 = vmatpush3.bf16.msra.mxu1 %v860_v15  ;;  %776 = vmatprep.subr.bf16.mxu0 %v887_v0 }
  0x1d   :  { %796 = vmatprep.subr.bf16.mxu1 %v887_v0 }
  0x1f   :  { %777 = vmatpush3.bf16.msra.mxu0 %v861_v16 }
  0x20   :  { %797 = vmatpush3.bf16.msra.mxu1 %v862_v17  ;;  %802 = vmatprep.subr.bf16.mxu0 %v887_v0 }
  0x21   :  { %822 = vmatprep.subr.bf16.mxu1 %v887_v0 }
  0x22   :  { %779 = vmatmul.mubr.bf16.vlgmr.msra.gmra.mxu0 %v863_v18 }
  0x23   :  { %799 = vmatmul.mubr.bf16.vlgmr.msra.gmra.mxu1 %v864_v19  ;;  %803 = vmatpush3.bf16.msra.mxu0 %v865_v20 }
  0x24   :  { %823 = vmatpush3.bf16.msra.mxu1 %v866_v21  ;;  %804 = vmatprep.subr.bf16.mxu0 %v887_v0 }
  0x25   :  { %824 = vmatprep.subr.bf16.mxu1 %v887_v0  ;;  %818 = vmatprep.mubr.msk.bf16.mxu0 %vm888_vm0, %v887_v0 }
  0x26   :  { %838 = vmatprep.mubr.msk.bf16.mxu1 %vm888_vm0, %v887_v0 }
  0x27   :  { %805 = vmatpush3.bf16.msra.mxu0 %v867_v22 }
  0x28   :  { %825 = vmatpush3.bf16.msra.mxu1 %v868_v23  ;;  %806 = vmatprep.subr.bf16.mxu0 %v887_v0 }
  0x29   :  { %826 = vmatprep.subr.bf16.mxu1 %v887_v0 }
  0x2b   :  { %807 = vmatpush3.bf16.msra.mxu0 %v869_v25 }
  0x2c   :  { %827 = vmatpush3.bf16.msra.mxu1 %v870_v27  ;;  %808 = vmatprep.subr.bf16.mxu0 %v887_v0 }
  0x2d   :  { %828 = vmatprep.subr.bf16.mxu1 %v887_v0 }
  0x2f   :  { %809 = vmatpush3.bf16.msra.mxu0 %v871_v28 }
  0x30   :  { %829 = vmatpush3.bf16.msra.mxu1 %v872_v29  ;;  %810 = vmatprep.subr.bf16.mxu0 %v887_v0 }
  0x31   :  { %830 = vmatprep.subr.bf16.mxu1 %v887_v0 }
  0x33   :  { %811 = vmatpush3.bf16.msra.mxu0 %v873_v30 }
  0x34   :  { %831 = vmatpush3.bf16.msra.mxu1 %v874_v31  ;;  %812 = vmatprep.subr.bf16.mxu0 %v887_v0 }
  0x35   :  { %832 = vmatprep.subr.bf16.mxu1 %v887_v0 }
  0x37   :  { %813 = vmatpush3.bf16.msra.mxu0 %v875_v32 }
  0x38   :  { %833 = vmatpush3.bf16.msra.mxu1 %v876_v33  ;;  %814 = vmatprep.subr.bf16.mxu0 %v887_v0 }
  0x39   :  { %834 = vmatprep.subr.bf16.mxu1 %v887_v0 }
  0x3b   :  { %815 = vmatpush3.bf16.msra.mxu0 %v877_v34 }
  0x3c   :  { %835 = vmatpush3.bf16.msra.mxu1 %v878_v35  ;;  %816 = vmatprep.subr.bf16.mxu0 %v887_v0 }
  0x3d   :  { %836 = vmatprep.subr.bf16.mxu1 %v887_v0 }
  0x3f   :  { %817 = vmatpush3.bf16.msra.mxu0 %v879_v36 }
  0x40   :  { %837 = vmatpush3.bf16.msra.mxu1 %v880_v37 }
  0x42   :  { %819 = vmatmul.mubr.bf16.vlgmr.msra.gmra.mxu0 %v881_v38 }
  0x43   :  { %839 = vmatmul.mubr.bf16.vlgmr.msra.gmra.mxu1 %v882_v39 }
  0x84   :  { %v44_v40 = vpop.permute.xlu0 %43 }
  0x88   :  { %v49_v53 = vpop.permute.xlu0 %48 }
  0xe2   :  { %v139_v41 = vpop.f32.mrf.mxu0 }
  0xe3   :  { %v1074_v42 = vadd.f32 %v139_v41, %v44_v40  ;;  %v254_v43 = vpop.f32.mrf.mxu1 }
  0xe4   :  { %v1076_v44 = vadd.f32 %v254_v43, %v44_v40  ;;  %v780_v45 = vpop.f32.mrf.mxu0 }
  0xe5   :  { %v800_v46 = vpop.f32.mrf.mxu1  ;;  %491 = vadd.xlane.f32.xlu1 %v1074_v42  ;;  %v515_v47 = vmul.f32 %v1074_v42, %v1074_v42 }
  0xe6   :  { %495 = vadd.xlane.f32.xlu0 %v1076_v44  ;;  %v142_v48 = vpop.f32.mrf.mxu0  ;;  %v521_v52 = vmul.f32 %v1076_v44, %v1076_v44 }
  0xe7   :  { %v257_v49 = vpop.f32.mrf.mxu1  ;;  %v1084_v54 = vadd.f32 %v142_v48, %v49_v53 }
  0xe8   :  { %v781_v50 = vpop.f32.mrf.mxu0  ;;  %v1087_v55 = vadd.f32 %v257_v49, %v49_v53 }
  0xe9   :  { %v801_v51 = vpop.f32.mrf.mxu1  ;;  %517 = vadd.xlane.f32.xlu1 %v515_v47  ;;  %v516_v56 = vmul.f32 %v1084_v54, %v1084_v54 }
  0xea   :  { %v522_v57 = vmul.f32 %v1087_v55, %v1087_v55 }
  0xed   :  { %523 = vadd.xlane.f32.xlu1 %v521_v52  ;;  %v558_v52 = vld [vmem:[%s1161_s3 + $0x8] sm:$0xff] }
  0xf1   :  { %493 = vadd.xlane.f32.xlu1 %v1084_v54 }
  0xf5   :  { %497 = vadd.xlane.f32.xlu1 %v1087_v55 }
  0xf9   :  { %519 = vadd.xlane.f32.xlu1 %v516_v56 }
  0xfd   :  { %525 = vadd.xlane.f32.xlu1 %v522_v57 }
 0x102   :  { %v369_v58 = vpop.f32.mrf.mxu0 }
 0x103   :  { %v1094_v59 = vadd.f32 %v369_v58, %v44_v40  ;;  %v484_v60 = vpop.f32.mrf.mxu1 }
 0x104   :  { %v820_v61 = vpop.f32.mrf.mxu0  ;;  %v1097_v0 = vadd.f32 %v484_v60, %v44_v40 }
 0x105   :  { %v840_v62 = vpop.f32.mrf.mxu1  ;;  %499 = vadd.xlane.f32.xlu1 %v1094_v59  ;;  %v527_v6 = vmul.f32 %v1094_v59, %v1094_v59  ;;  %v565_v61 = vld [vmem:[%s1162_s4] sm:$0xff] }
 0x106   :  { %v372_v63 = vpop.f32.mrf.mxu0  ;;  %v533_v9 = vmul.f32 %v1097_v0, %v1097_v0 }
 0x107   :  { %v487_v1 = vpop.f32.mrf.mxu1  ;;  %v1099_v2 = vadd.f32 %v372_v63, %v49_v53 }
 0x108   :  { %v1101_v3 = vadd.f32 %v487_v1, %v49_v53  ;;  %v821_v4 = vpop.f32.mrf.mxu0  ;;  %v557_v53 = vld [vmem:[%s1161_s3] sm:$0xff] }
 0x109   :  { %v841_v5 = vpop.f32.mrf.mxu1  ;;  %503 = vadd.xlane.f32.xlu1 %v1097_v0  ;;  %v528_v7 = vmul.f32 %v1099_v2, %v1099_v2  ;;  %v566_v4 = vld [vmem:[%s1162_s4 + $0x8] sm:$0xff] }
 0x10a   :  { %505 = vadd.xlane.f32.xlu0 %v1101_v3  ;;  %v534_v8 = vmul.f32 %v1101_v3, %v1101_v3 }
 0x10d   :  { %529 = vadd.xlane.f32.xlu1 %v527_v6 }
 0x10e   :  { %531 = vadd.xlane.f32.xlu0 %v528_v7 }
 0x111   :  { %501 = vadd.xlane.f32.xlu1 %v1099_v2 }
 0x112   :  { %537 = vadd.xlane.f32.xlu0 %v534_v8 }
 0x115   :  { %535 = vadd.xlane.f32.xlu1 %v533_v9 }
 0x16e   :  { %v492_v10 = vpop.xlane.xlu1 %491 }
 0x16f   :  { %v496_v18 = vpop.xlane.xlu0 %495 }
 0x170   :  { %v509_v21 = vadd.f32 %v496_v18, %v492_v10 }
 0x172   :  { %v518_v11 = vpop.xlane.xlu1 %517 }
 0x176   :  { %v524_v12 = vpop.xlane.xlu1 %523 }
 0x177   :  { %v541_v29 = vadd.f32 %v524_v12, %v518_v11 }
 0x17a   :  { %v494_v13 = vpop.xlane.xlu1 %493 }
 0x17e   :  { %v498_v14 = vpop.xlane.xlu1 %497 }
 0x17f   :  { %v510_v25 = vadd.f32 %v498_v14, %v494_v13 }
 0x182   :  { %v520_v15 = vpop.xlane.xlu1 %519 }
 0x186   :  { %v526_v16 = vpop.xlane.xlu1 %525 }
 0x187   :  { %v542_v26 = vadd.f32 %v526_v16, %v520_v15 }
 0x18e   :  { %v500_v17 = vpop.xlane.xlu1 %499 }
 0x18f   :  { %v511_v23 = vadd.f32 %v509_v21, %v500_v17 }
 0x192   :  { %v504_v19 = vpop.xlane.xlu1 %503 }
 0x193   :  { %v506_v20 = vpop.xlane.xlu0 %505  ;;  %v513_v27 = vadd.f32 %v511_v23, %v504_v19 }
 0x195   :  { %v547_v33 = vmul.f32 0.001953125, %v513_v27 }
 0x196   :  { %v530_v22 = vpop.xlane.xlu1 %529 }
 0x197   :  { %v532_v24 = vpop.xlane.xlu0 %531  ;;  %v543_v34 = vadd.f32 %v541_v29, %v530_v22  ;;  %v551_v40 = vmul.f32 %v547_v33, %v547_v33 }
 0x198   :  { %v544_v30 = vadd.f32 %v542_v26, %v532_v24 }
 0x19a   :  { %v502_v28 = vpop.xlane.xlu1 %501 }
 0x19b   :  { %v512_v31 = vadd.f32 %v510_v25, %v502_v28  ;;  %v538_v32 = vpop.xlane.xlu0 %537 }
 0x19c   :  { %v546_v36 = vadd.f32 %v544_v30, %v538_v32 }
 0x19d   :  { %v514_v35 = vadd.f32 %v512_v31, %v506_v20 }
 0x19e   :  { %v536_v37 = vpop.xlane.xlu1 %535  ;;  %v550_v43 = vmul.f32 0.001953125, %v546_v36 }
 0x19f   :  { %v548_v38 = vmul.f32 0.001953125, %v514_v35  ;;  %v545_v39 = vadd.f32 %v543_v34, %v536_v37 }
 0x1a1   :  { %v552_v41 = vmul.f32 %v548_v38, %v548_v38  ;;  %v549_v45 = vmul.f32 0.001953125, %v545_v39 }
 0x1a3   :  { %v554_v46 = vsub.f32 %v550_v43, %v552_v41  ;;  %v553_v47 = vsub.f32 %v549_v45, %v551_v40 }
 0x1a5   :  { %v556_v48 = vmax.f32 %v554_v46, 0.0  ;;  %v555_v49 = vmax.f32 %v553_v47, 0.0 }
 0x1a7   :  { %v560_v50 = vadd.f32 1e-05, %v556_v48  ;;  %v559_v51 = vadd.f32 1e-05, %v555_v49 }
 0x1a9   :  { %883 = vrsqrt.f32 %v560_v50 }
 0x1aa   :  { %885 = vrsqrt.f32 %v559_v51 }
 0x1b6   :  { %v884_v56 = vpop.eup %883 }
 0x1b7   :  { %v886_v57 = vpop.eup %885  ;;  %v564_v58 = vmul.f32 %v884_v56, %v558_v52 }
 0x1b8   :  { %v563_v60 = vmul.f32 %v886_v57, %v557_v53 }
 0x1b9   :  { %578 = vperm.xlu0 %845, %v564_v58   ;;  %v568_v1 = vmul.f32 %v564_v58, %v548_v38 }
 0x1ba   :  { %573 = vperm.xlu1 %846, %v563_v60   ;;  %v567_v62 = vmul.f32 %v563_v60, %v547_v33 }
 0x1bb   :  { %v570_v5 = vsub.f32 %v566_v4, %v568_v1 }
 0x1bc   :  { %v569_v63 = vsub.f32 %v565_v61, %v567_v62 }
 0x1be   :  { %585 = vperm.xlu1 %846, %v569_v63  }
 0x1c2   :  { %590 = vperm.xlu1 %846, %v570_v5  }
 0x234   :  { %v579_v11 = vpop.permute.xlu0 %578 }
 0x235   :  { %v574_v6 = vpop.permute.xlu1 %573  ;;  %v582_v17 = vmul.f32 %v579_v11, %v1084_v54  ;;  %v600_v18 = vmul.f32 %v579_v11, %v1087_v55  ;;  %v609_v19 = vmul.f32 %v579_v11, %v1099_v2 }
 0x236   :  { %v581_v7 = vmul.f32 %v574_v6, %v1074_v42  ;;  %v599_v8 = vmul.f32 %v574_v6, %v1076_v44  ;;  %v608_v9 = vmul.f32 %v574_v6, %v1094_v59  ;;  %v617_v10 = vmul.f32 %v574_v6, %v1097_v0 }
 0x237   :  { %v618_v42 = vmul.f32 %v579_v11, %v1101_v3 }
 0x239   :  { %v586_v12 = vpop.permute.xlu1 %585 }
 0x23a   :  { %v593_v13 = vadd.f32 %v586_v12, %v581_v7  ;;  %v601_v14 = vadd.f32 %v599_v8, %v586_v12  ;;  %v610_v15 = vadd.f32 %v608_v9, %v586_v12  ;;  %v619_v16 = vadd.f32 %v617_v10, %v586_v12 }
 0x23c   :  { %v595_v20 = vmax.f32 %v593_v13, 0.0  ;;  %v603_v44 = vmax.f32 %v601_v14, 0.0  ;;  %v612_v21 = vmax.f32 %v610_v15, 0.0  ;;  %v621_v59 = vmax.f32 %v619_v16, 0.0 }
 0x23d   :  { %v591_v22 = vpop.permute.xlu1 %590 }
 0x23e   :  { %597 = vst [vmem:[%s1163_s5] sm:$0xff] %v595_v20  ;;  %720 = vst [vmem:[%s1163_s5 + $0x10] sm:$0xff] %v603_v44  ;;  %v594_v54 = vadd.f32 %v591_v22, %v582_v17  ;;  %v602_v55 = vadd.f32 %v600_v18, %v591_v22  ;;  %v611_v0 = vadd.f32 %v609_v19, %v591_v22 }
 0x23f   :  { %722 = vst [vmem:[%s1163_s5 + $0x20] sm:$0xff] %v612_v21  ;;  %724 = vst [vmem:[%s1163_s5 + $0x30] sm:$0xff] %v621_v59  ;;  %v620_v2 = vadd.f32 %v618_v42, %v591_v22 }
 0x240   :  { %v596_v3 = vmax.f32 %v594_v54, 0.0  ;;  %v604_v23 = vmax.f32 %v602_v55, 0.0  ;;  %v613_v24 = vmax.f32 %v611_v0, 0.0 }
 0x241   :  { %v622_v25 = vmax.f32 %v620_v2, 0.0 }
 0x242   :  { %598 = vst [vmem:[%s1163_s5 + $0x8] sm:$0xff] %v596_v3  ;;  %721 = vst [vmem:[%s1163_s5 + $0x18] sm:$0xff] %v604_v23 }
 0x243   :  { %723 = vst [vmem:[%s1163_s5 + $0x28] sm:$0xff] %v613_v24  ;;  %725 = vst [vmem:[%s1163_s5 + $0x38] sm:$0xff] %v622_v25 }

// kernel: generator_forward.7
= control target key start
LH: loop header
LB: loop body
LE: loop exit
PB: predicated region body
PF: predicated region fallthrough
CT: control target
= control target key end

     0   :  { %v1260_v1 = vmov 0   ;;  %vm124_vm0 = vcmask 523264   ;;  %s1629_s1 = inlined_call_operand.vmem [shape: bf16[4,64,512], index: 1, kind: input, shape index: {}]   ;;  %s1630_s3 = inlined_call_operand.vmem [shape: f32[3,1], index: 3, kind: input, shape index: {}]   ;;  %s1631_s4 = inlined_call_operand.vmem [shape: f32[3,1], index: 4, kind: input, shape index: {}]   ;;  %s1632_s0 = inlined_call_operand.vmem [shape: bf16[4,3,64], index: 0, kind: input, shape index: {}]   ;;  %s1633_s2 = inlined_call_operand.vmem [shape: f32[3,1], index: 2, kind: input, shape index: {}]   ;;  %s1634_s5 = inlined_call_operand.vmem [shape: f32[4,3,512], index: 5, kind: output, shape index: {}]  }
   0x1   :  { %v1100_v0 = vld [vmem:[%s1629_s1 + $0x64] ss:$16 sps:$4 sm:$0xff]   ;;  %160 = vmatprep.mubr.bf16.mxu0 %v1260_v1  ;;  %201 = vmatprep.mubr.bf16.mxu1 %v1260_v1  ;;  %v1102_v2 = vld [vmem:[%s1629_s1 + $0x6c] ss:$16 sps:$4 sm:$0xff]   ;;  %v1104_v3 = vld [vmem:[%s1629_s1 + $0x60] ss:$16 sps:$4 sm:$0xff]  }
   0x2   :  { %1099 = vset.pattern.permute.xlu0 %v1260_v1  ;;  %136 = vmatprep.subr.bf16.mxu0 %v1100_v0  ;;  %v1105_v4 = vld [vmem:[%s1629_s1 + $0x68] ss:$16 sps:$4 sm:$0xff]   ;;  %v1106_v5 = vld [vmem:[%s1629_s1 + $0x44] ss:$16 sps:$4 sm:$0xff]   ;;  %v1108_v6 = vld [vmem:[%s1629_s1 + $0x4c] ss:$16 sps:$4 sm:$0xff]  }
   0x3   :  { %177 = vmatprep.subr.bf16.mxu1 %v1102_v2  ;;  %137 = vmatpush1.bf16.msra.mxu0 %v1104_v3  ;;  %v1110_v7 = vld [vmem:[%s1629_s1 + $0x40] ss:$16 sps:$4 sm:$0xff]   ;;  %v1111_v8 = vld [vmem:[%s1629_s1 + $0x48] ss:$16 sps:$4 sm:$0xff]   ;;  %v1112_v9 = vld [vmem:[%s1629_s1 + $0x24] ss:$16 sps:$4 sm:$0xff]  }
   0x4   :  { %178 = vmatpush1.bf16.msra.mxu1 %v1105_v4  ;;  %138 = vmatprep.subr.bf16.mxu0 %v1106_v5  ;;  %v1114_v10 = vld [vmem:[%s1629_s1 + $0x2c] ss:$16 sps:$4 sm:$0xff]   ;;  %v1116_v11 = vld [vmem:[%s1629_s1 + $0x20] ss:$16 sps:$4 sm:$0xff]   ;;  %v1117_v12 = vld [vmem:[%s1629_s1 + $0x28] ss:$16 sps:$4 sm:$0xff]  }
   0x5   :  { %179 = vmatprep.subr.bf16.mxu1 %v1108_v6  ;;  %v1118_v13 = vld [vmem:[%s1629_s1 + $0x4] ss:$16 sps:$4 sm:$0xff]   ;;  %v1120_v14 = vld [vmem:[%s1629_s1 + $0xc] ss:$16 sps:$4 sm:$0xff]   ;;  %v1122_v15 = vld [vmem:[%s1629_s1] ss:$16 sps:$4 sm:$0xff]  }
   0x6   :  { %v1123_v16 = vld [vmem:[%s1629_s1 + $0x8] ss:$16 sps:$4 sm:$0xff]   ;;  %v1126_v17 = vld [vmem:[%s1629_s1 + $0xe4] ss:$16 sps:$4 sm:$0xff]   ;;  %v1129_v18 = vld [vmem:[%s1629_s1 + $0xec] ss:$16 sps:$4 sm:$0xff]  }
   0x7   :  { %139 = vmatpush1.bf16.msra.mxu0 %v1110_v7  ;;  %v22_v19 = vld [vmem:[%s1632_s0] sm:$0x3]  ;;  %v1127_v21 = vld [vmem:[%s1629_s1 + $0xe8] ss:$16 sps:$4 sm:$0xff]   ;;  %v1132_v22 = vld [vmem:[%s1629_s1 + $0xc4] ss:$16 sps:$4 sm:$0xff]  }
   0x8   :  { %180 = vmatpush1.bf16.msra.mxu1 %v1111_v8  ;;  %140 = vmatprep.subr.bf16.mxu0 %v1112_v9  ;;  %v1124_v20 = vld [vmem:[%s1629_s1 + $0xe0] ss:$16 sps:$4 sm:$0xff]   ;;  %v1135_v23 = vld [vmem:[%s1629_s1 + $0xcc] ss:$16 sps:$4 sm:$0xff]   ;;  %v1133_v25 = vld [vmem:[%s1629_s1 + $0xc8] ss:$16 sps:$4 sm:$0xff]  }
   0x9   :  { %181 = vmatprep.subr.bf16.mxu1 %v1114_v10  ;;  %v1130_v24 = vld [vmem:[%s1629_s1 + $0xc0] ss:$16 sps:$4 sm:$0xff]   ;;  %v1138_v26 = vld [vmem:[%s1629_s1 + $0xa4] ss:$16 sps:$4 sm:$0xff]   ;;  %v1141_v27 = vld [vmem:[%s1629_s1 + $0xac] ss:$16 sps:$4 sm:$0xff]  }
   0xa   :  { %v1136_v28 = vld [vmem:[%s1629_s1 + $0xa0] ss:$16 sps:$4 sm:$0xff]   ;;  %v1139_v29 = vld [vmem:[%s1629_s1 + $0xa8] ss:$16 sps:$4 sm:$0xff]   ;;  %v1144_v30 = vld [vmem:[%s1629_s1 + $0x84] ss:$16 sps:$4 sm:$0xff]  }
   0xb   :  { %141 = vmatpush1.bf16.msra.mxu0 %v1116_v11  ;;  %v1147_v31 = vld [vmem:[%s1629_s1 + $0x8c] ss:$16 sps:$4 sm:$0xff]   ;;  %v1142_v32 = vld [vmem:[%s1629_s1 + $0x80] ss:$16 sps:$4 sm:$0xff]   ;;  %v1145_v33 = vld [vmem:[%s1629_s1 + $0x88] ss:$16 sps:$4 sm:$0xff]  }
   0xc   :  { %182 = vmatpush1.bf16.msra.mxu1 %v1117_v12  ;;  %142 = vmatprep.subr.bf16.mxu0 %v1118_v13  ;;  %v1150_v34 = vld [vmem:[%s1629_s1 + $0x164] ss:$16 sps:$4 sm:$0xff]   ;;  %v1153_v35 = vld [vmem:[%s1629_s1 + $0x16c] ss:$16 sps:$4 sm:$0xff]   ;;  %v987_v36 = vld [vmem:[%s1632_s0 + $0x2] sm:$0x3] }
   0xd   :  { %183 = vmatprep.subr.bf16.mxu1 %v1120_v14  ;;  %v1148_v37 = vld [vmem:[%s1629_s1 + $0x160] ss:$16 sps:$4 sm:$0xff]   ;;  %v1151_v38 = vld [vmem:[%s1629_s1 + $0x168] ss:$16 sps:$4 sm:$0xff]   ;;  %v1156_v39 = vld [vmem:[%s1629_s1 + $0x144] ss:$16 sps:$4 sm:$0xff]  }
   0xe   :  { %v1159_v40 = vld [vmem:[%s1629_s1 + $0x14c] ss:$16 sps:$4 sm:$0xff]   ;;  %v1154_v41 = vld [vmem:[%s1629_s1 + $0x140] ss:$16 sps:$4 sm:$0xff]   ;;  %v1157_v42 = vld [vmem:[%s1629_s1 + $0x148] ss:$16 sps:$4 sm:$0xff]  }
   0xf   :  { %143 = vmatpush1.bf16.msra.mxu0 %v1122_v15  ;;  %v1162_v43 = vld [vmem:[%s1629_s1 + $0x124] ss:$16 sps:$4 sm:$0xff]   ;;  %v1165_v44 = vld [vmem:[%s1629_s1 + $0x12c] ss:$16 sps:$4 sm:$0xff]   ;;  %v1160_v45 = vld [vmem:[%s1629_s1 + $0x120] ss:$16 sps:$4 sm:$0xff]  }
  0x10   :  { %184 = vmatpush1.bf16.msra.mxu1 %v1123_v16  ;;  %320 = vmatprep.subr.bf16.mxu0 %v1126_v17  ;;  %v1163_v46 = vld [vmem:[%s1629_s1 + $0x128] ss:$16 sps:$4 sm:$0xff]   ;;  %v1168_v47 = vld [vmem:[%s1629_s1 + $0x104] ss:$16 sps:$4 sm:$0xff]   ;;  %v1171_v48 = vld [vmem:[%s1629_s1 + $0x10c] ss:$16 sps:$4 sm:$0xff]  }
  0x11   :  { %361 = vmatprep.subr.bf16.mxu1 %v1129_v18  ;;  %v1166_v49 = vld [vmem:[%s1629_s1 + $0x100] ss:$16 sps:$4 sm:$0xff]   ;;  %v1169_v50 = vld [vmem:[%s1629_s1 + $0x108] ss:$16 sps:$4 sm:$0xff]   ;;  %v1174_v52 = vld [vmem:[%s1629_s1 + $0x1e4] ss:$16 sps:$4 sm:$0xff]  }
  0x12   :  { %985 = vmatmul.mubr.msk.bf16.vlgmr.msra.gmra.mxu0 %vm124_vm0, %v22_v19  ;;  %v21_v51 = vld [vmem:[%s1633_s2] sm:$0x7]  ;;  %v1177_v53 = vld [vmem:[%s1629_s1 + $0x1ec] ss:$16 sps:$4 sm:$0xff]   ;;  %v1022_v54 = vld [vmem:[%s1632_s0 + $0x4] sm:$0x3] }
  0x13   :  { %986 = vmatmul.mubr.msk.bf16.vlgmr.msra.gmra.mxu1 %vm124_vm0, %v22_v19  ;;  %321 = vmatpush1.bf16.msra.mxu0 %v1124_v20  ;;  %v1172_v55 = vld [vmem:[%s1629_s1 + $0x1e0] ss:$16 sps:$4 sm:$0xff]   ;;  %v1175_v56 = vld [vmem:[%s1629_s1 + $0x1e8] ss:$16 sps:$4 sm:$0xff]   ;;  %v1180_v57 = vld [vmem:[%s1629_s1 + $0x1c4] ss:$16 sps:$4 sm:$0xff]  }
  0x14   :  { %362 = vmatpush1.bf16.msra.mxu1 %v1127_v21  ;;  %322 = vmatprep.subr.bf16.mxu0 %v1132_v22  ;;  %v1183_v58 = vld [vmem:[%s1629_s1 + $0x1cc] ss:$16 sps:$4 sm:$0xff]   ;;  %v1178_v59 = vld [vmem:[%s1629_s1 + $0x1c0] ss:$16 sps:$4 sm:$0xff]   ;;  %v1181_v60 = vld [vmem:[%s1629_s1 + $0x1c8] ss:$16 sps:$4 sm:$0xff]  }
  0x15   :  { %363 = vmatprep.subr.bf16.mxu1 %v1135_v23  ;;  %344 = vmatprep.mubr.bf16.mxu0 %v1260_v1  ;;  %v1186_v61 = vld [vmem:[%s1629_s1 + $0x1a4] ss:$16 sps:$4 sm:$0xff]   ;;  %v1189_v62 = vld [vmem:[%s1629_s1 + $0x1ac] ss:$16 sps:$4 sm:$0xff]   ;;  %v1184_v63 = vld [vmem:[%s1629_s1 + $0x1a0] ss:$16 sps:$4 sm:$0xff]  }
  0x16   :  { %385 = vmatprep.mubr.bf16.mxu1 %v1260_v1  ;;  %41 = vperm.xlu0 %1099, %v21_v51   ;;  %v1187_v0 = vld [vmem:[%s1629_s1 + $0x1a8] ss:$16 sps:$4 sm:$0xff]   ;;  %v1192_v2 = vld [vmem:[%s1629_s1 + $0x184] ss:$16 sps:$4 sm:$0xff]   ;;  %v1190_v3 = vld [vmem:[%s1629_s1 + $0x180] ss:$16 sps:$4 sm:$0xff]  }
  0x17   :  { %323 = vmatpush1.bf16.msra.mxu0 %v1130_v24  ;;  %v1193_v4 = vld [vmem:[%s1629_s1 + $0x188] ss:$16 sps:$4 sm:$0xff]   ;;  %v1057_v5 = vld [vmem:[%s1632_s0 + $0x6] sm:$0x3] }
  0x18   :  { %364 = vmatpush1.bf16.msra.mxu1 %v1133_v25  ;;  %324 = vmatprep.subr.bf16.mxu0 %v1138_v26 }
  0x19   :  { %365 = vmatprep.subr.bf16.mxu1 %v1141_v27 }
  0x1b   :  { %325 = vmatpush1.bf16.msra.mxu0 %v1136_v28 }
  0x1c   :  { %366 = vmatpush1.bf16.msra.mxu1 %v1139_v29  ;;  %326 = vmatprep.subr.bf16.mxu0 %v1144_v30 }
  0x1d   :  { %367 = vmatprep.subr.bf16.mxu1 %v1147_v31 }
  0x1f   :  { %327 = vmatpush1.bf16.msra.mxu0 %v1142_v32 }
  0x20   :  { %368 = vmatpush1.bf16.msra.mxu1 %v1145_v33  ;;  %504 = vmatprep.subr.bf16.mxu0 %v1150_v34 }
  0x21   :  { %545 = vmatprep.subr.bf16.mxu1 %v1153_v35 }
  0x22   :  { %1020 = vmatmul.mubr.msk.bf16.vlgmr.msra.gmra.mxu0 %vm124_vm0, %v987_v36 }
  0x23   :  { %1021 = vmatmul.mubr.msk.bf16.vlgmr.msra.gmra.mxu1 %vm124_vm0, %v987_v36  ;;  %505 = vmatpush1.bf16.msra.mxu0 %v1148_v37 }
  0x24   :  { %546 = vmatpush1.bf16.msra.mxu1 %v1151_v38  ;;  %506 = vmatprep.subr.bf16.mxu0 %v1156_v39 }
  0x25   :  { %547 = vmatprep.subr.bf16.mxu1 %v1159_v40  ;;  %528 = vmatprep.mubr.bf16.mxu0 %v1260_v1 }
  0x26   :  { %569 = vmatprep.mubr.bf16.mxu1 %v1260_v1 }
  0x27   :  { %507 = vmatpush1.bf16.msra.mxu0 %v1154_v41 }
  0x28   :  { %548 = vmatpush1.bf16.msra.mxu1 %v1157_v42  ;;  %508 = vmatprep.subr.bf16.mxu0 %v1162_v43 }
  0x29   :  { %549 = vmatprep.subr.bf16.mxu1 %v1165_v44 }
  0x2b   :  { %509 = vmatpush1.bf16.msra.mxu0 %v1160_v45 }
  0x2c   :  { %550 = vmatpush1.bf16.msra.mxu1 %v1163_v46  ;;  %510 = vmatprep.subr.bf16.mxu0 %v1168_v47 }
  0x2d   :  { %551 = vmatprep.subr.bf16.mxu1 %v1171_v48 }
  0x2f   :  { %511 = vmatpush1.bf16.msra.mxu0 %v1166_v49 }
  0x30   :  { %552 = vmatpush1.bf16.msra.mxu1 %v1169_v50  ;;  %688 = vmatprep.subr.bf16.mxu0 %v1174_v52 }
  0x31   :  { %729 = vmatprep.subr.bf16.mxu1 %v1177_v53 }
  0x32   :  { %1055 = vmatmul.mubr.msk.bf16.vlgmr.msra.gmra.mxu0 %vm124_vm0, %v1022_v54 }
  0x33   :  { %1056 = vmatmul.mubr.msk.bf16.vlgmr.msra.gmra.mxu1 %vm124_vm0, %v1022_v54  ;;  %689 = vmatpush1.bf16.msra.mxu0 %v1172_v55 }
  0x34   :  { %730 = vmatpush1.bf16.msra.mxu1 %v1175_v56  ;;  %690 = vmatprep.subr.bf16.mxu0 %v1180_v57 }
  0x35   :  { %731 = vmatprep.subr.bf16.mxu1 %v1183_v58  ;;  %712 = vmatprep.mubr.bf16.mxu0 %v1260_v1 }
  0x36   :  { %753 = vmatprep.mubr.bf16.mxu1 %v1260_v1  ;;  %v1195_v1 = vld [vmem:[%s1629_s1 + $0x18c] ss:$16 sps:$4 sm:$0xff]  }
  0x37   :  { %691 = vmatpush1.bf16.msra.mxu0 %v1178_v59 }
  0x38   :  { %732 = vmatpush1.bf16.msra.mxu1 %v1181_v60  ;;  %692 = vmatprep.subr.bf16.mxu0 %v1186_v61 }
  0x39   :  { %733 = vmatprep.subr.bf16.mxu1 %v1189_v62 }
  0x3b   :  { %693 = vmatpush1.bf16.msra.mxu0 %v1184_v63 }
  0x3c   :  { %734 = vmatpush1.bf16.msra.mxu1 %v1187_v0  ;;  %694 = vmatprep.subr.bf16.mxu0 %v1192_v2 }
  0x3d   :  { %735 = vmatprep.subr.bf16.mxu1 %v1195_v1 }
  0x3f   :  { %695 = vmatpush1.bf16.msra.mxu0 %v1190_v3 }
  0x40   :  { %736 = vmatpush1.bf16.msra.mxu1 %v1193_v4 }
  0x42   :  { %1090 = vmatmul.mubr.msk.bf16.vlgmr.msra.gmra.mxu0 %vm124_vm0, %v1057_v5 }
  0x43   :  { %1091 = vmatmul.mubr.msk.bf16.vlgmr.msra.gmra.mxu1 %vm124_vm0, %v1057_v5 }
  0x91   :  { %v1515_v6 = vpop.permute.xlu0 %41 }
  0xd2   :  { %v162_v7 = vpop.f32.mrf.mxu0 }
  0xd3   :  { %v203_v8 = vpop.f32.mrf.mxu1  ;;  %v1518_v9 = vadd.f32 %v162_v7, %v1515_v6 }
  0xd4   :  { %v1521_v10 = vadd.f32 %v203_v8, %v1515_v6  ;;  %v164_v11 = vpop.f32.mrf.mxu0 }
  0xd5   :  { %v205_v12 = vpop.f32.mrf.mxu1  ;;  %v762_v13 = vand.u32 2147483647, %v1518_v9  ;;  %v1526_v15 = vadd.f32 %v164_v11, %v1515_v6  ;;  %vm778_vm1 = vcmp.ge.f32.partialorder %v1518_v9, 0.0 }
  0xd6   :  { %v764_v14 = vand.u32 2147483647, %v1521_v10  ;;  %v1529_v16 = vadd.f32 %v205_v12, %v1515_v6  ;;  %v166_v17 = vpop.f32.mrf.mxu0  ;;  %vm780_vm2 = vcmp.ge.f32.partialorder %v1521_v10, 0.0 }
  0xd7   :  { %v207_v18 = vpop.f32.mrf.mxu1  ;;  %v766_v19 = vsub.f32 0.0, %v762_v13  ;;  %v763_v21 = vand.u32 2147483647, %v1526_v15  ;;  %vm779_vm3 = vcmp.ge.f32.partialorder %v1526_v15, 0.0 }
  0xd8   :  { %v768_v20 = vsub.f32 0.0, %v764_v14  ;;  %v765_v22 = vand.u32 2147483647, %v1529_v16  ;;  %v167_v23 = vpop.f32.mrf.mxu0  ;;  %vm781_vm4 = vcmp.ge.f32.partialorder %v1529_v16, 0.0 }
  0xd9   :  { %v208_v24 = vpop.f32.mrf.mxu1  ;;  %v770_v25 = vmul.f32 1.442695, %v766_v19  ;;  %v767_v27 = vsub.f32 0.0, %v763_v21 }
  0xda   :  { %v774_v26 = vmul.f32 1.442695, %v768_v20  ;;  %v769_v28 = vsub.f32 0.0, %v765_v22 }
  0xdb   :  { %1196 = vpow2.f32 %v770_v25  ;;  %v772_v29 = vmul.f32 1.442695, %v767_v27 }
  0xdc   :  { %1198 = vpow2.f32 %v774_v26  ;;  %v776_v30 = vmul.f32 1.442695, %v769_v28 }
  0xdd   :  { %1200 = vpow2.f32 %v772_v29 }
  0xde   :  { %1202 = vpow2.f32 %v776_v30 }
  0xe2   :  { %v346_v31 = vpop.f32.mrf.mxu0 }
  0xe3   :  { %v387_v32 = vpop.f32.mrf.mxu1  ;;  %v1534_v33 = vadd.f32 %v346_v31, %v1515_v6 }
  0xe4   :  { %v1537_v34 = vadd.f32 %v387_v32, %v1515_v6  ;;  %v348_v35 = vpop.f32.mrf.mxu0 }
  0xe5   :  { %v389_v36 = vpop.f32.mrf.mxu1  ;;  %v812_v37 = vand.u32 2147483647, %v1534_v33  ;;  %v1542_v39 = vadd.f32 %v348_v35, %v1515_v6  ;;  %vm828_vm5 = vcmp.ge.f32.partialorder %v1534_v33, 0.0 }
  0xe6   :  { %v814_v38 = vand.u32 2147483647, %v1537_v34  ;;  %v1545_v40 = vadd.f32 %v389_v36, %v1515_v6  ;;  %v350_v41 = vpop.f32.mrf.mxu0  ;;  %vm830_vm6 = vcmp.ge.f32.partialorder %v1537_v34, 0.0 }
  0xe7   :  { %v391_v42 = vpop.f32.mrf.mxu1  ;;  %v816_v43 = vsub.f32 0.0, %v812_v37  ;;  %v813_v46 = vand.u32 2147483647, %v1542_v39  ;;  %vm829_vm7 = vcmp.ge.f32.partialorder %v1542_v39, 0.0 }
  0xe8   :  { %v1197_v44 = vpop.eup %1196  ;;  %v818_v45 = vsub.f32 0.0, %v814_v38  ;;  %v815_v47 = vand.u32 2147483647, %v1545_v40  ;;  %v351_v48 = vpop.f32.mrf.mxu0  ;;  %vm831_vm8 = vcmp.ge.f32.partialorder %v1545_v40, 0.0 }
  0xe9   :  { %v392_v49 = vpop.f32.mrf.mxu1  ;;  %v1199_v50 = vpop.eup %1198  ;;  %v782_v51 = vadd.f32 1.0, %v1197_v44  ;;  %v820_v52 = vmul.f32 1.442695, %v816_v43  ;;  %v817_v54 = vsub.f32 0.0, %v813_v46 }
  0xea   :  { %v784_v53 = vadd.f32 1.0, %v1199_v50  ;;  %v819_v55 = vsub.f32 0.0, %v815_v47  ;;  %v1201_v56 = vpop.eup %1200  ;;  %v824_v59 = vmul.f32 1.442695, %v818_v45 }
  0xeb   :  { %1204 = vrcp.f32 %v782_v51  ;;  %v1203_v57 = vpop.eup %1202  ;;  %v783_v58 = vadd.f32 1.0, %v1201_v56  ;;  %v822_v61 = vmul.f32 1.442695, %v817_v54 }
  0xec   :  { %1206 = vrcp.f32 %v784_v53  ;;  %v785_v60 = vadd.f32 1.0, %v1203_v57  ;;  %v826_v62 = vmul.f32 1.442695, %v819_v55 }
  0xed   :  { %1208 = vpow2.f32 %v820_v52 }
  0xee   :  { %1210 = vrcp.f32 %v783_v58 }
  0xef   :  { %1212 = vrcp.f32 %v785_v60 }
  0xf0   :  { %1214 = vpow2.f32 %v824_v59 }
  0xf1   :  { %1216 = vpow2.f32 %v822_v61 }
  0xf2   :  { %1218 = vpow2.f32 %v826_v62  ;;  %v530_v63 = vpop.f32.mrf.mxu0 }
  0xf3   :  { %v571_v0 = vpop.f32.mrf.mxu1  ;;  %v1550_v2 = vadd.f32 %v530_v63, %v1515_v6 }
  0xf4   :  { %v1553_v1 = vadd.f32 %v571_v0, %v1515_v6  ;;  %v532_v3 = vpop.f32.mrf.mxu0 }
  0xf5   :  { %v573_v4 = vpop.f32.mrf.mxu1  ;;  %v863_v5 = vand.u32 2147483647, %v1550_v2  ;;  %v1558_v8 = vadd.f32 %v532_v3, %v1515_v6  ;;  %vm879_vm9 = vcmp.ge.f32.partialorder %v1550_v2, 0.0 }
  0xf6   :  { %v865_v7 = vand.u32 2147483647, %v1553_v1  ;;  %v1561_v11 = vadd.f32 %v573_v4, %v1515_v6  ;;  %v534_v12 = vpop.f32.mrf.mxu0  ;;  %vm881_vm10 = vcmp.ge.f32.partialorder %v1553_v1, 0.0 }
  0xf7   :  { %v575_v13 = vpop.f32.mrf.mxu1  ;;  %v867_v14 = vsub.f32 0.0, %v863_v5  ;;  %v864_v19 = vand.u32 2147483647, %v1558_v8  ;;  %vm880_vm11 = vcmp.ge.f32.partialorder %v1558_v8, 0.0 }
  0xf8   :  { %v869_v17 = vsub.f32 0.0, %v865_v7  ;;  %v1205_v18 = vpop.eup %1204  ;;  %v866_v20 = vand.u32 2147483647, %v1561_v11  ;;  %v535_v21 = vpop.f32.mrf.mxu0  ;;  %vm882_vm12 = vcmp.ge.f32.partialorder %v1561_v11, 0.0 }
  0xf9   :  { %v576_v22 = vpop.f32.mrf.mxu1  ;;  %v1207_v23 = vpop.eup %1206  ;;  %v794_v24 = vmul.f32 %v1205_v18, %v1197_v44  ;;  %v871_v25 = vmul.f32 1.442695, %v867_v14  ;;  %v868_v29 = vsub.f32 0.0, %v864_v19 }
  0xfa   :  { %v875_v26 = vmul.f32 1.442695, %v869_v17  ;;  %v1565_v27 = vpop.eup %1208  ;;  %v796_v28 = vmul.f32 %v1207_v23, %v1199_v50  ;;  %v870_v30 = vsub.f32 0.0, %v866_v20 }
  0xfb   :  { %v1211_v31 = vpop.eup %1210  ;;  %v832_v32 = vadd.f32 1.0, %v1565_v27  ;;  %1220 = vpow2.f32 %v871_v25  ;;  %v873_v37 = vmul.f32 1.442695, %v868_v29  ;;  %v798_v41 = vsel %vm778_vm1, %v1205_v18, %v794_v24 }
  0xfc   :  { %v1213_v35 = vpop.eup %1212  ;;  %v795_v36 = vmul.f32 %v1211_v31, %v1201_v56  ;;  %1222 = vpow2.f32 %v875_v26  ;;  %v877_v42 = vmul.f32 1.442695, %v870_v30  ;;  %v800_v44 = vsel %vm780_vm2, %v1207_v23, %v796_v28 }
  0xfd   :  { %v1215_v38 = vpop.eup %1214  ;;  %v797_v9 = vmul.f32 %v1213_v35, %v1203_v57  ;;  %1224 = vrcp.f32 %v832_v32 }
  0xfe   :  { %v1217_v43 = vpop.eup %1216  ;;  %v799_v10 = vsel %vm779_vm3, %v1211_v31, %v795_v36  ;;  %v834_v45 = vadd.f32 1.0, %v1215_v38  ;;  %1226 = vpow2.f32 %v873_v37 }
  0xff   :  { %v1219_v46 = vpop.eup %1218  ;;  %v806_v47 = vcombine.low %v798_v41, %v799_v10  ;;  %v801_v48 = vsel %vm781_vm4, %v1213_v35, %v797_v9  ;;  %v833_v49 = vadd.f32 1.0, %v1217_v43  ;;  %1228 = vpow2.f32 %v877_v42 }
 0x100   :  { %v807_v50 = vcombine.low %v800_v44, %v801_v48  ;;  %1230 = vrcp.f32 %v834_v45  ;;  %v835_v51 = vadd.f32 1.0, %v1219_v46 }
 0x101   :  { %810 = vst [vmem:[%s1634_s5] sm:$0x77] %v806_v47  ;;  %1232 = vrcp.f32 %v833_v49 }
 0x102   :  { %811 = vst [vmem:[%s1634_s5 + $0x8] sm:$0x77] %v807_v50  ;;  %1234 = vrcp.f32 %v835_v51  ;;  %v714_v15 = vpop.f32.mrf.mxu0 }
 0x103   :  { %v755_v52 = vpop.f32.mrf.mxu1  ;;  %v1583_v16 = vadd.f32 %v714_v15, %v1515_v6 }
 0x104   :  { %v1586_v53 = vadd.f32 %v755_v52, %v1515_v6  ;;  %v716_v54 = vpop.f32.mrf.mxu0 }
 0x105   :  { %v757_v55 = vpop.f32.mrf.mxu1  ;;  %v914_v56 = vand.u32 2147483647, %v1583_v16  ;;  %v1591_v58 = vadd.f32 %v716_v54, %v1515_v6  ;;  %vm930_vm13 = vcmp.ge.f32.partialorder %v1583_v16, 0.0 }
 0x106   :  { %v916_v57 = vand.u32 2147483647, %v1586_v53  ;;  %v1594_v59 = vadd.f32 %v757_v55, %v1515_v6  ;;  %v718_v60 = vpop.f32.mrf.mxu0  ;;  %vm932_vm15 = vcmp.ge.f32.partialorder %v1586_v53, 0.0 }
 0x107   :  { %v759_v61 = vpop.f32.mrf.mxu1  ;;  %v918_v62 = vsub.f32 0.0, %v914_v56  ;;  %v915_v3 = vand.u32 2147483647, %v1591_v58  ;;  %vm931_vm14 = vcmp.ge.f32.partialorder %v1591_v58, 0.0 }
 0x108   :  { %v1221_v63 = vpop.eup %1220  ;;  %v920_v0 = vsub.f32 0.0, %v916_v57  ;;  %v917_v4 = vand.u32 2147483647, %v1594_v59  ;;  %v719_v5 = vpop.f32.mrf.mxu0  ;;  %vm933_vm0 = vcmp.ge.f32.partialorder %v1594_v59, 0.0 }
 0x109   :  { %v760_v7 = vpop.f32.mrf.mxu1  ;;  %v1223_v12 = vpop.eup %1222  ;;  %v883_v13 = vadd.f32 1.0, %v1221_v63  ;;  %v922_v14 = vmul.f32 1.442695, %v918_v62  ;;  %v919_v19 = vsub.f32 0.0, %v915_v3 }
 0x10a   :  { %v1225_v17 = vpop.eup %1224  ;;  %v885_v18 = vadd.f32 1.0, %v1223_v12  ;;  %v921_v20 = vsub.f32 0.0, %v917_v4  ;;  %v926_v23 = vmul.f32 1.442695, %v920_v0 }
 0x10b   :  { %v1227_v6 = vpop.eup %1226  ;;  %1236 = vrcp.f32 %v883_v13  ;;  %v844_v25 = vmul.f32 %v1225_v17, %v1565_v27  ;;  %v924_v28 = vmul.f32 1.442695, %v919_v19 }
 0x10c   :  { %v1229_v21 = vpop.eup %1228  ;;  %1238 = vrcp.f32 %v885_v18  ;;  %v884_v22 = vadd.f32 1.0, %v1227_v6  ;;  %v928_v31 = vmul.f32 1.442695, %v921_v20 }
 0x10d   :  { %v1231_v24 = vpop.eup %1230  ;;  %v886_v26 = vadd.f32 1.0, %v1229_v21  ;;  %1240 = vpow2.f32 %v922_v14  ;;  %v848_v37 = vsel %vm828_vm5, %v1225_v17, %v844_v25 }
 0x10e   :  { %v1233_v29 = vpop.eup %1232  ;;  %v846_v30 = vmul.f32 %v1231_v24, %v1215_v38  ;;  %1242 = vrcp.f32 %v884_v22 }
 0x10f   :  { %v1235_v32 = vpop.eup %1234  ;;  %v845_v35 = vmul.f32 %v1233_v29, %v1217_v43  ;;  %1244 = vrcp.f32 %v886_v26 }
 0x110   :  { %v847_v36 = vmul.f32 %v1235_v32, %v1219_v46  ;;  %1246 = vpow2.f32 %v926_v23  ;;  %v850_v41 = vsel %vm830_vm6, %v1231_v24, %v846_v30 }
 0x111   :  { %v849_v27 = vsel %vm829_vm7, %v1233_v29, %v845_v35  ;;  %1248 = vpow2.f32 %v924_v28 }
 0x112   :  { %v856_v38 = vcombine.low %v848_v37, %v849_v27  ;;  %v851_v9 = vsel %vm831_vm8, %v1235_v32, %v847_v36  ;;  %1250 = vpow2.f32 %v928_v31 }
 0x113   :  { %v857_v42 = vcombine.low %v850_v41, %v851_v9 }
 0x114   :  { %1092 = vst [vmem:[%s1634_s5 + $0x10] sm:$0x77] %v856_v38 }
 0x115   :  { %1093 = vst [vmem:[%s1634_s5 + $0x18] sm:$0x77] %v857_v42 }
 0x118   :  { %v1237_v33 = vpop.eup %1236 }
 0x119   :  { %v1239_v34 = vpop.eup %1238  ;;  %v895_v43 = vmul.f32 %v1237_v33, %v1221_v63 }
 0x11a   :  { %v1241_v39 = vpop.eup %1240  ;;  %v897_v40 = vmul.f32 %v1239_v34, %v1223_v12 }
 0x11b   :  { %v1243_v44 = vpop.eup %1242  ;;  %v934_v10 = vadd.f32 1.0, %v1241_v39  ;;  %v899_v50 = vsel %vm879_vm9, %v1237_v33, %v895_v43 }
 0x11c   :  { %v1245_v45 = vpop.eup %1244  ;;  %v896_v46 = vmul.f32 %v1243_v44, %v1227_v6  ;;  %v901_v54 = vsel %vm881_vm10, %v1239_v34, %v897_v40 }
 0x11d   :  { %v1247_v47 = vpop.eup %1246  ;;  %v898_v48 = vmul.f32 %v1245_v45, %v1229_v21  ;;  %1252 = vrcp.f32 %v934_v10 }
 0x11e   :  { %v1249_v49 = vpop.eup %1248  ;;  %v900_v51 = vsel %vm880_vm11, %v1243_v44, %v896_v46  ;;  %v936_v15 = vadd.f32 1.0, %v1247_v47 }
 0x11f   :  { %v1251_v52 = vpop.eup %1250  ;;  %v907_v55 = vcombine.low %v899_v50, %v900_v51  ;;  %v902_v56 = vsel %vm882_vm12, %v1245_v45, %v898_v48  ;;  %v935_v57 = vadd.f32 1.0, %v1249_v49 }
 0x120   :  { %v908_v2 = vcombine.low %v901_v54, %v902_v56  ;;  %1254 = vrcp.f32 %v936_v15  ;;  %v937_v60 = vadd.f32 1.0, %v1251_v52 }
 0x121   :  { %1094 = vst [vmem:[%s1634_s5 + $0x20] sm:$0x77] %v907_v55  ;;  %1256 = vrcp.f32 %v935_v57 }
 0x122   :  { %1095 = vst [vmem:[%s1634_s5 + $0x28] sm:$0x77] %v908_v2  ;;  %1258 = vrcp.f32 %v937_v60 }
 0x12a   :  { %v1253_v1 = vpop.eup %1252 }
 0x12b   :  { %v946_v11 = vmul.f32 %v1253_v1, %v1241_v39 }
 0x12d   :  { %v1255_v8 = vpop.eup %1254  ;;  %v950_v4 = vsel %vm930_vm13, %v1253_v1, %v946_v11 }
 0x12e   :  { %v1257_v61 = vpop.eup %1256  ;;  %v948_v62 = vmul.f32 %v1255_v8, %v1247_v47 }
 0x12f   :  { %v1259_v63 = vpop.eup %1258  ;;  %v947_v0 = vmul.f32 %v1257_v61, %v1249_v49 }
 0x130   :  { %v949_v3 = vmul.f32 %v1259_v63, %v1251_v52  ;;  %v952_v7 = vsel %vm932_vm15, %v1255_v8, %v948_v62 }
 0x131   :  { %v951_v5 = vsel %vm931_vm14, %v1257_v61, %v947_v0 }
 0x132   :  { %v958_v12 = vcombine.low %v950_v4, %v951_v5  ;;  %v953_v13 = vsel %vm933_vm0, %v1259_v63, %v949_v3 }
 0x133   :  { %v959_v14 = vcombine.low %v952_v7, %v953_v13 }
 0x134   :  { %1096 = vst [vmem:[%s1634_s5 + $0x30] sm:$0x77] %v958_v12 }
 0x135   :  { %1097 = vst [vmem:[%s1634_s5 + $0x38] sm:$0x77] %v959_v14 }

</bundles_post_ra>
